<compile_context>
chip_gen: v6e
topology: v6e:2x2x1
jax: 0.10.0
libtpu: 0.0.40
codegen_flags: <defaults>
</compile_context>

<pallas_src>
import functools

import jax
import jax.numpy as jnp
from jax.experimental import pallas as pl
from jax.experimental.pallas import tpu as pltpu

BN_EPS = 1e-5


def _round_up(v, m):
    return ((v + m - 1) // m) * m


def _pick_vmem_limit_bytes():
    """Generation-aware VMEM limit: ~3/4 of physical, capped below 128 MiB parts."""
    cap = 128 << 20
    try:
        info = pltpu.get_tpu_info()
        cap = int(getattr(info, "vmem_capacity_bytes", cap))
    except Exception:
        pass
    return min(cap * 3 // 4, 100 << 20)   # v7x(64MiB)->48MiB, v5e/v6e(128MiB)->96MiB


def tnet_kernel(x_ref,
                w1, b1, g1, be1,
                w2, b2, g2, be2,
                w3, b3, g3, be3,
                w4_hbm, b4, g4, be4,
                w5_hbm, b5, g5, be5,
                w6, b6,
                out_ref,
                s1, q1, s2, q2, s3, q3, mx_scr,
                *, bs, n_pts, tile_n, conv_dtype):
    f32 = jnp.float32
    phase = pl.program_id(0)
    b = pl.program_id(1)
    j = pl.program_id(2)
    n_tiles = pl.num_programs(2)
    inv_count = 1.0 / float(bs * n_pts)

    def valid_row():
        # (1, tile_n) 1/0 mask over point rows of this tile (lane-major, feeds MXU).
        idx = j * tile_n + jax.lax.broadcasted_iota(jnp.int32, (1, tile_n), 1)
        return (idx < n_pts).astype(f32)

    def valid_col():
        # (tile_n, 1) 1/0 mask (sublane-major, broadcast over channels).
        idx = j * tile_n + jax.lax.broadcasted_iota(jnp.int32, (tile_n, 1), 0)
        return (idx < n_pts).astype(f32)

    @pl.when((phase == 0) & (b == 0) & (j == 0))
    def _init():
        for r in (s1, q1, s2, q2, s3, q3, mx_scr):
            # mx init to 0 is correct: h3 = relu(...) >= 0, so per-batch max >= 0.
            r[...] = jnp.zeros(r.shape, r.dtype)

    def bn_affine(s_ref, q_ref, g_ref, be_ref):
        # Training-mode BN as y = h*scale + shift (one-pass biased variance, f32).
        mean = s_ref[...] * inv_count
        var = jnp.maximum(q_ref[...] * inv_count - mean * mean, 0.0)
        scale = jax.lax.rsqrt(var + BN_EPS) * g_ref[...]
        return scale, be_ref[...] - mean * scale

    def masked_stats(h, s_ref, q_ref):
        # MXU-based masked channel reductions: (1,tile_n) x (tile_n,C).
        # Folds the padded-row mask into the dot; padded rows contribute exactly 0.
        vt = valid_row()
        s_ref[...] += jnp.dot(vt, h, preferred_element_type=f32)
        q_ref[...] += jnp.dot(vt, h * h, preferred_element_type=f32)

    def compute_h1():
        x = x_ref[0]                                      # (tile_n, dim), conv_dtype
        return jnp.maximum(
            jnp.dot(x, w1[...], preferred_element_type=f32) + b1[...], 0.0)

    def compute_h2(h1):
        sc1, sh1 = bn_affine(s1, q1, g1, be1)
        h1n = (h1 * sc1 + sh1).astype(conv_dtype)
        return jnp.maximum(
            jnp.dot(h1n, w2[...], preferred_element_type=f32) + b2[...], 0.0)

    # ------------------ phase 0: conv1 + BN1 statistics ------------------
    @pl.when(phase == 0)
    def _phase0():
        masked_stats(compute_h1(), s1, q1)

    # --------------- phase 1: bn1 + conv2 + BN2 statistics ---------------
    @pl.when(phase == 1)
    def _phase1():
        masked_stats(compute_h2(compute_h1()), s2, q2)

    # -- phase 2: bn2 + conv3 + BN3 stats + streamed max-pool (+ FC head) --
    @pl.when(phase == 2)
    def _phase2():
        h2 = compute_h2(compute_h1())
        sc2, sh2 = bn_affine(s2, q2, g2, be2)
        h2n = (h2 * sc2 + sh2).astype(conv_dtype)
        h3 = jnp.maximum(
            jnp.dot(h2n, w3[...], preferred_element_type=f32) + b3[...], 0.0)
        masked_stats(h3, s3, q3)

        # Streamed per-batch max.  Since h3 >= 0, masking padded rows to 0 keeps
        # the max identical; update only this batch's row (dynamic leading index).
        tile_max = jnp.max(h3 * valid_col(), axis=0, keepdims=True)   # (1, 1024)
        mx_scr[b] = jnp.maximum(mx_scr[b], tile_max)

        # FC head: runs exactly once, right after the final accumulation.
        @pl.when((b == bs - 1) & (j == n_tiles - 1))
        def _head():
            sc3, sh3 = bn_affine(s3, q3, g3, be3)
            # max over points commutes with BN3's positive-slope affine
            # (requires scale3 > 0: true for the PyTorch default gamma=1).
            pooled_raw = jnp.concatenate([mx_scr[i] for i in range(bs)], axis=0)
            pooled = pooled_raw * sc3 + sh3                           # (bs, 1024)

            def bn_rows(h, g_ref, be_ref):
                m = jnp.mean(h, axis=0, keepdims=True)
                v = jnp.maximum(jnp.mean(h * h, axis=0, keepdims=True) - m * m, 0.0)
                return (h - m) * jax.lax.rsqrt(v + BN_EPS) * g_ref[...] + be_ref[...]

            def _fc(w4_v, w5_v):
                # FC weights live in HBM for the whole run; fetch them once here.
                pltpu.sync_copy(w4_hbm, w4_v)
                pltpu.sync_copy(w5_hbm, w5_v)
                f = jnp.maximum(
                    jnp.dot(pooled, w4_v[...], preferred_element_type=f32) + b4[...],
                    0.0)
                f = bn_rows(f, g4, be4)
                f = jnp.maximum(
                    jnp.dot(f, w5_v[...], preferred_element_type=f32) + b5[...], 0.0)
                f = bn_rows(f, g5, be5)
                # eye(dim).flatten() was folded into b6 by the wrapper.
                out_ref[...] = jnp.dot(f, w6[...],
                                       preferred_element_type=f32) + b6[...]

            pl.run_scoped(_fc,
                          pltpu.VMEM(w4_hbm.shape, w4_hbm.dtype),
                          pltpu.VMEM(w5_hbm.shape, w5_hbm.dtype))


def tnet_forward(x_ncl, params, dim, *, tile_n=None, conv_dtype=jnp.bfloat16):
    """x_ncl: (bs, dim, num_points) float32, PyTorch NCL convention."""
    bs, d, n = x_ncl.shape
    assert d == dim
    if tile_n is None:
        tile_n = 2048                       # big tiles: fewer ~0.35us grid steps
    tile_n = _round_up(min(tile_n, _round_up(n, 8)), 8)
    n_pad = _round_up(n, tile_n)
    n_tiles = n_pad // tile_n

    # layout: NCL -> (bs, N, C); channels in the lane dim so Conv1d(k=1) == matmul.
    x = jnp.transpose(x_ncl, (0, 2, 1)).astype(conv_dtype)
    if n_pad != n:
        x = jnp.pad(x, ((0, 0), (0, n_pad - n), (0, 0)))

    (w1, b1, g1, be1, w2, b2, g2, be2, w3, b3, g3, be3,
     w4, b4, g4, be4, w5, b5, g5, be5, w6, b6) = params
    # bf16 operands for the big conv matmuls (f32 accumulation inside the kernel).
    w1c, w2c, w3c = (w.astype(conv_dtype) for w in (w1, w2, w3))
    # Fold the identity added at the end of forward() into the linear3 bias.
    b6_eff = b6 + jnp.eye(dim, dtype=jnp.float32).reshape(1, dim * dim)

    flat_params = [w1c, b1, g1, be1, w2c, b2, g2, be2, w3c, b3, g3, be3,
                   w4, b4, g4, be4, w5, b5, g5, be5, w6, b6_eff]

    kernel = functools.partial(tnet_kernel, bs=bs, n_pts=n, tile_n=tile_n,
                               conv_dtype=conv_dtype)

    grid = (3, bs, n_tiles)                 # (phase, batch, point tile)
    x_spec = pl.BlockSpec((1, tile_n, dim), lambda p, b, j: (b, j, 0))
    # Constant index_map => small weights / BN params stay resident in VMEM;
    # the two big FC weights (w4, w5) stay in HBM and are DMA'd once in the head.
    hbm_param_idx = (12, 16)                # w4, w5 positions in flat_params
    param_specs = []
    for idx, p in enumerate(flat_params):
        if idx in hbm_param_idx:
            param_specs.append(pl.BlockSpec(memory_space=pl.ANY))
        else:
            param_specs.append(pl.BlockSpec(p.shape, lambda p_, b_, j_: (0, 0)))
    out_spec = pl.BlockSpec((bs, dim * dim), lambda p, b, j: (0, 0))

    scratch = [
        pltpu.VMEM((1, 64), jnp.float32), pltpu.VMEM((1, 64), jnp.float32),
        pltpu.VMEM((1, 128), jnp.float32), pltpu.VMEM((1, 128), jnp.float32),
        pltpu.VMEM((1, 1024), jnp.float32), pltpu.VMEM((1, 1024), jnp.float32),
        pltpu.VMEM((bs, 1, 1024), jnp.float32),   # running per-batch max
    ]

    out = pl.pallas_call(
        kernel,
        out_shape=jax.ShapeDtypeStruct((bs, dim * dim), jnp.float32),
        grid_spec=pltpu.PrefetchScalarGridSpec(
            num_scalar_prefetch=0,
            grid=grid,
            in_specs=[x_spec] + param_specs,
            out_specs=out_spec,
            scratch_shapes=scratch),
        compiler_params=pltpu.CompilerParams(
            # Phase ordering + shared-stat accumulation are order dependent.
            # TODO(synk): shard the (batch, point-tile) work across v7x's two
            # TensorCores (core_map) with per-core partial stats/maxes and a
            # tiny combine step before the FC head.
            dimension_semantics=("arbitrary", "arbitrary", "arbitrary"),
            vmem_limit_bytes=_pick_vmem_limit_bytes()),
    )(x, *flat_params)
    return out.reshape(bs, dim, dim)


def init_params(key, dim):
    """Deterministic synthetic parameters (shapes match the PyTorch module)."""
    layer_dims = [(dim, 64), (64, 128), (128, 1024),
                  (1024, 512), (512, 256), (256, dim * dim)]
    params = []
    for i, (fan_in, fan_out) in enumerate(layer_dims):
        key, kw, kb = jax.random.split(key, 3)
        bound = 1.0 / (fan_in ** 0.5)
        w = jax.random.uniform(kw, (fan_in, fan_out), jnp.float32, -bound, bound)
        b = jax.random.uniform(kb, (1, fan_out), jnp.float32, -bound, bound)
        params.extend([w, b])
        if i < 5:  # bn1..bn5 (PyTorch defaults: weight=1, bias=0)
            params.extend([jnp.ones((1, fan_out), jnp.float32),
                           jnp.zeros((1, fan_out), jnp.float32)])
    return params


def tnet_ref(x_ncl, params, dim, *, conv_bf16=False):
    """Pure-JAX reference of the PyTorch forward (training-mode BN).

    conv_bf16=True mirrors the kernel's precision choice (bf16 operands for the
    conv1-3 matmuls with f32 accumulation, all BN math in f32) so the
    comparison isolates structural errors from that precision trade-off.
    """
    bs, d, n = x_ncl.shape
    x = jnp.transpose(x_ncl, (0, 2, 1)).reshape(bs * n, d)
    (w1, b1, g1, be1, w2, b2, g2, be2, w3, b3, g3, be3,
     w4, b4, g4, be4, w5, b5, g5, be5, w6, b6) = params

    cast = (lambda a: a.astype(jnp.bfloat16)) if conv_bf16 else (lambda a: a)

    def dotf(a, b):
        return jnp.dot(a, b, preferred_element_type=jnp.float32,
                       precision=jax.lax.Precision.HIGHEST)

    def bn(h, g, b):
        m = h.mean(0, keepdims=True)
        v = ((h - m) ** 2).mean(0, keepdims=True)
        return (h - m) / jnp.sqrt(v + BN_EPS) * g + b

    h1 = jnp.maximum(dotf(cast(x), cast(w1)) + b1, 0.0)
    h1n = bn(h1, g1, be1)
    h2 = jnp.maximum(dotf(cast(h1n), cast(w2)) + b2, 0.0)
    h2n = bn(h2, g2, be2)
    h3 = jnp.maximum(dotf(cast(h2n), cast(w3)) + b3, 0.0)
    h3n = bn(h3, g3, be3)
    p = h3n.reshape(bs, n, -1).max(axis=1)
    f = bn(jnp.maximum(dotf(p, w4) + b4, 0.0), g4, be4)
    f = bn(jnp.maximum(dotf(f, w5) + b5, 0.0), g5, be5)
    f = dotf(f, w6) + b6
    return f.reshape(bs, dim, dim) + jnp.eye(dim, dtype=f.dtype)[None]


if __name__ == "__main__":
    # Small synthetic shapes (module default is num_points=10000); bs=8 keeps the
    # bs-sample BN4/BN5 statistics reasonably conditioned for the comparison.
    bs, dim, n_pts = 8, 3, 100
    key = jax.random.PRNGKey(0)
    kx, kp = jax.random.split(key)

    x = jax.random.normal(kx, (bs, dim, n_pts), dtype=jnp.float32)  # PyTorch NCL input
    params = init_params(kp, dim)

    # Optimized path: bf16 conv-matmul operands; tile_n=64 exercises multi-tile
    # streaming plus padded-row masking (100 points -> 128 padded per batch).
    out = tnet_forward(x, params, dim, tile_n=64, conv_dtype=jnp.bfloat16)
    out = jax.block_until_ready(out)
    assert out.shape == (bs, dim, dim), out.shape
    assert bool(jnp.all(jnp.isfinite(out)))
    ref_bf16 = tnet_ref(x, params, dim, conv_bf16=True)
    assert jnp.allclose(out, ref_bf16, atol=3e-2, rtol=3e-2), (
        f"bf16 path: max abs err = {jnp.max(jnp.abs(out - ref_bf16))}")

    # f32-operand path vs the pure-f32 module reference (tighter check of the
    # streaming / masking / BN structure).
    out32 = tnet_forward(x, params, dim, tile_n=64, conv_dtype=jnp.float32)
    out32 = jax.block_until_ready(out32)
    ref32 = tnet_ref(x, params, dim, conv_bf16=False)
    assert jnp.allclose(out32, ref32, atol=1e-2, rtol=1e-2), (
        f"f32 path: max abs err = {jnp.max(jnp.abs(out32 - ref32))}")

    print("KERNEL_OK")
</pallas_src>

<mosaic_0001>
module attributes {stable_mosaic.version = 11 : i64} {
  func.func @tnet_kernel(%arg0: i32, %arg1: i32, %arg2: i32, %arg3: memref<1x64x3xbf16, #tpu.memory_space<vmem>>, %arg4: memref<3x64xbf16, #tpu.memory_space<vmem>>, %arg5: memref<1x64xf32, #tpu.memory_space<vmem>>, %arg6: memref<1x64xf32, #tpu.memory_space<vmem>>, %arg7: memref<1x64xf32, #tpu.memory_space<vmem>>, %arg8: memref<64x128xbf16, #tpu.memory_space<vmem>>, %arg9: memref<1x128xf32, #tpu.memory_space<vmem>>, %arg10: memref<1x128xf32, #tpu.memory_space<vmem>>, %arg11: memref<1x128xf32, #tpu.memory_space<vmem>>, %arg12: memref<128x1024xbf16, #tpu.memory_space<vmem>>, %arg13: memref<1x1024xf32, #tpu.memory_space<vmem>>, %arg14: memref<1x1024xf32, #tpu.memory_space<vmem>>, %arg15: memref<1x1024xf32, #tpu.memory_space<vmem>>, %arg16: memref<1024x512xf32, #tpu.memory_space<any>>, %arg17: memref<1x512xf32, #tpu.memory_space<vmem>>, %arg18: memref<1x512xf32, #tpu.memory_space<vmem>>, %arg19: memref<1x512xf32, #tpu.memory_space<vmem>>, %arg20: memref<512x256xf32, #tpu.memory_space<any>>, %arg21: memref<1x256xf32, #tpu.memory_space<vmem>>, %arg22: memref<1x256xf32, #tpu.memory_space<vmem>>, %arg23: memref<1x256xf32, #tpu.memory_space<vmem>>, %arg24: memref<256x9xf32, #tpu.memory_space<vmem>>, %arg25: memref<1x9xf32, #tpu.memory_space<vmem>>, %arg26: memref<8x9xf32, #tpu.memory_space<vmem>>, %arg27: memref<1x64xf32, #tpu.memory_space<vmem>>, %arg28: memref<1x64xf32, #tpu.memory_space<vmem>>, %arg29: memref<1x128xf32, #tpu.memory_space<vmem>>, %arg30: memref<1x128xf32, #tpu.memory_space<vmem>>, %arg31: memref<1x1024xf32, #tpu.memory_space<vmem>>, %arg32: memref<1x1024xf32, #tpu.memory_space<vmem>>, %arg33: memref<8x1x1024xf32, #tpu.memory_space<vmem>>) attributes {dimension_semantics = [#tpu.dimension_semantics<arbitrary>, #tpu.dimension_semantics<arbitrary>, #tpu.dimension_semantics<arbitrary>], iteration_bounds = array<i64: 3, 8, 2>, scalar_prefetch = 0 : i64, scratch_operands = 7 : i64, tpu.core_type = #tpu.core_type<tc>, window_params = [{transform_indices = @transform_0, window_bounds = array<i64: 1, 64, 3>}, {pipeline_mode = #tpu.pipeline_mode<synchronous>, transform_indices = @transform_1, window_bounds = array<i64: 3, 64>}, {pipeline_mode = #tpu.pipeline_mode<synchronous>, transform_indices = @transform_2, window_bounds = array<i64: 1, 64>}, {pipeline_mode = #tpu.pipeline_mode<synchronous>, transform_indices = @transform_3, window_bounds = array<i64: 1, 64>}, {pipeline_mode = #tpu.pipeline_mode<synchronous>, transform_indices = @transform_4, window_bounds = array<i64: 1, 64>}, {pipeline_mode = #tpu.pipeline_mode<synchronous>, transform_indices = @transform_5, window_bounds = array<i64: 64, 128>}, {pipeline_mode = #tpu.pipeline_mode<synchronous>, transform_indices = @transform_6, window_bounds = array<i64: 1, 128>}, {pipeline_mode = #tpu.pipeline_mode<synchronous>, transform_indices = @transform_7, window_bounds = array<i64: 1, 128>}, {pipeline_mode = #tpu.pipeline_mode<synchronous>, transform_indices = @transform_8, window_bounds = array<i64: 1, 128>}, {pipeline_mode = #tpu.pipeline_mode<synchronous>, transform_indices = @transform_9, window_bounds = array<i64: 128, 1024>}, {pipeline_mode = #tpu.pipeline_mode<synchronous>, transform_indices = @transform_10, window_bounds = array<i64: 1, 1024>}, {pipeline_mode = #tpu.pipeline_mode<synchronous>, transform_indices = @transform_11, window_bounds = array<i64: 1, 1024>}, {pipeline_mode = #tpu.pipeline_mode<synchronous>, transform_indices = @transform_12, window_bounds = array<i64: 1, 1024>}, {}, {pipeline_mode = #tpu.pipeline_mode<synchronous>, transform_indices = @transform_14, window_bounds = array<i64: 1, 512>}, {pipeline_mode = #tpu.pipeline_mode<synchronous>, transform_indices = @transform_15, window_bounds = array<i64: 1, 512>}, {pipeline_mode = #tpu.pipeline_mode<synchronous>, transform_indices = @transform_16, window_bounds = array<i64: 1, 512>}, {}, {pipeline_mode = #tpu.pipeline_mode<synchronous>, transform_indices = @transform_18, window_bounds = array<i64: 1, 256>}, {pipeline_mode = #tpu.pipeline_mode<synchronous>, transform_indices = @transform_19, window_bounds = array<i64: 1, 256>}, {pipeline_mode = #tpu.pipeline_mode<synchronous>, transform_indices = @transform_20, window_bounds = array<i64: 1, 256>}, {pipeline_mode = #tpu.pipeline_mode<synchronous>, transform_indices = @transform_21, window_bounds = array<i64: 256, 9>}, {pipeline_mode = #tpu.pipeline_mode<synchronous>, transform_indices = @transform_22, window_bounds = array<i64: 1, 9>}, {pipeline_mode = #tpu.pipeline_mode<synchronous>, transform_indices = @transform_23, window_bounds = array<i64: 8, 9>}]} {
    %c0_i32 = arith.constant 0 : i32
    %0 = arith.cmpi eq, %arg0, %c0_i32 : i32
    %c0_i32_0 = arith.constant 0 : i32
    %1 = arith.cmpi eq, %arg1, %c0_i32_0 : i32
    %2 = arith.andi %0, %1 : i1
    %c0_i32_1 = arith.constant 0 : i32
    %3 = arith.cmpi eq, %arg2, %c0_i32_1 : i32
    %4 = arith.andi %2, %3 : i1
    %5 = arith.extui %4 : i1 to i32
    %c0_i32_2 = arith.constant 0 : i32
    %6 = arith.cmpi ne, %5, %c0_i32_2 : i32
    scf.if %6 {
      %cst = arith.constant 0.000000e+00 : f32
      %16 = vector.broadcast %cst : f32 to vector<1x64xf32>
      %c0 = arith.constant 0 : index
      %c0_7 = arith.constant 0 : index
      %17 = vector.load %arg27[%c0, %c0_7] : memref<1x64xf32, #tpu.memory_space<vmem>>, vector<1x64xf32>
      tpu.vector_store %arg27[%c0, %c0_7], %16 {strides = array<i32>} : memref<1x64xf32, #tpu.memory_space<vmem>>, vector<1x64xf32>,
      %cst_8 = arith.constant 0.000000e+00 : f32
      %18 = vector.broadcast %cst_8 : f32 to vector<1x64xf32>
      %c0_9 = arith.constant 0 : index
      %c0_10 = arith.constant 0 : index
      %19 = vector.load %arg28[%c0_9, %c0_10] : memref<1x64xf32, #tpu.memory_space<vmem>>, vector<1x64xf32>
      tpu.vector_store %arg28[%c0_9, %c0_10], %18 {strides = array<i32>} : memref<1x64xf32, #tpu.memory_space<vmem>>, vector<1x64xf32>,
      %cst_11 = arith.constant 0.000000e+00 : f32
      %20 = vector.broadcast %cst_11 : f32 to vector<1x128xf32>
      %c0_12 = arith.constant 0 : index
      %c0_13 = arith.constant 0 : index
      %21 = vector.load %arg29[%c0_12, %c0_13] : memref<1x128xf32, #tpu.memory_space<vmem>>, vector<1x128xf32>
      tpu.vector_store %arg29[%c0_12, %c0_13], %20 {strides = array<i32>} : memref<1x128xf32, #tpu.memory_space<vmem>>, vector<1x128xf32>,
      %cst_14 = arith.constant 0.000000e+00 : f32
      %22 = vector.broadcast %cst_14 : f32 to vector<1x128xf32>
      %c0_15 = arith.constant 0 : index
      %c0_16 = arith.constant 0 : index
      %23 = vector.load %arg30[%c0_15, %c0_16] : memref<1x128xf32, #tpu.memory_space<vmem>>, vector<1x128xf32>
      tpu.vector_store %arg30[%c0_15, %c0_16], %22 {strides = array<i32>} : memref<1x128xf32, #tpu.memory_space<vmem>>, vector<1x128xf32>,
      %cst_17 = arith.constant 0.000000e+00 : f32
      %24 = vector.broadcast %cst_17 : f32 to vector<1x1024xf32>
      %c0_18 = arith.constant 0 : index
      %c0_19 = arith.constant 0 : index
      %25 = vector.load %arg31[%c0_18, %c0_19] : memref<1x1024xf32, #tpu.memory_space<vmem>>, vector<1x1024xf32>
      tpu.vector_store %arg31[%c0_18, %c0_19], %24 {strides = array<i32>} : memref<1x1024xf32, #tpu.memory_space<vmem>>, vector<1x1024xf32>,
      %cst_20 = arith.constant 0.000000e+00 : f32
      %26 = vector.broadcast %cst_20 : f32 to vector<1x1024xf32>
      %c0_21 = arith.constant 0 : index
      %c0_22 = arith.constant 0 : index
      %27 = vector.load %arg32[%c0_21, %c0_22] : memref<1x1024xf32, #tpu.memory_space<vmem>>, vector<1x1024xf32>
      tpu.vector_store %arg32[%c0_21, %c0_22], %26 {strides = array<i32>} : memref<1x1024xf32, #tpu.memory_space<vmem>>, vector<1x1024xf32>,
      %cst_23 = arith.constant 0.000000e+00 : f32
      %28 = vector.broadcast %cst_23 : f32 to vector<8x1x1024xf32>
      %c0_24 = arith.constant 0 : index
      %c0_25 = arith.constant 0 : index
      %c0_26 = arith.constant 0 : index
      %29 = vector.load %arg33[%c0_24, %c0_25, %c0_26] : memref<8x1x1024xf32, #tpu.memory_space<vmem>>, vector<8x1x1024xf32>
      tpu.vector_store %arg33[%c0_24, %c0_25, %c0_26], %28 {strides = array<i32>} : memref<8x1x1024xf32, #tpu.memory_space<vmem>>, vector<8x1x1024xf32>,
    } else {
    }
    %c0_i32_3 = arith.constant 0 : i32
    %7 = arith.cmpi eq, %arg0, %c0_i32_3 : i32
    %8 = arith.extui %7 : i1 to i32
    %c0_i32_4 = arith.constant 0 : i32
    %9 = arith.cmpi ne, %8, %c0_i32_4 : i32
    scf.if %9 {
      %c0 = arith.constant 0 : index
      %c0_7 = arith.constant 0 : index
      %c0_8 = arith.constant 0 : index
      %16 = vector.load %arg3[%c0, %c0_7, %c0_8] : memref<1x64x3xbf16, #tpu.memory_space<vmem>>, vector<1x64x3xbf16>
      %17 = vector.shape_cast %16 : vector<1x64x3xbf16> to vector<64x3xbf16>
      %c0_9 = arith.constant 0 : index
      %c0_10 = arith.constant 0 : index
      %18 = vector.load %arg4[%c0_9, %c0_10] : memref<3x64xbf16, #tpu.memory_space<vmem>>, vector<3x64xbf16>
      %cst = arith.constant dense<0.000000e+00> : vector<64x64xf32>
      %19 = tpu.matmul %17, %18, %cst {dimension_numbers = #tpu.dot_dimension_numbers<[1], [0], [0], [1], [0, 0, 1, 1], [], []>} : vector<64x3xbf16>, vector<3x64xbf16>, vector<64x64xf32> -> vector<64x64xf32>
      %c0_11 = arith.constant 0 : index
      %c0_12 = arith.constant 0 : index
      %20 = vector.load %arg5[%c0_11, %c0_12] : memref<1x64xf32, #tpu.memory_space<vmem>>, vector<1x64xf32>
      %21 = vector.broadcast %20 : vector<1x64xf32> to vector<64x64xf32>
      %22 = arith.addf %19, %21 : vector<64x64xf32>
      %cst_13 = arith.constant 0.000000e+00 : f32
      %23 = vector.broadcast %cst_13 : f32 to vector<64x64xf32>
      %24 = arith.maximumf %22, %23 : vector<64x64xf32>
      %c64_i32 = arith.constant 64 : i32
      %25 = arith.muli %arg2, %c64_i32 : i32
      %26 = tpu.iota {dimensions = array<i32: 1>} : vector<1x64xi32>
      %27 = vector.broadcast %25 : i32 to vector<1x64xi32>
      %28 = arith.addi %27, %26 : vector<1x64xi32>
      %c100_i32 = arith.constant 100 : i32
      %29 = vector.broadcast %c100_i32 : i32 to vector<1x64xi32>
      %30 = arith.cmpi slt, %28, %29 : vector<1x64xi32>
      %31 = arith.extui %30 : vector<1x64xi1> to vector<1x64xi32>
      %32 = arith.sitofp %31 : vector<1x64xi32> to vector<1x64xf32>
      %c0_14 = arith.constant 0 : index
      %c0_15 = arith.constant 0 : index
      %33 = vector.load %arg27[%c0_14, %c0_15] : memref<1x64xf32, #tpu.memory_space<vmem>>, vector<1x64xf32>
      %cst_16 = arith.constant dense<0.000000e+00> : vector<1x64xf32>
      %34 = tpu.matmul %32, %24, %cst_16 {dimension_numbers = #tpu.dot_dimension_numbers<[1], [0], [0], [1], [0, 0, 1, 1], [], []>} : vector<1x64xf32>, vector<64x64xf32>, vector<1x64xf32> -> vector<1x64xf32>
      %35 = arith.addf %33, %34 : vector<1x64xf32>
      %c0_17 = arith.constant 0 : index
      %c0_18 = arith.constant 0 : index
      %36 = vector.load %arg27[%c0_17, %c0_18] : memref<1x64xf32, #tpu.memory_space<vmem>>, vector<1x64xf32>
      tpu.vector_store %arg27[%c0_17, %c0_18], %35 {strides = array<i32>} : memref<1x64xf32, #tpu.memory_space<vmem>>, vector<1x64xf32>,
      %c0_19 = arith.constant 0 : index
      %c0_20 = arith.constant 0 : index
      %37 = vector.load %arg28[%c0_19, %c0_20] : memref<1x64xf32, #tpu.memory_space<vmem>>, vector<1x64xf32>
      %38 = arith.mulf %24, %24 : vector<64x64xf32>
      %cst_21 = arith.constant dense<0.000000e+00> : vector<1x64xf32>
      %39 = tpu.matmul %32, %38, %cst_21 {dimension_numbers = #tpu.dot_dimension_numbers<[1], [0], [0], [1], [0, 0, 1, 1], [], []>} : vector<1x64xf32>, vector<64x64xf32>, vector<1x64xf32> -> vector<1x64xf32>
      %40 = arith.addf %37, %39 : vector<1x64xf32>
      %c0_22 = arith.constant 0 : index
      %c0_23 = arith.constant 0 : index
      %41 = vector.load %arg28[%c0_22, %c0_23] : memref<1x64xf32, #tpu.memory_space<vmem>>, vector<1x64xf32>
      tpu.vector_store %arg28[%c0_22, %c0_23], %40 {strides = array<i32>} : memref<1x64xf32, #tpu.memory_space<vmem>>, vector<1x64xf32>,
    } else {
    }
    %c1_i32 = arith.constant 1 : i32
    %10 = arith.cmpi eq, %arg0, %c1_i32 : i32
    %11 = arith.extui %10 : i1 to i32
    %c0_i32_5 = arith.constant 0 : i32
    %12 = arith.cmpi ne, %11, %c0_i32_5 : i32
    scf.if %12 {
      %c0 = arith.constant 0 : index
      %c0_7 = arith.constant 0 : index
      %c0_8 = arith.constant 0 : index
      %16 = vector.load %arg3[%c0, %c0_7, %c0_8] : memref<1x64x3xbf16, #tpu.memory_space<vmem>>, vector<1x64x3xbf16>
      %17 = vector.shape_cast %16 : vector<1x64x3xbf16> to vector<64x3xbf16>
      %c0_9 = arith.constant 0 : index
      %c0_10 = arith.constant 0 : index
      %18 = vector.load %arg4[%c0_9, %c0_10] : memref<3x64xbf16, #tpu.memory_space<vmem>>, vector<3x64xbf16>
      %cst = arith.constant dense<0.000000e+00> : vector<64x64xf32>
      %19 = tpu.matmul %17, %18, %cst {dimension_numbers = #tpu.dot_dimension_numbers<[1], [0], [0], [1], [0, 0, 1, 1], [], []>} : vector<64x3xbf16>, vector<3x64xbf16>, vector<64x64xf32> -> vector<64x64xf32>
      %c0_11 = arith.constant 0 : index
      %c0_12 = arith.constant 0 : index
      %20 = vector.load %arg5[%c0_11, %c0_12] : memref<1x64xf32, #tpu.memory_space<vmem>>, vector<1x64xf32>
      %21 = vector.broadcast %20 : vector<1x64xf32> to vector<64x64xf32>
      %22 = arith.addf %19, %21 : vector<64x64xf32>
      %cst_13 = arith.constant 0.000000e+00 : f32
      %23 = vector.broadcast %cst_13 : f32 to vector<64x64xf32>
      %24 = arith.maximumf %22, %23 : vector<64x64xf32>
      %c0_14 = arith.constant 0 : index
      %c0_15 = arith.constant 0 : index
      %25 = vector.load %arg27[%c0_14, %c0_15] : memref<1x64xf32, #tpu.memory_space<vmem>>, vector<1x64xf32>
      %cst_16 = arith.constant 1.250000e-03 : f32
      %26 = vector.broadcast %cst_16 : f32 to vector<1x64xf32>
      %27 = arith.mulf %25, %26 : vector<1x64xf32>
      %c0_17 = arith.constant 0 : index
      %c0_18 = arith.constant 0 : index
      %28 = vector.load %arg28[%c0_17, %c0_18] : memref<1x64xf32, #tpu.memory_space<vmem>>, vector<1x64xf32>
      %cst_19 = arith.constant 1.250000e-03 : f32
      %29 = vector.broadcast %cst_19 : f32 to vector<1x64xf32>
      %30 = arith.mulf %28, %29 : vector<1x64xf32>
      %31 = arith.mulf %27, %27 : vector<1x64xf32>
      %32 = arith.subf %30, %31 : vector<1x64xf32>
      %cst_20 = arith.constant 0.000000e+00 : f32
      %33 = vector.broadcast %cst_20 : f32 to vector<1x64xf32>
      %34 = arith.maximumf %32, %33 : vector<1x64xf32>
      %cst_21 = arith.constant 9.99999974E-6 : f32
      %35 = vector.broadcast %cst_21 : f32 to vector<1x64xf32>
      %36 = arith.addf %34, %35 : vector<1x64xf32>
      %37 = math.rsqrt %36 : vector<1x64xf32>
      %c0_22 = arith.constant 0 : index
      %c0_23 = arith.constant 0 : index
      %38 = vector.load %arg6[%c0_22, %c0_23] : memref<1x64xf32, #tpu.memory_space<vmem>>, vector<1x64xf32>
      %39 = arith.mulf %37, %38 : vector<1x64xf32>
      %c0_24 = arith.constant 0 : index
      %c0_25 = arith.constant 0 : index
      %40 = vector.load %arg7[%c0_24, %c0_25] : memref<1x64xf32, #tpu.memory_space<vmem>>, vector<1x64xf32>
      %41 = arith.mulf %27, %39 : vector<1x64xf32>
      %42 = arith.subf %40, %41 : vector<1x64xf32>
      %43 = vector.broadcast %39 : vector<1x64xf32> to vector<64x64xf32>
      %44 = arith.mulf %24, %43 : vector<64x64xf32>
      %45 = vector.broadcast %42 : vector<1x64xf32> to vector<64x64xf32>
      %46 = arith.addf %44, %45 : vector<64x64xf32>
      %47 = arith.truncf %46 : vector<64x64xf32> to vector<64x64xbf16>
      %c0_26 = arith.constant 0 : index
      %c0_27 = arith.constant 0 : index
      %48 = vector.load %arg8[%c0_26, %c0_27] : memref<64x128xbf16, #tpu.memory_space<vmem>>, vector<64x128xbf16>
      %cst_28 = arith.constant dense<0.000000e+00> : vector<64x128xf32>
      %49 = tpu.matmul %47, %48, %cst_28 {dimension_numbers = #tpu.dot_dimension_numbers<[1], [0], [0], [1], [0, 0, 1, 1], [], []>} : vector<64x64xbf16>, vector<64x128xbf16>, vector<64x128xf32> -> vector<64x128xf32>
      %c0_29 = arith.constant 0 : index
      %c0_30 = arith.constant 0 : index
      %50 = vector.load %arg9[%c0_29, %c0_30] : memref<1x128xf32, #tpu.memory_space<vmem>>, vector<1x128xf32>
      %51 = vector.broadcast %50 : vector<1x128xf32> to vector<64x128xf32>
      %52 = arith.addf %49, %51 : vector<64x128xf32>
      %cst_31 = arith.constant 0.000000e+00 : f32
      %53 = vector.broadcast %cst_31 : f32 to vector<64x128xf32>
      %54 = arith.maximumf %52, %53 : vector<64x128xf32>
      %c64_i32 = arith.constant 64 : i32
      %55 = arith.muli %arg2, %c64_i32 : i32
      %56 = tpu.iota {dimensions = array<i32: 1>} : vector<1x64xi32>
      %57 = vector.broadcast %55 : i32 to vector<1x64xi32>
      %58 = arith.addi %57, %56 : vector<1x64xi32>
      %c100_i32 = arith.constant 100 : i32
      %59 = vector.broadcast %c100_i32 : i32 to vector<1x64xi32>
      %60 = arith.cmpi slt, %58, %59 : vector<1x64xi32>
      %61 = arith.extui %60 : vector<1x64xi1> to vector<1x64xi32>
      %62 = arith.sitofp %61 : vector<1x64xi32> to vector<1x64xf32>
      %c0_32 = arith.constant 0 : index
      %c0_33 = arith.constant 0 : index
      %63 = vector.load %arg29[%c0_32, %c0_33] : memref<1x128xf32, #tpu.memory_space<vmem>>, vector<1x128xf32>
      %cst_34 = arith.constant dense<0.000000e+00> : vector<1x128xf32>
      %64 = tpu.matmul %62, %54, %cst_34 {dimension_numbers = #tpu.dot_dimension_numbers<[1], [0], [0], [1], [0, 0, 1, 1], [], []>} : vector<1x64xf32>, vector<64x128xf32>, vector<1x128xf32> -> vector<1x128xf32>
      %65 = arith.addf %63, %64 : vector<1x128xf32>
      %c0_35 = arith.constant 0 : index
      %c0_36 = arith.constant 0 : index
      %66 = vector.load %arg29[%c0_35, %c0_36] : memref<1x128xf32, #tpu.memory_space<vmem>>, vector<1x128xf32>
      tpu.vector_store %arg29[%c0_35, %c0_36], %65 {strides = array<i32>} : memref<1x128xf32, #tpu.memory_space<vmem>>, vector<1x128xf32>,
      %c0_37 = arith.constant 0 : index
      %c0_38 = arith.constant 0 : index
      %67 = vector.load %arg30[%c0_37, %c0_38] : memref<1x128xf32, #tpu.memory_space<vmem>>, vector<1x128xf32>
      %68 = arith.mulf %54, %54 : vector<64x128xf32>
      %cst_39 = arith.constant dense<0.000000e+00> : vector<1x128xf32>
      %69 = tpu.matmul %62, %68, %cst_39 {dimension_numbers = #tpu.dot_dimension_numbers<[1], [0], [0], [1], [0, 0, 1, 1], [], []>} : vector<1x64xf32>, vector<64x128xf32>, vector<1x128xf32> -> vector<1x128xf32>
      %70 = arith.addf %67, %69 : vector<1x128xf32>
      %c0_40 = arith.constant 0 : index
      %c0_41 = arith.constant 0 : index
      %71 = vector.load %arg30[%c0_40, %c0_41] : memref<1x128xf32, #tpu.memory_space<vmem>>, vector<1x128xf32>
      tpu.vector_store %arg30[%c0_40, %c0_41], %70 {strides = array<i32>} : memref<1x128xf32, #tpu.memory_space<vmem>>, vector<1x128xf32>,
    } else {
    }
    %c2_i32 = arith.constant 2 : i32
    %13 = arith.cmpi eq, %arg0, %c2_i32 : i32
    %14 = arith.extui %13 : i1 to i32
    %c0_i32_6 = arith.constant 0 : i32
    %15 = arith.cmpi ne, %14, %c0_i32_6 : i32
    scf.if %15 {
      %c0 = arith.constant 0 : index
      %c0_7 = arith.constant 0 : index
      %c0_8 = arith.constant 0 : index
      %16 = vector.load %arg3[%c0, %c0_7, %c0_8] : memref<1x64x3xbf16, #tpu.memory_space<vmem>>, vector<1x64x3xbf16>
      %17 = vector.shape_cast %16 : vector<1x64x3xbf16> to vector<64x3xbf16>
      %c0_9 = arith.constant 0 : index
      %c0_10 = arith.constant 0 : index
      %18 = vector.load %arg4[%c0_9, %c0_10] : memref<3x64xbf16, #tpu.memory_space<vmem>>, vector<3x64xbf16>
      %cst = arith.constant dense<0.000000e+00> : vector<64x64xf32>
      %19 = tpu.matmul %17, %18, %cst {dimension_numbers = #tpu.dot_dimension_numbers<[1], [0], [0], [1], [0, 0, 1, 1], [], []>} : vector<64x3xbf16>, vector<3x64xbf16>, vector<64x64xf32> -> vector<64x64xf32>
      %c0_11 = arith.constant 0 : index
      %c0_12 = arith.constant 0 : index
      %20 = vector.load %arg5[%c0_11, %c0_12] : memref<1x64xf32, #tpu.memory_space<vmem>>, vector<1x64xf32>
      %21 = vector.broadcast %20 : vector<1x64xf32> to vector<64x64xf32>
      %22 = arith.addf %19, %21 : vector<64x64xf32>
      %cst_13 = arith.constant 0.000000e+00 : f32
      %23 = vector.broadcast %cst_13 : f32 to vector<64x64xf32>
      %24 = arith.maximumf %22, %23 : vector<64x64xf32>
      %c0_14 = arith.constant 0 : index
      %c0_15 = arith.constant 0 : index
      %25 = vector.load %arg27[%c0_14, %c0_15] : memref<1x64xf32, #tpu.memory_space<vmem>>, vector<1x64xf32>
      %cst_16 = arith.constant 1.250000e-03 : f32
      %26 = vector.broadcast %cst_16 : f32 to vector<1x64xf32>
      %27 = arith.mulf %25, %26 : vector<1x64xf32>
      %c0_17 = arith.constant 0 : index
      %c0_18 = arith.constant 0 : index
      %28 = vector.load %arg28[%c0_17, %c0_18] : memref<1x64xf32, #tpu.memory_space<vmem>>, vector<1x64xf32>
      %cst_19 = arith.constant 1.250000e-03 : f32
      %29 = vector.broadcast %cst_19 : f32 to vector<1x64xf32>
      %30 = arith.mulf %28, %29 : vector<1x64xf32>
      %31 = arith.mulf %27, %27 : vector<1x64xf32>
      %32 = arith.subf %30, %31 : vector<1x64xf32>
      %cst_20 = arith.constant 0.000000e+00 : f32
      %33 = vector.broadcast %cst_20 : f32 to vector<1x64xf32>
      %34 = arith.maximumf %32, %33 : vector<1x64xf32>
      %cst_21 = arith.constant 9.99999974E-6 : f32
      %35 = vector.broadcast %cst_21 : f32 to vector<1x64xf32>
      %36 = arith.addf %34, %35 : vector<1x64xf32>
      %37 = math.rsqrt %36 : vector<1x64xf32>
      %c0_22 = arith.constant 0 : index
      %c0_23 = arith.constant 0 : index
      %38 = vector.load %arg6[%c0_22, %c0_23] : memref<1x64xf32, #tpu.memory_space<vmem>>, vector<1x64xf32>
      %39 = arith.mulf %37, %38 : vector<1x64xf32>
      %c0_24 = arith.constant 0 : index
      %c0_25 = arith.constant 0 : index
      %40 = vector.load %arg7[%c0_24, %c0_25] : memref<1x64xf32, #tpu.memory_space<vmem>>, vector<1x64xf32>
      %41 = arith.mulf %27, %39 : vector<1x64xf32>
      %42 = arith.subf %40, %41 : vector<1x64xf32>
      %43 = vector.broadcast %39 : vector<1x64xf32> to vector<64x64xf32>
      %44 = arith.mulf %24, %43 : vector<64x64xf32>
      %45 = vector.broadcast %42 : vector<1x64xf32> to vector<64x64xf32>
      %46 = arith.addf %44, %45 : vector<64x64xf32>
      %47 = arith.truncf %46 : vector<64x64xf32> to vector<64x64xbf16>
      %c0_26 = arith.constant 0 : index
      %c0_27 = arith.constant 0 : index
      %48 = vector.load %arg8[%c0_26, %c0_27] : memref<64x128xbf16, #tpu.memory_space<vmem>>, vector<64x128xbf16>
      %cst_28 = arith.constant dense<0.000000e+00> : vector<64x128xf32>
      %49 = tpu.matmul %47, %48, %cst_28 {dimension_numbers = #tpu.dot_dimension_numbers<[1], [0], [0], [1], [0, 0, 1, 1], [], []>} : vector<64x64xbf16>, vector<64x128xbf16>, vector<64x128xf32> -> vector<64x128xf32>
      %c0_29 = arith.constant 0 : index
      %c0_30 = arith.constant 0 : index
      %50 = vector.load %arg9[%c0_29, %c0_30] : memref<1x128xf32, #tpu.memory_space<vmem>>, vector<1x128xf32>
      %51 = vector.broadcast %50 : vector<1x128xf32> to vector<64x128xf32>
      %52 = arith.addf %49, %51 : vector<64x128xf32>
      %cst_31 = arith.constant 0.000000e+00 : f32
      %53 = vector.broadcast %cst_31 : f32 to vector<64x128xf32>
      %54 = arith.maximumf %52, %53 : vector<64x128xf32>
      %c0_32 = arith.constant 0 : index
      %c0_33 = arith.constant 0 : index
      %55 = vector.load %arg29[%c0_32, %c0_33] : memref<1x128xf32, #tpu.memory_space<vmem>>, vector<1x128xf32>
      %cst_34 = arith.constant 1.250000e-03 : f32
      %56 = vector.broadcast %cst_34 : f32 to vector<1x128xf32>
      %57 = arith.mulf %55, %56 : vector<1x128xf32>
      %c0_35 = arith.constant 0 : index
      %c0_36 = arith.constant 0 : index
      %58 = vector.load %arg30[%c0_35, %c0_36] : memref<1x128xf32, #tpu.memory_space<vmem>>, vector<1x128xf32>
      %cst_37 = arith.constant 1.250000e-03 : f32
      %59 = vector.broadcast %cst_37 : f32 to vector<1x128xf32>
      %60 = arith.mulf %58, %59 : vector<1x128xf32>
      %61 = arith.mulf %57, %57 : vector<1x128xf32>
      %62 = arith.subf %60, %61 : vector<1x128xf32>
      %cst_38 = arith.constant 0.000000e+00 : f32
      %63 = vector.broadcast %cst_38 : f32 to vector<1x128xf32>
      %64 = arith.maximumf %62, %63 : vector<1x128xf32>
      %cst_39 = arith.constant 9.99999974E-6 : f32
      %65 = vector.broadcast %cst_39 : f32 to vector<1x128xf32>
      %66 = arith.addf %64, %65 : vector<1x128xf32>
      %67 = math.rsqrt %66 : vector<1x128xf32>
      %c0_40 = arith.constant 0 : index
      %c0_41 = arith.constant 0 : index
      %68 = vector.load %arg10[%c0_40, %c0_41] : memref<1x128xf32, #tpu.memory_space<vmem>>, vector<1x128xf32>
      %69 = arith.mulf %67, %68 : vector<1x128xf32>
      %c0_42 = arith.constant 0 : index
      %c0_43 = arith.constant 0 : index
      %70 = vector.load %arg11[%c0_42, %c0_43] : memref<1x128xf32, #tpu.memory_space<vmem>>, vector<1x128xf32>
      %71 = arith.mulf %57, %69 : vector<1x128xf32>
      %72 = arith.subf %70, %71 : vector<1x128xf32>
      %73 = vector.broadcast %69 : vector<1x128xf32> to vector<64x128xf32>
      %74 = arith.mulf %54, %73 : vector<64x128xf32>
      %75 = vector.broadcast %72 : vector<1x128xf32> to vector<64x128xf32>
      %76 = arith.addf %74, %75 : vector<64x128xf32>
      %77 = arith.truncf %76 : vector<64x128xf32> to vector<64x128xbf16>
      %c0_44 = arith.constant 0 : index
      %c0_45 = arith.constant 0 : index
      %78 = vector.load %arg12[%c0_44, %c0_45] : memref<128x1024xbf16, #tpu.memory_space<vmem>>, vector<128x1024xbf16>
      %cst_46 = arith.constant dense<0.000000e+00> : vector<64x1024xf32>
      %79 = tpu.matmul %77, %78, %cst_46 {dimension_numbers = #tpu.dot_dimension_numbers<[1], [0], [0], [1], [0, 0, 1, 1], [], []>} : vector<64x128xbf16>, vector<128x1024xbf16>, vector<64x1024xf32> -> vector<64x1024xf32>
      %c0_47 = arith.constant 0 : index
      %c0_48 = arith.constant 0 : index
      %80 = vector.load %arg13[%c0_47, %c0_48] : memref<1x1024xf32, #tpu.memory_space<vmem>>, vector<1x1024xf32>
      %81 = vector.broadcast %80 : vector<1x1024xf32> to vector<64x1024xf32>
      %82 = arith.addf %79, %81 : vector<64x1024xf32>
      %cst_49 = arith.constant 0.000000e+00 : f32
      %83 = vector.broadcast %cst_49 : f32 to vector<64x1024xf32>
      %84 = arith.maximumf %82, %83 : vector<64x1024xf32>
      %c64_i32 = arith.constant 64 : i32
      %85 = arith.muli %arg2, %c64_i32 : i32
      %86 = tpu.iota {dimensions = array<i32: 1>} : vector<1x64xi32>
      %87 = vector.broadcast %85 : i32 to vector<1x64xi32>
      %88 = arith.addi %87, %86 : vector<1x64xi32>
      %c100_i32 = arith.constant 100 : i32
      %89 = vector.broadcast %c100_i32 : i32 to vector<1x64xi32>
      %90 = arith.cmpi slt, %88, %89 : vector<1x64xi32>
      %91 = arith.extui %90 : vector<1x64xi1> to vector<1x64xi32>
      %92 = arith.sitofp %91 : vector<1x64xi32> to vector<1x64xf32>
      %c0_50 = arith.constant 0 : index
      %c0_51 = arith.constant 0 : index
      %93 = vector.load %arg31[%c0_50, %c0_51] : memref<1x1024xf32, #tpu.memory_space<vmem>>, vector<1x1024xf32>
      %cst_52 = arith.constant dense<0.000000e+00> : vector<1x1024xf32>
      %94 = tpu.matmul %92, %84, %cst_52 {dimension_numbers = #tpu.dot_dimension_numbers<[1], [0], [0], [1], [0, 0, 1, 1], [], []>} : vector<1x64xf32>, vector<64x1024xf32>, vector<1x1024xf32> -> vector<1x1024xf32>
      %95 = arith.addf %93, %94 : vector<1x1024xf32>
      %c0_53 = arith.constant 0 : index
      %c0_54 = arith.constant 0 : index
      %96 = vector.load %arg31[%c0_53, %c0_54] : memref<1x1024xf32, #tpu.memory_space<vmem>>, vector<1x1024xf32>
      tpu.vector_store %arg31[%c0_53, %c0_54], %95 {strides = array<i32>} : memref<1x1024xf32, #tpu.memory_space<vmem>>, vector<1x1024xf32>,
      %c0_55 = arith.constant 0 : index
      %c0_56 = arith.constant 0 : index
      %97 = vector.load %arg32[%c0_55, %c0_56] : memref<1x1024xf32, #tpu.memory_space<vmem>>, vector<1x1024xf32>
      %98 = arith.mulf %84, %84 : vector<64x1024xf32>
      %cst_57 = arith.constant dense<0.000000e+00> : vector<1x1024xf32>
      %99 = tpu.matmul %92, %98, %cst_57 {dimension_numbers = #tpu.dot_dimension_numbers<[1], [0], [0], [1], [0, 0, 1, 1], [], []>} : vector<1x64xf32>, vector<64x1024xf32>, vector<1x1024xf32> -> vector<1x1024xf32>
      %100 = arith.addf %97, %99 : vector<1x1024xf32>
      %c0_58 = arith.constant 0 : index
      %c0_59 = arith.constant 0 : index
      %101 = vector.load %arg32[%c0_58, %c0_59] : memref<1x1024xf32, #tpu.memory_space<vmem>>, vector<1x1024xf32>
      tpu.vector_store %arg32[%c0_58, %c0_59], %100 {strides = array<i32>} : memref<1x1024xf32, #tpu.memory_space<vmem>>, vector<1x1024xf32>,
      %c64_i32_60 = arith.constant 64 : i32
      %102 = arith.muli %arg2, %c64_i32_60 : i32
      %103 = tpu.iota {dimensions = array<i32: 0>} : vector<64x1xi32>
      %104 = vector.broadcast %102 : i32 to vector<64x1xi32>
      %105 = arith.addi %104, %103 : vector<64x1xi32>
      %c100_i32_61 = arith.constant 100 : i32
      %106 = vector.broadcast %c100_i32_61 : i32 to vector<64x1xi32>
      %107 = arith.cmpi slt, %105, %106 : vector<64x1xi32>
      %108 = arith.extui %107 : vector<64x1xi1> to vector<64x1xi32>
      %109 = arith.sitofp %108 : vector<64x1xi32> to vector<64x1xf32>
      %110 = vector.broadcast %109 : vector<64x1xf32> to vector<64x1024xf32>
      %111 = arith.mulf %84, %110 : vector<64x1024xf32>
      %cst_62 = arith.constant dense<0xFF800000> : vector<1024xf32>
      %112 = vector.multi_reduction <maximumf>, %111, %cst_62 [0] : vector<64x1024xf32> to vector<1024xf32>
      %113 = vector.shape_cast %112 : vector<1024xf32> to vector<1x1024xf32>
      %114 = arith.index_cast %arg1 : i32 to index
      %c0_63 = arith.constant 0 : index
      %c0_64 = arith.constant 0 : index
      %115 = vector.load %arg33[%114, %c0_63, %c0_64] : memref<8x1x1024xf32, #tpu.memory_space<vmem>>, vector<1x1x1024xf32>
      %116 = vector.shape_cast %115 : vector<1x1x1024xf32> to vector<1x1024xf32>
      %117 = arith.maximumf %116, %113 : vector<1x1024xf32>
      %118 = arith.index_cast %arg1 : i32 to index
      %c0_65 = arith.constant 0 : index
      %c0_66 = arith.constant 0 : index
      %119 = vector.load %arg33[%118, %c0_65, %c0_66] : memref<8x1x1024xf32, #tpu.memory_space<vmem>>, vector<1x1x1024xf32>
      %120 = vector.shape_cast %119 : vector<1x1x1024xf32> to vector<1x1024xf32>
      %121 = vector.shape_cast %117 : vector<1x1024xf32> to vector<1x1x1024xf32>
      tpu.vector_store %arg33[%118, %c0_65, %c0_66], %121 {strides = array<i32>} : memref<8x1x1024xf32, #tpu.memory_space<vmem>>, vector<1x1x1024xf32>,
      %c7_i32 = arith.constant 7 : i32
      %122 = arith.cmpi eq, %arg1, %c7_i32 : i32
      %c1_i32_67 = arith.constant 1 : i32
      %123 = arith.cmpi eq, %arg2, %c1_i32_67 : i32
      %124 = arith.andi %122, %123 : i1
      %125 = arith.extui %124 : i1 to i32
      %c0_i32_68 = arith.constant 0 : i32
      %126 = arith.cmpi ne, %125, %c0_i32_68 : i32
      scf.if %126 {
        %c0_69 = arith.constant 0 : index
        %c0_70 = arith.constant 0 : index
        %127 = vector.load %arg31[%c0_69, %c0_70] : memref<1x1024xf32, #tpu.memory_space<vmem>>, vector<1x1024xf32>
        %cst_71 = arith.constant 1.250000e-03 : f32
        %128 = vector.broadcast %cst_71 : f32 to vector<1x1024xf32>
        %129 = arith.mulf %127, %128 : vector<1x1024xf32>
        %c0_72 = arith.constant 0 : index
        %c0_73 = arith.constant 0 : index
        %130 = vector.load %arg32[%c0_72, %c0_73] : memref<1x1024xf32, #tpu.memory_space<vmem>>, vector<1x1024xf32>
        %cst_74 = arith.constant 1.250000e-03 : f32
        %131 = vector.broadcast %cst_74 : f32 to vector<1x1024xf32>
        %132 = arith.mulf %130, %131 : vector<1x1024xf32>
        %133 = arith.mulf %129, %129 : vector<1x1024xf32>
        %134 = arith.subf %132, %133 : vector<1x1024xf32>
        %cst_75 = arith.constant 0.000000e+00 : f32
        %135 = vector.broadcast %cst_75 : f32 to vector<1x1024xf32>
        %136 = arith.maximumf %134, %135 : vector<1x1024xf32>
        %cst_76 = arith.constant 9.99999974E-6 : f32
        %137 = vector.broadcast %cst_76 : f32 to vector<1x1024xf32>
        %138 = arith.addf %136, %137 : vector<1x1024xf32>
        %139 = math.rsqrt %138 : vector<1x1024xf32>
        %c0_77 = arith.constant 0 : index
        %c0_78 = arith.constant 0 : index
        %140 = vector.load %arg14[%c0_77, %c0_78] : memref<1x1024xf32, #tpu.memory_space<vmem>>, vector<1x1024xf32>
        %141 = arith.mulf %139, %140 : vector<1x1024xf32>
        %c0_79 = arith.constant 0 : index
        %c0_80 = arith.constant 0 : index
        %142 = vector.load %arg15[%c0_79, %c0_80] : memref<1x1024xf32, #tpu.memory_space<vmem>>, vector<1x1024xf32>
        %143 = arith.mulf %129, %141 : vector<1x1024xf32>
        %144 = arith.subf %142, %143 : vector<1x1024xf32>
        %c0_81 = arith.constant 0 : index
        %c0_82 = arith.constant 0 : index
        %c0_83 = arith.constant 0 : index
        %145 = vector.load %arg33[%c0_81, %c0_82, %c0_83] : memref<8x1x1024xf32, #tpu.memory_space<vmem>>, vector<1x1x1024xf32>
        %146 = vector.shape_cast %145 : vector<1x1x1024xf32> to vector<1x1024xf32>
        %c1 = arith.constant 1 : index
        %c0_84 = arith.constant 0 : index
        %c0_85 = arith.constant 0 : index
        %147 = vector.load %arg33[%c1, %c0_84, %c0_85] : memref<8x1x1024xf32, #tpu.memory_space<vmem>>, vector<1x1x1024xf32>
        %148 = vector.shape_cast %147 : vector<1x1x1024xf32> to vector<1x1024xf32>
        %c2 = arith.constant 2 : index
        %c0_86 = arith.constant 0 : index
        %c0_87 = arith.constant 0 : index
        %149 = vector.load %arg33[%c2, %c0_86, %c0_87] : memref<8x1x1024xf32, #tpu.memory_space<vmem>>, vector<1x1x1024xf32>
        %150 = vector.shape_cast %149 : vector<1x1x1024xf32> to vector<1x1024xf32>
        %c3 = arith.constant 3 : index
        %c0_88 = arith.constant 0 : index
        %c0_89 = arith.constant 0 : index
        %151 = vector.load %arg33[%c3, %c0_88, %c0_89] : memref<8x1x1024xf32, #tpu.memory_space<vmem>>, vector<1x1x1024xf32>
        %152 = vector.shape_cast %151 : vector<1x1x1024xf32> to vector<1x1024xf32>
        %c4 = arith.constant 4 : index
        %c0_90 = arith.constant 0 : index
        %c0_91 = arith.constant 0 : index
        %153 = vector.load %arg33[%c4, %c0_90, %c0_91] : memref<8x1x1024xf32, #tpu.memory_space<vmem>>, vector<1x1x1024xf32>
        %154 = vector.shape_cast %153 : vector<1x1x1024xf32> to vector<1x1024xf32>
        %c5 = arith.constant 5 : index
        %c0_92 = arith.constant 0 : index
        %c0_93 = arith.constant 0 : index
        %155 = vector.load %arg33[%c5, %c0_92, %c0_93] : memref<8x1x1024xf32, #tpu.memory_space<vmem>>, vector<1x1x1024xf32>
        %156 = vector.shape_cast %155 : vector<1x1x1024xf32> to vector<1x1024xf32>
        %c6 = arith.constant 6 : index
        %c0_94 = arith.constant 0 : index
        %c0_95 = arith.constant 0 : index
        %157 = vector.load %arg33[%c6, %c0_94, %c0_95] : memref<8x1x1024xf32, #tpu.memory_space<vmem>>, vector<1x1x1024xf32>
        %158 = vector.shape_cast %157 : vector<1x1x1024xf32> to vector<1x1024xf32>
        %c7 = arith.constant 7 : index
        %c0_96 = arith.constant 0 : index
        %c0_97 = arith.constant 0 : index
        %159 = vector.load %arg33[%c7, %c0_96, %c0_97] : memref<8x1x1024xf32, #tpu.memory_space<vmem>>, vector<1x1x1024xf32>
        %160 = vector.shape_cast %159 : vector<1x1x1024xf32> to vector<1x1024xf32>
        %161 = tpu.concatenate %146, %148, %150, %152, %154, %156, %158, %160 in 0 : vector<1x1024xf32>, vector<1x1024xf32>, vector<1x1024xf32>, vector<1x1024xf32>, vector<1x1024xf32>, vector<1x1024xf32>, vector<1x1024xf32>, vector<1x1024xf32> -> vector<8x1024xf32>
        %162 = vector.broadcast %141 : vector<1x1024xf32> to vector<8x1024xf32>
        %163 = arith.mulf %161, %162 : vector<8x1024xf32>
        %164 = vector.broadcast %144 : vector<1x1024xf32> to vector<8x1024xf32>
        %165 = arith.addf %163, %164 : vector<8x1024xf32>
        "tpu.region"() ({
          %alloca = memref.alloca() : memref<1024x512xf32, #tpu.memory_space<vmem>>
          %alloca_98 = memref.alloca() : memref<512x256xf32, #tpu.memory_space<vmem>>
          "tpu.region"() ({
            %238 = tpu.sem_alloc : memref<!tpu.dma_semaphore, #tpu.memory_space<semaphore_mem>>
            tpu.enqueue_dma source(%arg16 : memref<1024x512xf32, #tpu.memory_space<any>>) target(%alloca : memref<1024x512xf32, #tpu.memory_space<vmem>>) target_semaphore(%238 : memref<!tpu.dma_semaphore, #tpu.memory_space<semaphore_mem>>)
            tpu.wait_dma2 semaphore(%238 : memref<!tpu.dma_semaphore, #tpu.memory_space<semaphore_mem>>) src(%arg16 : memref<1024x512xf32, #tpu.memory_space<any>>) dst(%alloca : memref<1024x512xf32, #tpu.memory_space<vmem>>)
            tpu.yield
          }) : () -> ()
          "tpu.region"() ({
            %238 = tpu.sem_alloc : memref<!tpu.dma_semaphore, #tpu.memory_space<semaphore_mem>>
            tpu.enqueue_dma source(%arg20 : memref<512x256xf32, #tpu.memory_space<any>>) target(%alloca_98 : memref<512x256xf32, #tpu.memory_space<vmem>>) target_semaphore(%238 : memref<!tpu.dma_semaphore, #tpu.memory_space<semaphore_mem>>)
            tpu.wait_dma2 semaphore(%238 : memref<!tpu.dma_semaphore, #tpu.memory_space<semaphore_mem>>) src(%arg20 : memref<512x256xf32, #tpu.memory_space<any>>) dst(%alloca_98 : memref<512x256xf32, #tpu.memory_space<vmem>>)
            tpu.yield
          }) : () -> ()
          %c0_99 = arith.constant 0 : index
          %c0_100 = arith.constant 0 : index
          %166 = vector.load %alloca[%c0_99, %c0_100] : memref<1024x512xf32, #tpu.memory_space<vmem>>, vector<1024x512xf32>
          %cst_101 = arith.constant dense<0.000000e+00> : vector<8x512xf32>
          %167 = tpu.matmul %165, %166, %cst_101 {dimension_numbers = #tpu.dot_dimension_numbers<[1], [0], [0], [1], [0, 0, 1, 1], [], []>} : vector<8x1024xf32>, vector<1024x512xf32>, vector<8x512xf32> -> vector<8x512xf32>
          %c0_102 = arith.constant 0 : index
          %c0_103 = arith.constant 0 : index
          %168 = vector.load %arg17[%c0_102, %c0_103] : memref<1x512xf32, #tpu.memory_space<vmem>>, vector<1x512xf32>
          %169 = vector.broadcast %168 : vector<1x512xf32> to vector<8x512xf32>
          %170 = arith.addf %167, %169 : vector<8x512xf32>
          %cst_104 = arith.constant 0.000000e+00 : f32
          %171 = vector.broadcast %cst_104 : f32 to vector<8x512xf32>
          %172 = arith.maximumf %170, %171 : vector<8x512xf32>
          %cst_105 = arith.constant dense<0.000000e+00> : vector<512xf32>
          %173 = vector.multi_reduction <add>, %172, %cst_105 [0] : vector<8x512xf32> to vector<512xf32>
          %174 = vector.shape_cast %173 : vector<512xf32> to vector<1x512xf32>
          %cst_106 = arith.constant 8.000000e+00 : f32
          %175 = vector.broadcast %cst_106 : f32 to vector<1x512xf32>
          %176 = arith.divf %174, %175 : vector<1x512xf32>
          %177 = arith.mulf %172, %172 : vector<8x512xf32>
          %cst_107 = arith.constant dense<0.000000e+00> : vector<512xf32>
          %178 = vector.multi_reduction <add>, %177, %cst_107 [0] : vector<8x512xf32> to vector<512xf32>
          %179 = vector.shape_cast %178 : vector<512xf32> to vector<1x512xf32>
          %cst_108 = arith.constant 8.000000e+00 : f32
          %180 = vector.broadcast %cst_108 : f32 to vector<1x512xf32>
          %181 = arith.divf %179, %180 : vector<1x512xf32>
          %182 = arith.mulf %176, %176 : vector<1x512xf32>
          %183 = arith.subf %181, %182 : vector<1x512xf32>
          %cst_109 = arith.constant 0.000000e+00 : f32
          %184 = vector.broadcast %cst_109 : f32 to vector<1x512xf32>
          %185 = arith.maximumf %183, %184 : vector<1x512xf32>
          %186 = vector.broadcast %176 : vector<1x512xf32> to vector<8x512xf32>
          %187 = arith.subf %172, %186 : vector<8x512xf32>
          %cst_110 = arith.constant 9.99999974E-6 : f32
          %188 = vector.broadcast %cst_110 : f32 to vector<1x512xf32>
          %189 = arith.addf %185, %188 : vector<1x512xf32>
          %190 = math.rsqrt %189 : vector<1x512xf32>
          %191 = vector.broadcast %190 : vector<1x512xf32> to vector<8x512xf32>
          %192 = arith.mulf %187, %191 : vector<8x512xf32>
          %c0_111 = arith.constant 0 : index
          %c0_112 = arith.constant 0 : index
          %193 = vector.load %arg18[%c0_111, %c0_112] : memref<1x512xf32, #tpu.memory_space<vmem>>, vector<1x512xf32>
          %194 = vector.broadcast %193 : vector<1x512xf32> to vector<8x512xf32>
          %195 = arith.mulf %192, %194 : vector<8x512xf32>
          %c0_113 = arith.constant 0 : index
          %c0_114 = arith.constant 0 : index
          %196 = vector.load %arg19[%c0_113, %c0_114] : memref<1x512xf32, #tpu.memory_space<vmem>>, vector<1x512xf32>
          %197 = vector.broadcast %196 : vector<1x512xf32> to vector<8x512xf32>
          %198 = arith.addf %195, %197 : vector<8x512xf32>
          %c0_115 = arith.constant 0 : index
          %c0_116 = arith.constant 0 : index
          %199 = vector.load %alloca_98[%c0_115, %c0_116] : memref<512x256xf32, #tpu.memory_space<vmem>>, vector<512x256xf32>
          %cst_117 = arith.constant dense<0.000000e+00> : vector<8x256xf32>
          %200 = tpu.matmul %198, %199, %cst_117 {dimension_numbers = #tpu.dot_dimension_numbers<[1], [0], [0], [1], [0, 0, 1, 1], [], []>} : vector<8x512xf32>, vector<512x256xf32>, vector<8x256xf32> -> vector<8x256xf32>
          %c0_118 = arith.constant 0 : index
          %c0_119 = arith.constant 0 : index
          %201 = vector.load %arg21[%c0_118, %c0_119] : memref<1x256xf32, #tpu.memory_space<vmem>>, vector<1x256xf32>
          %202 = vector.broadcast %201 : vector<1x256xf32> to vector<8x256xf32>
          %203 = arith.addf %200, %202 : vector<8x256xf32>
          %cst_120 = arith.constant 0.000000e+00 : f32
          %204 = vector.broadcast %cst_120 : f32 to vector<8x256xf32>
          %205 = arith.maximumf %203, %204 : vector<8x256xf32>
          %cst_121 = arith.constant dense<0.000000e+00> : vector<256xf32>
          %206 = vector.multi_reduction <add>, %205, %cst_121 [0] : vector<8x256xf32> to vector<256xf32>
          %207 = vector.shape_cast %206 : vector<256xf32> to vector<1x256xf32>
          %cst_122 = arith.constant 8.000000e+00 : f32
          %208 = vector.broadcast %cst_122 : f32 to vector<1x256xf32>
          %209 = arith.divf %207, %208 : vector<1x256xf32>
          %210 = arith.mulf %205, %205 : vector<8x256xf32>
          %cst_123 = arith.constant dense<0.000000e+00> : vector<256xf32>
          %211 = vector.multi_reduction <add>, %210, %cst_123 [0] : vector<8x256xf32> to vector<256xf32>
          %212 = vector.shape_cast %211 : vector<256xf32> to vector<1x256xf32>
          %cst_124 = arith.constant 8.000000e+00 : f32
          %213 = vector.broadcast %cst_124 : f32 to vector<1x256xf32>
          %214 = arith.divf %212, %213 : vector<1x256xf32>
          %215 = arith.mulf %209, %209 : vector<1x256xf32>
          %216 = arith.subf %214, %215 : vector<1x256xf32>
          %cst_125 = arith.constant 0.000000e+00 : f32
          %217 = vector.broadcast %cst_125 : f32 to vector<1x256xf32>
          %218 = arith.maximumf %216, %217 : vector<1x256xf32>
          %219 = vector.broadcast %209 : vector<1x256xf32> to vector<8x256xf32>
          %220 = arith.subf %205, %219 : vector<8x256xf32>
          %cst_126 = arith.constant 9.99999974E-6 : f32
          %221 = vector.broadcast %cst_126 : f32 to vector<1x256xf32>
          %222 = arith.addf %218, %221 : vector<1x256xf32>
          %223 = math.rsqrt %222 : vector<1x256xf32>
          %224 = vector.broadcast %223 : vector<1x256xf32> to vector<8x256xf32>
          %225 = arith.mulf %220, %224 : vector<8x256xf32>
          %c0_127 = arith.constant 0 : index
          %c0_128 = arith.constant 0 : index
          %226 = vector.load %arg22[%c0_127, %c0_128] : memref<1x256xf32, #tpu.memory_space<vmem>>, vector<1x256xf32>
          %227 = vector.broadcast %226 : vector<1x256xf32> to vector<8x256xf32>
          %228 = arith.mulf %225, %227 : vector<8x256xf32>
          %c0_129 = arith.constant 0 : index
          %c0_130 = arith.constant 0 : index
          %229 = vector.load %arg23[%c0_129, %c0_130] : memref<1x256xf32, #tpu.memory_space<vmem>>, vector<1x256xf32>
          %230 = vector.broadcast %229 : vector<1x256xf32> to vector<8x256xf32>
          %231 = arith.addf %228, %230 : vector<8x256xf32>
          %c0_131 = arith.constant 0 : index
          %c0_132 = arith.constant 0 : index
          %232 = vector.load %arg24[%c0_131, %c0_132] : memref<256x9xf32, #tpu.memory_space<vmem>>, vector<256x9xf32>
          %cst_133 = arith.constant dense<0.000000e+00> : vector<8x9xf32>
          %233 = tpu.matmul %231, %232, %cst_133 {dimension_numbers = #tpu.dot_dimension_numbers<[1], [0], [0], [1], [0, 0, 1, 1], [], []>} : vector<8x256xf32>, vector<256x9xf32>, vector<8x9xf32> -> vector<8x9xf32>
          %c0_134 = arith.constant 0 : index
          %c0_135 = arith.constant 0 : index
          %234 = vector.load %arg25[%c0_134, %c0_135] : memref<1x9xf32, #tpu.memory_space<vmem>>, vector<1x9xf32>
          %235 = vector.broadcast %234 : vector<1x9xf32> to vector<8x9xf32>
          %236 = arith.addf %233, %235 : vector<8x9xf32>
          %c0_136 = arith.constant 0 : index
          %c0_137 = arith.constant 0 : index
          %237 = vector.load %arg26[%c0_136, %c0_137] : memref<8x9xf32, #tpu.memory_space<vmem>>, vector<8x9xf32>
          tpu.vector_store %arg26[%c0_136, %c0_137], %236 {strides = array<i32>} : memref<8x9xf32, #tpu.memory_space<vmem>>, vector<8x9xf32>,
          tpu.yield
        }) : () -> ()
      } else {
      }
    } else {
    }
    return
  }
  func.func @transform_0(%arg0: i32, %arg1: i32, %arg2: i32) -> (i32, i32, i32) {
    %c0_i32 = arith.constant 0 : i32
    %c0_i32_0 = arith.constant 0 : i32
    return %arg1, %arg2, %c0_i32 : i32, i32, i32
  }
  func.func @transform_1(%arg0: i32, %arg1: i32, %arg2: i32) -> (i32, i32) {
    %c0_i32 = arith.constant 0 : i32
    %c0_i32_0 = arith.constant 0 : i32
    %c0_i32_1 = arith.constant 0 : i32
    return %c0_i32, %c0_i32_0 : i32, i32
  }
  func.func @transform_2(%arg0: i32, %arg1: i32, %arg2: i32) -> (i32, i32) {
    %c0_i32 = arith.constant 0 : i32
    %c0_i32_0 = arith.constant 0 : i32
    %c0_i32_1 = arith.constant 0 : i32
    return %c0_i32, %c0_i32_0 : i32, i32
  }
  func.func @transform_3(%arg0: i32, %arg1: i32, %arg2: i32) -> (i32, i32) {
    %c0_i32 = arith.constant 0 : i32
    %c0_i32_0 = arith.constant 0 : i32
    %c0_i32_1 = arith.constant 0 : i32
    return %c0_i32, %c0_i32_0 : i32, i32
  }
  func.func @transform_4(%arg0: i32, %arg1: i32, %arg2: i32) -> (i32, i32) {
    %c0_i32 = arith.constant 0 : i32
    %c0_i32_0 = arith.constant 0 : i32
    %c0_i32_1 = arith.constant 0 : i32
    return %c0_i32, %c0_i32_0 : i32, i32
  }
  func.func @transform_5(%arg0: i32, %arg1: i32, %arg2: i32) -> (i32, i32) {
    %c0_i32 = arith.constant 0 : i32
    %c0_i32_0 = arith.constant 0 : i32
    %c0_i32_1 = arith.constant 0 : i32
    return %c0_i32, %c0_i32_0 : i32, i32
  }
  func.func @transform_6(%arg0: i32, %arg1: i32, %arg2: i32) -> (i32, i32) {
    %c0_i32 = arith.constant 0 : i32
    %c0_i32_0 = arith.constant 0 : i32
    %c0_i32_1 = arith.constant 0 : i32
    return %c0_i32, %c0_i32_0 : i32, i32
  }
  func.func @transform_7(%arg0: i32, %arg1: i32, %arg2: i32) -> (i32, i32) {
    %c0_i32 = arith.constant 0 : i32
    %c0_i32_0 = arith.constant 0 : i32
    %c0_i32_1 = arith.constant 0 : i32
    return %c0_i32, %c0_i32_0 : i32, i32
  }
  func.func @transform_8(%arg0: i32, %arg1: i32, %arg2: i32) -> (i32, i32) {
    %c0_i32 = arith.constant 0 : i32
    %c0_i32_0 = arith.constant 0 : i32
    %c0_i32_1 = arith.constant 0 : i32
    return %c0_i32, %c0_i32_0 : i32, i32
  }
  func.func @transform_9(%arg0: i32, %arg1: i32, %arg2: i32) -> (i32, i32) {
    %c0_i32 = arith.constant 0 : i32
    %c0_i32_0 = arith.constant 0 : i32
    %c0_i32_1 = arith.constant 0 : i32
    return %c0_i32, %c0_i32_0 : i32, i32
  }
  func.func @transform_10(%arg0: i32, %arg1: i32, %arg2: i32) -> (i32, i32) {
    %c0_i32 = arith.constant 0 : i32
    %c0_i32_0 = arith.constant 0 : i32
    %c0_i32_1 = arith.constant 0 : i32
    return %c0_i32, %c0_i32_0 : i32, i32
  }
  func.func @transform_11(%arg0: i32, %arg1: i32, %arg2: i32) -> (i32, i32) {
    %c0_i32 = arith.constant 0 : i32
    %c0_i32_0 = arith.constant 0 : i32
    %c0_i32_1 = arith.constant 0 : i32
    return %c0_i32, %c0_i32_0 : i32, i32
  }
  func.func @transform_12(%arg0: i32, %arg1: i32, %arg2: i32) -> (i32, i32) {
    %c0_i32 = arith.constant 0 : i32
    %c0_i32_0 = arith.constant 0 : i32
    %c0_i32_1 = arith.constant 0 : i32
    return %c0_i32, %c0_i32_0 : i32, i32
  }
  func.func @transform_14(%arg0: i32, %arg1: i32, %arg2: i32) -> (i32, i32) {
    %c0_i32 = arith.constant 0 : i32
    %c0_i32_0 = arith.constant 0 : i32
    %c0_i32_1 = arith.constant 0 : i32
    return %c0_i32, %c0_i32_0 : i32, i32
  }
  func.func @transform_15(%arg0: i32, %arg1: i32, %arg2: i32) -> (i32, i32) {
    %c0_i32 = arith.constant 0 : i32
    %c0_i32_0 = arith.constant 0 : i32
    %c0_i32_1 = arith.constant 0 : i32
    return %c0_i32, %c0_i32_0 : i32, i32
  }
  func.func @transform_16(%arg0: i32, %arg1: i32, %arg2: i32) -> (i32, i32) {
    %c0_i32 = arith.constant 0 : i32
    %c0_i32_0 = arith.constant 0 : i32
    %c0_i32_1 = arith.constant 0 : i32
    return %c0_i32, %c0_i32_0 : i32, i32
  }
  func.func @transform_18(%arg0: i32, %arg1: i32, %arg2: i32) -> (i32, i32) {
    %c0_i32 = arith.constant 0 : i32
    %c0_i32_0 = arith.constant 0 : i32
    %c0_i32_1 = arith.constant 0 : i32
    return %c0_i32, %c0_i32_0 : i32, i32
  }
  func.func @transform_19(%arg0: i32, %arg1: i32, %arg2: i32) -> (i32, i32) {
    %c0_i32 = arith.constant 0 : i32
    %c0_i32_0 = arith.constant 0 : i32
    %c0_i32_1 = arith.constant 0 : i32
    return %c0_i32, %c0_i32_0 : i32, i32
  }
  func.func @transform_20(%arg0: i32, %arg1: i32, %arg2: i32) -> (i32, i32) {
    %c0_i32 = arith.constant 0 : i32
    %c0_i32_0 = arith.constant 0 : i32
    %c0_i32_1 = arith.constant 0 : i32
    return %c0_i32, %c0_i32_0 : i32, i32
  }
  func.func @transform_21(%arg0: i32, %arg1: i32, %arg2: i32) -> (i32, i32) {
    %c0_i32 = arith.constant 0 : i32
    %c0_i32_0 = arith.constant 0 : i32
    %c0_i32_1 = arith.constant 0 : i32
    return %c0_i32, %c0_i32_0 : i32, i32
  }
  func.func @transform_22(%arg0: i32, %arg1: i32, %arg2: i32) -> (i32, i32) {
    %c0_i32 = arith.constant 0 : i32
    %c0_i32_0 = arith.constant 0 : i32
    %c0_i32_1 = arith.constant 0 : i32
    return %c0_i32, %c0_i32_0 : i32, i32
  }
  func.func @transform_23(%arg0: i32, %arg1: i32, %arg2: i32) -> (i32, i32) {
    %c0_i32 = arith.constant 0 : i32
    %c0_i32_0 = arith.constant 0 : i32
    %c0_i32_1 = arith.constant 0 : i32
    return %c0_i32, %c0_i32_0 : i32, i32
  }
}

</mosaic_0001>

<bundles_post_ra>
// kernel: tpu_custom_call.1
= control target key start
LH: loop header
LB: loop body
LE: loop exit
PB: predicated region body
PF: predicated region fallthrough
CT: control target
= control target key end

     0   :  { %s9814_s0 = inlined_call_operand.vmem [shape: bf16[8,128,3], index: 0, kind: input, shape index: {}]   ;;  %s9815_s1 = inlined_call_operand.hbm [shape: bf16[3,64], index: 1, kind: input, shape index: {}]   ;;  %s9816_s2 = inlined_call_operand.hbm [shape: f32[1,64], index: 2, kind: input, shape index: {}]   ;;  %s9817_s3 = inlined_call_operand.hbm [shape: f32[1,64], index: 3, kind: input, shape index: {}]   ;;  %s9818_s4 = inlined_call_operand.hbm [shape: f32[1,64], index: 4, kind: input, shape index: {}]   ;;  %s9819_s5 = inlined_call_operand.hbm [shape: bf16[64,128], index: 5, kind: input, shape index: {}]   ;;  %s9820_s6 = inlined_call_operand.hbm [shape: f32[1,128], index: 6, kind: input, shape index: {}]   ;;  %s9821_s7 = inlined_call_operand.hbm [shape: f32[1,128], index: 7, kind: input, shape index: {}]   ;;  %s9822_s8 = inlined_call_operand.hbm [shape: f32[1,128], index: 8, kind: input, shape index: {}]   ;;  %s9823_s9 = inlined_call_operand.hbm [shape: bf16[128,1024], index: 9, kind: input, shape index: {}]   ;;  %s9824_s10 = inlined_call_operand.hbm [shape: f32[1,1024], index: 10, kind: input, shape index: {}]   ;;  %s9825_s11 = inlined_call_operand.hbm [shape: f32[1,1024], index: 11, kind: input, shape index: {}]   ;;  %s9826_s12 = inlined_call_operand.hbm [shape: f32[1,1024], index: 12, kind: input, shape index: {}]   ;;  %s9827_s13 = inlined_call_operand.hbm [shape: f32[1024,512], index: 13, kind: input, shape index: {}]   ;;  %s9828_s14 = inlined_call_operand.hbm [shape: f32[1,512], index: 14, kind: input, shape index: {}]   ;;  %s9829_s15 = inlined_call_operand.hbm [shape: f32[1,512], index: 15, kind: input, shape index: {}]   ;;  %s9830_s16 = inlined_call_operand.hbm [shape: f32[1,512], index: 16, kind: input, shape index: {}]   ;;  %s9831_s17 = inlined_call_operand.hbm [shape: f32[512,256], index: 17, kind: input, shape index: {}]   ;;  %s9832_s18 = inlined_call_operand.hbm [shape: f32[1,256], index: 18, kind: input, shape index: {}]   ;;  %s9833_s19 = inlined_call_operand.hbm [shape: f32[1,256], index: 19, kind: input, shape index: {}]   ;;  %s9834_s20 = inlined_call_operand.hbm [shape: f32[1,256], index: 20, kind: input, shape index: {}]   ;;  %s9835_s21 = inlined_call_operand.vmem [shape: f32[256,9], index: 21, kind: input, shape index: {}]   ;;  %s9836_s22 = inlined_call_operand.hbm [shape: f32[1,9], index: 22, kind: input, shape index: {}]   ;;  %s9837_s23 = inlined_call_operand.hbm [shape: f32[8,9], index: 23, kind: output, shape index: {}]  }
   0x1   :  { %9915 = sst [smem:[#allocation112_spill]] %s9814_s0 }
   0x2   :  { %9916 = sst [smem:[#allocation113_spill]] %s9815_s1 }
   0x3   :  { %9917 = sst [smem:[#allocation114_spill]] %s9816_s2 }
   0x4   :  { %9918 = sst [smem:[#allocation115_spill]] %s9817_s3 }
   0x5   :  { %9919 = sst [smem:[#allocation116_spill]] %s9818_s4 }
   0x6   :  { %9920 = sst [smem:[#allocation117_spill]] %s9819_s5 }
   0x7   :  { %9921 = sst [smem:[#allocation118_spill]] %s9820_s6 }
   0x8   :  { %9922 = sst [smem:[#allocation119_spill]] %s9821_s7 }
   0x9   :  { %9923 = sst [smem:[#allocation120_spill]] %s9822_s8 }
   0xa   :  { %9924 = sst [smem:[#allocation121_spill]] %s9824_s10 }
   0xb   :  { %9925 = sst [smem:[#allocation122_spill]] %s9826_s12 }
   0xc   :  { %9926 = sst [smem:[#allocation123_spill]] %s9827_s13 }
   0xd   :  { %9927 = sst [smem:[#allocation124_spill]] %s9829_s15 }
   0xe   :  { %9928 = sst [smem:[#allocation125_spill]] %s9831_s17 }
   0xf   :  { %9929 = sst [smem:[#allocation126_spill]] %s9832_s18 }
  0x10   :  { %9930 = sst [smem:[#allocation127_spill]] %s9835_s21 }
  0x11   :  { %9931 = sst [smem:[#allocation128_spill]] %s9837_s23 }
  0x12   :  { %28 = vsyncpa [#allocation10], 0 }
  0x13   :  { %29 = vsyncpa [#allocation13], 0 }
  0x14   :  { %30 = vsyncpa [#allocation16], 0 }
  0x15   :  { %31 = vsyncpa [#allocation19], 0 }
  0x16   :  { %32 = vsyncpa [#allocation22], 0 }
  0x17   :  { %33 = vsyncpa [#allocation25], 0 }
  0x18   :  { %34 = vsyncpa [#allocation28], 0 }
  0x19   :  { %35 = vsyncpa [#allocation31], 0 }
  0x1a   :  { %36 = vsyncpa [#allocation34], 0 }
  0x1b   :  { %37 = vsyncpa [#allocation37], 0 }
  0x1c   :  { %38 = vsyncpa [#allocation11], 0  ;;  %s7964_s4 = smov 0   ;;  %s7966_s30 = smov 0  }
  0x1d   :  { %s7968_s24 = smov 0   ;;  %s7970_s25 = smov 0  }
  0x1e   :  { %s7972_s5 = smov 0   ;;  %s7974_s1 = smov 0  }
  0x1f   :  { %s7976_s26 = smov 0  }
  0x20 LB: > { %9932 = sst [smem:[#allocation63_spill]] %s7789_s24  ;;  %s7807_s2 = smov [#allocation12]   ;;  %s7805_s26 = sphi %s7976_s26, %s10094_s26   ;;  %s7801_s1 = sphi %s7974_s1, %s10093_s1   ;;  %s7797_s5 = sphi %s7972_s5, %s10092_s5   ;;  %s7793_s25 = sphi %s7970_s25, %s10091_s25   ;;  %s7789_s24 = sphi %s7968_s24, %s10090_s24   ;;  %s7785_s30 = sphi %s7966_s30, %s10089_s30   ;;  %s7781_s4 = sphi %s7964_s4, %s10088_s4  }
  0x21   : > { %9933 = sst [smem:[#allocation64_spill]] %s7805_s26  ;;  %s561_s6 = sshll.u32 %s7807_s2, 4  ;;  %s562_s6 = int_to_ptr.vmem [resolvable:$true] %s561_s6 }
  0x22   : > { %s9838_s27 = sadd.s32 4294967295, %s7805_s26   ;;  %p6406_p0 = scmp.ge.s32.totalorder %s7805_s26, 1 }
  0x23   : > { %p537_p1 = scmp.lt.s32.totalorder %s7805_s26, 49  ;;  %p8004_p2 = scmp.eq.s32.totalorder %s9838_s27, 0 }
  0x24   : > { %s7808_s29 = smov [#allocation15]   ;;  %s7809_s0 = smov [#allocation18]  }
  0x25   : > { %s9934_s7 = scalar_select %p8004_p2, 1, 0 }
  0x26   : > { %p8008_p3 = pnand %p6406_p0, %p537_p1  ;;  %s583_s3 = sshll.u32 %s7808_s29, 4  ;;  %s8014_s3 = int_to_ptr.vmem [resolvable:$true] %s583_s3 }
  0x27   : > { %s607_s2 = sshll.u32 %s7809_s0, 4  ;;  %s7810_s23 = smov [#allocation21]   ;;  %s8022_s2 = int_to_ptr.vmem [resolvable:$true] %s607_s2 }
  0x28   : > { %s9935_s28 = scalar_select %p8008_p3, 1, 0 }
  0x29   : > { %p6914_p4 = pneg %p8008_p3  ;;  %s629_s26 = sshll.u32 %s7810_s23, 4  ;;  %s8024_s26 = int_to_ptr.vmem [resolvable:$true] %s629_s26 }
  0x2a   : > { %s7156_s21 = scalar_lea.vmem %s562_s6, 16  ;;  %s7163_s0 = scalar_lea.vmem %s562_s6, 32 }
  0x2b   : > { %p8018_p5 = pnand %p8004_p2, %p6914_p4  ;;  %p7157_p7 = scmp.ne.s32.totalorder %s562_s6, %s7156_s21 }
  0x2c   : > { %p7164_p10 = scmp.lt.s32.totalorder %s562_s6, %s562_s6  ;;  %p7165_p11 = scmp.lt.s32.totalorder %s7163_s0, %s7156_s21 }
  0x2d   : > { %p8028_p6 = pneg %p8018_p5 }
  0x2e   : > { %p7166_p12 = por %p7165_p11, %p7164_p10 }
  0x2f   : > { %p7159_p8 = pnand %p7157_p7, %p8028_p6 }
  0x31   : > { %p7160_p9 = pneg %p7159_p8 }
  0x33   : > { %p7167_p13 = pnand %p7166_p12, %p7160_p9 }
  0x35   : > { %7170 = shalt.err (!%p7167_p13)
}
  0x36   : > { %s9938_s13 = sld [smem:[#allocation114_spill]]  ;;  %s7182_s24 = scalar_lea.vmem %s8014_s3, 16 }
  0x37   : > { %p7183_p0 = scmp.ne.s32.totalorder %s8014_s3, %s7182_s24  ;;  %s7189_s21 = scalar_lea.vmem %s8014_s3, 32 }
  0x38   : > { %p7190_p7 = scmp.lt.s32.totalorder %s8014_s3, %s8014_s3  ;;  %p7191_p8 = scmp.lt.s32.totalorder %s7189_s21, %s7182_s24 }
  0x39   : > { %p7185_p1 = pnand %p7183_p0, %p8028_p6 }
  0x3a   : > { %p7192_p9 = por %p7191_p8, %p7190_p7 }
  0x3b   : > { %p7186_p4 = pneg %p7185_p1 }
  0x3c   : > { %6920 = dma.hbm_to_vmem [thread:$0]  (!%p8018_p5), %s9938_s13, 16, %s562_s6, [#allocation13]  }
  0x3d   : > { %p7193_p10 = pnand %p7192_p9, %p7186_p4 }
  0x3f   : > { %7196 = shalt.err (!%p7193_p10)
}
  0x40   : > { %s9939_s23 = sld [smem:[#allocation116_spill]]  ;;  %s7208_s13 = scalar_lea.vmem %s8022_s2, 16 }
  0x41   : > { %p7209_p11 = scmp.ne.s32.totalorder %s8022_s2, %s7208_s13  ;;  %s7215_s24 = scalar_lea.vmem %s8022_s2, 32 }
  0x42   : > { %p7216_p0 = scmp.lt.s32.totalorder %s8022_s2, %s8022_s2  ;;  %p7217_p1 = scmp.lt.s32.totalorder %s7215_s24, %s7208_s13 }
  0x43   : > { %p7211_p12 = pnand %p7209_p11, %p8028_p6 }
  0x44   : > { %p7218_p4 = por %p7217_p1, %p7216_p0 }
  0x45   : > { %p7212_p13 = pneg %p7211_p12 }
  0x46   : > { %6926 = dma.hbm_to_vmem [thread:$0]  (!%p8018_p5), %s9939_s23, 16, %s8014_s3, [#allocation16]  }
  0x47   : > { %p7219_p7 = pnand %p7218_p4, %p7212_p13 }
  0x49   : > { %7222 = shalt.err (!%p7219_p7)
}
  0x4a   : > { %s9940_s17 = sld [smem:[#allocation118_spill]]  ;;  %s7234_s3 = scalar_lea.vmem %s8024_s26, 16 }
  0x4b   : > { %p7235_p8 = scmp.ne.s32.totalorder %s8024_s26, %s7234_s3  ;;  %s7241_s0 = scalar_lea.vmem %s8024_s26, 32 }
  0x4c   : > { %p7242_p11 = scmp.lt.s32.totalorder %s8024_s26, %s8024_s26  ;;  %p7243_p12 = scmp.lt.s32.totalorder %s7241_s0, %s7234_s3 }
  0x4d   : > { %p7237_p9 = pnand %p7235_p8, %p8028_p6 }
  0x4e   : > { %p7244_p13 = por %p7243_p12, %p7242_p11 }
  0x4f   : > { %p7238_p10 = pneg %p7237_p9 }
  0x50   : > { %6932 = dma.hbm_to_vmem [thread:$0]  (!%p8018_p5), %s9940_s17, 16, %s8022_s2, [#allocation19]  }
  0x51   : > { %p7245_p0 = pnand %p7244_p13, %p7238_p10 }
  0x53   : > { %7248 = shalt.err (!%p7245_p0)
}
  0x54   : > { %s9941_s8 = sld [smem:[#allocation120_spill]]  ;;  %s7811_s2 = smov [#allocation24]  }
  0x55   : > { %s653_s24 = sshll.u32 %s7811_s2, 4  ;;  %s7812_s6 = smov [#allocation27]   ;;  %s654_s24 = int_to_ptr.vmem [resolvable:$true] %s653_s24 }
  0x56   : > { %s675_s21 = sshll.u32 %s7812_s6, 4  ;;  %s7260_s17 = scalar_lea.vmem %s654_s24, 128  ;;  %s676_s21 = int_to_ptr.vmem [resolvable:$true] %s675_s21 }
  0x57   : > { %p7261_p1 = scmp.ne.s32.totalorder %s654_s24, %s7260_s17  ;;  %p7268_p8 = scmp.lt.s32.totalorder %s654_s24, %s654_s24 }
  0x58   : > { %p7269_p9 = scmp.lt.s32.totalorder %s7260_s17, %s7260_s17 }
  0x59   : > { %p7263_p4 = pnand %p7261_p1, %p8028_p6 }
  0x5a   : > { %6938 = dma.hbm_to_vmem [thread:$0]  (!%p8018_p5), %s9941_s8, 16, %s8024_s26, [#allocation22]  }
  0x5b   : > { %p7264_p7 = pneg %p7263_p4  ;;  %p7270_p10 = por %p7269_p9, %p7268_p8 }
  0x5d   : > { %p7271_p11 = pnand %p7270_p10, %p7264_p7 }
  0x5f   : > { %7274 = shalt.err (!%p7271_p11)
}
  0x60   : > { %s9942_s10 = sld [smem:[#allocation121_spill]]  ;;  %s7286_s26 = scalar_lea.vmem %s676_s21, 128 }
  0x61   : > { %p7287_p12 = scmp.ne.s32.totalorder %s676_s21, %s7286_s26  ;;  %p7294_p1 = scmp.lt.s32.totalorder %s676_s21, %s676_s21 }
  0x62   : > { %p7295_p4 = scmp.lt.s32.totalorder %s7286_s26, %s7286_s26 }
  0x63   : > { %p7289_p13 = pnand %p7287_p12, %p8028_p6 }
  0x64   : > { %p7296_p2 = por %p7295_p4, %p7294_p1 }
  0x65   : > { %p7290_p0 = pneg %p7289_p13 }
  0x66   : > { %6944 = dma.hbm_to_vmem [thread:$0]  (!%p8018_p5), %s9942_s10, 128, %s654_s24, [#allocation25]  }
  0x67   : > { %p7297_p3 = pnand %p7296_p2, %p7290_p0 }
  0x69   : > { %7300 = shalt.err (!%p7297_p3)
}
  0x6a   : > { %s9943_s12 = sld [smem:[#allocation122_spill]]  ;;  %s7813_s2 = smov [#allocation30]  }
  0x6b   : > { %s697_s24 = sshll.u32 %s7813_s2, 4  ;;  %s7814_s6 = smov [#allocation33]   ;;  %s698_s24 = int_to_ptr.vmem [resolvable:$true] %s697_s24 }
  0x6c   : > { %s719_s17 = sshll.u32 %s7814_s6, 4  ;;  %s7312_s3 = scalar_lea.vmem %s698_s24, 64  ;;  %s720_s17 = int_to_ptr.vmem [resolvable:$true] %s719_s17 }
  0x6d   : > { %p7313_p7 = scmp.ne.s32.totalorder %s698_s24, %s7312_s3  ;;  %p7320_p10 = scmp.lt.s32.totalorder %s698_s24, %s698_s24 }
  0x6e   : > { %p7321_p2 = scmp.lt.s32.totalorder %s7312_s3, %s7312_s3 }
  0x6f   : > { %p7315_p8 = pnand %p7313_p7, %p8028_p6 }
  0x70   : > { %6950 = dma.hbm_to_vmem [thread:$0]  (!%p8018_p5), %s9943_s12, 128, %s676_s21, [#allocation28]  }
  0x71   : > { %p7316_p9 = pneg %p7315_p8  ;;  %p7322_p3 = por %p7321_p2, %p7320_p10 }
  0x73   : > { %p7323_p11 = pnand %p7322_p3, %p7316_p9 }
  0x75   : > { %7326 = shalt.err (!%p7323_p11)
}
  0x76   : > { %s9944_s15 = sld [smem:[#allocation124_spill]]  ;;  %s7338_s21 = scalar_lea.vmem %s720_s17, 32 }
  0x77   : > { %p7339_p12 = scmp.ne.s32.totalorder %s720_s17, %s7338_s21  ;;  %p7346_p1 = scmp.lt.s32.totalorder %s720_s17, %s720_s17 }
  0x78   : > { %p7347_p4 = scmp.lt.s32.totalorder %s7338_s21, %s7338_s21 }
  0x79   : > { %p7341_p13 = pnand %p7339_p12, %p8028_p6 }
  0x7a   : > { %p7348_p7 = por %p7347_p4, %p7346_p1 }
  0x7b   : > { %p7342_p0 = pneg %p7341_p13 }
  0x7c   : > { %6956 = dma.hbm_to_vmem [thread:$0]  (!%p8018_p5), %s9944_s15, 64, %s698_s24, [#allocation31]  }
  0x7d   : > { %p7349_p8 = pnand %p7348_p7, %p7342_p0 }
  0x7f   : > { %7352 = shalt.err (!%p7349_p8)
}
  0x80   : > { %s9945_s18 = sld [smem:[#allocation126_spill]]  ;;  %s7815_s2 = smov [#allocation36]  }
  0x81   : > { %s741_s24 = sshll.u32 %s7815_s2, 4  ;;  %s742_s24 = int_to_ptr.vmem [resolvable:$true] %s741_s24 }
  0x82   : > { %s7364_s6 = scalar_lea.vmem %s742_s24, 32  ;;  %p7372_p3 = scmp.lt.s32.totalorder %s742_s24, %s742_s24 }
  0x83   : > { %p7365_p9 = scmp.ne.s32.totalorder %s742_s24, %s7364_s6  ;;  %p7373_p11 = scmp.lt.s32.totalorder %s7364_s6, %s7364_s6 }
  0x85   : > { %p7367_p10 = pnand %p7365_p9, %p8028_p6  ;;  %p7374_p12 = por %p7373_p11, %p7372_p3 }
  0x86   : > { %6962 = dma.hbm_to_vmem [thread:$0]  (!%p8018_p5), %s9945_s18, 32, %s720_s17, [#allocation34]  }
  0x87   : > { %p7368_p2 = pneg %p7367_p10 }
  0x89   : > { %p7375_p13 = pnand %p7374_p12, %p7368_p2 }
  0x8b   : > { %7378 = shalt.err (!%p7375_p13)
}
  0x8c   : > { %6968 = dma.hbm_to_vmem [thread:$0]  (!%p8018_p5), %s9834_s20, 32, %s742_s24, [#allocation37]  }
  0x8d   : > { %s56_s17 = sadd.s32 1, %s7793_s25  ;;  %s59_s26 = sadd.s32 1, %s7797_s5 }
  0x8e   : > { %p57_p0 = scmp.ge.s32.totalorder %s56_s17, 2  ;;  %s63_s21 = sadd.s32 1, %s7801_s1 }
  0x8f   : > { %s7816_s23 = smov [#allocation9]   ;;  %s7817_s2 = smov [#allocation14]  }
  0x90   : > { %s10096_s17 = smov (%p57_p0, %s56_s17), 0  ;;  %s10098_s26 = smov (!%p57_p0, %s59_s26), %s7797_s5 }
  0x91   : > { %s550_s13 = sshll.u32 %s7816_s23, 4  ;;  %s572_s6 = sshll.u32 %s7817_s2, 4  ;;  %s551_s13 = int_to_ptr.vmem [resolvable:$true] %s550_s13  ;;  %s573_s6 = int_to_ptr.vmem [resolvable:$true] %s572_s6 }
  0x92   : > { %p61_p1 = scmp.ge.s32.totalorder %s10098_s26, 8  ;;  %s7390_s3 = scalar_lea.vmem %s551_s13, 32 }
  0x93   : > { %p7391_p4 = scmp.ne.s32.totalorder %s551_s13, %s7390_s3  ;;  %p7398_p9 = scmp.lt.s32.totalorder %s551_s13, %s551_s13 }
  0x94   : > { %p7399_p10 = scmp.lt.s32.totalorder %s7390_s3, %s7390_s3 }
  0x95   : > { %p7393_p7 = pnand %p7391_p4, %p8028_p6 }
  0x96   : > { %p7400_p2 = por %p7399_p10, %p7398_p9 }
  0x97   : > { %p7394_p8 = pneg %p7393_p7 }
  0x99   : > { %p7401_p3 = pnand %p7400_p2, %p7394_p8 }
  0x9b   : > { %7404 = shalt.err (!%p7401_p3)
}
  0x9c   : > { %s9946_s8 = sld [smem:[#allocation113_spill]]  ;;  %s10100_s26 = smov (%p61_p1, %s10098_s26), 0 }
  0x9d   : > { %s10102_s21 = smov (!%p61_p1, %s63_s21), %s7801_s1  ;;  %s7818_s23 = smov [#allocation17]  }
  0x9e   : > { %p65_p11 = scmp.ge.s32.totalorder %s10102_s21, 3  ;;  %s593_s2 = sshll.u32 %s7818_s23, 4  ;;  %s594_s2 = int_to_ptr.vmem [resolvable:$true] %s593_s2 }
  0x9f   : > { %s7416_s10 = scalar_lea.vmem %s573_s6, 16  ;;  %s7423_s3 = scalar_lea.vmem %s573_s6, 32 }
  0xa0   : > { %p7417_p12 = scmp.ne.s32.totalorder %s573_s6, %s7416_s10  ;;  %p7424_p4 = scmp.lt.s32.totalorder %s573_s6, %s573_s6 }
  0xa1   : > { %p7425_p7 = scmp.lt.s32.totalorder %s7423_s3, %s7416_s10 }
  0xa2   : > { %6917 = dma.hbm_to_vmem [thread:$0]  (!%p8018_p5), %s9946_s8, 32, %s551_s13, [#allocation10]  }
  0xa3   : > { %p7419_p13 = pnand %p7417_p12, %p8028_p6  ;;  %p7426_p8 = por %p7425_p7, %p7424_p4 }
  0xa5   : > { %p7420_p0 = pneg %p7419_p13 }
  0xa7   : > { %p7427_p9 = pnand %p7426_p8, %p7420_p0 }
  0xa9   : > { %7430 = shalt.err (!%p7427_p9)
}
  0xaa   : > { %s9947_s24 = sld [smem:[#allocation115_spill]]  ;;  %s10104_s21 = smov (%p65_p11, %s10102_s21), 0 }
  0xab   : > { %s7442_s0 = scalar_lea.vmem %s594_s2, 512  ;;  %p7450_p3 = scmp.lt.s32.totalorder %s594_s2, %s594_s2 }
  0xac   : > { %p7443_p1 = scmp.ne.s32.totalorder %s594_s2, %s7442_s0  ;;  %p7451_p12 = scmp.lt.s32.totalorder %s7442_s0, %s7442_s0 }
  0xae   : > { %p7445_p10 = pnand %p7443_p1, %p8028_p6  ;;  %p7452_p13 = por %p7451_p12, %p7450_p3 }
  0xb0   : > { %6923 = dma.hbm_to_vmem [thread:$0]  (!%p8018_p5), %s9947_s24, 16, %s573_s6, [#allocation13]  }
  0xb1   : > { %p7446_p2 = pneg %p7445_p10 }
  0xb3   : > { %p7453_p0 = pnand %p7452_p13, %p7446_p2 }
  0xb5   : > { %7456 = shalt.err (!%p7453_p0)
}
  0xb6   : > { %s7819_s10 = smov 64   ;;  %s7820_s23 = smov 4  }
  0xb7   : > { %s9948_s8 = sld [smem:[#allocation117_spill]]  ;;  %s7821_s13 = smov [#allocation20]  }
  0xb8   : > { %s618_s24 = sshll.u32 %s7821_s13, 4  ;;  %s7822_s12 = smov [#allocation23]   ;;  %s619_s24 = int_to_ptr.vmem [resolvable:$true] %s618_s24 }
  0xb9   : > { %s639_s15 = sshll.u32 %s7822_s12, 4  ;;  %s7468_s18 = scalar_lea.vmem %s619_s24, 16  ;;  %s640_s15 = int_to_ptr.vmem [resolvable:$true] %s639_s15 }
  0xba   : > { %p7469_p11 = scmp.ne.s32.totalorder %s619_s24, %s7468_s18  ;;  %s7475_s0 = scalar_lea.vmem %s619_s24, 32 }
  0xbb   : > { %p7476_p8 = scmp.lt.s32.totalorder %s619_s24, %s619_s24  ;;  %p7477_p9 = scmp.lt.s32.totalorder %s7475_s0, %s7468_s18 }
  0xbc   : > { %p7471_p4 = pnand %p7469_p11, %p8028_p6 }
  0xbd   : > { %6929 = dma.hbm_to_vmem [thread:$0]  (!%p8018_p5), %s9948_s8, 512, %s594_s2, [#allocation16], %s7819_s10, %s7819_s10, %s7820_s23  }
  0xbe   : > { %p7472_p7 = pneg %p7471_p4  ;;  %p7478_p1 = por %p7477_p9, %p7476_p8 }
  0xc0   : > { %p7479_p10 = pnand %p7478_p1, %p7472_p7 }
  0xc2   : > { %7482 = shalt.err (!%p7479_p10)
}
  0xc3   : > { %s9949_s10 = sld [smem:[#allocation119_spill]]  ;;  %s7494_s12 = scalar_lea.vmem %s640_s15, 8192 }
  0xc4   : > { %p7495_p2 = scmp.ne.s32.totalorder %s640_s15, %s7494_s12  ;;  %p7502_p13 = scmp.lt.s32.totalorder %s640_s15, %s640_s15 }
  0xc5   : > { %p7503_p0 = scmp.lt.s32.totalorder %s7494_s12, %s7494_s12 }
  0xc6   : > { %p7497_p3 = pnand %p7495_p2, %p8028_p6 }
  0xc7   : > { %p7504_p11 = por %p7503_p0, %p7502_p13 }
  0xc8   : > { %p7498_p12 = pneg %p7497_p3 }
  0xc9   : > { %6935 = dma.hbm_to_vmem [thread:$0]  (!%p8018_p5), %s9949_s10, 16, %s619_s24, [#allocation19]  }
  0xca   : > { %p7505_p4 = pnand %p7504_p11, %p7498_p12 }
  0xcc   : > { %7508 = shalt.err (!%p7505_p4)
}
  0xcd   : > { %s7823_s18 = smov 512   ;;  %s7824_s23 = smov 32  }
  0xce   : > { %6941 = dma.hbm_to_vmem [thread:$0]  (!%p8018_p5), %s9823_s9, 8192, %s640_s15, [#allocation22], %s7823_s18, %s7823_s18, %s7824_s23  }
  0xcf   : > { %s7825_s13 = smov [#allocation26]   ;;  %s7826_s0 = smov [#allocation29]  }
  0xd0   : > { %s664_s24 = sshll.u32 %s7825_s13, 4  ;;  %s686_s6 = sshll.u32 %s7826_s0, 4  ;;  %s665_s24 = int_to_ptr.vmem [resolvable:$true] %s664_s24  ;;  %s687_s6 = int_to_ptr.vmem [resolvable:$true] %s686_s6 }
  0xd1   : > { %s7520_s2 = scalar_lea.vmem %s665_s24, 128  ;;  %p7528_p1 = scmp.lt.s32.totalorder %s665_s24, %s665_s24 }
  0xd2   : > { %p7521_p7 = scmp.ne.s32.totalorder %s665_s24, %s7520_s2  ;;  %p7529_p10 = scmp.lt.s32.totalorder %s7520_s2, %s7520_s2 }
  0xd4   : > { %p7523_p8 = pnand %p7521_p7, %p8028_p6  ;;  %p7530_p2 = por %p7529_p10, %p7528_p1 }
  0xd6   : > { %p7524_p9 = pneg %p7523_p8 }
  0xd8   : > { %p7531_p3 = pnand %p7530_p2, %p7524_p9 }
  0xda   : > { %7534 = shalt.err (!%p7531_p3)
}
  0xdb   : > { %6947 = dma.hbm_to_vmem [thread:$0]  (!%p8018_p5), %s9825_s11, 128, %s665_s24, [#allocation25]  }
  0xdc   : > { %s7546_s15 = scalar_lea.vmem %s687_s6, 64  ;;  %p7554_p11 = scmp.lt.s32.totalorder %s687_s6, %s687_s6 }
  0xdd   : > { %p7547_p12 = scmp.ne.s32.totalorder %s687_s6, %s7546_s15  ;;  %p7555_p4 = scmp.lt.s32.totalorder %s7546_s15, %s7546_s15 }
  0xdf   : > { %p7549_p13 = pnand %p7547_p12, %p8028_p6  ;;  %p7556_p7 = por %p7555_p4, %p7554_p11 }
  0xe1   : > { %p7550_p0 = pneg %p7549_p13 }
  0xe3   : > { %p7557_p8 = pnand %p7556_p7, %p7550_p0 }
  0xe5   : > { %7560 = shalt.err (!%p7557_p8)
}
  0xe6   : > { %6953 = dma.hbm_to_vmem [thread:$0]  (!%p8018_p5), %s9828_s14, 64, %s687_s6, [#allocation28]  }
  0xe7   : > { %s7827_s3 = smov [#allocation32]   ;;  %s7828_s13 = smov [#allocation35]  }
  0xe8   : > { %s708_s8 = sshll.u32 %s7827_s3, 4  ;;  %s730_s24 = sshll.u32 %s7828_s13, 4  ;;  %s709_s8 = int_to_ptr.vmem [resolvable:$true] %s708_s8  ;;  %s731_s24 = int_to_ptr.vmem [resolvable:$true] %s730_s24 }
  0xe9   : > { %s7572_s0 = scalar_lea.vmem %s709_s8, 64  ;;  %p7580_p2 = scmp.lt.s32.totalorder %s709_s8, %s709_s8 }
  0xea   : > { %p7573_p9 = scmp.ne.s32.totalorder %s709_s8, %s7572_s0  ;;  %p7581_p3 = scmp.lt.s32.totalorder %s7572_s0, %s7572_s0 }
  0xec   : > { %p7575_p1 = pnand %p7573_p9, %p8028_p6  ;;  %p7582_p12 = por %p7581_p3, %p7580_p2 }
  0xee   : > { %p7576_p10 = pneg %p7575_p1 }
  0xf0   : > { %p7583_p13 = pnand %p7582_p12, %p7576_p10 }
  0xf2   : > { %7586 = shalt.err (!%p7583_p13)
}
  0xf3   : > { %6959 = dma.hbm_to_vmem [thread:$0]  (!%p8018_p5), %s9830_s16, 64, %s709_s8, [#allocation31]  }
  0xf4   : > { %s7598_s6 = scalar_lea.vmem %s731_s24, 32  ;;  %p7606_p7 = scmp.lt.s32.totalorder %s731_s24, %s731_s24 }
  0xf5   : > { %p7599_p0 = scmp.ne.s32.totalorder %s731_s24, %s7598_s6  ;;  %p7607_p8 = scmp.lt.s32.totalorder %s7598_s6, %s7598_s6 }
  0xf7   : > { %p7601_p11 = pnand %p7599_p0, %p8028_p6  ;;  %p7608_p9 = por %p7607_p8, %p7606_p7 }
  0xf9   : > { %p7602_p4 = pneg %p7601_p11 }
  0xfb   : > { %p7609_p1 = pnand %p7608_p9, %p7602_p4 }
  0xfd   : > { %7612 = shalt.err (!%p7609_p1)
}
  0xfe   : > { %6965 = dma.hbm_to_vmem [thread:$0]  (!%p8018_p5), %s9833_s19, 32, %s731_s24, [#allocation34]  }
  0xff   : > { %s7829_s18 = smov [#allocation38]  }
 0x100   : > { %s755_s23 = sshll.u32 %s7829_s18, 4  ;;  %s756_s23 = int_to_ptr.vmem [resolvable:$true] %s755_s23 }
 0x101   : > { %s7624_s3 = scalar_lea.vmem %s756_s23, 16  ;;  %s7631_s8 = scalar_lea.vmem %s756_s23, 32 }
 0x102   : > { %p7625_p10 = scmp.ne.s32.totalorder %s756_s23, %s7624_s3  ;;  %p7632_p12 = scmp.lt.s32.totalorder %s756_s23, %s756_s23 }
 0x103   : > { %p7633_p13 = scmp.lt.s32.totalorder %s7631_s8, %s7624_s3 }
 0x104   : > { %p7627_p2 = pnand %p7625_p10, %p8028_p6 }
 0x105   : > { %p7634_p0 = por %p7633_p13, %p7632_p12 }
 0x106   : > { %p7628_p3 = pneg %p7627_p2 }
 0x108   : > { %p7635_p11 = pnand %p7634_p0, %p7628_p3 }
 0x10a   : > { %7638 = shalt.err (!%p7635_p11)
}
 0x10b   : > { %6971 = dma.hbm_to_vmem [thread:$0]  (!%p8018_p5), %s9836_s22, 16, %s756_s23, [#allocation37]  }
 0x10c   : > { %p9950_p4 = scmp.ne.s32.totalorder %s9935_s28, 0 }
 0x10d   : > { %p9951_p7 = scmp.ne.s32.totalorder (!%p9950_p4), %s9934_s7, 0 }
 0x10e   : > { %781 = sbr.rel (%p9950_p4) target bundleno = 3441 (0xd71), region = 104 }
 0x113   : > { %7732 = dma.done.wait (%p9951_p7), [#allocation10], 32  }
 0x114   : > { %7734 = vsyncadd (%p9951_p7), [#allocation10], 4294967264 }
 0x115   : > { %7736 = dma.done.wait (%p9951_p7), [#allocation13], 32  }
 0x116   : > { %7738 = vsyncadd (%p9951_p7), [#allocation13], 4294967264 }
 0x117   : > { %7740 = dma.done.wait (%p9951_p7), [#allocation16], 528  }
 0x118   : > { %7742 = vsyncadd (%p9951_p7), [#allocation16], 4294966768 }
 0x119   : > { %7744 = dma.done.wait (%p9951_p7), [#allocation19], 32  }
 0x11a   : > { %7746 = vsyncadd (%p9951_p7), [#allocation19], 4294967264 }
 0x11b   : > { %7748 = dma.done.wait (%p9951_p7), [#allocation22], 8208  }
 0x11c   : > { %7750 = vsyncadd (%p9951_p7), [#allocation22], 4294959088 }
 0x11d   : > { %7752 = dma.done.wait (%p9951_p7), [#allocation25], 256  }
 0x11e   : > { %7754 = vsyncadd (%p9951_p7), [#allocation25], 4294967040 }
 0x11f   : > { %7756 = dma.done.wait (%p9951_p7), [#allocation28], 192  }
 0x120   : > { %7758 = vsyncadd (%p9951_p7), [#allocation28], 4294967104 }
 0x121   : > { %7760 = dma.done.wait (%p9951_p7), [#allocation31], 128  }
 0x122   : > { %7762 = vsyncadd (%p9951_p7), [#allocation31], 4294967168 }
 0x123   : > { %7764 = dma.done.wait (%p9951_p7), [#allocation34], 64  }
 0x124   : > { %7766 = vsyncadd (%p9951_p7), [#allocation34], 4294967232 }
 0x125   : > { %7768 = dma.done.wait (%p9951_p7), [#allocation37], 48  }
 0x126   : > { %7770 = vsyncadd (%p9951_p7), [#allocation37], 4294967248  ;;  %s9952_s27 = sld [smem:[#allocation63_spill]]  ;;  %s6447_s28 = sshll.u32 %s7781_s4, 3 }
 0x127   : > { %p913_p5 = scmp.lt.s32.totalorder %s7785_s30, 7  ;;  %p915_p6 = scmp.lt.s32.totalorder %s6447_s28, 15 }
 0x128   : > { %p924_p9 = scmp.eq.s32.totalorder %s7785_s30, 0  ;;  %p927_p1 = scmp.eq.s32.totalorder %s7781_s4, 0 }
 0x129   : > { %s914_s29 = scalar_select %p913_p5, %s7785_s30, 7 }
 0x12a   : > { %s10106_s28 = smov (!%p915_p6, %s6447_s28), 15  ;;  %s9953_s12 = sld [smem:[#allocation112_spill]] }
 0x12b   : > { %s6448_s24 = sshll.u32 %s914_s29, 4 }
 0x12c   : > { %p923_p8 = scmp.eq.s32.totalorder %s9952_s27, 0  ;;  %s918_s2 = sadd.s32 %s6448_s24, %s10106_s28 }
 0x12d   : > { %s6449_s10 = sshll.u32 %s918_s2, 2 }
 0x12e   : > { %p925_p10 = pnand %p924_p9, %p923_p8 }
 0x130   : > { %s8246_s15 = scalar_lea.vmem %s9953_s12, %s6449_s10  ;;  %p926_p2 = pneg %p925_p10 }
 0x132   : > { %p928_p3 = pnand %p927_p1, %p926_p2 }
 0x134   : > { %931 = sbr.rel (%p928_p3) target bundleno = 321 (0x141), region = 184 }
 0x139   : > { %vm932_vm0 = vcmask 516096   ;;  %v7830_v0 = vmov 0.0  }
 0x13a   : > { %933 = vst.msk [vmem:[#allocation2] sm:$0x1] %vm932_vm0, %v7830_v0  ;;  %934 = vst.msk [vmem:[#allocation3] sm:$0x1] %vm932_vm0, %v7830_v0 }
 0x13b   : > { %935 = vst [vmem:[#allocation4] sm:$0x1] %v7830_v0  ;;  %936 = vst [vmem:[#allocation5] sm:$0x1] %v7830_v0 }
 0x13c   : > { %937 = vst [vmem:[#allocation6] sm:$0xff] %v7830_v0  ;;  %938 = vst [vmem:[#allocation7] sm:$0xff] %v7830_v0 }
 0x13d   : > { %939 = vst [vmem:[#allocation8] sm:$0xff] %v7830_v0  ;;  %940 = vst [vmem:[#allocation8 + $0x8] sm:$0xff] %v7830_v0 }
 0x13e   : > { %941 = vst [vmem:[#allocation8 + $0x10] sm:$0xff] %v7830_v0  ;;  %942 = vst [vmem:[#allocation8 + $0x18] sm:$0xff] %v7830_v0 }
 0x13f   : > { %943 = vst [vmem:[#allocation8 + $0x20] sm:$0xff] %v7830_v0  ;;  %944 = vst [vmem:[#allocation8 + $0x28] sm:$0xff] %v7830_v0 }
 0x140   : > { %945 = vst [vmem:[#allocation8 + $0x30] sm:$0xff] %v7830_v0  ;;  %946 = vst [vmem:[#allocation8 + $0x38] sm:$0xff] %v7830_v0 }
 0x141 PF: > { %s9954_s18 = sld [smem:[#allocation63_spill]] }
 0x147   : > { %p6450_p12 = scmp.ne.s32.totalorder %s9954_s18, 0 }
 0x148   : > { %s6460_s23 = sshll.u32 (!%p6450_p12), %s7781_s4, 6 }
 0x149   : > { %949 = sbr.rel (%p6450_p12) target bundleno = 765 (0x2fd), region = 188 }
 0x14e   : > { %v958_v1 = vld [vmem:[#allocation9] sm:$0x3]  ;;  %vm999_vm1 = vcmask 1040384   ;;  %vm1000_vm2 = vcmask 1041408   ;;  %v7105_v2 = vld [vmem:[%s8246_s15] sm:$0xff]   ;;  %v7831_v3 = vmov 65535   ;;  %v1080_v22 = vlaneseq }
 0x14f   : > { %v1001_v4 = vsel %vm999_vm1, 4294967295, %v7831_v3  ;;  %vm986_vm3 = vcmask 23552   ;;  %v7106_v7 = vld [vmem:[%s8246_s15 + $0x8] sm:$0xff]   ;;  %v7107_v8 = vld [vmem:[%s8246_s15 + $0x10] sm:$0xff]   ;;  %v7108_v9 = vld [vmem:[%s8246_s15 + $0x18] sm:$0xff]   ;;  %v7832_v10 = vmov 0.0   ;;  %v1082_v34 = vstv %s6460_s23 }
 0x150   : > { %v1002_v5 = vsel %vm1000_vm2, %v1001_v4, 0  ;;  %6698 = vmatprep.mubr.msk.bf16.mxu0 %vm986_vm3, %v7105_v2  ;;  %6706 = vmatprep.subr.mxu1 %v7832_v10  ;;  %vm7833_vm4 = vmmov 0   ;;  %v6451_v16 = vld [vmem:[#allocation12] ss:$0 sm:$0xff]  ;;  %v1081_v30 = vand.u32 127, %v1080_v22  ;;  %vm1088_vm6 = vcmask 523264  }
 0x151   : > { %v1004_v6 = vand.u32 %v1002_v5, %v958_v1  ;;  %6722 = vmatprep.mubr.msk.f32.mxu1 %vm7833_vm4, %v7832_v10  ;;  %v1087_v49 = vld [vmem:[#allocation2] sm:$0x1]  ;;  %vm1163_vm7 = vcmask 516096   ;;  %v1165_v51 = vld [vmem:[#allocation3] sm:$0x1] }
 0x152   : > { %v1083_v38 = vadd.s32 %v1082_v34, %v1081_v30 }
 0x153   : > { %6696 = vmatprep.subr.bf16.mxu0 %v1004_v6 }
 0x154   : > { %6697 = vmatpush3.bf16.msra.mxu0 %v1004_v6  ;;  %vm1084_vm5 = vcmp.lt.s32.totalorder %v1083_v38, 100 }
 0x155   : > { %6725 = vmatprep.subr.mxu0 %v7832_v10  ;;  %v6461_v47 = vsel %vm1084_vm5, 1.0, %v7832_v10 }
 0x157   : > { %6699 = vmatmul.mubr.msk.bf16.vlgmr.msra.gmra.mxu0 %vm986_vm3, %v7106_v7 }
 0x158   : > { %6702 = vmatprep.mubr.msk.bf16.mxu0 %vm986_vm3, %v7107_v8 }
 0x15f   : > { %6703 = vmatmul.mubr.msk.bf16.gmra.mxu0 %vm986_vm3, %v7108_v9 }
 0x160   : > { %6741 = vmatprep.mubr.msk.f32.mxu0 %vm7833_vm4, %v7832_v10 }
 0x217   : > { %v6700_v11 = vpop.f32.mrf.mxu0 }
 0x218   : > { %v1049_v31 = vadd.f32 %v6700_v11, %v6451_v16 }
 0x219   : > { %v1040_v12 = vpop.f32.mrf.mxu0 }
 0x21a   : > { %v1073_v39 = vmax.f32 %v1049_v31, 0.0  ;;  %v1041_v40 = vadd.f32 %v6451_v16, %v1040_v12 }
 0x21b   : > { %v6701_v13 = vpop.f32.mrf.mxu0 }
 0x21c   : > { %v1052_v27 = vadd.f32 %v6701_v13, %v6451_v16  ;;  %v1168_v44 = vmul.f32 %v1073_v39, %v1073_v39  ;;  %v1071_v45 = vmax.f32 %v1041_v40, 0.0 }
 0x21d   : > { %v1043_v14 = vpop.f32.mrf.mxu0 }
 0x21e   : > { %v1074_v35 = vmax.f32 %v1052_v27, 0.0  ;;  %v1044_v36 = vadd.f32 %v6451_v16, %v1043_v14  ;;  %v1166_v48 = vmul.f32 %v1071_v45, %v1071_v45 }
 0x21f   : > { %v6704_v15 = vpop.f32.mrf.mxu0 }
 0x220   : > { %v1065_v18 = vadd.f32 %v6704_v15, %v6451_v16  ;;  %v1169_v42 = vmul.f32 %v1074_v35, %v1074_v35  ;;  %v1072_v43 = vmax.f32 %v1044_v36, 0.0 }
 0x221   : > { %v1056_v17 = vpop.f32.mrf.mxu0 }
 0x222   : > { %v1077_v23 = vmax.f32 %v1065_v18, 0.0  ;;  %v1057_v24 = vadd.f32 %v6451_v16, %v1056_v17  ;;  %v1167_v46 = vmul.f32 %v1072_v43, %v1072_v43 }
 0x223   : > { %v6705_v19 = vpop.f32.mrf.mxu0 }
 0x224   : > { %v1068_v20 = vadd.f32 %v6705_v19, %v6451_v16  ;;  %v1172_v32 = vmul.f32 %v1077_v23, %v1077_v23  ;;  %v1075_v33 = vmax.f32 %v1057_v24, 0.0 }
 0x225   : > { %v1059_v21 = vpop.f32.mrf.mxu0 }
 0x226   : > { %v1078_v25 = vmax.f32 %v1068_v20, 0.0  ;;  %v1060_v26 = vadd.f32 %v6451_v16, %v1059_v21  ;;  %v1170_v41 = vmul.f32 %v1075_v33, %v1075_v33 }
 0x228   : > { %v1173_v28 = vmul.f32 %v1078_v25, %v1078_v25  ;;  %v1076_v29 = vmax.f32 %v1060_v26, 0.0  ;;  %6707 = vmatpush3.msra.mxu1 %v1078_v25 }
 0x229   : > { %6708 = vmatprep.subr.mxu1 %v7832_v10 }
 0x22a   : > { %6709 = vmatpush3.msra.mxu1 %v1077_v23  ;;  %6726 = vmatpush3.msra.mxu0 %v1173_v28  ;;  %v1171_v37 = vmul.f32 %v1076_v29, %v1076_v29 }
 0x22b   : > { %6710 = vmatprep.subr.mxu1 %v7832_v10  ;;  %6727 = vmatprep.subr.mxu0 %v7832_v10 }
 0x22c   : > { %6711 = vmatpush3.msra.mxu1 %v1076_v29  ;;  %6728 = vmatpush3.msra.mxu0 %v1172_v32 }
 0x22d   : > { %6712 = vmatprep.subr.mxu1 %v7832_v10  ;;  %6729 = vmatprep.subr.mxu0 %v7832_v10 }
 0x22e   : > { %6713 = vmatpush3.msra.mxu1 %v1075_v33  ;;  %6730 = vmatpush3.msra.mxu0 %v1171_v37 }
 0x22f   : > { %6714 = vmatprep.subr.mxu1 %v7832_v10  ;;  %6731 = vmatprep.subr.mxu0 %v7832_v10 }
 0x230   : > { %6715 = vmatpush3.msra.mxu1 %v1074_v35  ;;  %6732 = vmatpush3.msra.mxu0 %v1170_v41 }
 0x231   : > { %6716 = vmatprep.subr.mxu1 %v7832_v10  ;;  %6733 = vmatprep.subr.mxu0 %v7832_v10 }
 0x232   : > { %6717 = vmatpush3.msra.mxu1 %v1073_v39  ;;  %6734 = vmatpush3.msra.mxu0 %v1169_v42 }
 0x233   : > { %6718 = vmatprep.subr.mxu1 %v7832_v10  ;;  %6735 = vmatprep.subr.mxu0 %v7832_v10 }
 0x234   : > { %6719 = vmatpush3.msra.mxu1 %v1072_v43  ;;  %6736 = vmatpush3.msra.mxu0 %v1168_v44 }
 0x235   : > { %6720 = vmatprep.subr.mxu1 %v7832_v10  ;;  %6737 = vmatprep.subr.mxu0 %v7832_v10 }
 0x236   : > { %6721 = vmatpush3.msra.mxu1 %v1071_v45  ;;  %6738 = vmatpush3.msra.mxu0 %v1167_v46 }
 0x237   : > { %6739 = vmatprep.subr.mxu0 %v7832_v10  ;;  %6723 = vmatmul.mubr.msk.f32.vlgmr.msra.gmra.mxu1 %vm1088_vm6, %v6461_v47 }
 0x238   : > { %6740 = vmatpush3.msra.mxu0 %v1166_v48 }
 0x239   : > { %6742 = vmatmul.mubr.msk.f32.vlgmr.msra.gmra.mxu0 %vm1088_vm6, %v6461_v47 }
 0x2f7   : > { %v1158_v50 = vpop.f32.mrf.mxu1 }
 0x2f8   : > { %v1162_v52 = vadd.f32 %v1158_v50, %v1087_v49 }
 0x2f9   : > { %v1240_v53 = vpop.f32.mrf.mxu0  ;;  %v6724_v54 = vpop.f32.mrf.mxu1 }
 0x2fa   : > { %1164 = vst.msk [vmem:[#allocation2] sm:$0x1] %vm1163_vm7, %v1162_v52  ;;  %v1244_v55 = vadd.f32 %v1240_v53, %v1165_v51 }
 0x2fb   : > { %v6743_v56 = vpop.f32.mrf.mxu0 }
 0x2fc   : > { %1245 = vst.msk [vmem:[#allocation3] sm:$0x1] %vm1163_vm7, %v1244_v55 }
 0x2fd PF: > { %s9955_s3 = sld [smem:[#allocation63_spill]] }
 0x303   : > { %p6464_p13 = scmp.ne.s32.totalorder %s9955_s3, 1 }
 0x304   : > { %s6483_s8 = sshll.u32 (!%p6464_p13), %s7781_s4, 6 }
 0x305   : > { %1249 = sbr.rel (%p6464_p13) target bundleno = 1419 (0x58b), region = 192 }
 0x30a   : > { %v1258_v57 = vld [vmem:[#allocation9] sm:$0x3]  ;;  %vm1299_vm8 = vcmask 1040384   ;;  %vm1300_vm9 = vcmask 1041408   ;;  %v7109_v58 = vld [vmem:[%s8246_s15] sm:$0xff]   ;;  %v7834_v59 = vmov 65535   ;;  %v1394_v16 = vlaneseq }
 0x30b   : > { %v1301_v60 = vsel %vm1299_vm8, 4294967295, %v7834_v59  ;;  %vm1286_vm10 = vcmask 23552   ;;  %v7110_v63 = vld [vmem:[%s8246_s15 + $0x8] sm:$0xff]   ;;  %v7111_v0 = vld [vmem:[%s8246_s15 + $0x10] sm:$0xff]   ;;  %v7112_v1 = vld [vmem:[%s8246_s15 + $0x18] sm:$0xff]   ;;  %vm1464_vm11 = vcmask 523264  }
 0x30c   : > { %v1302_v61 = vsel %vm1300_vm9, %v1301_v60, 0  ;;  %6746 = vmatprep.mubr.msk.bf16.mxu0 %vm1286_vm10, %v7109_v58  ;;  %v7113_v2 = vld [vmem:[#allocation17 + $0x18] sm:$0xff]   ;;  %v7114_v3 = vld [vmem:[#allocation17 + $0x10] sm:$0xff]   ;;  %v7115_v4 = vld [vmem:[#allocation17 + $0x8] sm:$0xff]   ;;  %v1395_v18 = vshrl.u32 %v1394_v16, 7  ;;  %vm7836_vm12 = vmmov 0  }
 0x30d   : > { %v1304_v62 = vand.u32 %v1302_v61, %v1258_v57  ;;  %6754 = vmatprep.subr.bf16.mxu1 %v7113_v2  ;;  %v7116_v5 = vld [vmem:[#allocation17] sm:$0xff]   ;;  %v1388_v15 = vld [vmem:[#allocation14] sm:$0x1]  ;;  %v6465_v20 = vld [vmem:[#allocation12] ss:$0 sm:$0xff] }
 0x30e   : > { %6755 = vmatpush3.bf16.msra.mxu1 %v7113_v2  ;;  %v1379_v6 = vld [vmem:[#allocation2] sm:$0x1]  ;;  %v1381_v8 = vld [vmem:[#allocation3] sm:$0x1]  ;;  %v1390_v24 = vld [vmem:[#allocation15] sm:$0x1] }
 0x30f   : > { %6744 = vmatprep.subr.bf16.mxu0 %v1304_v62  ;;  %6756 = vmatprep.subr.bf16.mxu1 %v7114_v3  ;;  %v1380_v7 = vmul.f32 0.00125, %v1379_v6  ;;  %v1382_v9 = vmul.f32 0.00125, %v1381_v8  ;;  %v1396_v25 = vsub.s32 0, %v1395_v18  ;;  %v7835_v6 = vmov 0.0  }
 0x310   : > { %6745 = vmatpush3.bf16.msra.mxu0 %v1304_v62 }
 0x311   : > { %v1383_v10 = vmul.f32 %v1380_v7, %v1380_v7  ;;  %6770 = vmatprep.subr.mxu0 %v7835_v6 }
 0x312   : > { %6757 = vmatpush3.bf16.msra.mxu1 %v7114_v3 }
 0x313   : > { %6747 = vmatmul.mubr.msk.bf16.vlgmr.msra.gmra.mxu0 %vm1286_vm10, %v7110_v63  ;;  %6758 = vmatprep.subr.bf16.mxu1 %v7115_v4  ;;  %v1384_v11 = vsub.f32 %v1382_v9, %v1383_v10 }
 0x314   : > { %6750 = vmatprep.mubr.msk.bf16.mxu0 %vm1286_vm10, %v7111_v0 }
 0x315   : > { %v1385_v12 = vmax.f32 %v1384_v11, 0.0 }
 0x316   : > { %6759 = vmatpush3.bf16.msra.mxu1 %v7115_v4 }
 0x317   : > { %6760 = vmatprep.subr.bf16.mxu1 %v7116_v5  ;;  %v1386_v13 = vadd.f32 1e-05, %v1385_v12  ;;  %v6474_v12 = vld [vmem:[#allocation18] ss:$0 sm:$0xff] }
 0x319   : > { %7117 = vrsqrt.f32 %v1386_v13 }
 0x31a   : > { %6761 = vmatpush3.bf16.msra.mxu1 %v7116_v5 }
 0x31b   : > { %6751 = vmatmul.mubr.msk.bf16.gmra.mxu0 %vm1286_vm10, %v7112_v1  ;;  %6789 = vmatprep.subr.mxu1 %v7835_v6 }
 0x31c   : > { %6786 = vmatprep.mubr.msk.f32.mxu0 %vm7836_vm12, %v7835_v6 }
 0x326   : > { %v7118_v14 = vpop.eup %7117 }
 0x327   : > { %v1389_v17 = vmul.f32 %v7118_v14, %v1388_v15 }
 0x329   : > { %v1391_v21 = vmul.f32 %v1389_v17, %v1380_v7  ;;  %v1397_v33 = vrot.slane %v1389_v17, %v1396_v25 }
 0x32b   : > { %v1392_v29 = vsub.f32 %v1390_v24, %v1391_v21 }
 0x32d   : > { %v1411_v39 = vrot.slane %v1392_v29, %v1396_v25 }
 0x3d3   : > { %v6748_v19 = vpop.f32.mrf.mxu0 }
 0x3d4   : > { %v1349_v23 = vadd.f32 %v6748_v19, %v6465_v20 }
 0x3d5   : > { %v1340_v22 = vpop.f32.mrf.mxu0 }
 0x3d6   : > { %v1341_v26 = vadd.f32 %v6465_v20, %v1340_v22  ;;  %v1373_v32 = vmax.f32 %v1349_v23, 0.0 }
 0x3d7   : > { %v6749_v27 = vpop.f32.mrf.mxu0 }
 0x3d8   : > { %v1352_v28 = vadd.f32 %v6749_v27, %v6465_v20  ;;  %v1371_v30 = vmax.f32 %v1341_v26, 0.0  ;;  %v1401_v42 = vmul.f32 %v1397_v33, %v1373_v32  ;;  %v1552_v26 = vand.u32 127, %v1394_v16 }
 0x3d9   : > { %v1343_v31 = vpop.f32.mrf.mxu0 }
 0x3da   : > { %v1374_v34 = vmax.f32 %v1352_v28, 0.0  ;;  %v1344_v35 = vadd.f32 %v6465_v20, %v1343_v31  ;;  %v1399_v40 = vmul.f32 %v1397_v33, %v1371_v30  ;;  %v1415_v53 = vadd.f32 %v1411_v39, %v1401_v42 }
 0x3db   : > { %v6752_v36 = vpop.f32.mrf.mxu0  ;;  %v1553_v30 = vstv %s6483_s8 }
 0x3dc   : > { %v1402_v37 = vmul.f32 %v1397_v33, %v1374_v34  ;;  %v1372_v38 = vmax.f32 %v1344_v35, 0.0  ;;  %v1365_v44 = vadd.f32 %v6752_v36, %v6465_v20  ;;  %v1413_v51 = vadd.f32 %v1411_v39, %v1399_v40 }
 0x3dd   : > { %v1356_v41 = vpop.f32.mrf.mxu0  ;;  %v1554_v16 = vadd.s32 %v1553_v30, %v1552_v26 }
 0x3de   : > { %v1400_v43 = vmul.f32 %v1397_v33, %v1372_v38  ;;  %v1357_v45 = vadd.f32 %v6465_v20, %v1356_v41  ;;  %v1416_v47 = vadd.f32 %v1411_v39, %v1402_v37  ;;  %v1377_v54 = vmax.f32 %v1365_v44, 0.0  ;;  %v1558_v44 = vld [vmem:[#allocation4] sm:$0x1] }
 0x3df   : > { %v6753_v46 = vpop.f32.mrf.mxu0  ;;  %vm1555_vm13 = vcmp.lt.s32.totalorder %v1554_v16, 100 }
 0x3e0   : > { %v1375_v48 = vmax.f32 %v1357_v45, 0.0  ;;  %v1368_v49 = vadd.f32 %v6753_v46, %v6465_v20  ;;  %v1414_v52 = vadd.f32 %v1411_v39, %v1400_v43  ;;  %v1422_v58 = vpack.c.bf16 %v1416_v47, %v1415_v53  ;;  %v1634_v46 = vld [vmem:[#allocation5] sm:$0x1] }
 0x3e1   : > { %v1359_v50 = vpop.f32.mrf.mxu0  ;;  %v1405_v62 = vmul.f32 %v1397_v33, %v1377_v54  ;;  %v6484_v42 = vsel %vm1555_vm13, 1.0, %v7835_v6 }
 0x3e2   : > { %v1378_v55 = vmax.f32 %v1368_v49, 0.0  ;;  %v1360_v56 = vadd.f32 %v6465_v20, %v1359_v50  ;;  %v1421_v57 = vpack.c.bf16 %v1414_v52, %v1413_v51  ;;  %v1403_v59 = vmul.f32 %v1397_v33, %v1375_v48 }
 0x3e3   : > { %v1419_v3 = vadd.f32 %v1411_v39, %v1405_v62 }
 0x3e4   : > { %v1406_v60 = vmul.f32 %v1397_v33, %v1378_v55  ;;  %v1376_v61 = vmax.f32 %v1360_v56, 0.0  ;;  %6762 = vmatprep.mubr.msk.bf16.mxu1 %vm1464_vm11, %v1421_v57  ;;  %v1417_v0 = vadd.f32 %v1411_v39, %v1403_v59 }
 0x3e5   : > { %6763 = vmatmul.mubr.msk.bf16.vlgmr.msra.gmra.mxu1 %vm1464_vm11, %v1422_v58 }
 0x3e6   : > { %v1404_v63 = vmul.f32 %v1397_v33, %v1376_v61  ;;  %v1420_v1 = vadd.f32 %v1411_v39, %v1406_v60 }
 0x3e8   : > { %v1418_v2 = vadd.f32 %v1411_v39, %v1404_v63  ;;  %v1424_v5 = vpack.c.bf16 %v1420_v1, %v1419_v3 }
 0x3ea   : > { %v1423_v4 = vpack.c.bf16 %v1418_v2, %v1417_v0 }
 0x3ec   : > { %6766 = vmatprep.mubr.msk.bf16.mxu1 %vm1464_vm11, %v1423_v4 }
 0x3ed   : > { %6767 = vmatmul.mubr.msk.bf16.gmra.mxu1 %vm1464_vm11, %v1424_v5 }
 0x3ee   : > { %6805 = vmatprep.mubr.msk.f32.mxu1 %vm7836_vm12, %v7835_v6 }
 0x4a5   : > { %v6764_v7 = vpop.f32.mrf.mxu1 }
 0x4a6   : > { %v1520_v27 = vadd.f32 %v6764_v7, %v6474_v12 }
 0x4a7   : > { %v1511_v8 = vpop.f32.mrf.mxu1 }
 0x4a8   : > { %v1544_v34 = vmax.f32 %v1520_v27, 0.0  ;;  %v1512_v35 = vadd.f32 %v6474_v12, %v1511_v8 }
 0x4a9   : > { %v6765_v9 = vpop.f32.mrf.mxu1 }
 0x4aa   : > { %v1523_v23 = vadd.f32 %v6765_v9, %v6474_v12  ;;  %v1637_v39 = vmul.f32 %v1544_v34, %v1544_v34  ;;  %v1542_v40 = vmax.f32 %v1512_v35, 0.0 }
 0x4ab   : > { %v1514_v10 = vpop.f32.mrf.mxu1 }
 0x4ac   : > { %v1545_v31 = vmax.f32 %v1523_v23, 0.0  ;;  %v1515_v32 = vadd.f32 %v6474_v12, %v1514_v10  ;;  %v1635_v43 = vmul.f32 %v1542_v40, %v1542_v40 }
 0x4ad   : > { %v6768_v11 = vpop.f32.mrf.mxu1 }
 0x4ae   : > { %v1536_v14 = vadd.f32 %v6768_v11, %v6474_v12  ;;  %v1638_v37 = vmul.f32 %v1545_v31, %v1545_v31  ;;  %v1543_v38 = vmax.f32 %v1515_v32, 0.0 }
 0x4af   : > { %v1527_v13 = vpop.f32.mrf.mxu1 }
 0x4b0   : > { %v1548_v19 = vmax.f32 %v1536_v14, 0.0  ;;  %v1528_v20 = vadd.f32 %v6474_v12, %v1527_v13  ;;  %v1636_v41 = vmul.f32 %v1543_v38, %v1543_v38 }
 0x4b1   : > { %v6769_v15 = vpop.f32.mrf.mxu1 }
 0x4b2   : > { %v1539_v17 = vadd.f32 %v6769_v15, %v6474_v12  ;;  %v1641_v28 = vmul.f32 %v1548_v19, %v1548_v19  ;;  %v1546_v29 = vmax.f32 %v1528_v20, 0.0 }
 0x4b3   : > { %v1530_v18 = vpop.f32.mrf.mxu1 }
 0x4b4   : > { %v1549_v21 = vmax.f32 %v1539_v17, 0.0  ;;  %v1531_v22 = vadd.f32 %v6474_v12, %v1530_v18  ;;  %v1639_v36 = vmul.f32 %v1546_v29, %v1546_v29 }
 0x4b6   : > { %v1642_v24 = vmul.f32 %v1549_v21, %v1549_v21  ;;  %v1547_v25 = vmax.f32 %v1531_v22, 0.0  ;;  %6771 = vmatpush3.msra.mxu0 %v1549_v21 }
 0x4b7   : > { %6772 = vmatprep.subr.mxu0 %v7835_v6 }
 0x4b8   : > { %6773 = vmatpush3.msra.mxu0 %v1548_v19  ;;  %6790 = vmatpush3.msra.mxu1 %v1642_v24  ;;  %v1640_v33 = vmul.f32 %v1547_v25, %v1547_v25 }
 0x4b9   : > { %6774 = vmatprep.subr.mxu0 %v7835_v6  ;;  %6791 = vmatprep.subr.mxu1 %v7835_v6 }
 0x4ba   : > { %6775 = vmatpush3.msra.mxu0 %v1547_v25  ;;  %6792 = vmatpush3.msra.mxu1 %v1641_v28 }
 0x4bb   : > { %6776 = vmatprep.subr.mxu0 %v7835_v6  ;;  %6793 = vmatprep.subr.mxu1 %v7835_v6 }
 0x4bc   : > { %6777 = vmatpush3.msra.mxu0 %v1546_v29  ;;  %6794 = vmatpush3.msra.mxu1 %v1640_v33 }
 0x4bd   : > { %6778 = vmatprep.subr.mxu0 %v7835_v6  ;;  %6795 = vmatprep.subr.mxu1 %v7835_v6 }
 0x4be   : > { %6779 = vmatpush3.msra.mxu0 %v1545_v31  ;;  %6796 = vmatpush3.msra.mxu1 %v1639_v36 }
 0x4bf   : > { %6780 = vmatprep.subr.mxu0 %v7835_v6  ;;  %6797 = vmatprep.subr.mxu1 %v7835_v6 }
 0x4c0   : > { %6781 = vmatpush3.msra.mxu0 %v1544_v34  ;;  %6798 = vmatpush3.msra.mxu1 %v1638_v37 }
 0x4c1   : > { %6782 = vmatprep.subr.mxu0 %v7835_v6  ;;  %6799 = vmatprep.subr.mxu1 %v7835_v6 }
 0x4c2   : > { %6783 = vmatpush3.msra.mxu0 %v1543_v38  ;;  %6800 = vmatpush3.msra.mxu1 %v1637_v39 }
 0x4c3   : > { %6784 = vmatprep.subr.mxu0 %v7835_v6  ;;  %6801 = vmatprep.subr.mxu1 %v7835_v6 }
 0x4c4   : > { %6785 = vmatpush3.msra.mxu0 %v1542_v40  ;;  %6802 = vmatpush3.msra.mxu1 %v1636_v41 }
 0x4c5   : > { %6803 = vmatprep.subr.mxu1 %v7835_v6  ;;  %6787 = vmatmul.mubr.msk.f32.vlgmr.msra.gmra.mxu0 %vm1464_vm11, %v6484_v42 }
 0x4c6   : > { %6804 = vmatpush3.msra.mxu1 %v1635_v43 }
 0x4c7   : > { %6806 = vmatmul.mubr.msk.f32.vlgmr.msra.gmra.mxu1 %vm1464_vm11, %v6484_v42 }
 0x585   : > { %v1628_v45 = vpop.f32.mrf.mxu0 }
 0x586   : > { %v1632_v47 = vadd.f32 %v1628_v45, %v1558_v44 }
 0x587   : > { %v1709_v48 = vpop.f32.mrf.mxu1  ;;  %v6788_v49 = vpop.f32.mrf.mxu0 }
 0x588   : > { %1633 = vst [vmem:[#allocation4] sm:$0x1] %v1632_v47  ;;  %v1713_v50 = vadd.f32 %v1709_v48, %v1634_v46 }
 0x589   : > { %v6807_v51 = vpop.f32.mrf.mxu1 }
 0x58a   : > { %1714 = vst [vmem:[#allocation5] sm:$0x1] %v1713_v50 }
 0x58b PF: > { %s9956_s13 = sld [smem:[#allocation63_spill]] }
 0x591   : > { %p6487_p0 = scmp.ne.s32.totalorder %s9956_s13, 2 }
 0x593   : > { %1718 = sbr.rel (%p6487_p0) target bundleno = 3416 (0xd58), region = 196 }
 0x598   : > { %v1727_v52 = vld [vmem:[#allocation9] sm:$0x3]  ;;  %vm1768_vm14 = vcmask 1040384   ;;  %vm1769_vm15 = vcmask 1041408   ;;  %v7119_v53 = vld [vmem:[%s8246_s15] sm:$0xff]   ;;  %v7837_v54 = vmov 65535   ;;  %v9846_v30 = vlaneseq }
 0x599   : > { %v1770_v55 = vsel %vm1768_vm14, 4294967295, %v7837_v54  ;;  %vm1755_vm0 = vcmask 23552   ;;  %v7120_v58 = vld [vmem:[%s8246_s15 + $0x8] sm:$0xff]   ;;  %v7121_v59 = vld [vmem:[%s8246_s15 + $0x10] sm:$0xff]   ;;  %v7122_v60 = vld [vmem:[%s8246_s15 + $0x18] sm:$0xff]   ;;  %vm1933_vm1 = vcmask 523264  }
 0x59a   : > { %v1771_v56 = vsel %vm1769_vm15, %v1770_v55, 0  ;;  %6810 = vmatprep.mubr.msk.bf16.mxu0 %vm1755_vm0, %v7119_v53  ;;  %v7123_v61 = vld [vmem:[#allocation17 + $0x18] sm:$0xff]   ;;  %v7124_v62 = vld [vmem:[#allocation17 + $0x10] sm:$0xff]   ;;  %v7125_v63 = vld [vmem:[#allocation17 + $0x8] sm:$0xff]   ;;  %v8322_v16 = vshrl.u32 %v9846_v30, 7  ;;  %s6570_s0 = sshll.u32 %s7781_s4, 6 }
 0x59b   : > { %v1773_v57 = vand.u32 %v1771_v56, %v1727_v52  ;;  %6818 = vmatprep.subr.bf16.mxu1 %v7123_v61  ;;  %v7126_v0 = vld [vmem:[#allocation17] sm:$0xff]   ;;  %v8313_v3 = vld [vmem:[#allocation23 + $0x1c8] sm:$0xff]  ;;  %v1857_v32 = vld [vmem:[#allocation14] sm:$0x1]  ;;  %s6588_s27 = sshll.u32 %s7785_s30, 3  ;;  %p3884_p11 = scmp.eq.s32.totalorder %s7785_s30, 7 }
 0x59c   : > { %6819 = vmatpush3.bf16.msra.mxu1 %v7123_v61  ;;  %v2121_v1 = vld [vmem:[#allocation23 + $0x1c0] sm:$0xff]  ;;  %v8315_v6 = vld [vmem:[#allocation23 + $0x1e8] sm:$0xff]  ;;  %v1848_v22 = vld [vmem:[#allocation2] sm:$0x1]  ;;  %9957 = vst [vmem:[#allocation65_spill] sm:$0xff] %v8322_v16  ;;  %v8325_v38 = vsub.s32 0, %v8322_v16 }
 0x59d   : > { %6808 = vmatprep.subr.bf16.mxu0 %v1773_v57  ;;  %6820 = vmatprep.subr.bf16.mxu1 %v7124_v62  ;;  %v2125_v2 = vld [vmem:[#allocation23 + $0x1e0] sm:$0xff]  ;;  %v6564_v9 = vcombine.low %v8313_v3, %v8315_v6  ;;  %v6565_v10 = vcombine.high %v8313_v3, %v8315_v6  ;;  %v1849_v23 = vmul.f32 0.00125, %v1848_v22  ;;  %v1850_v24 = vld [vmem:[#allocation3] sm:$0x1]  ;;  %v2110_v22 = vld [vmem:[#allocation23 + $0x168] sm:$0xff] }
 0x59e   : > { %6809 = vmatpush3.bf16.msra.mxu0 %v1773_v57  ;;  %v6562_v4 = vcombine.low %v2121_v1, %v2125_v2  ;;  %v6563_v5 = vcombine.high %v2121_v1, %v2125_v2  ;;  %v2113_v7 = vld [vmem:[#allocation23 + $0x180] sm:$0xff]  ;;  %v1851_v25 = vmul.f32 0.00125, %v1850_v24  ;;  %v6488_v34 = vld [vmem:[#allocation12] ss:$0 sm:$0xff]  ;;  %9958 = vst [vmem:[#allocation66_spill] sm:$0xff] %v8325_v38 }
 0x59f   : > { %v2117_v8 = vld [vmem:[#allocation23 + $0x1a0] sm:$0xff]  ;;  %v1852_v26 = vmul.f32 %v1849_v23, %v1849_v23  ;;  %v1859_v40 = vld [vmem:[#allocation15] sm:$0x1]  ;;  %s3822_s28 = scalar_lea.vmem [#allocation8], %s6588_s27  ;;  %p3885_p4 = scmp.eq.s32.totalorder %s7781_s4, 1 }
 0x5a0   : > { %6821 = vmatpush3.bf16.msra.mxu1 %v7124_v62  ;;  %v6555_v11 = vcombine.high %v2113_v7, %v2117_v8  ;;  %v2105_v12 = vld [vmem:[#allocation23 + $0x140] sm:$0xff]  ;;  %2491 = vmatprep.subr.bf16.mxu0 %v6563_v5  ;;  %v6554_v14 = vcombine.low %v2113_v7, %v2117_v8  ;;  %v2114_v8 = vld [vmem:[#allocation23 + $0x188] sm:$0xff] }
 0x5a1   : > { %6811 = vmatmul.mubr.msk.bf16.vlgmr.msra.gmra.mxu0 %vm1755_vm0, %v7120_v58  ;;  %6822 = vmatprep.subr.bf16.mxu1 %v7125_v63  ;;  %v2109_v13 = vld [vmem:[#allocation23 + $0x160] sm:$0xff]  ;;  %v1853_v27 = vsub.f32 %v1851_v25, %v1852_v26  ;;  %p9159_p7 = pnand %p3885_p4, %p3884_p11 }
 0x5a2   : > { %6814 = vmatprep.mubr.msk.bf16.mxu0 %vm1755_vm0, %v7121_v59  ;;  %2492 = vmatpush1.bf16.msra.mxu0 %v6562_v4  ;;  %v6547_v15 = vcombine.high %v2105_v12, %v2109_v13  ;;  %v2097_v17 = vld [vmem:[#allocation23 + $0x100] sm:$0xff]  ;;  %v6546_v19 = vcombine.low %v2105_v12, %v2109_v13 }
 0x5a3   : > { %2493 = vmatprep.subr.bf16.mxu0 %v6555_v11  ;;  %v2101_v18 = vld [vmem:[#allocation23 + $0x120] sm:$0xff]  ;;  %v1854_v28 = vmax.f32 %v1853_v27, 0.0 }
 0x5a4   : > { %6823 = vmatpush3.bf16.msra.mxu1 %v7125_v63  ;;  %v6539_v20 = vcombine.high %v2097_v17, %v2101_v18  ;;  %v6538_v21 = vcombine.low %v2097_v17, %v2101_v18  ;;  %v2089_v3 = vld [vmem:[#allocation23 + $0xc0] sm:$0xff] }
 0x5a5   : > { %6824 = vmatprep.subr.bf16.mxu1 %v7126_v0  ;;  %v1855_v29 = vadd.f32 1e-05, %v1854_v28  ;;  %v2093_v6 = vld [vmem:[#allocation23 + $0xe0] sm:$0xff] }
 0x5a6   : > { %2494 = vmatpush1.bf16.msra.mxu0 %v6554_v14 }
 0x5a7   : > { %2495 = vmatprep.subr.bf16.mxu0 %v6547_v15  ;;  %7127 = vrsqrt.f32 %v1855_v29 }
 0x5a8   : > { %6825 = vmatpush3.bf16.msra.mxu1 %v7126_v0 }
 0x5a9   : > { %6815 = vmatmul.mubr.msk.bf16.gmra.mxu0 %vm1755_vm0, %v7122_v60  ;;  %2564 = vmatprep.subr.bf16.mxu1 %v6565_v10  ;;  %v2118_v10 = vld [vmem:[#allocation23 + $0x1a8] sm:$0xff] }
 0x5aa   : > { %2496 = vmatpush1.bf16.msra.mxu0 %v6546_v19  ;;  %v6556_v27 = vcombine.low %v2114_v8, %v2118_v10 }
 0x5ab   : > { %2497 = vmatprep.subr.bf16.mxu0 %v6539_v20  ;;  %v6557_v20 = vcombine.high %v2114_v8, %v2118_v10  ;;  %v8340_v8 = vld [vmem:[#allocation23 + $0x1d8] sm:$0xff] }
 0x5ae   : > { %2498 = vmatpush1.bf16.msra.mxu0 %v6538_v21  ;;  %v2106_v21 = vld [vmem:[#allocation23 + $0x148] sm:$0xff] }
 0x5af   : > { %v6549_v29 = vcombine.high %v2106_v21, %v2110_v22 }
 0x5b4   : > { %v7128_v31 = vpop.eup %7127 }
 0x5b5   : > { %v1858_v33 = vmul.f32 %v7128_v31, %v1857_v32  ;;  %v2098_v31 = vld [vmem:[#allocation23 + $0x108] sm:$0xff] }
 0x5b6   : > { %v2102_v32 = vld [vmem:[#allocation23 + $0x128] sm:$0xff] }
 0x5b7   : > { %v1860_v37 = vmul.f32 %v1858_v33, %v1849_v23  ;;  %v1866_v46 = vrot.slane %v1858_v33, %v8325_v38 }
 0x5b9   : > { %v1861_v45 = vsub.f32 %v1859_v40, %v1860_v37  ;;  %v6540_v37 = vcombine.low %v2098_v31, %v2102_v32  ;;  %v2094_v40 = vld [vmem:[#allocation23 + $0xe8] sm:$0xff] }
 0x5bb   : > { %v1880_v56 = vrot.slane %v1861_v45, %v8325_v38  ;;  %v2085_v45 = vld [vmem:[#allocation23 + $0xa0] sm:$0xff] }
 0x661   : > { %v6812_v35 = vpop.f32.mrf.mxu0 }
 0x662   : > { %v1818_v36 = vadd.f32 %v6812_v35, %v6488_v34  ;;  %v6548_v35 = vcombine.low %v2106_v21, %v2110_v22 }
 0x663   : > { %v1809_v39 = vpop.f32.mrf.mxu0 }
 0x664   : > { %v1810_v41 = vadd.f32 %v6488_v34, %v1809_v39  ;;  %v1842_v44 = vmax.f32 %v1818_v36, 0.0  ;;  %v6541_v36 = vcombine.high %v2098_v31, %v2102_v32  ;;  %v2090_v39 = vld [vmem:[#allocation23 + $0xc8] sm:$0xff] }
 0x665   : > { %v6813_v42 = vpop.f32.mrf.mxu0 }
 0x666   : > { %v1821_v43 = vadd.f32 %v6813_v42, %v6488_v34  ;;  %v1840_v47 = vmax.f32 %v1810_v41, 0.0  ;;  %v1870_v55 = vmul.f32 %v1866_v46, %v1842_v44  ;;  %v6530_v41 = vcombine.low %v2089_v3, %v2093_v6  ;;  %v2081_v44 = vld [vmem:[#allocation23 + $0x80] sm:$0xff] }
 0x667   : > { %v1812_v48 = vpop.f32.mrf.mxu0  ;;  %v6532_v42 = vcombine.low %v2090_v39, %v2094_v40 }
 0x668   : > { %v1843_v49 = vmax.f32 %v1821_v43, 0.0  ;;  %v1813_v50 = vadd.f32 %v6488_v34, %v1812_v48  ;;  %v1868_v57 = vmul.f32 %v1866_v46, %v1840_v47  ;;  %v1884_v2 = vadd.f32 %v1880_v56, %v1870_v55  ;;  %v2082_v47 = vld [vmem:[#allocation23 + $0x88] sm:$0xff] }
 0x669   : > { %v6816_v51 = vpop.f32.mrf.mxu0  ;;  %v6533_v43 = vcombine.high %v2090_v39, %v2094_v40  ;;  %v2086_v48 = vld [vmem:[#allocation23 + $0xa8] sm:$0xff] }
 0x66a   : > { %v1871_v52 = vmul.f32 %v1866_v46, %v1843_v49  ;;  %v1841_v53 = vmax.f32 %v1813_v50, 0.0  ;;  %v1834_v54 = vadd.f32 %v6816_v51, %v6488_v34  ;;  %v1882_v5 = vadd.f32 %v1880_v56, %v1868_v57 }
 0x66b   : > { %v1825_v58 = vpop.f32.mrf.mxu0  ;;  %v6522_v49 = vcombine.low %v2081_v44, %v2085_v45  ;;  %v6524_v50 = vcombine.low %v2082_v47, %v2086_v48  ;;  %v6525_v51 = vcombine.high %v2082_v47, %v2086_v48  ;;  %v2115_v48 = vld [vmem:[#allocation23 + $0x190] sm:$0xff] }
 0x66c   : > { %v1869_v59 = vmul.f32 %v1866_v46, %v1841_v53  ;;  %v1846_v60 = vmax.f32 %v1834_v54, 0.0  ;;  %v1826_v61 = vadd.f32 %v6488_v34, %v1825_v58  ;;  %v1885_v63 = vadd.f32 %v1880_v56, %v1871_v52  ;;  %v2073_v52 = vld [vmem:[#allocation23 + $0x40] sm:$0xff]  ;;  %v2074_v54 = vld [vmem:[#allocation23 + $0x48] sm:$0xff] }
 0x66d   : > { %v6817_v62 = vpop.f32.mrf.mxu0  ;;  %v2077_v53 = vld [vmem:[#allocation23 + $0x60] sm:$0xff] }
 0x66e   : > { %v1844_v0 = vmax.f32 %v1826_v61, 0.0  ;;  %v1837_v1 = vadd.f32 %v6817_v62, %v6488_v34  ;;  %v1883_v7 = vadd.f32 %v1880_v56, %v1869_v59  ;;  %v1874_v11 = vmul.f32 %v1866_v46, %v1846_v60  ;;  %v2065_v60 = vld [vmem:[#allocation23] sm:$0xff]  ;;  %v2066_v62 = vld [vmem:[#allocation23 + $0x8] sm:$0xff] }
 0x66f   : > { %v1828_v4 = vpop.f32.mrf.mxu0  ;;  %v1891_v17 = vpack.c.bf16 %v1885_v63, %v1884_v2  ;;  %v6515_v55 = vcombine.high %v2073_v52, %v2077_v53  ;;  %v6514_v57 = vcombine.low %v2073_v52, %v2077_v53  ;;  %v2069_v61 = vld [vmem:[#allocation23 + $0x20] sm:$0xff]  ;;  %v2120_v52 = vld [vmem:[#allocation23 + $0x1b8] sm:$0xff] }
 0x670   : > { %v1872_v12 = vmul.f32 %v1866_v46, %v1844_v0  ;;  %v1847_v13 = vmax.f32 %v1837_v1, 0.0  ;;  %v1829_v14 = vadd.f32 %v6488_v34, %v1828_v4  ;;  %v1890_v15 = vpack.c.bf16 %v1883_v7, %v1882_v5  ;;  %v2070_v0 = vld [vmem:[#allocation23 + $0x28] sm:$0xff]  ;;  %v8336_v5 = vld [vmem:[#allocation23 + $0x1d0] sm:$0xff] }
 0x671   : > { %v1888_v23 = vadd.f32 %v1880_v56, %v1874_v11  ;;  %v6507_v63 = vcombine.high %v2065_v60, %v2069_v61  ;;  %v6506_v1 = vcombine.low %v2065_v60, %v2069_v61  ;;  %v6508_v2 = vcombine.low %v2066_v62, %v2070_v0  ;;  %v8338_v7 = vld [vmem:[#allocation23 + $0x1f0] sm:$0xff]  ;;  %v8344_v11 = vld [vmem:[#allocation23 + $0x1f8] sm:$0xff] }
 0x672   : > { %v1875_v18 = vmul.f32 %v1866_v46, %v1847_v13  ;;  %v1845_v19 = vmax.f32 %v1829_v14, 0.0  ;;  %6826 = vmatprep.mubr.msk.bf16.mxu1 %vm1933_vm1, %v1890_v15  ;;  %v1886_v24 = vadd.f32 %v1880_v56, %v1872_v12  ;;  %v6509_v4 = vcombine.high %v2066_v62, %v2070_v0  ;;  %v2107_v62 = vld [vmem:[#allocation23 + $0x150] sm:$0xff]  ;;  %v2108_v0 = vld [vmem:[#allocation23 + $0x158] sm:$0xff] }
 0x673   : > { %6827 = vmatmul.mubr.msk.bf16.vlgmr.msra.gmra.mxu1 %vm1933_vm1, %v1891_v17  ;;  %v6567_v10 = vcombine.high %v8336_v5, %v8338_v7  ;;  %v7838_v12 = vmov 0   ;;  %v6566_v13 = vcombine.low %v8336_v5, %v8338_v7  ;;  %v6568_v14 = vcombine.low %v8340_v8, %v8344_v11  ;;  %v2019_v17 = vld [vmem:[#allocation4] sm:$0x1] }
 0x674   : > { %v1889_v25 = vadd.f32 %v1880_v56, %v1875_v18  ;;  %v1873_v26 = vmul.f32 %v1866_v46, %v1845_v19  ;;  %2565 = vmatpush1.bf16.msra.mxu1 %v6564_v9  ;;  %v6531_v9 = vcombine.high %v2089_v3, %v2093_v6  ;;  %v6523_v46 = vcombine.high %v2081_v44, %v2085_v45  ;;  %v2021_v19 = vld [vmem:[#allocation5] sm:$0x1] }
 0x675   : > { %2566 = vmatprep.subr.bf16.mxu1 %v6557_v20  ;;  %2523 = vmatprep.mubr.bf16.mxu0 %v7838_v12  ;;  %v6569_v15 = vcombine.high %v8340_v8, %v8344_v11  ;;  %v2020_v18 = vmul.f32 0.00125, %v2019_v17  ;;  %v2022_v20 = vmul.f32 0.00125, %v2021_v19  ;;  %v2099_v8 = vld [vmem:[#allocation23 + $0x110] sm:$0xff]  ;;  %v2100_v19 = vld [vmem:[#allocation23 + $0x118] sm:$0xff] }
 0x676   : > { %v1887_v28 = vadd.f32 %v1880_v56, %v1873_v26  ;;  %v1893_v33 = vpack.c.bf16 %v1889_v25, %v1888_v23  ;;  %2499 = vmatprep.subr.bf16.mxu0 %v6531_v9  ;;  %v2078_v56 = vld [vmem:[#allocation23 + $0x68] sm:$0xff]  ;;  %v2028_v26 = vld [vmem:[#allocation20] sm:$0x1] }
 0x677   : > { %2500 = vmatpush1.bf16.msra.mxu0 %v6530_v41  ;;  %v6516_v58 = vcombine.low %v2074_v54, %v2078_v56  ;;  %v6517_v59 = vcombine.high %v2074_v54, %v2078_v56  ;;  %v2023_v21 = vmul.f32 %v2020_v18, %v2020_v18 }
 0x678   : > { %v1892_v34 = vpack.c.bf16 %v1887_v28, %v1886_v24  ;;  %2567 = vmatpush1.bf16.msra.mxu1 %v6556_v27  ;;  %2501 = vmatprep.subr.bf16.mxu0 %v6523_v46 }
 0x679   : > { %2568 = vmatprep.subr.bf16.mxu1 %v6549_v29  ;;  %v2024_v22 = vsub.f32 %v2022_v20, %v2023_v21  ;;  %v8354_v29 = vld [vmem:[#allocation18] ss:$0 sm:$0xff] }
 0x67a   : > { %6830 = vmatprep.mubr.msk.bf16.mxu1 %vm1933_vm1, %v1892_v34  ;;  %v2030_v34 = vld [vmem:[#allocation21] sm:$0x1] }
 0x67b   : > { %6831 = vmatmul.mubr.msk.bf16.gmra.mxu1 %vm1933_vm1, %v1893_v33  ;;  %2502 = vmatpush1.bf16.msra.mxu0 %v6522_v49  ;;  %v2025_v23 = vmax.f32 %v2024_v22, 0.0  ;;  %v2119_v49 = vld [vmem:[#allocation23 + $0x1b0] sm:$0xff]  ;;  %v2104_v20 = vld [vmem:[#allocation23 + $0x138] sm:$0xff] }
 0x67c   : > { %2569 = vmatpush1.bf16.msra.mxu1 %v6548_v35  ;;  %2503 = vmatprep.subr.bf16.mxu0 %v6515_v55  ;;  %v6558_v5 = vcombine.low %v2115_v48, %v2119_v49 }
 0x67d   : > { %2570 = vmatprep.subr.bf16.mxu1 %v6541_v36  ;;  %2596 = vmatprep.mubr.bf16.mxu1 %v7838_v12  ;;  %v2026_v24 = vadd.f32 1e-05, %v2025_v23 }
 0x67f   : > { %2504 = vmatpush1.bf16.msra.mxu0 %v6514_v57  ;;  %7129 = vrsqrt.f32 %v2026_v24  ;;  %v6559_v57 = vcombine.high %v2115_v48, %v2119_v49  ;;  %v6545_v24 = vcombine.high %v2100_v19, %v2104_v20 }
 0x680   : > { %2571 = vmatpush1.bf16.msra.mxu1 %v6540_v37  ;;  %2505 = vmatprep.subr.bf16.mxu0 %v6507_v63  ;;  %v2111_v63 = vld [vmem:[#allocation23 + $0x170] sm:$0xff] }
 0x681   : > { %2572 = vmatprep.subr.bf16.mxu1 %v6533_v43  ;;  %v6550_v21 = vcombine.low %v2107_v62, %v2111_v63 }
 0x683   : > { %2506 = vmatpush1.bf16.msra.mxu0 %v6506_v1  ;;  %v2112_v1 = vld [vmem:[#allocation23 + $0x178] sm:$0xff] }
 0x684   : > { %2573 = vmatpush1.bf16.msra.mxu1 %v6532_v42  ;;  %2637 = vmatprep.subr.bf16.mxu0 %v6567_v10  ;;  %v6553_v17 = vcombine.high %v2108_v0, %v2112_v1  ;;  %v6552_v22 = vcombine.low %v2108_v0, %v2112_v1  ;;  %v2067_v0 = vld [vmem:[#allocation23 + $0x10] sm:$0xff] }
 0x685   : > { %2574 = vmatprep.subr.bf16.mxu1 %v6525_v51  ;;  %v2116_v51 = vld [vmem:[#allocation23 + $0x198] sm:$0xff]  ;;  %v2071_v1 = vld [vmem:[#allocation23 + $0x30] sm:$0xff] }
 0x686   : > { %v6561_v61 = vcombine.high %v2116_v51, %v2120_v52  ;;  %v6560_v7 = vcombine.low %v2116_v51, %v2120_v52 }
 0x688   : > { %2575 = vmatpush1.bf16.msra.mxu1 %v6524_v50 }
 0x689   : > { %2576 = vmatprep.subr.bf16.mxu1 %v6517_v59 }
 0x68c   : > { %2577 = vmatpush1.bf16.msra.mxu1 %v6516_v58  ;;  %v7130_v25 = vpop.eup %7129 }
 0x68d   : > { %2578 = vmatprep.subr.bf16.mxu1 %v6509_v4  ;;  %v2029_v27 = vmul.f32 %v7130_v25, %v2028_v26 }
 0x68f   : > { %v2031_v32 = vmul.f32 %v2029_v27, %v2020_v18  ;;  %v8358_v6 = vrot.slane %v2029_v27, %v8325_v38  ;;  %v2103_v18 = vld [vmem:[#allocation23 + $0x130] sm:$0xff] }
 0x690   : > { %2579 = vmatpush1.bf16.msra.mxu1 %v6508_v2  ;;  %v6543_v23 = vcombine.high %v2099_v8, %v2103_v18 }
 0x691   : > { %2710 = vmatprep.subr.bf16.mxu1 %v6569_v15  ;;  %v2032_v3 = vsub.f32 %v2030_v34, %v2031_v32  ;;  %v6551_v15 = vcombine.high %v2107_v62, %v2111_v63  ;;  %v2092_v32 = vld [vmem:[#allocation23 + $0xd8] sm:$0xff] }
 0x693   : > { %v8367_v45 = vrot.slane %v2032_v3, %v8325_v38 }
 0x733   : > { %v6828_v28 = vpop.f32.mrf.mxu1 }
 0x734   : > { %v1989_v41 = vadd.f32 %v6828_v28, %v8354_v29  ;;  %v2091_v28 = vld [vmem:[#allocation23 + $0xd0] sm:$0xff] }
 0x735   : > { %v1980_v31 = vpop.f32.mrf.mxu1 }
 0x736   : > { %v1981_v33 = vadd.f32 %v8354_v29, %v1980_v31  ;;  %v2013_v53 = vmax.f32 %v1989_v41, 0.0  ;;  %v2095_v31 = vld [vmem:[#allocation23 + $0xf0] sm:$0xff] }
 0x737   : > { %v6829_v35 = vpop.f32.mrf.mxu1 }
 0x738   : > { %v2011_v36 = vmax.f32 %v1981_v33, 0.0  ;;  %v1992_v9 = vadd.f32 %v6829_v35, %v8354_v29  ;;  %v2041_v2 = vmul.f32 %v8358_v6, %v2013_v53  ;;  %v2096_v33 = vld [vmem:[#allocation23 + $0xf8] sm:$0xff]  ;;  %v2075_v53 = vld [vmem:[#allocation23 + $0x50] sm:$0xff] }
 0x739   : > { %v1983_v37 = vpop.f32.mrf.mxu1  ;;  %v6537_v41 = vcombine.high %v2092_v32, %v2096_v33  ;;  %v6536_v48 = vcombine.low %v2092_v32, %v2096_v33  ;;  %v3619_v32 = vadd.s32 48, %v8322_v16 }
 0x73a   : > { %v1984_v39 = vadd.f32 %v8354_v29, %v1983_v37  ;;  %v2039_v42 = vmul.f32 %v8358_v6, %v2011_v36  ;;  %v2014_v46 = vmax.f32 %v1992_v9, 0.0  ;;  %v6542_v36 = vcombine.low %v2099_v8, %v2103_v18 }
 0x73b   : > { %v8362_v40 = vpop.f32.mrf.mxu1  ;;  %v6544_v37 = vcombine.low %v2100_v19, %v2104_v20  ;;  %v8419_v18 = vstv %s6570_s0  ;;  %v3615_v19 = vadd.s32 16, %v8322_v16  ;;  %v3616_v20 = vadd.s32 24, %v8322_v16 }
 0x73c   : > { %v2012_v43 = vmax.f32 %v1984_v39, 0.0  ;;  %v2053_v54 = vadd.f32 %v8367_v45, %v2039_v42  ;;  %v2042_v58 = vmul.f32 %v8358_v6, %v2014_v46  ;;  %v2005_v34 = vadd.f32 %v8362_v40, %v8354_v29  ;;  %v2083_v42 = vld [vmem:[#allocation23 + $0x90] sm:$0xff]  ;;  %v2088_v40 = vld [vmem:[#allocation23 + $0xb8] sm:$0xff] }
 0x73d   : > { %v1996_v44 = vpop.f32.mrf.mxu1  ;;  %v6535_v39 = vcombine.high %v2091_v28, %v2095_v31 }
 0x73e   : > { %v2040_v47 = vmul.f32 %v8358_v6, %v2012_v43  ;;  %v1997_v4 = vadd.f32 %v8354_v29, %v1996_v44  ;;  %v2056_v10 = vadd.f32 %v8367_v45, %v2042_v58  ;;  %v2087_v43 = vld [vmem:[#allocation23 + $0xb0] sm:$0xff]  ;;  %v2017_v44 = vmax.f32 %v2005_v34, 0.0 }
 0x73f   : > { %v6833_v50 = vpop.f32.mrf.mxu1  ;;  %v6527_v49 = vcombine.high %v2083_v42, %v2087_v43  ;;  %v6526_v58 = vcombine.low %v2083_v42, %v2087_v43  ;;  %v8441_v34 = vsub.s32 1, %v8322_v16 }
 0x740   : > { %v2054_v55 = vadd.f32 %v8367_v45, %v2040_v47  ;;  %v2008_v26 = vadd.f32 %v6833_v50, %v8354_v29  ;;  %v6534_v47 = vcombine.low %v2091_v28, %v2095_v31  ;;  %v3624_v28 = vadd.s32 %v3616_v20, %v8419_v18 }
 0x741   : > { %v1999_v56 = vpop.f32.mrf.mxu1  ;;  %v3618_v31 = vadd.s32 40, %v8322_v16  ;;  %9960 = vst [vmem:[#allocation68_spill] sm:$0xff] %v8441_v34 }
 0x742   : > { %v8373_v59 = vpack.c.bf16 %v2054_v55, %v2053_v54  ;;  %v2000_v60 = vadd.f32 %v8354_v29, %v1999_v56  ;;  %v2018_v3 = vmax.f32 %v2008_v26, 0.0  ;;  %v2084_v29 = vld [vmem:[#allocation23 + $0x98] sm:$0xff]  ;;  %v2079_v54 = vld [vmem:[#allocation23 + $0x70] sm:$0xff]  ;;  %vm3632_vm5 = vcmp.lt.s32.totalorder %v3624_v28, 100 }
 0x743   : > { %v6529_v52 = vcombine.high %v2084_v29, %v2088_v40  ;;  %v2076_v55 = vld [vmem:[#allocation23 + $0x58] sm:$0xff]  ;;  %v6519_v62 = vcombine.high %v2075_v53, %v2079_v54  ;;  %v3626_v43 = vadd.s32 %v3618_v31, %v8419_v18 }
 0x744   : > { %2524 = vmatmul.mubr.bf16.vlgmr.msra.gmra.mxu0 %v8373_v59  ;;  %2597 = vmatmul.mubr.bf16.vlgmr.msra.gmra.mxu1 %v8373_v59  ;;  %v2016_v11 = vmax.f32 %v2000_v60, 0.0  ;;  %v2046_v50 = vmul.f32 %v8358_v6, %v2018_v3  ;;  %v2080_v56 = vld [vmem:[#allocation23 + $0x78] sm:$0xff]  ;;  %v6528_v60 = vcombine.low %v2084_v29, %v2088_v40  ;;  %v3627_v29 = vadd.s32 %v3619_v32, %v8419_v18 }
 0x745   : > { %2638 = vmatpush1.bf16.msra.mxu0 %v6566_v13  ;;  %2711 = vmatpush1.bf16.msra.mxu1 %v6568_v14  ;;  %v2055_v13 = vadd.f32 %v8367_v45, %v2041_v2  ;;  %v2015_v14 = vmax.f32 %v1997_v4, 0.0  ;;  %v6521_v63 = vcombine.high %v2076_v55, %v2080_v56  ;;  %v2068_v2 = vld [vmem:[#allocation23 + $0x18] sm:$0xff]  ;;  %vm3634_vm7 = vcmp.lt.s32.totalorder %v3626_v43, 100 }
 0x746   : > { %2639 = vmatprep.subr.bf16.mxu0 %v6559_v57  ;;  %2712 = vmatprep.subr.bf16.mxu1 %v6561_v61  ;;  %v2044_v27 = vmul.f32 %v8358_v6, %v2016_v11  ;;  %v2045_v57 = vmul.f32 %v8358_v6, %v2017_v44  ;;  %v2060_v61 = vadd.f32 %v8367_v45, %v2046_v50  ;;  %vm3635_vm8 = vcmp.lt.s32.totalorder %v3627_v29, 100 }
 0x747   : > { %2533 = vmatprep.mubr.bf16.mxu0 %v7838_v12  ;;  %2606 = vmatprep.mubr.bf16.mxu1 %v7838_v12  ;;  %v8384_v25 = vpack.c.bf16 %v2056_v10, %v2055_v13  ;;  %v2043_v35 = vmul.f32 %v8358_v6, %v2015_v14  ;;  %v2072_v6 = vld [vmem:[#allocation23 + $0x38] sm:$0xff]  ;;  %v6511_v10 = vcombine.high %v2067_v0, %v2071_v1  ;;  %v8423_v13 = vld [vmem:[#allocation24] sm:$0xff] }
 0x748   : > { %v2058_v9 = vadd.f32 %v8367_v45, %v2044_v27  ;;  %v2059_v4 = vadd.f32 %v8367_v45, %v2045_v57  ;;  %v6513_v11 = vcombine.high %v2068_v2, %v2072_v6  ;;  %v3623_v27 = vadd.s32 %v3615_v19, %v8419_v18 }
 0x749   : > { %2640 = vmatpush1.bf16.msra.mxu0 %v6558_v5  ;;  %2713 = vmatpush1.bf16.msra.mxu1 %v6560_v7  ;;  %v2057_v46 = vadd.f32 %v8367_v45, %v2043_v35  ;;  %v6518_v5 = vcombine.low %v2075_v53, %v2079_v54  ;;  %v6520_v7 = vcombine.low %v2076_v55, %v2080_v56  ;;  %v9844_v45 = vmov 0.0  }
 0x74a   : > { %2641 = vmatprep.subr.bf16.mxu0 %v6551_v15  ;;  %2714 = vmatprep.subr.bf16.mxu1 %v6553_v17  ;;  %v2064_v8 = vpack.c.bf16 %v2060_v61, %v2059_v4  ;;  %v6510_v15 = vcombine.low %v2067_v0, %v2071_v1  ;;  %v6512_v17 = vcombine.low %v2068_v2, %v2072_v6  ;;  %v8444_v35 = vsub.s32 3, %v8322_v16 }
 0x74b   : > { %v2063_v51 = vpack.c.bf16 %v2058_v9, %v2057_v46  ;;  %v8438_v33 = vrot.slane %v8423_v13, %v8325_v38  ;;  %v3620_v9 = vadd.s32 56, %v8322_v16  ;;  %vm3631_vm4 = vcmp.lt.s32.totalorder %v3623_v27, 100 }
 0x74c   : > { %2534 = vmatmul.mubr.bf16.gmra.mxu0 %v8384_v25  ;;  %2607 = vmatmul.mubr.bf16.gmra.mxu1 %v8384_v25  ;;  %9961 = vst [vmem:[#allocation69_spill] sm:$0xff] %v8444_v35  ;;  %v8457_v44 = vrot.slane %v8423_v13, %v8441_v34  ;;  %v8461_v46 = vrot.slane %v8423_v13, %v8444_v35  ;;  %v8474_v54 = vsel %vm3631_vm4, 1.0, %v9844_v45  ;;  %v8477_v55 = vsel %vm3632_vm5, 1.0, %v9844_v45 }
 0x74d   : > { %2642 = vmatpush1.bf16.msra.mxu0 %v6550_v21  ;;  %2715 = vmatpush1.bf16.msra.mxu1 %v6552_v22  ;;  %v3617_v21 = vadd.s32 32, %v8322_v16  ;;  %v3621_v22 = vadd.s32 %v8419_v18, %v8322_v16  ;;  %9962 = vst [vmem:[#allocation70_spill] sm:$0xff] %v8474_v54  ;;  %9963 = vst [vmem:[#allocation71_spill] sm:$0xff] %v8477_v55 }
 0x74e   : > { %2643 = vmatprep.subr.bf16.mxu0 %v6543_v23  ;;  %2716 = vmatprep.subr.bf16.mxu1 %v6545_v24  ;;  %v8429_v23 = vsub.s32 2, %v8322_v16 }
 0x74f   : > { %2543 = vmatprep.mubr.bf16.mxu0 %v7838_v12  ;;  %2616 = vmatprep.mubr.bf16.mxu1 %v7838_v12  ;;  %v3625_v3 = vadd.s32 %v3617_v21, %v8419_v18  ;;  %vm3629_vm2 = vcmp.lt.s32.totalorder %v3621_v22, 100 }
 0x750   : > { %9959 = vst [vmem:[#allocation67_spill] sm:$0xff] %v8429_v23 }
 0x751   : > { %2644 = vmatpush1.bf16.msra.mxu0 %v6542_v36  ;;  %2717 = vmatpush1.bf16.msra.mxu1 %v6544_v37  ;;  %vm3633_vm6 = vcmp.lt.s32.totalorder %v3625_v3, 100 }
 0x752   : > { %2645 = vmatprep.subr.bf16.mxu0 %v6535_v39  ;;  %2718 = vmatprep.subr.bf16.mxu1 %v6537_v41  ;;  %v8450_v39 = vrot.slane %v8423_v13, %v8429_v23  ;;  %v8488_v0 = vsel %vm3633_vm6, 1.0, %v9844_v45 }
 0x753   : > { %9966 = vst [vmem:[#allocation74_spill] sm:$0xff] %v8488_v0 }
 0x754   : > { %2544 = vmatmul.mubr.bf16.gmra.mxu0 %v2063_v51  ;;  %2617 = vmatmul.mubr.bf16.gmra.mxu1 %v2063_v51 }
 0x755   : > { %2646 = vmatpush1.bf16.msra.mxu0 %v6534_v47  ;;  %2719 = vmatpush1.bf16.msra.mxu1 %v6536_v48  ;;  %v8464_v47 = vsel %vm3629_vm2, 1.0, %v9844_v45 }
 0x756   : > { %2647 = vmatprep.subr.bf16.mxu0 %v6527_v49  ;;  %2720 = vmatprep.subr.bf16.mxu1 %v6529_v52 }
 0x757   : > { %2553 = vmatprep.mubr.bf16.mxu0 %v7838_v12  ;;  %2626 = vmatprep.mubr.bf16.mxu1 %v7838_v12 }
 0x759   : > { %2648 = vmatpush1.bf16.msra.mxu0 %v6526_v58  ;;  %2721 = vmatpush1.bf16.msra.mxu1 %v6528_v60  ;;  %v8481_v60 = vsub.s32 4, %v8322_v16 }
 0x75a   : > { %2649 = vmatprep.subr.bf16.mxu0 %v6519_v62  ;;  %2722 = vmatprep.subr.bf16.mxu1 %v6521_v63 }
 0x75b   : > { %9964 = vst [vmem:[#allocation72_spill] sm:$0xff] %v8481_v60 }
 0x75c   : > { %2554 = vmatmul.mubr.bf16.gmra.mxu0 %v2064_v8  ;;  %2627 = vmatmul.mubr.bf16.gmra.mxu1 %v2064_v8 }
 0x75d   : > { %2650 = vmatpush1.bf16.msra.mxu0 %v6518_v5  ;;  %2723 = vmatpush1.bf16.msra.mxu1 %v6520_v7 }
 0x75e   : > { %2651 = vmatprep.subr.bf16.mxu0 %v6511_v10  ;;  %2724 = vmatprep.subr.bf16.mxu1 %v6513_v11  ;;  %v8500_v10 = vsel %vm3635_vm8, 1.0, %v9844_v45  ;;  %v8503_v11 = vsub.s32 6, %v8322_v16 }
 0x75f   : > { %2669 = vmatprep.mubr.bf16.mxu0 %v7838_v12  ;;  %2742 = vmatprep.mubr.bf16.mxu1 %v7838_v12 }
 0x760   : > { %9970 = vst [vmem:[#allocation78_spill] sm:$0xff] %v8503_v11 }
 0x761   : > { %2652 = vmatpush1.bf16.msra.mxu0 %v6510_v15  ;;  %2725 = vmatpush1.bf16.msra.mxu1 %v6512_v17 }
 0x764   : > { %2670 = vmatmul.mubr.bf16.vlgmr.msra.gmra.mxu0 %v8373_v59  ;;  %2743 = vmatmul.mubr.bf16.vlgmr.msra.gmra.mxu1 %v8373_v59  ;;  %v3614_v59 = vadd.s32 8, %v8322_v16 }
 0x765   : > { %2679 = vmatprep.mubr.bf16.mxu0 %v7838_v12  ;;  %2752 = vmatprep.mubr.bf16.mxu1 %v7838_v12 }
 0x766   : > { %v3622_v24 = vadd.s32 %v3614_v59, %v8419_v18 }
 0x768   : > { %vm3630_vm3 = vcmp.lt.s32.totalorder %v3622_v24, 100 }
 0x769   : > { %v8471_v53 = vsel %vm3630_vm3, 1.0, %v9844_v45 }
 0x76c   : > { %2680 = vmatmul.mubr.bf16.gmra.mxu0 %v8384_v25  ;;  %2753 = vmatmul.mubr.bf16.gmra.mxu1 %v8384_v25 }
 0x76d   : > { %2689 = vmatprep.mubr.bf16.mxu0 %v7838_v12  ;;  %2762 = vmatprep.mubr.bf16.mxu1 %v7838_v12 }
 0x774   : > { %2690 = vmatmul.mubr.bf16.gmra.mxu0 %v2063_v51  ;;  %2763 = vmatmul.mubr.bf16.gmra.mxu1 %v2063_v51  ;;  %v3628_v51 = vadd.s32 %v3620_v9, %v8419_v18 }
 0x775   : > { %2699 = vmatprep.mubr.bf16.mxu0 %v7838_v12  ;;  %2772 = vmatprep.mubr.bf16.mxu1 %v7838_v12 }
 0x776   : > { %vm3636_vm9 = vcmp.lt.s32.totalorder %v3628_v51, 100 }
 0x777   : > { %v8520_v24 = vsel %vm3636_vm9, 1.0, %v9844_v45 }
 0x77c   : > { %2700 = vmatmul.mubr.bf16.gmra.mxu0 %v2064_v8  ;;  %2773 = vmatmul.mubr.bf16.gmra.mxu1 %v2064_v8  ;;  %v8497_v8 = vsel %vm3634_vm7, 1.0, %v9844_v45 }
 0x77d   : > { %2923 = vmatprep.mubr.f32.mxu0 %v9844_v45  ;;  %2994 = vmatprep.mubr.f32.mxu1 %v9844_v45  ;;  %9969 = vst [vmem:[#allocation77_spill] sm:$0xff] %v8497_v8 }
 0x804   : > { %v2525_v14 = vpop.f32.mrf.mxu0  ;;  %v2598_v12 = vpop.f32.mrf.mxu1 }
 0x805   : > { %v2526_v40 = vadd.f32 %v2525_v14, %v8438_v33  ;;  %v2599_v52 = vadd.f32 %v2598_v12, %v8450_v39  ;;  %v8511_v14 = vrot.slane %v8423_v13, %v8481_v60 }
 0x806   : > { %v2527_v25 = vpop.f32.mrf.mxu0  ;;  %v2600_v26 = vpop.f32.mrf.mxu1 }
 0x807   : > { %v8483_v61 = vmax.f32 %v2526_v40, 0.0  ;;  %v2528_v1 = vadd.f32 %v2527_v25, %v8457_v44  ;;  %v2601_v2 = vadd.f32 %v2600_v26, %v8461_v46  ;;  %v8494_v7 = vmax.f32 %v2599_v52, 0.0 }
 0x808   : > { %v2529_v36 = vpop.f32.mrf.mxu0  ;;  %v2602_v37 = vpop.f32.mrf.mxu1 }
 0x809   : > { %v2530_v48 = vadd.f32 %v2529_v36, %v8438_v33  ;;  %v2603_v56 = vadd.f32 %v2602_v37, %v8450_v39  ;;  %9965 = vst [vmem:[#allocation73_spill] sm:$0xff] %v8483_v61  ;;  %9968 = vst [vmem:[#allocation76_spill] sm:$0xff] %v8494_v7  ;;  %v3653_v12 = vmul.f32 %v8464_v47, %v8483_v61  ;;  %v8522_v25 = vmax.f32 %v2528_v1, 0.0 }
 0x80a   : > { %v2531_v41 = vpop.f32.mrf.mxu0  ;;  %v2604_v42 = vpop.f32.mrf.mxu1  ;;  %v8524_v26 = vmax.f32 %v2601_v2, 0.0  ;;  %v3655_v36 = vmul.f32 %v8464_v47, %v8494_v7 }
 0x80b   : > { %v2532_v62 = vadd.f32 %v2531_v41, %v8457_v44  ;;  %v2605_v63 = vadd.f32 %v2604_v42, %v8461_v46  ;;  %v8492_v6 = vmax.f32 %v2530_v48, 0.0  ;;  %v8505_v15 = vmax.f32 %v2603_v56, 0.0  ;;  %9974 = vst [vmem:[#allocation82_spill] sm:$0xff] %v8522_v25 }
 0x80c   : > { %v2535_v49 = vpop.f32.mrf.mxu0  ;;  %v2608_v50 = vpop.f32.mrf.mxu1  ;;  %9975 = vst [vmem:[#allocation83_spill] sm:$0xff] %v8524_v26  ;;  %v3654_v56 = vmul.f32 %v8464_v47, %v8522_v25 }
 0x80d   : > { %9967 = vst [vmem:[#allocation75_spill] sm:$0xff] %v8492_v6  ;;  %9971 = vst [vmem:[#allocation79_spill] sm:$0xff] %v8505_v15  ;;  %v2536_v17 = vadd.f32 %v2535_v49, %v8438_v33  ;;  %v2609_v59 = vadd.f32 %v2608_v50, %v8450_v39  ;;  %v8515_v21 = vmax.f32 %v2532_v62, 0.0  ;;  %v8517_v22 = vmax.f32 %v2605_v63, 0.0 }
 0x80e   : > { %v2537_v57 = vpop.f32.mrf.mxu0  ;;  %v2610_v58 = vpop.f32.mrf.mxu1  ;;  %v3661_v27 = vmul.f32 %v8471_v53, %v8492_v6  ;;  %v3663_v41 = vmul.f32 %v8471_v53, %v8505_v15  ;;  %v8679_v15 = vsub.s32 5, %v8322_v16 }
 0x80f   : > { %9972 = vst [vmem:[#allocation80_spill] sm:$0xff] %v8515_v21  ;;  %9973 = vst [vmem:[#allocation81_spill] sm:$0xff] %v8517_v22  ;;  %v2538_v28 = vadd.f32 %v2537_v57, %v8457_v44  ;;  %v2611_v37 = vadd.f32 %v2610_v58, %v8461_v46  ;;  %v8536_v42 = vmax.f32 %v2536_v17, 0.0  ;;  %v8538_v43 = vmax.f32 %v2609_v59, 0.0 }
 0x810   : > { %v2539_v4 = vpop.f32.mrf.mxu0  ;;  %v2612_v5 = vpop.f32.mrf.mxu1  ;;  %v3662_v49 = vmul.f32 %v8471_v53, %v8515_v21  ;;  %v3664_v50 = vmul.f32 %v8471_v53, %v8517_v22  ;;  %v3656_v57 = vmul.f32 %v8464_v47, %v8524_v26  ;;  %v3717_v58 = vmax.f32 %v3653_v12, %v3661_v27  ;;  %10000 = vst [vmem:[#allocation107_spill] sm:$0xff] %v8679_v15 }
 0x811   : > { %v2540_v3 = vadd.f32 %v2539_v4, %v8438_v33  ;;  %v2613_v9 = vadd.f32 %v2612_v5, %v8450_v39  ;;  %9976 = vst [vmem:[#allocation84_spill] sm:$0xff] %v8536_v42  ;;  %9977 = vst [vmem:[#allocation85_spill] sm:$0xff] %v8538_v43  ;;  %v8551_v62 = vmax.f32 %v2538_v28, 0.0  ;;  %v8553_v2 = vmax.f32 %v2611_v37, 0.0 }
 0x812   : > { %v2541_v19 = vpop.f32.mrf.mxu0  ;;  %v2614_v20 = vpop.f32.mrf.mxu1  ;;  %v3743_v59 = vmax.f32 %v3655_v36, %v3663_v41  ;;  %v3756_v37 = vmax.f32 %v3656_v57, %v3664_v50 }
 0x813   : > { %v2542_v29 = vadd.f32 %v2541_v19, %v8457_v44  ;;  %9978 = vst [vmem:[#allocation86_spill] sm:$0xff] %v8551_v62  ;;  %9979 = vst [vmem:[#allocation87_spill] sm:$0xff] %v8553_v2  ;;  %v8555_v4 = vmax.f32 %v2540_v3, 0.0  ;;  %v8557_v5 = vmax.f32 %v2613_v9, 0.0  ;;  %v2615_v17 = vadd.f32 %v2614_v20, %v8461_v46 }
 0x814   : > { %v2545_v31 = vpop.f32.mrf.mxu0  ;;  %v2618_v32 = vpop.f32.mrf.mxu1  ;;  %v3669_v19 = vmul.f32 %v8474_v54, %v8536_v42  ;;  %v3670_v20 = vmul.f32 %v8474_v54, %v8551_v62  ;;  %v3672_v60 = vmul.f32 %v8474_v54, %v8553_v2 }
 0x815   : > { %v2546_v51 = vadd.f32 %v2545_v31, %v8438_v33  ;;  %v2619_v52 = vadd.f32 %v2618_v32, %v8450_v39  ;;  %9980 = vst [vmem:[#allocation88_spill] sm:$0xff] %v8555_v4  ;;  %9981 = vst [vmem:[#allocation89_spill] sm:$0xff] %v8557_v5  ;;  %v3671_v31 = vmul.f32 %v8474_v54, %v8538_v43  ;;  %v8564_v12 = vmax.f32 %v2542_v29, 0.0 }
 0x816   : > { %v2547_v40 = vpop.f32.mrf.mxu0  ;;  %v2620_v48 = vpop.f32.mrf.mxu1  ;;  %v3730_v32 = vmax.f32 %v3654_v56, %v3662_v49  ;;  %v3677_v49 = vmul.f32 %v8477_v55, %v8555_v4  ;;  %v3679_v50 = vmul.f32 %v8477_v55, %v8557_v5  ;;  %v8602_v54 = vmax.f32 %v3756_v37, %v3672_v60 }
 0x817   : > { %9982 = vst [vmem:[#allocation90_spill] sm:$0xff] %v8564_v12  ;;  %v8566_v45 = vmax.f32 %v2546_v51, 0.0  ;;  %v8568_v3 = vmax.f32 %v2619_v52, 0.0  ;;  %v2548_v36 = vadd.f32 %v2547_v40, %v8457_v44  ;;  %v8581_v51 = vmax.f32 %v2615_v17, 0.0 }
 0x818   : > { %v2549_v63 = vpop.f32.mrf.mxu0  ;;  %v2622_v1 = vpop.f32.mrf.mxu1  ;;  %v3718_v52 = vmax.f32 %v3717_v58, %v3669_v19  ;;  %v3744_v56 = vmax.f32 %v3743_v59, %v3671_v31  ;;  %v8585_v40 = vmul.f32 %v8477_v55, %v8564_v12  ;;  %v2621_v34 = vadd.f32 %v2620_v48, %v8461_v46 }
 0x819   : > { %9983 = vst [vmem:[#allocation91_spill] sm:$0xff] %v8566_v45  ;;  %9984 = vst [vmem:[#allocation92_spill] sm:$0xff] %v8568_v3  ;;  %v2550_v9 = vadd.f32 %v2549_v63, %v8438_v33  ;;  %v2623_v41 = vadd.f32 %v2622_v1, %v8450_v39  ;;  %v3685_v35 = vmul.f32 %v8488_v0, %v8566_v45  ;;  %v8596_v59 = vmax.f32 %v2548_v36, 0.0 }
 0x81a   : > { %v2551_v27 = vpop.f32.mrf.mxu0  ;;  %v2624_v28 = vpop.f32.mrf.mxu1  ;;  %9985 = vst [vmem:[#allocation93_spill] sm:$0xff] %v8581_v51  ;;  %v3687_v23 = vmul.f32 %v8488_v0, %v8568_v3  ;;  %v8594_v58 = vmax.f32 %v3730_v32, %v3670_v20  ;;  %v3719_v7 = vmax.f32 %v3718_v52, %v3677_v49  ;;  %v3745_v61 = vmax.f32 %v3744_v56, %v3679_v50 }
 0x81b   : > { %9986 = vst [vmem:[#allocation94_spill] sm:$0xff] %v8596_v59  ;;  %v8598_v19 = vmax.f32 %v2550_v9, 0.0  ;;  %v8600_v31 = vmax.f32 %v2623_v41, 0.0  ;;  %v8606_v26 = vmul.f32 %v8477_v55, %v8581_v51  ;;  %v2552_v32 = vadd.f32 %v2551_v27, %v8457_v44 }
 0x81c   : > { %v2555_v30 = vpop.f32.mrf.mxu0  ;;  %v2628_v29 = vpop.f32.mrf.mxu1  ;;  %v3732_v48 = vmax.f32 %v8594_v58, %v8585_v40  ;;  %v3746_v60 = vmax.f32 %v3745_v61, %v3687_v23  ;;  %v8615_v37 = vmax.f32 %v2621_v34, 0.0  ;;  %v2625_v49 = vadd.f32 %v2624_v28, %v8461_v46 }
 0x81d   : > { %v2556_v57 = vadd.f32 %v2555_v30, %v8438_v33  ;;  %v2629_v17 = vadd.f32 %v2628_v29, %v8450_v39  ;;  %9987 = vst [vmem:[#allocation95_spill] sm:$0xff] %v8598_v19  ;;  %9988 = vst [vmem:[#allocation96_spill] sm:$0xff] %v8600_v31  ;;  %v3720_v29 = vmax.f32 %v3719_v7, %v3685_v35  ;;  %v8631_v7 = vmax.f32 %v2552_v32, 0.0 }
 0x81e   : > { %v2557_v63 = vpop.f32.mrf.mxu0  ;;  %v2630_v1 = vpop.f32.mrf.mxu1  ;;  %9990 = vst [vmem:[#allocation98_spill] sm:$0xff] %v8615_v37  ;;  %v3686_v50 = vmul.f32 %v8488_v0, %v8596_v59  ;;  %v3693_v52 = vmul.f32 %v8497_v8, %v8598_v19  ;;  %v3695_v27 = vmul.f32 %v8497_v8, %v8600_v31 }
 0x81f   : > { %v8611_v20 = vmax.f32 %v2556_v57, 0.0  ;;  %v8613_v36 = vmax.f32 %v2629_v17, 0.0  ;;  %v2558_v56 = vadd.f32 %v2557_v63, %v8457_v44  ;;  %v2631_v23 = vadd.f32 %v2630_v1, %v8461_v46  ;;  %9991 = vst [vmem:[#allocation99_spill] sm:$0xff] %v8631_v7 }
 0x820   : > { %v2559_v30 = vpop.f32.mrf.mxu0  ;;  %v2632_v38 = vpop.f32.mrf.mxu1  ;;  %v8642_v1 = vmax.f32 %v2625_v49, 0.0 }
 0x821   : > { %9989 = vst [vmem:[#allocation97_spill] sm:$0xff] %v8613_v36  ;;  %v2560_v34 = vadd.f32 %v2559_v30, %v8438_v33  ;;  %v2633_v35 = vadd.f32 %v2632_v38, %v8450_v39  ;;  %v3701_v28 = vmul.f32 %v8500_v10, %v8611_v20  ;;  %v3703_v17 = vmul.f32 %v8500_v10, %v8613_v36 }
 0x822   : > { %v2561_v9 = vpop.f32.mrf.mxu0  ;;  %v2634_v41 = vpop.f32.mrf.mxu1  ;;  %9992 = vst [vmem:[#allocation100_spill] sm:$0xff] %v8642_v1  ;;  %v3747_v30 = vmax.f32 %v3746_v60, %v3695_v27  ;;  %v8650_v32 = vmax.f32 %v2558_v56, 0.0  ;;  %v8658_v49 = vmax.f32 %v2631_v23, 0.0  ;;  %v9999_v23 = vlaneseq }
 0x823   : > { %v2562_v61 = vadd.f32 %v2561_v9, %v8457_v44  ;;  %v2635_v63 = vadd.f32 %v2634_v41, %v8461_v46  ;;  %v8644_v33 = vmax.f32 %v2560_v34, 0.0  ;;  %v8646_v38 = vmax.f32 %v2633_v35, 0.0 }
 0x824   : > { %v2671_v40 = vpop.f32.mrf.mxu0  ;;  %v8625_v57 = vpop.f32.mrf.mxu1  ;;  %v3721_v44 = vmax.f32 %v3720_v29, %v3693_v52  ;;  %9996 = vst [vmem:[#allocation104_spill] sm:$0xff] %v8650_v32  ;;  %v3688_v41 = vmul.f32 %v8488_v0, %v8615_v37  ;;  %9998 = vst [vmem:[#allocation106_spill] sm:$0xff] %v8658_v49  ;;  %v3694_v29 = vmul.f32 %v8497_v8, %v8631_v7 }
 0x825   : > { %9993 = vst [vmem:[#allocation101_spill] sm:$0xff] %v8644_v33  ;;  %9994 = vst [vmem:[#allocation102_spill] sm:$0xff] %v8646_v38  ;;  %v8648_v39 = vmax.f32 %v2562_v61, 0.0  ;;  %v8652_v9 = vmax.f32 %v2635_v63, 0.0  ;;  %v3709_v34 = vmul.f32 %v8520_v24, %v8644_v33  ;;  %v3711_v35 = vmul.f32 %v8520_v24, %v8646_v38 }
 0x826   : > { %v8638_v58 = vpop.f32.mrf.mxu0  ;;  %v8640_v55 = vpop.f32.mrf.mxu1  ;;  %v3722_v60 = vmax.f32 %v3721_v44, %v3701_v28  ;;  %v3748_v52 = vmax.f32 %v3747_v30, %v3703_v17  ;;  %v2849_v61 = vand.u32 127, %v9999_v23  ;;  %v3758_v63 = vmax.f32 %v8602_v54, %v8606_v26 }
 0x827   : > { %9995 = vst [vmem:[#allocation103_spill] sm:$0xff] %v8648_v39  ;;  %9997 = vst [vmem:[#allocation105_spill] sm:$0xff] %v8652_v9  ;;  %2875 = vmatprep.subr.mxu0 %v8648_v39  ;;  %2946 = vmatprep.subr.mxu1 %v8652_v9  ;;  %v3696_v0 = vmul.f32 %v8497_v8, %v8642_v1  ;;  %v8682_v28 = vsub.s32 7, %v8322_v16  ;;  %v3733_v17 = vmax.f32 %v3732_v48, %v3686_v50 }
 0x828   : > { %v2675_v25 = vpop.f32.mrf.mxu0  ;;  %v8654_v46 = vpop.f32.mrf.mxu1  ;;  %2876 = vmatpush1.msra.mxu0 %v8644_v33  ;;  %2947 = vmatpush1.msra.mxu1 %v8646_v38  ;;  %v3702_v44 = vmul.f32 %v8500_v10, %v8650_v32  ;;  %v3723_v30 = vmax.f32 %v3722_v60, %v3709_v34  ;;  %v3749_v23 = vmax.f32 %v3748_v52, %v3711_v35 }
 0x829   : > { %10001 = vst [vmem:[#allocation108_spill] sm:$0xff] %v8682_v28  ;;  %2877 = vmatprep.subr.mxu0 %v8650_v32  ;;  %v3759_v33 = vmax.f32 %v3758_v63, %v3688_v41  ;;  %v3704_v8 = vmul.f32 %v8500_v10, %v8658_v49  ;;  %v8696_v16 = vrot.slane %v8423_v13, %v8503_v11 }
 0x82a   : > { %v8669_v27 = vpop.f32.mrf.mxu0  ;;  %v8671_v56 = vpop.f32.mrf.mxu1  ;;  %2948 = vmatprep.subr.mxu1 %v8658_v49  ;;  %2878 = vmatpush1.msra.mxu0 %v8611_v20  ;;  %v3734_v48 = vmax.f32 %v3733_v17, %v3694_v29  ;;  %v3710_v50 = vmul.f32 %v8520_v24, %v8648_v39  ;;  %v2851_v35 = vadd.s32 %v8419_v18, %v2849_v61  ;;  %v3724_v11 = vrot.slane %v3723_v30, 4 }
 0x82b   : > { %2949 = vmatpush1.msra.mxu1 %v8613_v36  ;;  %2879 = vmatprep.subr.mxu0 %v8631_v7  ;;  %v3760_v60 = vmax.f32 %v3759_v33, %v3696_v0  ;;  %v3712_v52 = vmul.f32 %v8520_v24, %v8652_v9  ;;  %v2672_v63 = vadd.f32 %v2671_v40, %v8511_v14  ;;  %v3750_v36 = vrot.slane %v3749_v23, 4  ;;  %v10012_v9 = vld [vmem:[#allocation71_spill] sm:$0xff] }
 0x82c   : > { %v8688_v54 = vpop.f32.mrf.mxu0  ;;  %v8690_v26 = vpop.f32.mrf.mxu1  ;;  %v8710_v29 = vrot.slane %v8423_v13, %v8679_v15  ;;  %2950 = vmatprep.subr.mxu1 %v8642_v1  ;;  %v3735_v17 = vmax.f32 %v3734_v48, %v3702_v44  ;;  %v8715_v7 = vrot.slane %v8423_v13, %v8682_v28  ;;  %2880 = vmatpush1.msra.mxu0 %v8598_v19  ;;  %vm2852_vm10 = vcmp.lt.s32.totalorder %v2851_v35, 100 }
 0x82d   : > { %v3761_v40 = vmax.f32 %v3760_v60, %v3704_v8  ;;  %v2676_v33 = vadd.f32 %v2675_v25, %v8511_v14  ;;  %2951 = vmatpush1.msra.mxu1 %v8600_v31  ;;  %2881 = vmatprep.subr.mxu0 %v8596_v59  ;;  %v2745_v44 = vadd.f32 %v8625_v57, %v8696_v16  ;;  %v8733_v60 = vmax.f32 %v2672_v63, 0.0 }
 0x82e   : > { %v2683_v41 = vpop.f32.mrf.mxu0  ;;  %v2756_v34 = vpop.f32.mrf.mxu1  ;;  %v3736_v61 = vmax.f32 %v3735_v17, %v3710_v50  ;;  %2952 = vmatprep.subr.mxu1 %v8615_v37  ;;  %2882 = vmatpush1.msra.mxu0 %v8566_v45  ;;  %v2674_v25 = vadd.f32 %v8638_v58, %v8710_v29  ;;  %v3725_v50 = vmax.f32 %v3723_v30, %v3724_v11  ;;  %v10003_v11 = vmov 0.0  }
 0x82f   : > { %v3762_v8 = vmax.f32 %v3761_v40, %v3712_v52  ;;  %10002 = vst [vmem:[#allocation109_spill] sm:$0xff] %v8733_v60  ;;  %2953 = vmatpush1.msra.mxu1 %v8568_v3  ;;  %v3751_v17 = vmax.f32 %v3749_v23, %v3750_v36  ;;  %v2747_v57 = vadd.f32 %v8640_v55, %v8715_v7  ;;  %v8745_v35 = vmax.f32 %v2676_v33, 0.0 }
 0x830   : > { %v8718_v18 = vpop.f32.mrf.mxu0  ;;  %v8720_v0 = vpop.f32.mrf.mxu1  ;;  %2883 = vmatprep.subr.mxu0 %v8564_v12  ;;  %v2749_v52 = vadd.f32 %v8654_v46, %v8696_v16  ;;  %2954 = vmatprep.subr.mxu1 %v8581_v51  ;;  %v8752_v36 = vsel %vm2852_vm10, 1.0, %v10003_v11  ;;  %v3737_v58 = vrot.slane %v3736_v61, 4  ;;  %v8754_v55 = vmax.f32 %v2745_v44, 0.0 }
 0x831   : > { %2884 = vmatpush1.msra.mxu0 %v8555_v4  ;;  %10004 = vst [vmem:[#allocation110_spill] sm:$0xff] %v8752_v36  ;;  %v2678_v30 = vadd.f32 %v8669_v27, %v8710_v29  ;;  %v2751_v23 = vadd.f32 %v8671_v56, %v8715_v7  ;;  %2955 = vmatpush1.msra.mxu1 %v8557_v5  ;;  %v3763_v40 = vrot.slane %v3762_v8, 4  ;;  %v8770_v44 = vmax.f32 %v2674_v25, 0.0 }
 0x832   : > { %v8729_v13 = vpop.f32.mrf.mxu0  ;;  %v8731_v48 = vpop.f32.mrf.mxu1  ;;  %10005 = vst [vmem:[#allocation111_spill] sm:$0xff] %v8754_v55  ;;  %2885 = vmatprep.subr.mxu0 %v8551_v62  ;;  %v8768_v33 = vmul.f32 %v8464_v47, %v8733_v60  ;;  %v2682_v27 = vadd.f32 %v8688_v54, %v8511_v14  ;;  %2956 = vmatprep.subr.mxu1 %v8553_v2  ;;  %v3726_v56 = vrot.slane %v3725_v50, 2  ;;  %v3752_v5 = vrot.slane %v3751_v17, 2 }
 0x833   : > { %v8775_v4 = vmax.f32 %v2747_v57, 0.0  ;;  %v2755_v62 = vadd.f32 %v8690_v26, %v8696_v16  ;;  %2886 = vmatpush1.msra.mxu0 %v8536_v42  ;;  %v8782_v51 = vmul.f32 %v8471_v53, %v8745_v35  ;;  %v8784_v25 = vmax.f32 %v2749_v52, 0.0  ;;  %2957 = vmatpush1.msra.mxu1 %v8538_v43 }
 0x834   : > { %v8741_v28 = vpop.f32.mrf.mxu0  ;;  %v8743_v15 = vpop.f32.mrf.mxu1  ;;  %v2684_v12 = vadd.f32 %v2683_v41, %v8710_v29  ;;  %v2757_v54 = vadd.f32 %v2756_v34, %v8715_v7  ;;  %2887 = vmatprep.subr.mxu0 %v8515_v21  ;;  %v3738_v26 = vmax.f32 %v3736_v61, %v3737_v58  ;;  %v3659_v42 = vmul.f32 %v8464_v47, %v8754_v55  ;;  %v10006_v61 = vld [vmem:[#allocation79_spill] sm:$0xff]  ;;  %v10007_v58 = vld [vmem:[#allocation82_spill] sm:$0xff] }
 0x835   : > { %v8796_v3 = vmax.f32 %v2678_v30, 0.0  ;;  %v8798_v52 = vmax.f32 %v2751_v23, 0.0  ;;  %2958 = vmatprep.subr.mxu1 %v8517_v22  ;;  %2888 = vmatpush1.msra.mxu0 %v8492_v6  ;;  %v8802_v41 = vmax.f32 %v3762_v8, %v3763_v40  ;;  %v3658_v34 = vmul.f32 %v8464_v47, %v8770_v44  ;;  %v10008_v40 = vld [vmem:[#allocation83_spill] sm:$0xff] }
 0x836   : > { %v8762_v46 = vpop.f32.mrf.mxu0  ;;  %v8764_v63 = vpop.f32.mrf.mxu1  ;;  %v8806_v21 = vmax.f32 %v2682_v27, 0.0  ;;  %v8808_v43 = vmax.f32 %v2755_v62, 0.0  ;;  %2959 = vmatpush1.msra.mxu1 %v10006_v61  ;;  %2889 = vmatprep.subr.mxu0 %v10007_v58  ;;  %v8812_v30 = vmax.f32 %v3725_v50, %v3726_v56  ;;  %v3660_v23 = vmul.f32 %v8464_v47, %v8775_v4  ;;  %v10009_v56 = vld [vmem:[#allocation73_spill] sm:$0xff] }
 0x837   : > { %v8816_v22 = vmax.f32 %v2684_v12, 0.0  ;;  %v8818_v8 = vmax.f32 %v2757_v54, 0.0  ;;  %2960 = vmatprep.subr.mxu1 %v10008_v40  ;;  %v8821_v6 = vmax.f32 %v3751_v17, %v3752_v5  ;;  %v3769_v62 = vmax.f32 %v8768_v33, %v8782_v51  ;;  %2890 = vmatpush1.msra.mxu0 %v10009_v56  ;;  %v10010_v33 = vld [vmem:[#allocation76_spill] sm:$0xff] }
 0x838   : > { %v8790_v57 = vpop.f32.mrf.mxu0  ;;  %v8792_v2 = vpop.f32.mrf.mxu1  ;;  %v3667_v27 = vmul.f32 %v8471_v53, %v8784_v25  ;;  %v2686_v50 = vadd.f32 %v8718_v18, %v8511_v14  ;;  %v3666_v54 = vmul.f32 %v8471_v53, %v8796_v3  ;;  %v3668_v5 = vmul.f32 %v8471_v53, %v8798_v52  ;;  %2961 = vmatpush1.msra.mxu1 %v10010_v33  ;;  %v10011_v18 = vld [vmem:[#allocation70_spill] sm:$0xff] }
 0x839   : > { %v2759_v17 = vadd.f32 %v8720_v0, %v8696_v16  ;;  %v2688_v51 = vadd.f32 %v8729_v13, %v8710_v29  ;;  %v3739_v40 = vrot.slane %v3738_v26, 2  ;;  %v3673_v56 = vmul.f32 %v10011_v18, %v8806_v21  ;;  %6572 = vmatmul.mubr.msk.f32.vlgmr.msra.gmra.mxu0 %vm1933_vm1, %v8752_v36  ;;  %6573 = vmatmul.mubr.msk.f32.vlgmr.msra.gmra.mxu1 %vm1933_vm1, %v8752_v36 }
 0x83a   : > { %v2697_v47 = vpop.f32.mrf.mxu0  ;;  %v2770_v12 = vpop.f32.mrf.mxu1  ;;  %v3675_v58 = vmul.f32 %v10011_v18, %v8808_v43  ;;  %v2761_v61 = vadd.f32 %v8731_v48, %v8715_v7  ;;  %v3765_v53 = vrot.slane %v8802_v41, 2  ;;  %v3674_v0 = vmul.f32 %v10011_v18, %v8816_v22  ;;  %3065 = vmatprep.mubr.f32.mxu0 %v10003_v11  ;;  %3136 = vmatprep.mubr.f32.mxu1 %v10003_v11 }
 0x83b   : > { %v3676_v13 = vmul.f32 %v10011_v18, %v8818_v8  ;;  %v2692_v33 = vadd.f32 %v8741_v28, %v8511_v14  ;;  %v8858_v48 = vmax.f32 %v2686_v50, 0.0  ;;  %v8860_v45 = vmax.f32 %v2759_v17, 0.0 }
 0x83c   : > { %v8862_v37 = vmax.f32 %v2688_v51, 0.0  ;;  %v2765_v59 = vadd.f32 %v8743_v15, %v8696_v16  ;;  %v2701_v31 = vpop.f32.mrf.mxu0  ;;  %v2774_v19 = vpop.f32.mrf.mxu1  ;;  %v3795_v1 = vmax.f32 %v3659_v42, %v3667_v27  ;;  %v3782_v18 = vmax.f32 %v3658_v34, %v3666_v54 }
 0x83d   : > { %v3808_v49 = vmax.f32 %v3660_v23, %v3668_v5  ;;  %v8866_v32 = vmax.f32 %v2761_v61, 0.0  ;;  %v8868_v28 = vmax.f32 %v3738_v26, %v3739_v40  ;;  %v8870_v36 = vmax.f32 %v2692_v33, 0.0  ;;  %v10013_v40 = vld [vmem:[#allocation74_spill] sm:$0xff] }
 0x83e   : > { %v8872_v50 = vmax.f32 %v2765_v59, 0.0  ;;  %v2694_v17 = vadd.f32 %v8762_v46, %v8710_v29  ;;  %v3770_v51 = vmax.f32 %v3769_v62, %v3673_v56  ;;  %v3796_v11 = vmax.f32 %v3795_v1, %v3675_v58  ;;  %v2703_v59 = vpop.f32.mrf.mxu0  ;;  %v2776_v23 = vpop.f32.mrf.mxu1 }
 0x83f   : > { %v3783_v38 = vmax.f32 %v3782_v18, %v3674_v0  ;;  %v3809_v15 = vmax.f32 %v3808_v49, %v3676_v13  ;;  %v3681_v42 = vmul.f32 %v10012_v9, %v8858_v48  ;;  %v3683_v34 = vmul.f32 %v10012_v9, %v8860_v45 }
 0x840   : > { %v3682_v26 = vmul.f32 %v10012_v9, %v8862_v37  ;;  %v8882_v61 = vmax.f32 %v2694_v17, 0.0  ;;  %v3684_v46 = vmul.f32 %v10012_v9, %v8866_v32  ;;  %v2767_v1 = vadd.f32 %v8764_v63, %v8715_v7  ;;  %v2778_v18 = vpop.f32.mrf.mxu1 }
 0x841   : > { %v2696_v49 = vadd.f32 %v8790_v57, %v8511_v14  ;;  %v2769_v58 = vadd.f32 %v8792_v2, %v8696_v16  ;;  %v3689_v62 = vmul.f32 %v10013_v40, %v8870_v36  ;;  %v3691_v27 = vmul.f32 %v10013_v40, %v8872_v50 }
 0x842   : > { %v2698_v56 = vadd.f32 %v2697_v47, %v8710_v29  ;;  %v2771_v54 = vadd.f32 %v2770_v12, %v8715_v7  ;;  %v8898_v9 = vmax.f32 %v2767_v1, 0.0  ;;  %v2702_v57 = vadd.f32 %v2701_v31, %v8511_v14  ;;  %v2705_v47 = vpop.f32.mrf.mxu0  ;;  %v10014_v31 = vld [vmem:[#allocation77_spill] sm:$0xff] }
 0x843   : > { %v8900_v5 = vmax.f32 %v2696_v49, 0.0  ;;  %v8902_v63 = vmax.f32 %v2769_v58, 0.0  ;;  %v3690_v2 = vmul.f32 %v10013_v40, %v8882_v61  ;;  %v2775_v13 = vadd.f32 %v2774_v19, %v8696_v16 }
 0x844   : > { %v8907_v33 = vmax.f32 %v2698_v56, 0.0  ;;  %v8909_v0 = vmax.f32 %v2771_v54, 0.0  ;;  %v8913_v12 = vmax.f32 %v8802_v41, %v3765_v53  ;;  %v3771_v17 = vmax.f32 %v3770_v51, %v3681_v42 }
 0x845   : > { %v3692_v1 = vmul.f32 %v10013_v40, %v8898_v9  ;;  %v3697_v49 = vmul.f32 %v10014_v31, %v8900_v5  ;;  %v3797_v58 = vmax.f32 %v3796_v11, %v3683_v34  ;;  %v3784_v55 = vmax.f32 %v3783_v38, %v3682_v26  ;;  %v2707_v38 = vpop.f32.mrf.mxu0 }
 0x846   : > { %v3810_v56 = vmax.f32 %v3809_v15, %v3684_v46  ;;  %v8919_v60 = vmax.f32 %v2702_v57, 0.0  ;;  %v3772_v54 = vmax.f32 %v3771_v17, %v3689_v62  ;;  %v3699_v19 = vmul.f32 %v10014_v31, %v8902_v63  ;;  %v2780_v15 = vpop.f32.mrf.mxu1 }
 0x847   : > { %v8923_v39 = vmax.f32 %v2775_v13, 0.0  ;;  %v2704_v41 = vadd.f32 %v2703_v59, %v8710_v29  ;;  %v3798_v53 = vmax.f32 %v3797_v58, %v3691_v27  ;;  %v3785_v51 = vmax.f32 %v3784_v55, %v3690_v2 }
 0x848   : > { %v3698_v42 = vmul.f32 %v10014_v31, %v8907_v33  ;;  %v3700_v11 = vmul.f32 %v10014_v31, %v8909_v0  ;;  %v3811_v34 = vmax.f32 %v3810_v56, %v3692_v1  ;;  %v3773_v26 = vmax.f32 %v3772_v54, %v3697_v49 }
 0x849   : > { %v3705_v46 = vmul.f32 %v8500_v10, %v8919_v60  ;;  %v8932_v40 = vmax.f32 %v2704_v41, 0.0  ;;  %v3707_v59 = vmul.f32 %v8500_v10, %v8923_v39  ;;  %v2777_v55 = vadd.f32 %v2776_v23, %v8715_v7 }
 0x84a   : > { %v2706_v62 = vadd.f32 %v2705_v47, %v8511_v14  ;;  %v2779_v27 = vadd.f32 %v2778_v18, %v8696_v16  ;;  %v3799_v57 = vmax.f32 %v3798_v53, %v3699_v19  ;;  %v2708_v13 = vadd.f32 %v2707_v38, %v8710_v29 }
 0x84b   : > { %v3706_v2 = vmul.f32 %v8500_v10, %v8932_v40  ;;  %v2781_v17 = vadd.f32 %v2780_v15, %v8715_v7  ;;  %v3786_v1 = vmax.f32 %v3785_v51, %v3698_v42  ;;  %v8943_v31 = vmax.f32 %v2777_v55, 0.0 }
 0x84c   : > { %v8945_v49 = vmax.f32 %v2706_v62, 0.0  ;;  %v8947_v58 = vmax.f32 %v2779_v27, 0.0  ;;  %v3812_v23 = vmax.f32 %v3811_v34, %v3700_v11  ;;  %v3774_v56 = vmax.f32 %v3773_v26, %v3705_v46 }
 0x84d   : > { %v8949_v14 = vmax.f32 %v2708_v13, 0.0  ;;  %v8951_v16 = vmax.f32 %v2781_v17, 0.0  ;;  %v3800_v47 = vmax.f32 %v3799_v57, %v3707_v59  ;;  %v3787_v18 = vmax.f32 %v3786_v1, %v3706_v2 }
 0x84e   : > { %v3708_v29 = vmul.f32 %v8500_v10, %v8943_v31  ;;  %v3713_v7 = vmul.f32 %v8520_v24, %v8945_v49  ;;  %v7840_v54 = vmov 1966171168   ;;  %v3715_v41 = vmul.f32 %v8520_v24, %v8947_v58 }
 0x84f   : > { %v3156_v19 = vunpack.c.l.s4 %v7840_v54  ;;  %v3714_v53 = vmul.f32 %v8520_v24, %v8949_v14  ;;  %v3716_v51 = vmul.f32 %v8520_v24, %v8951_v16  ;;  %3017 = vmatprep.subr.mxu0 %v8949_v14  ;;  %3088 = vmatprep.subr.mxu1 %v8951_v16  ;;  %v3741_v10 = vrot.slane %v8868_v28, 1 }
 0x850   : > { %v3767_v42 = vrot.slane %v8913_v12, 1  ;;  %v3813_v11 = vmax.f32 %v3812_v23, %v3708_v29  ;;  %v3775_v38 = vmax.f32 %v3774_v56, %v3713_v7  ;;  %3018 = vmatpush1.msra.mxu0 %v8945_v49  ;;  %3089 = vmatpush1.msra.mxu1 %v8947_v58  ;;  %v3801_v15 = vmax.f32 %v3800_v47, %v3715_v41 }
 0x851   : > { %v3788_v34 = vmax.f32 %v3787_v18, %v3714_v53  ;;  %3019 = vmatprep.subr.mxu0 %v8932_v40  ;;  %3090 = vmatprep.subr.mxu1 %v8943_v31  ;;  %v3728_v24 = vrot.slane %v8812_v30, 1  ;;  %v3754_v26 = vrot.slane %v8821_v6, 1  ;;  %v3157_v55 = vunpack.c.0.s8 %v3156_v19 }
 0x852   : > { %v3776_v46 = vrot.slane %v3775_v38, 4  ;;  %v3814_v59 = vmax.f32 %v3813_v11, %v3716_v51  ;;  %3020 = vmatpush1.msra.mxu0 %v8919_v60  ;;  %3091 = vmatpush1.msra.mxu1 %v8923_v39  ;;  %v3802_v62 = vrot.slane %v3801_v15, 4  ;;  %v3742_v57 = vmax.f32 %v8868_v28, %v3741_v10 }
 0x853   : > { %v3789_v27 = vrot.slane %v3788_v34, 4  ;;  %3021 = vmatprep.subr.mxu0 %v8907_v33  ;;  %3092 = vmatprep.subr.mxu1 %v8909_v0  ;;  %v3768_v2 = vmax.f32 %v8913_v12, %v3767_v42  ;;  %v3729_v56 = vmax.f32 %v8812_v30, %v3728_v24  ;;  %v3755_v47 = vmax.f32 %v8821_v6, %v3754_v26  ;;  %v10015_v12 = vld [vmem:[#allocation65_spill] sm:$0xff] }
 0x854   : > { %v3777_v13 = vmax.f32 %v3775_v38, %v3776_v46  ;;  %v3815_v17 = vrot.slane %v3814_v59, 4  ;;  %3022 = vmatpush1.msra.mxu0 %v8900_v5  ;;  %3093 = vmatpush1.msra.mxu1 %v8902_v63  ;;  %v3803_v1 = vmax.f32 %v3801_v15, %v3802_v62  ;;  %v8988_v29 = vsub.s32 %v3157_v55, %v10015_v12  ;;  %v10016_v55 = vld [vmem:[#allocation103_spill] sm:$0xff] }
 0x855   : > { %v3790_v23 = vmax.f32 %v3788_v34, %v3789_v27  ;;  %3023 = vmatprep.subr.mxu0 %v8882_v61  ;;  %3094 = vmatprep.subr.mxu1 %v8898_v9  ;;  %v3832_v19 = vcombine.low %v3729_v56, %v3742_v57  ;;  %v3833_v41 = vcombine.low %v3755_v47, %v3768_v2  ;;  %v10017_v57 = vld [vmem:[#allocation109_spill] sm:$0xff]  ;;  %v10018_v2 = vld [vmem:[#allocation111_spill] sm:$0xff]  ;;  %v10021_v56 = vld [vmem:[#allocation102_spill] sm:$0xff] }
 0x856   : > { %v3778_v18 = vrot.slane %v3777_v13, 2  ;;  %v3816_v28 = vmax.f32 %v3814_v59, %v3815_v17  ;;  %3024 = vmatpush1.msra.mxu0 %v8870_v36  ;;  %3095 = vmatpush1.msra.mxu1 %v8872_v50  ;;  %v3804_v7 = vrot.slane %v3803_v1, 2  ;;  %v3252_v15 = vmul.f32 %v8611_v20, %v8611_v20 }
 0x857   : > { %v3791_v54 = vrot.slane %v3790_v23, 2  ;;  %3025 = vmatprep.subr.mxu0 %v8862_v37  ;;  %3096 = vmatprep.subr.mxu1 %v8866_v32  ;;  %v3842_v34 = vrot.slane %v3832_v19, %v8988_v29  ;;  %v3849_v24 = vrot.slane %v3833_v41, %v8988_v29  ;;  %v3261_v62 = vmul.f32 %v10016_v55, %v10016_v55  ;;  %v10024_v19 = vld [vmem:[#allocation106_spill] sm:$0xff]  ;;  %v10029_v55 = vld [vmem:[#allocation96_spill] sm:$0xff] }
 0x858   : > { %v3779_v30 = vmax.f32 %v3777_v13, %v3778_v18  ;;  %v3817_v53 = vrot.slane %v3816_v28, 2  ;;  %3026 = vmatpush1.msra.mxu0 %v8858_v48  ;;  %3097 = vmatpush1.msra.mxu1 %v8860_v45  ;;  %v3805_v6 = vmax.f32 %v3803_v1, %v3804_v7  ;;  %v10019_v13 = vld [vmem:[#allocation105_spill] sm:$0xff]  ;;  %v3262_v47 = vmul.f32 %v10021_v56, %v10021_v56  ;;  %v10023_v7 = vld [vmem:[#allocation104_spill] sm:$0xff] }
 0x859   : > { %v3792_v51 = vmax.f32 %v3790_v23, %v3791_v54  ;;  %3027 = vmatprep.subr.mxu0 %v8816_v22  ;;  %3098 = vmatprep.subr.mxu1 %v8818_v8  ;;  %v3263_v17 = vmul.f32 %v10019_v13, %v10019_v13  ;;  %v10020_v1 = vld [vmem:[#allocation101_spill] sm:$0xff]  ;;  %v3253_v54 = vmul.f32 %v10023_v7, %v10023_v7 }
 0x85a   : > { %v3780_v10 = vrot.slane %v3779_v30, 1  ;;  %v3818_v42 = vmax.f32 %v3816_v28, %v3817_v53  ;;  %3028 = vmatpush1.msra.mxu0 %v8806_v21  ;;  %3099 = vmatpush1.msra.mxu1 %v8808_v43  ;;  %v3806_v11 = vrot.slane %v3805_v6, 1  ;;  %v3260_v23 = vmul.f32 %v10020_v1, %v10020_v1  ;;  %v10022_v28 = vld [vmem:[#allocation110_spill] sm:$0xff]  ;;  %v10035_v7 = vld [vmem:[#allocation93_spill] sm:$0xff] }
 0x85b   : > { %v3793_v38 = vrot.slane %v3792_v51, 1  ;;  %3029 = vmatprep.subr.mxu0 %v8796_v3  ;;  %3100 = vmatprep.subr.mxu1 %v8798_v52  ;;  %v3255_v41 = vmul.f32 %v10024_v19, %v10024_v19  ;;  %v10036_v19 = vld [vmem:[#allocation88_spill] sm:$0xff] }
 0x85c   : > { %v3819_v26 = vrot.slane %v3818_v42, 1  ;;  %3030 = vmatpush1.msra.mxu0 %v8745_v35  ;;  %3101 = vmatpush1.msra.mxu1 %v8784_v25  ;;  %v3781_v46 = vmax.f32 %v3779_v30, %v3780_v10  ;;  %v3807_v27 = vmax.f32 %v3805_v6, %v3806_v11  ;;  %v10025_v30 = vld [vmem:[#allocation97_spill] sm:$0xff]  ;;  %v3864_v6 = vcombine.low %v3842_v34, %v3849_v24 }
 0x85d   : > { %v3794_v59 = vmax.f32 %v3792_v51, %v3793_v38  ;;  %3031 = vmatprep.subr.mxu0 %v8770_v44  ;;  %3102 = vmatprep.subr.mxu1 %v8775_v4  ;;  %v3254_v53 = vmul.f32 %v10025_v30, %v10025_v30  ;;  %v10027_v38 = vld [vmem:[#allocation100_spill] sm:$0xff]  ;;  %v3246_v34 = vmul.f32 %v10029_v55, %v10029_v55  ;;  %v10037_v30 = vld [vmem:[#allocation89_spill] sm:$0xff] }
 0x85e   : > { %v3820_v20 = vmax.f32 %v3818_v42, %v3819_v26  ;;  %3032 = vmatpush1.msra.mxu0 %v10017_v57  ;;  %3103 = vmatpush1.msra.mxu1 %v10018_v2  ;;  %v10026_v42 = vld [vmem:[#allocation99_spill] sm:$0xff]  ;;  %v3247_v26 = vmul.f32 %v10027_v38, %v10027_v38 }
 0x85f   : > { %v3834_v18 = vcombine.low %v3781_v46, %v3794_v59  ;;  %6574 = vmatmul.mubr.msk.f32.vlgmr.msra.gmra.mxu0 %vm1933_vm1, %v10022_v28  ;;  %6575 = vmatmul.mubr.msk.f32.vlgmr.msra.gmra.mxu1 %vm1933_vm1, %v10022_v28  ;;  %v3245_v11 = vmul.f32 %v10026_v42, %v10026_v42  ;;  %v10028_v46 = vld [vmem:[#allocation95_spill] sm:$0xff] }
 0x860   : > { %v3835_v12 = vcombine.low %v3807_v27, %v3820_v20  ;;  %3284 = vmatprep.subr.mxu0 %v3261_v62  ;;  %3355 = vmatprep.subr.mxu1 %v3263_v17  ;;  %v3244_v59 = vmul.f32 %v10028_v46, %v10028_v46  ;;  %v10030_v62 = vld [vmem:[#allocation94_spill] sm:$0xff]  ;;  %v10032_v17 = vld [vmem:[#allocation91_spill] sm:$0xff] }
 0x861   : > { %v3856_v51 = vrot.slane %v3834_v18, %v8988_v29  ;;  %3285 = vmatpush1.msra.mxu0 %v3260_v23  ;;  %3356 = vmatpush1.msra.mxu1 %v3262_v47  ;;  %v3237_v27 = vmul.f32 %v10030_v62, %v10030_v62  ;;  %v10031_v20 = vld [vmem:[#allocation98_spill] sm:$0xff]  ;;  %v3236_v1 = vmul.f32 %v10032_v17, %v10032_v17  ;;  %v10033_v23 = vld [vmem:[#allocation92_spill] sm:$0xff] }
 0x862   : > { %v3863_v10 = vrot.slane %v3835_v12, %v8988_v29  ;;  %3286 = vmatprep.subr.mxu0 %v3253_v54  ;;  %3357 = vmatprep.subr.mxu1 %v3255_v41  ;;  %v3239_v13 = vmul.f32 %v10031_v20, %v10031_v20  ;;  %v3238_v56 = vmul.f32 %v10033_v23, %v10033_v23  ;;  %v10034_v18 = vld [vmem:[#allocation90_spill] sm:$0xff] }
 0x863   : > { %3287 = vmatpush1.msra.mxu0 %v3252_v15  ;;  %3358 = vmatpush1.msra.mxu1 %v3254_v53  ;;  %v3872_v47 = vrot.slane %v3864_v6, %v8988_v29  ;;  %v3229_v12 = vmul.f32 %v10034_v18, %v10034_v18  ;;  %v3231_v54 = vmul.f32 %v10035_v7, %v10035_v7  ;;  %v3823_v6 = vld [vmem:[%s3822_s28] sm:$0xff] }
 0x864   : > { %v3865_v24 = vcombine.low %v3856_v51, %v3863_v10  ;;  %3288 = vmatprep.subr.mxu0 %v3245_v11  ;;  %3359 = vmatprep.subr.mxu1 %v3247_v26  ;;  %v3228_v41 = vmul.f32 %v10036_v19, %v10036_v19  ;;  %v3230_v53 = vmul.f32 %v10037_v30, %v10037_v30  ;;  %v10038_v10 = vld [vmem:[#allocation86_spill] sm:$0xff]  ;;  %v10039_v11 = vld [vmem:[#allocation87_spill] sm:$0xff]  ;;  %v10040_v26 = vld [vmem:[#allocation84_spill] sm:$0xff] }
 0x865   : > { %3289 = vmatpush1.msra.mxu0 %v3244_v59  ;;  %3360 = vmatpush1.msra.mxu1 %v3246_v34  ;;  %v3221_v42 = vmul.f32 %v10038_v10, %v10038_v10  ;;  %v3223_v38 = vmul.f32 %v10039_v11, %v10039_v11  ;;  %v3220_v46 = vmul.f32 %v10040_v26, %v10040_v26  ;;  %v10041_v59 = vld [vmem:[#allocation85_spill] sm:$0xff] }
 0x866   : > { %v3879_v15 = vrot.slane %v3865_v24, %v8988_v29  ;;  %3290 = vmatprep.subr.mxu0 %v3237_v27  ;;  %3361 = vmatprep.subr.mxu1 %v3239_v13  ;;  %v3222_v55 = vmul.f32 %v10041_v59, %v10041_v59  ;;  %v10042_v24 = vld [vmem:[#allocation80_spill] sm:$0xff]  ;;  %v10043_v27 = vld [vmem:[#allocation81_spill] sm:$0xff]  ;;  %v10044_v13 = vld [vmem:[#allocation75_spill] sm:$0xff]  ;;  %v3265_v30 = vmul.f32 %v8949_v14, %v8949_v14 }
 0x867   : > { %3291 = vmatpush1.msra.mxu0 %v3236_v1  ;;  %3362 = vmatpush1.msra.mxu1 %v3238_v56  ;;  %v3213_v62 = vmul.f32 %v10042_v24, %v10042_v24  ;;  %v3215_v20 = vmul.f32 %v10043_v27, %v10043_v27  ;;  %v3212_v17 = vmul.f32 %v10044_v13, %v10044_v13  ;;  %v10045_v1 = vld [vmem:[#allocation79_spill] sm:$0xff]  ;;  %v10046_v56 = vld [vmem:[#allocation82_spill] sm:$0xff] }
 0x868   : > { %v3880_v51 = vcombine.low %v3872_v47, %v3879_v15  ;;  %3292 = vmatprep.subr.mxu0 %v3229_v12  ;;  %3363 = vmatprep.subr.mxu1 %v3231_v54  ;;  %v3214_v23 = vmul.f32 %v10045_v1, %v10045_v1  ;;  %v3205_v47 = vmul.f32 %v10046_v56, %v10046_v56  ;;  %v10047_v15 = vld [vmem:[#allocation83_spill] sm:$0xff]  ;;  %v10048_v12 = vld [vmem:[#allocation73_spill] sm:$0xff]  ;;  %v10049_v54 = vld [vmem:[#allocation76_spill] sm:$0xff] }
 0x869   : > { %3293 = vmatpush1.msra.mxu0 %v3228_v41  ;;  %3364 = vmatpush1.msra.mxu1 %v3230_v53  ;;  %v3207_v18 = vmul.f32 %v10047_v15, %v10047_v15  ;;  %v3204_v7 = vmul.f32 %v10048_v12, %v10048_v12  ;;  %v3206_v19 = vmul.f32 %v10049_v54, %v10049_v54  ;;  %v10050_v41 = vmov 0.0   ;;  %v2855_v1 = vld [vmem:[#allocation6] sm:$0xff] }
 0x86a   : > { %v3882_v34 = vmax.f32 %v3823_v6, %v3880_v51  ;;  %3294 = vmatprep.subr.mxu0 %v3221_v42  ;;  %3365 = vmatprep.subr.mxu1 %v3223_v38  ;;  %v3267_v53 = vmul.f32 %v8951_v16, %v8951_v16  ;;  %v3264_v6 = vmul.f32 %v8945_v49, %v8945_v49 }
 0x86b   : > { %3295 = vmatpush1.msra.mxu0 %v3220_v46  ;;  %3366 = vmatpush1.msra.mxu1 %v3222_v55  ;;  %v3266_v51 = vmul.f32 %v8947_v58, %v8947_v58  ;;  %v3257_v14 = vmul.f32 %v8932_v40, %v8932_v40  ;;  %v3259_v16 = vmul.f32 %v8943_v31, %v8943_v31 }
 0x86c   : > { %3883 = vst [vmem:[%s3822_s28] sm:$0xff] %v3882_v34  ;;  %3296 = vmatprep.subr.mxu0 %v3213_v62  ;;  %3367 = vmatprep.subr.mxu1 %v3215_v20  ;;  %v3256_v49 = vmul.f32 %v8919_v60, %v8919_v60  ;;  %v3258_v58 = vmul.f32 %v8923_v39, %v8923_v39 }
 0x86d   : > { %3297 = vmatpush1.msra.mxu0 %v3212_v17  ;;  %3368 = vmatpush1.msra.mxu1 %v3214_v23  ;;  %v3249_v10 = vmul.f32 %v8907_v33, %v8907_v33  ;;  %v3251_v42 = vmul.f32 %v8909_v0, %v8909_v0  ;;  %v3248_v40 = vmul.f32 %v8900_v5, %v8900_v5 }
 0x86e   : > { %3298 = vmatprep.subr.mxu0 %v3205_v47  ;;  %3369 = vmatprep.subr.mxu1 %v3207_v18  ;;  %v3250_v31 = vmul.f32 %v8902_v63, %v8902_v63  ;;  %v3241_v39 = vmul.f32 %v8882_v61, %v8882_v61  ;;  %v3243_v60 = vmul.f32 %v8898_v9, %v8898_v9 }
 0x86f   : > { %3299 = vmatpush1.msra.mxu0 %v3204_v7  ;;  %3332 = vmatprep.mubr.f32.mxu0 %v10050_v41  ;;  %v3240_v33 = vmul.f32 %v8870_v36, %v8870_v36  ;;  %v3242_v0 = vmul.f32 %v8872_v50, %v8872_v50  ;;  %v3233_v5 = vmul.f32 %v8862_v37, %v8862_v37 }
 0x870   : > { %3370 = vmatpush1.msra.mxu1 %v3206_v19  ;;  %3403 = vmatprep.mubr.f32.mxu1 %v10050_v41  ;;  %v3235_v63 = vmul.f32 %v8866_v32, %v8866_v32  ;;  %v3232_v61 = vmul.f32 %v8858_v48, %v8858_v48  ;;  %v3234_v9 = vmul.f32 %v8860_v45, %v8860_v45 }
 0x871   : > { %6576 = vmatmul.mubr.msk.f32.vlgmr.msra.gmra.mxu0 %vm1933_vm1, %v10022_v28  ;;  %6577 = vmatmul.mubr.msk.f32.vlgmr.msra.gmra.mxu1 %vm1933_vm1, %v10022_v28  ;;  %v3225_v36 = vmul.f32 %v8816_v22, %v8816_v22  ;;  %v3227_v50 = vmul.f32 %v8818_v8, %v8818_v8  ;;  %v3224_v37 = vmul.f32 %v8806_v21, %v8806_v21 }
 0x872   : > { %3426 = vmatprep.subr.mxu0 %v3265_v30  ;;  %3497 = vmatprep.subr.mxu1 %v3267_v53  ;;  %v3226_v32 = vmul.f32 %v8808_v43, %v8808_v43  ;;  %v3217_v45 = vmul.f32 %v8796_v3, %v8796_v3  ;;  %v3219_v48 = vmul.f32 %v8798_v52, %v8798_v52 }
 0x873   : > { %3427 = vmatpush1.msra.mxu0 %v3264_v6  ;;  %3498 = vmatpush1.msra.mxu1 %v3266_v51  ;;  %v3216_v22 = vmul.f32 %v8745_v35, %v8745_v35  ;;  %v3218_v8 = vmul.f32 %v8784_v25, %v8784_v25  ;;  %v3209_v21 = vmul.f32 %v8770_v44, %v8770_v44 }
 0x874   : > { %3428 = vmatprep.subr.mxu0 %v3257_v14  ;;  %3499 = vmatprep.subr.mxu1 %v3259_v16  ;;  %v3211_v43 = vmul.f32 %v8775_v4, %v8775_v4  ;;  %v3208_v3 = vmul.f32 %v10017_v57, %v10017_v57  ;;  %v3210_v35 = vmul.f32 %v10018_v2, %v10018_v2 }
 0x875   : > { %3429 = vmatpush1.msra.mxu0 %v3256_v49  ;;  %3500 = vmatpush1.msra.mxu1 %v3258_v58 }
 0x876   : > { %3430 = vmatprep.subr.mxu0 %v3249_v10  ;;  %3501 = vmatprep.subr.mxu1 %v3251_v42 }
 0x877   : > { %3431 = vmatpush1.msra.mxu0 %v3248_v40  ;;  %3502 = vmatpush1.msra.mxu1 %v3250_v31 }
 0x878   : > { %3432 = vmatprep.subr.mxu0 %v3241_v39  ;;  %3503 = vmatprep.subr.mxu1 %v3243_v60  ;;  %v3203_v39 = vld [vmem:[#allocation7] sm:$0xff] }
 0x879   : > { %3433 = vmatpush1.msra.mxu0 %v3240_v33  ;;  %3504 = vmatpush1.msra.mxu1 %v3242_v0 }
 0x87a   : > { %3434 = vmatprep.subr.mxu0 %v3233_v5  ;;  %3505 = vmatprep.subr.mxu1 %v3235_v63 }
 0x87b   : > { %3435 = vmatpush1.msra.mxu0 %v3232_v61  ;;  %3506 = vmatpush1.msra.mxu1 %v3234_v9 }
 0x87c   : > { %3436 = vmatprep.subr.mxu0 %v3225_v36  ;;  %3507 = vmatprep.subr.mxu1 %v3227_v50 }
 0x87d   : > { %3437 = vmatpush1.msra.mxu0 %v3224_v37  ;;  %3508 = vmatpush1.msra.mxu1 %v3226_v32 }
 0x87e   : > { %3438 = vmatprep.subr.mxu0 %v3217_v45  ;;  %3509 = vmatprep.subr.mxu1 %v3219_v48 }
 0x87f   : > { %3439 = vmatpush1.msra.mxu0 %v3216_v22  ;;  %3510 = vmatpush1.msra.mxu1 %v3218_v8 }
 0x880   : > { %3440 = vmatprep.subr.mxu0 %v3209_v21  ;;  %3511 = vmatprep.subr.mxu1 %v3211_v43 }
 0x881   : > { %3441 = vmatpush1.msra.mxu0 %v3208_v3  ;;  %3474 = vmatprep.mubr.f32.mxu0 %v10050_v41 }
 0x882   : > { %3512 = vmatpush1.msra.mxu1 %v3210_v35  ;;  %3545 = vmatprep.mubr.f32.mxu1 %v10050_v41 }
 0x883   : > { %6578 = vmatmul.mubr.msk.f32.vlgmr.msra.gmra.mxu0 %vm1933_vm1, %v10022_v28  ;;  %6579 = vmatmul.mubr.msk.f32.vlgmr.msra.gmra.mxu1 %vm1933_vm1, %v10022_v28 }
 0x8f9   : > { %v2925_v4 = vpop.f32.mrf.mxu0  ;;  %v2996_v44 = vpop.f32.mrf.mxu1 }
 0x8fb   : > { %v2927_v25 = vpop.f32.mrf.mxu0  ;;  %v2998_v52 = vpop.f32.mrf.mxu1 }
 0x8fc   : > { %v3151_v57 = vcombine.low %v2925_v4, %v2927_v25  ;;  %v3152_v2 = vcombine.low %v2996_v44, %v2998_v52 }
 0x8fe   : > { %v3161_v26 = vrot.slane %v3151_v57, %v8988_v29  ;;  %v3168_v46 = vrot.slane %v3152_v2, %v8988_v29 }
 0x900   : > { %v3183_v24 = vcombine.low %v3161_v26, %v3168_v46 }
 0x902   : > { %v3191_v13 = vrot.slane %v3183_v24, %v8988_v29 }
 0x91f   : > { %v3067_v11 = vpop.f32.mrf.mxu0  ;;  %v3138_v38 = vpop.f32.mrf.mxu1 }
 0x921   : > { %v3069_v59 = vpop.f32.mrf.mxu0  ;;  %v3140_v28 = vpop.f32.mrf.mxu1 }
 0x922   : > { %v3153_v55 = vcombine.low %v3067_v11, %v3069_v59  ;;  %v3154_v34 = vcombine.low %v3138_v38, %v3140_v28 }
 0x924   : > { %v3175_v62 = vrot.slane %v3153_v55, %v8988_v29  ;;  %v3182_v27 = vrot.slane %v3154_v34, %v8988_v29 }
 0x926   : > { %v3184_v20 = vcombine.low %v3175_v62, %v3182_v27 }
 0x928   : > { %v3198_v17 = vrot.slane %v3184_v20, %v8988_v29 }
 0x92a   : > { %v3199_v23 = vcombine.low %v3191_v13, %v3198_v17 }
 0x92c   : > { %v3201_v56 = vadd.f32 %v3199_v23, %v2855_v1 }
 0x92e   : > { %3202 = vst [vmem:[#allocation6] sm:$0xff] %v3201_v56 }
 0x931   : > { %v3334_v47 = vpop.f32.mrf.mxu0  ;;  %v3405_v15 = vpop.f32.mrf.mxu1 }
 0x933   : > { %v3336_v18 = vpop.f32.mrf.mxu0  ;;  %v3407_v12 = vpop.f32.mrf.mxu1 }
 0x934   : > { %v3560_v7 = vcombine.low %v3334_v47, %v3336_v18  ;;  %v3561_v54 = vcombine.low %v3405_v15, %v3407_v12 }
 0x936   : > { %v3570_v30 = vrot.slane %v3560_v7, %v8988_v29  ;;  %v3577_v53 = vrot.slane %v3561_v54, %v8988_v29 }
 0x938   : > { %v3592_v49 = vcombine.low %v3570_v30, %v3577_v53 }
 0x93a   : > { %v3600_v40 = vrot.slane %v3592_v49, %v8988_v29 }
 0x943   : > { %v3476_v19 = vpop.f32.mrf.mxu0  ;;  %v3547_v41 = vpop.f32.mrf.mxu1 }
 0x945   : > { %v3478_v6 = vpop.f32.mrf.mxu0  ;;  %v3549_v51 = vpop.f32.mrf.mxu1 }
 0x946   : > { %v3562_v14 = vcombine.low %v3476_v19, %v3478_v6  ;;  %v3563_v16 = vcombine.low %v3547_v41, %v3549_v51 }
 0x948   : > { %v3584_v58 = vrot.slane %v3562_v14, %v8988_v29  ;;  %v3591_v10 = vrot.slane %v3563_v16, %v8988_v29 }
 0x94a   : > { %v3593_v42 = vcombine.low %v3584_v58, %v3591_v10 }
 0x94c   : > { %v3607_v31 = vrot.slane %v3593_v42, %v8988_v29 }
 0x94e   : > { %v3608_v60 = vcombine.low %v3600_v40, %v3607_v31  ;;  %3889 = sbr.rel (%p9159_p7) target bundleno = 3416 (0xd58), region = 200 }
 0x950   : > { %v3610_v33 = vadd.f32 %v3608_v60, %v3203_v39 }
 0x952   : > { %3611 = vst [vmem:[#allocation7] sm:$0xff] %v3610_v33 }
 0x953   : > { %v3890_v0 = vld [vmem:[#allocation6] sm:$0xff]  ;;  %v9179_v9 = vld [vmem:[#allocation8] sm:$0xff]  ;;  %v9181_v36 = vld [vmem:[#allocation8 + $0x8] sm:$0xff]  ;;  %vm4263_vm11 = vcmask 1042432   ;;  %vm4272_vm12 = vcmask 1043456   ;;  %vm4281_vm13 = vcmask 1044480  }
 0x954   : > { %v9177_v63 = vmul.f32 0.00125, %v3890_v0  ;;  %v10052_v50 = vld [vmem:[#allocation66_spill] sm:$0xff]  ;;  %v10053_v29 = vld [vmem:[#allocation68_spill] sm:$0xff]  ;;  %v10054_v45 = vld [vmem:[#allocation67_spill] sm:$0xff] }
 0x955   : > { %v3923_v37 = vrot.slane %v9179_v9, %v10052_v50  ;;  %v3927_v32 = vrot.slane %v9179_v9, %v10053_v29  ;;  %v3931_v48 = vrot.slane %v9179_v9, %v10054_v45  ;;  %v10055_v22 = vld [vmem:[#allocation69_spill] sm:$0xff]  ;;  %v9193_v43 = vld [vmem:[#allocation8 + $0x10] sm:$0xff]  ;;  %v10056_v3 = vld [vmem:[#allocation72_spill] sm:$0xff]  ;;  %v3964_v11 = vrot.slane %v9181_v36, %v10052_v50 }
 0x956   : > { %v3935_v8 = vrot.slane %v9179_v9, %v10055_v22  ;;  %v3894_v21 = vmul.f32 %v9177_v63, %v9177_v63  ;;  %v3939_v35 = vrot.slane %v9179_v9, %v10056_v3  ;;  %v10057_v4 = vld [vmem:[#allocation107_spill] sm:$0xff]  ;;  %v10058_v25 = vld [vmem:[#allocation78_spill] sm:$0xff]  ;;  %v10059_v57 = vld [vmem:[#allocation108_spill] sm:$0xff]  ;;  %v3968_v38 = vrot.slane %v9181_v36, %v10053_v29 }
 0x957   : > { %v3943_v44 = vrot.slane %v9179_v9, %v10057_v4  ;;  %v3947_v52 = vrot.slane %v9179_v9, %v10058_v25  ;;  %v3951_v2 = vrot.slane %v9179_v9, %v10059_v57  ;;  %v3972_v26 = vrot.slane %v9181_v36, %v10054_v45  ;;  %v9209_v59 = vld [vmem:[#allocation8 + $0x18] sm:$0xff]  ;;  %v9231_v56 = vld [vmem:[#allocation8 + $0x20] sm:$0xff]  ;;  %v9247_v30 = vld [vmem:[#allocation8 + $0x28] sm:$0xff] }
 0x958   : > { %v3976_v28 = vrot.slane %v9181_v36, %v10055_v22  ;;  %v3980_v55 = vrot.slane %v9181_v36, %v10056_v3  ;;  %v3984_v34 = vrot.slane %v9181_v36, %v10057_v4  ;;  %v3988_v24 = vrot.slane %v9181_v36, %v10058_v25  ;;  %v9263_v10 = vld [vmem:[#allocation8 + $0x30] sm:$0xff] }
 0x959   : > { %v3892_v5 = vld [vmem:[#allocation7] sm:$0xff]  ;;  %v3992_v62 = vrot.slane %v9181_v36, %v10059_v57  ;;  %v4005_v27 = vrot.slane %v9193_v43, %v10052_v50  ;;  %v4009_v20 = vrot.slane %v9193_v43, %v10053_v29  ;;  %v4013_v17 = vrot.slane %v9193_v43, %v10054_v45 }
 0x95a   : > { %v3893_v61 = vmul.f32 0.00125, %v3892_v5  ;;  %v4017_v1 = vrot.slane %v9193_v43, %v10055_v22  ;;  %v4021_v23 = vrot.slane %v9193_v43, %v10056_v3  ;;  %v4025_v47 = vrot.slane %v9193_v43, %v10057_v4 }
 0x95b   : > { %v4029_v15 = vrot.slane %v9193_v43, %v10058_v25  ;;  %v4033_v18 = vrot.slane %v9193_v43, %v10059_v57  ;;  %v4046_v12 = vrot.slane %v9209_v59, %v10052_v50  ;;  %v4050_v54 = vrot.slane %v9209_v59, %v10053_v29 }
 0x95c   : > { %v3895_v46 = vsub.f32 %v3893_v61, %v3894_v21  ;;  %v4054_v19 = vrot.slane %v9209_v59, %v10054_v45  ;;  %v4058_v41 = vrot.slane %v9209_v59, %v10055_v22  ;;  %v4062_v53 = vrot.slane %v9209_v59, %v10056_v3  ;;  %v9281_v61 = vld [vmem:[#allocation8 + $0x38] sm:$0xff] }
 0x95d   : > { %v4066_v6 = vrot.slane %v9209_v59, %v10057_v4  ;;  %v4070_v51 = vrot.slane %v9209_v59, %v10058_v25  ;;  %v4074_v14 = vrot.slane %v9209_v59, %v10059_v57  ;;  %v4087_v16 = vrot.slane %v9231_v56, %v10052_v50 }
 0x95e   : > { %v3896_v13 = vmax.f32 %v3895_v46, 0.0  ;;  %v4091_v49 = vrot.slane %v9231_v56, %v10053_v29  ;;  %v4095_v58 = vrot.slane %v9231_v56, %v10054_v45  ;;  %v4099_v42 = vrot.slane %v9231_v56, %v10055_v22 }
 0x95f   : > { %v4103_v40 = vrot.slane %v9231_v56, %v10056_v3  ;;  %v4107_v31 = vrot.slane %v9231_v56, %v10057_v4  ;;  %v4111_v39 = vrot.slane %v9231_v56, %v10058_v25  ;;  %v4115_v60 = vrot.slane %v9231_v56, %v10059_v57 }
 0x960   : > { %v3897_v7 = vadd.f32 1e-05, %v3896_v13  ;;  %v4214_v21 = vrot.slane %v9281_v61, %v10053_v29  ;;  %v4218_v46 = vrot.slane %v9281_v61, %v10054_v45  ;;  %v4234_v5 = vrot.slane %v9281_v61, %v10058_v25 }
 0x961   : > { %v4247_v13 = vsel %vm1768_vm14, %v3923_v37, %v3964_v11  ;;  %v4248_v0 = vsel %vm1768_vm14, %v3927_v32, %v3968_v38  ;;  %v4249_v33 = vsel %vm1768_vm14, %v3931_v48, %v3972_v26  ;;  %v4250_v37 = vsel %vm1768_vm14, %v3935_v8, %v3976_v28 }
 0x962   : > { %7131 = vrsqrt.f32 %v3897_v7  ;;  %v4226_v7 = vrot.slane %v9281_v61, %v10056_v3  ;;  %v4251_v32 = vsel %vm1768_vm14, %v3939_v35, %v3980_v55  ;;  %v4252_v48 = vsel %vm1768_vm14, %v3943_v44, %v3984_v34 }
 0x963   : > { %v4253_v8 = vsel %vm1768_vm14, %v3947_v52, %v3988_v24  ;;  %v4254_v35 = vsel %vm1768_vm14, %v3951_v2, %v3992_v62  ;;  %v4255_v44 = vsel %vm1769_vm15, %v4247_v13, %v4005_v27  ;;  %v4256_v11 = vsel %vm1769_vm15, %v4248_v0, %v4009_v20  ;;  %v3899_v52 = vld [vmem:[#allocation26] sm:$0xff] }
 0x964   : > { %v4257_v36 = vsel %vm1769_vm15, %v4249_v33, %v4013_v17  ;;  %v4258_v9 = vsel %vm1769_vm15, %v4250_v37, %v4017_v1  ;;  %v4259_v2 = vsel %vm1769_vm15, %v4251_v32, %v4021_v23  ;;  %v4260_v38 = vsel %vm1769_vm15, %v4252_v48, %v4025_v47 }
 0x965   : > { %v4261_v26 = vsel %vm1769_vm15, %v4253_v8, %v4029_v15  ;;  %v4262_v28 = vsel %vm1769_vm15, %v4254_v35, %v4033_v18  ;;  %v4264_v55 = vsel %vm4263_vm11, %v4255_v44, %v4046_v12  ;;  %v4265_v34 = vsel %vm4263_vm11, %v4256_v11, %v4050_v54  ;;  %v3901_v18 = vld [vmem:[#allocation27] sm:$0xff] }
 0x966   : > { %v4266_v24 = vsel %vm4263_vm11, %v4257_v36, %v4054_v19  ;;  %v4267_v43 = vsel %vm4263_vm11, %v4258_v9, %v4058_v41  ;;  %v4268_v27 = vsel %vm4263_vm11, %v4259_v2, %v4062_v53  ;;  %v4269_v20 = vsel %vm4263_vm11, %v4260_v38, %v4066_v6 }
 0x967   : > { %v4270_v17 = vsel %vm4263_vm11, %v4261_v26, %v4070_v51  ;;  %v4271_v23 = vsel %vm4263_vm11, %v4262_v28, %v4074_v14  ;;  %v4273_v47 = vsel %vm4272_vm12, %v4264_v55, %v4087_v16  ;;  %v4274_v15 = vsel %vm4272_vm12, %v4265_v34, %v4091_v49 }
 0x968   : > { %v4275_v12 = vsel %vm4272_vm12, %v4266_v24, %v4095_v58  ;;  %v4276_v59 = vsel %vm4272_vm12, %v4267_v43, %v4099_v42  ;;  %v4277_v54 = vsel %vm4272_vm12, %v4268_v27, %v4103_v40  ;;  %v4278_v19 = vsel %vm4272_vm12, %v4269_v20, %v4107_v31 }
 0x969   : > { %v4279_v53 = vsel %vm4272_vm12, %v4270_v17, %v4111_v39  ;;  %v4280_v6 = vsel %vm4272_vm12, %v4271_v23, %v4115_v60  ;;  %v10060_v51 = vrot.slane %v9247_v30, %v10052_v50  ;;  %v10061_v16 = vrot.slane %v9247_v30, %v10053_v29 }
 0x96a   : > { %v10062_v49 = vrot.slane %v9247_v30, %v10054_v45  ;;  %v10063_v56 = vrot.slane %v9247_v30, %v10055_v22  ;;  %v10064_v40 = vrot.slane %v9247_v30, %v10056_v3  ;;  %v10065_v60 = vrot.slane %v9247_v30, %v10057_v4 }
 0x96b   : > { %v4282_v14 = vsel %vm4281_vm13, %v4273_v47, %v10060_v51  ;;  %v10066_v0 = vrot.slane %v9247_v30, %v10058_v25  ;;  %v10067_v37 = vrot.slane %v9247_v30, %v10059_v57  ;;  %vm4290_vm14 = vcmask 1045504  }
 0x96c   : > { %v4284_v58 = vsel %vm4281_vm13, %v4275_v12, %v10062_v49  ;;  %v4285_v42 = vsel %vm4281_vm13, %v4276_v59, %v10063_v56  ;;  %v4286_v31 = vsel %vm4281_vm13, %v4277_v54, %v10064_v40  ;;  %v4287_v33 = vsel %vm4281_vm13, %v4278_v19, %v10065_v60 }
 0x96d   : > { %v4288_v13 = vsel %vm4281_vm13, %v4279_v53, %v10066_v0  ;;  %v4289_v32 = vsel %vm4281_vm13, %v4280_v6, %v10067_v37  ;;  %vm4299_vm15 = vcmask 1046528   ;;  %v10068_v35 = vrot.slane %v9263_v10, %v10052_v50 }
 0x96e   : > { %v10069_v11 = vrot.slane %v9263_v10, %v10053_v29  ;;  %v10071_v9 = vrot.slane %v9263_v10, %v10055_v22  ;;  %v10072_v38 = vrot.slane %v9263_v10, %v10056_v3  ;;  %v10073_v28 = vrot.slane %v9263_v10, %v10057_v4 }
 0x96f   : > { %v7132_v62 = vpop.eup %7131  ;;  %v4291_v44 = vsel %vm4290_vm14, %v4282_v14, %v10068_v35  ;;  %v10074_v34 = vrot.slane %v9263_v10, %v10058_v25  ;;  %v10076_v27 = vrot.slane %v9281_v61, %v10052_v50  ;;  %v10077_v47 = vrot.slane %v9281_v61, %v10055_v22 }
 0x970   : > { %v3900_v1 = vmul.f32 %v7132_v62, %v3899_v52  ;;  %v10070_v52 = vrot.slane %v9263_v10, %v10054_v45  ;;  %v4294_v2 = vsel %vm4290_vm14, %v4285_v42, %v10071_v9  ;;  %v4295_v26 = vsel %vm4290_vm14, %v4286_v31, %v10072_v38 }
 0x971   : > { %v4296_v55 = vsel %vm4290_vm14, %v4287_v33, %v10073_v28  ;;  %v4297_v24 = vsel %vm4290_vm14, %v4288_v13, %v10074_v34  ;;  %v10075_v62 = vrot.slane %v9263_v10, %v10059_v57  ;;  %v4300_v20 = vsel %vm4299_vm15, %v4291_v44, %v10076_v27 }
 0x972   : > { %v3902_v41 = vmul.f32 %v3900_v1, %v9177_v63  ;;  %v4283_v63 = vsel %vm4281_vm13, %v4274_v15, %v10061_v16  ;;  %v4312_v48 = vrot.slane %v3900_v1, %v10052_v50  ;;  %v4316_v8 = vrot.slane %v3900_v1, %v10053_v29 }
 0x973   : > { %v4292_v36 = vsel %vm4290_vm14, %v4283_v63, %v10069_v11  ;;  %v4293_v30 = vsel %vm4290_vm14, %v4284_v58, %v10070_v52  ;;  %v4298_v43 = vsel %vm4290_vm14, %v4289_v32, %v10075_v62  ;;  %v4303_v10 = vsel %vm4299_vm15, %v4294_v2, %v10077_v47 }
 0x974   : > { %v3903_v39 = vsub.f32 %v3901_v18, %v3902_v41  ;;  %v4301_v17 = vsel %vm4299_vm15, %v4292_v36, %v4214_v21  ;;  %v4302_v23 = vsel %vm4299_vm15, %v4293_v30, %v4218_v46  ;;  %v4304_v15 = vsel %vm4299_vm15, %v4295_v26, %v4226_v7 }
 0x975   : > { %v10078_v18 = vrot.slane %v9281_v61, %v10057_v4  ;;  %v4306_v46 = vsel %vm4299_vm15, %v4297_v24, %v4234_v5  ;;  %v10079_v12 = vrot.slane %v9281_v61, %v10059_v57  ;;  %v4320_v54 = vrot.slane %v3900_v1, %v10054_v45 }
 0x976   : > { %v4324_v19 = vrot.slane %v3900_v1, %v10055_v22  ;;  %v4328_v7 = vrot.slane %v3900_v1, %v10056_v3  ;;  %v4332_v41 = vrot.slane %v3900_v1, %v10057_v4  ;;  %v4336_v53 = vrot.slane %v3900_v1, %v10058_v25 }
 0x977   : > { %v4305_v21 = vsel %vm4299_vm15, %v4296_v55, %v10078_v18  ;;  %v4307_v59 = vsel %vm4299_vm15, %v4298_v43, %v10079_v12  ;;  %v4340_v6 = vrot.slane %v3900_v1, %v10059_v57  ;;  %v4349_v51 = vmul.f32 %v4312_v48, %v4300_v20 }
 0x978   : > { %v4350_v14 = vmul.f32 %v4316_v8, %v4301_v17  ;;  %v4351_v5 = vmul.f32 %v4320_v54, %v4302_v23  ;;  %v4352_v16 = vmul.f32 %v4324_v19, %v4303_v10  ;;  %v4353_v63 = vmul.f32 %v4328_v7, %v4304_v15 }
 0x979   : > { %v4354_v61 = vmul.f32 %v4332_v41, %v4305_v21  ;;  %v4355_v49 = vmul.f32 %v4336_v53, %v4306_v46  ;;  %v4356_v58 = vmul.f32 %v4340_v6, %v4307_v59  ;;  %v4361_v56 = vrot.slane %v3903_v39, %v10052_v50 }
 0x97a   : > { %v4365_v42 = vrot.slane %v3903_v39, %v10053_v29  ;;  %v4369_v40 = vrot.slane %v3903_v39, %v10054_v45  ;;  %v4373_v31 = vrot.slane %v3903_v39, %v10055_v22  ;;  %v4377_v60 = vrot.slane %v3903_v39, %v10056_v3 }
 0x97b   : > { %v4381_v1 = vrot.slane %v3903_v39, %v10057_v4  ;;  %v4385_v33 = vrot.slane %v3903_v39, %v10058_v25  ;;  %v4389_v0 = vrot.slane %v3903_v39, %v10059_v57  ;;  %v9582_v13 = vadd.f32 %v4361_v56, %v4349_v51 }
 0x97c   : > { %v9584_v37 = vadd.f32 %v4365_v42, %v4350_v14  ;;  %v9586_v32 = vadd.f32 %v4369_v40, %v4351_v5  ;;  %v9588_v48 = vadd.f32 %v4373_v31, %v4352_v16  ;;  %v9590_v8 = vadd.f32 %v4377_v60, %v4353_v63 }
 0x97d   : > { %v9592_v35 = vadd.f32 %v4381_v1, %v4354_v61  ;;  %v9594_v44 = vadd.f32 %v4385_v33, %v4355_v49  ;;  %v9596_v3 = vadd.f32 %v4389_v0, %v4356_v58 }
 0x97e   : > { %s7841_s4 = smov [#allocation40]  }
 0x97f   : > { %s4413_s30 = sshll.u32 %s7841_s4, 4  ;;  %s4414_s30 = int_to_ptr.vmem [resolvable:$true] %s4413_s30 }
 0x980   : > { %s7647_s24 = scalar_lea.vmem %s4414_s30, 65536  ;;  %p7652_p6 = scmp.lt.s32.totalorder %s4414_s30, %s4414_s30 }
 0x981   : > { %p7648_p5 = scmp.ne.s32.totalorder %s4414_s30, %s7647_s24  ;;  %p7653_p8 = scmp.lt.s32.totalorder %s7647_s24, %s7647_s24 }
 0x983   : > { %p7654_p9 = por %p7653_p8, %p7652_p6 }
 0x985   : > { %p7655_p1 = pnand %p7654_p9, %p7648_p5 }
 0x987   : > { %7658 = shalt.err (!%p7655_p1)  }
 0x988   : > { %s10080_s7 = sld [smem:[#allocation123_spill]] }
 0x98e   : > { %4416 = dma.hbm_to_vmem [thread:$0]  %s10080_s7, 65536, %s4414_s30, [#allocation42] }
 0x98f   : > { %7771 = dma.done.wait [#allocation42], 65536 }
 0x990   : > { %7772 = vsyncadd [#allocation42], 4294901760 }
 0x991   : > { %s7842_s6 = smov [#allocation41]  }
 0x992   : > { %s4428_s12 = sshll.u32 %s7842_s6, 4  ;;  %s4429_s12 = int_to_ptr.vmem [resolvable:$true] %s4428_s12 }
 0x993   : > { %s7667_s15 = scalar_lea.vmem %s4429_s12, 16384  ;;  %p7672_p2 = scmp.lt.s32.totalorder %s4429_s12, %s4429_s12 }
 0x994   : > { %p7668_p10 = scmp.ne.s32.totalorder %s4429_s12, %s7667_s15  ;;  %p7673_p3 = scmp.lt.s32.totalorder %s7667_s15, %s7667_s15 }
 0x996   : > { %p7674_p12 = por %p7673_p3, %p7672_p2 }
 0x998   : > { %p7675_p13 = pnand %p7674_p12, %p7668_p10 }
 0x99a   : > { %7678 = shalt.err (!%p7675_p13)  }
 0x99b   : > { %s10081_s3 = sld [smem:[#allocation125_spill]] }
 0x9a1   : > { %4431 = dma.hbm_to_vmem [thread:$0]  %s10081_s3, 16384, %s4429_s12, [#allocation47] }
 0x9a2   : > { %7773 = dma.done.wait [#allocation47], 16384 }
 0x9a3   : > { %7774 = vsyncadd [#allocation47], 4294950912  ;;  %v4497_v4 = vld [vmem:[#allocation40 + $0x1e8] sm:$0xff]  ;;  %v4496_v57 = vld [vmem:[#allocation40 + $0x1e0] sm:$0xff]  ;;  %5034 = vmatprep.mubr.f32.mxu0 %v9584_v37  ;;  %5105 = vmatprep.mubr.f32.mxu1 %v9588_v48  ;;  %s10082_s0 = sld [smem:[#allocation127_spill]]  ;;  %vm6148_vm0 = vcmask 72704  }
 0x9a4   : > { %v4625_v25 = vld [vmem:[#allocation40 + $0x5e8] sm:$0xff]  ;;  %4970 = vmatprep.subr.mxu0 %v4497_v4  ;;  %v4624_v39 = vld [vmem:[#allocation40 + $0x5e0] sm:$0xff] }
 0x9a5   : > { %5041 = vmatprep.subr.mxu1 %v4625_v25  ;;  %v4493_v11 = vld [vmem:[#allocation40 + $0x1c8] sm:$0xff]  ;;  %4971 = vmatpush1.msra.mxu0 %v4496_v57  ;;  %v4492_v52 = vld [vmem:[#allocation40 + $0x1c0] sm:$0xff] }
 0x9a6   : > { %v4621_v36 = vld [vmem:[#allocation40 + $0x5c8] sm:$0xff]  ;;  %5042 = vmatpush1.msra.mxu1 %v4624_v39  ;;  %v4620_v30 = vld [vmem:[#allocation40 + $0x5c0] sm:$0xff]  ;;  %4972 = vmatprep.subr.mxu0 %v4493_v11 }
 0x9a7   : > { %v4489_v9 = vld [vmem:[#allocation40 + $0x1a8] sm:$0xff]  ;;  %5043 = vmatprep.subr.mxu1 %v4621_v36  ;;  %v4488_v38 = vld [vmem:[#allocation40 + $0x1a0] sm:$0xff]  ;;  %4973 = vmatpush1.msra.mxu0 %v4492_v52 }
 0x9a8   : > { %v4617_v2 = vld [vmem:[#allocation40 + $0x5a8] sm:$0xff]  ;;  %v4616_v26 = vld [vmem:[#allocation40 + $0x5a0] sm:$0xff]  ;;  %5044 = vmatpush1.msra.mxu1 %v4620_v30  ;;  %4974 = vmatprep.subr.mxu0 %v4489_v9 }
 0x9a9   : > { %v4485_v28 = vld [vmem:[#allocation40 + $0x188] sm:$0xff]  ;;  %5045 = vmatprep.subr.mxu1 %v4617_v2  ;;  %v4484_v34 = vld [vmem:[#allocation40 + $0x180] sm:$0xff]  ;;  %4975 = vmatpush1.msra.mxu0 %v4488_v38 }
 0x9aa   : > { %v4613_v55 = vld [vmem:[#allocation40 + $0x588] sm:$0xff]  ;;  %v4612_v24 = vld [vmem:[#allocation40 + $0x580] sm:$0xff]  ;;  %5046 = vmatpush1.msra.mxu1 %v4616_v26  ;;  %4976 = vmatprep.subr.mxu0 %v4485_v28 }
 0x9ab   : > { %v4481_v62 = vld [vmem:[#allocation40 + $0x168] sm:$0xff]  ;;  %5047 = vmatprep.subr.mxu1 %v4613_v55  ;;  %v4480_v27 = vld [vmem:[#allocation40 + $0x160] sm:$0xff]  ;;  %4977 = vmatpush1.msra.mxu0 %v4484_v34 }
 0x9ac   : > { %v4609_v43 = vld [vmem:[#allocation40 + $0x568] sm:$0xff]  ;;  %v4608_v20 = vld [vmem:[#allocation40 + $0x560] sm:$0xff]  ;;  %5048 = vmatpush1.msra.mxu1 %v4612_v24  ;;  %4978 = vmatprep.subr.mxu0 %v4481_v62 }
 0x9ad   : > { %v4477_v17 = vld [vmem:[#allocation40 + $0x148] sm:$0xff]  ;;  %5049 = vmatprep.subr.mxu1 %v4609_v43  ;;  %v4476_v47 = vld [vmem:[#allocation40 + $0x140] sm:$0xff]  ;;  %4979 = vmatpush1.msra.mxu0 %v4480_v27 }
 0x9ae   : > { %v4605_v23 = vld [vmem:[#allocation40 + $0x548] sm:$0xff]  ;;  %v4604_v10 = vld [vmem:[#allocation40 + $0x540] sm:$0xff]  ;;  %5050 = vmatpush1.msra.mxu1 %v4608_v20  ;;  %4980 = vmatprep.subr.mxu0 %v4477_v17 }
 0x9af   : > { %v4473_v15 = vld [vmem:[#allocation40 + $0x128] sm:$0xff]  ;;  %5051 = vmatprep.subr.mxu1 %v4605_v23  ;;  %v4472_v21 = vld [vmem:[#allocation40 + $0x120] sm:$0xff]  ;;  %4981 = vmatpush1.msra.mxu0 %v4476_v47 }
 0x9b0   : > { %v4601_v18 = vld [vmem:[#allocation40 + $0x528] sm:$0xff]  ;;  %v4600_v46 = vld [vmem:[#allocation40 + $0x520] sm:$0xff]  ;;  %5052 = vmatpush1.msra.mxu1 %v4604_v10  ;;  %4982 = vmatprep.subr.mxu0 %v4473_v15 }
 0x9b1   : > { %v4469_v12 = vld [vmem:[#allocation40 + $0x108] sm:$0xff]  ;;  %5053 = vmatprep.subr.mxu1 %v4601_v18  ;;  %v4468_v54 = vld [vmem:[#allocation40 + $0x100] sm:$0xff]  ;;  %4983 = vmatpush1.msra.mxu0 %v4472_v21 }
 0x9b2   : > { %v4597_v59 = vld [vmem:[#allocation40 + $0x508] sm:$0xff]  ;;  %v4596_v19 = vld [vmem:[#allocation40 + $0x500] sm:$0xff]  ;;  %5054 = vmatpush1.msra.mxu1 %v4600_v46  ;;  %4984 = vmatprep.subr.mxu0 %v4469_v12 }
 0x9b3   : > { %v4465_v7 = vld [vmem:[#allocation40 + $0xe8] sm:$0xff]  ;;  %5055 = vmatprep.subr.mxu1 %v4597_v59  ;;  %v4464_v53 = vld [vmem:[#allocation40 + $0xe0] sm:$0xff]  ;;  %4985 = vmatpush1.msra.mxu0 %v4468_v54 }
 0x9b4   : > { %v4593_v41 = vld [vmem:[#allocation40 + $0x4e8] sm:$0xff]  ;;  %v4592_v6 = vld [vmem:[#allocation40 + $0x4e0] sm:$0xff]  ;;  %5056 = vmatpush1.msra.mxu1 %v4596_v19  ;;  %4986 = vmatprep.subr.mxu0 %v4465_v7 }
 0x9b5   : > { %v4461_v51 = vld [vmem:[#allocation40 + $0xc8] sm:$0xff]  ;;  %5057 = vmatprep.subr.mxu1 %v4593_v41  ;;  %v4460_v5 = vld [vmem:[#allocation40 + $0xc0] sm:$0xff]  ;;  %4987 = vmatpush1.msra.mxu0 %v4464_v53 }
 0x9b6   : > { %v4589_v14 = vld [vmem:[#allocation40 + $0x4c8] sm:$0xff]  ;;  %v4588_v16 = vld [vmem:[#allocation40 + $0x4c0] sm:$0xff]  ;;  %5058 = vmatpush1.msra.mxu1 %v4592_v6  ;;  %4988 = vmatprep.subr.mxu0 %v4461_v51 }
 0x9b7   : > { %v4457_v63 = vld [vmem:[#allocation40 + $0xa8] sm:$0xff]  ;;  %5059 = vmatprep.subr.mxu1 %v4589_v14  ;;  %v4456_v49 = vld [vmem:[#allocation40 + $0xa0] sm:$0xff]  ;;  %4989 = vmatpush1.msra.mxu0 %v4460_v5 }
 0x9b8   : > { %v4585_v61 = vld [vmem:[#allocation40 + $0x4a8] sm:$0xff]  ;;  %v4584_v58 = vld [vmem:[#allocation40 + $0x4a0] sm:$0xff]  ;;  %5060 = vmatpush1.msra.mxu1 %v4588_v16  ;;  %4990 = vmatprep.subr.mxu0 %v4457_v63 }
 0x9b9   : > { %v4453_v56 = vld [vmem:[#allocation40 + $0x88] sm:$0xff]  ;;  %5061 = vmatprep.subr.mxu1 %v4585_v61  ;;  %v4452_v40 = vld [vmem:[#allocation40 + $0x80] sm:$0xff]  ;;  %4991 = vmatpush1.msra.mxu0 %v4456_v49 }
 0x9ba   : > { %v4581_v42 = vld [vmem:[#allocation40 + $0x488] sm:$0xff]  ;;  %v4580_v31 = vld [vmem:[#allocation40 + $0x480] sm:$0xff]  ;;  %5062 = vmatpush1.msra.mxu1 %v4584_v58  ;;  %4992 = vmatprep.subr.mxu0 %v4453_v56 }
 0x9bb   : > { %v4449_v60 = vld [vmem:[#allocation40 + $0x68] sm:$0xff]  ;;  %5063 = vmatprep.subr.mxu1 %v4581_v42  ;;  %v4448_v33 = vld [vmem:[#allocation40 + $0x60] sm:$0xff]  ;;  %4993 = vmatpush1.msra.mxu0 %v4452_v40 }
 0x9bc   : > { %v4577_v1 = vld [vmem:[#allocation40 + $0x468] sm:$0xff]  ;;  %v4576_v0 = vld [vmem:[#allocation40 + $0x460] sm:$0xff]  ;;  %5064 = vmatpush1.msra.mxu1 %v4580_v31  ;;  %4994 = vmatprep.subr.mxu0 %v4449_v60 }
 0x9bd   : > { %v4445_v4 = vld [vmem:[#allocation40 + $0x48] sm:$0xff]  ;;  %5065 = vmatprep.subr.mxu1 %v4577_v1  ;;  %v4444_v57 = vld [vmem:[#allocation40 + $0x40] sm:$0xff]  ;;  %4995 = vmatpush1.msra.mxu0 %v4448_v33 }
 0x9be   : > { %v4573_v25 = vld [vmem:[#allocation40 + $0x448] sm:$0xff]  ;;  %v4572_v39 = vld [vmem:[#allocation40 + $0x440] sm:$0xff]  ;;  %5066 = vmatpush1.msra.mxu1 %v4576_v0  ;;  %4996 = vmatprep.subr.mxu0 %v4445_v4 }
 0x9bf   : > { %v4441_v11 = vld [vmem:[#allocation40 + $0x28] sm:$0xff]  ;;  %5067 = vmatprep.subr.mxu1 %v4573_v25  ;;  %v4440_v52 = vld [vmem:[#allocation40 + $0x20] sm:$0xff]  ;;  %4997 = vmatpush1.msra.mxu0 %v4444_v57 }
 0x9c0   : > { %v4569_v36 = vld [vmem:[#allocation40 + $0x428] sm:$0xff]  ;;  %v4568_v30 = vld [vmem:[#allocation40 + $0x420] sm:$0xff]  ;;  %5068 = vmatpush1.msra.mxu1 %v4572_v39  ;;  %4998 = vmatprep.subr.mxu0 %v4441_v11 }
 0x9c1   : > { %v4437_v9 = vld [vmem:[#allocation40 + $0x8] sm:$0xff]  ;;  %5069 = vmatprep.subr.mxu1 %v4569_v36  ;;  %v4436_v38 = vld [vmem:[#allocation40] sm:$0xff]  ;;  %4999 = vmatpush1.msra.mxu0 %v4440_v52 }
 0x9c2   : > { %v4565_v2 = vld [vmem:[#allocation40 + $0x408] sm:$0xff]  ;;  %v4564_v26 = vld [vmem:[#allocation40 + $0x400] sm:$0xff]  ;;  %5070 = vmatpush1.msra.mxu1 %v4568_v30  ;;  %5000 = vmatprep.subr.mxu0 %v4437_v9 }
 0x9c3   : > { %v4561_v28 = vld [vmem:[#allocation40 + $0x3e8] sm:$0xff]  ;;  %5071 = vmatprep.subr.mxu1 %v4565_v2  ;;  %v4560_v34 = vld [vmem:[#allocation40 + $0x3e0] sm:$0xff]  ;;  %5001 = vmatpush1.msra.mxu0 %v4436_v38 }
 0x9c4   : > { %v4689_v55 = vld [vmem:[#allocation40 + $0x7e8] sm:$0xff]  ;;  %v4688_v24 = vld [vmem:[#allocation40 + $0x7e0] sm:$0xff]  ;;  %5072 = vmatpush1.msra.mxu1 %v4564_v26  ;;  %5002 = vmatprep.subr.mxu0 %v4561_v28 }
 0x9c5   : > { %v4557_v62 = vld [vmem:[#allocation40 + $0x3c8] sm:$0xff]  ;;  %5073 = vmatprep.subr.mxu1 %v4689_v55  ;;  %v4556_v27 = vld [vmem:[#allocation40 + $0x3c0] sm:$0xff]  ;;  %5003 = vmatpush2.msra.mxu0 %v4560_v34 }
 0x9c6   : > { %v4685_v43 = vld [vmem:[#allocation40 + $0x7c8] sm:$0xff]  ;;  %v4684_v20 = vld [vmem:[#allocation40 + $0x7c0] sm:$0xff]  ;;  %5074 = vmatpush2.msra.mxu1 %v4688_v24  ;;  %5004 = vmatprep.subr.mxu0 %v4557_v62 }
 0x9c7   : > { %v4553_v17 = vld [vmem:[#allocation40 + $0x3a8] sm:$0xff]  ;;  %5075 = vmatprep.subr.mxu1 %v4685_v43  ;;  %v4552_v47 = vld [vmem:[#allocation40 + $0x3a0] sm:$0xff]  ;;  %5005 = vmatpush2.msra.mxu0 %v4556_v27 }
 0x9c8   : > { %v4681_v23 = vld [vmem:[#allocation40 + $0x7a8] sm:$0xff]  ;;  %v4680_v10 = vld [vmem:[#allocation40 + $0x7a0] sm:$0xff]  ;;  %5076 = vmatpush2.msra.mxu1 %v4684_v20  ;;  %5006 = vmatprep.subr.mxu0 %v4553_v17 }
 0x9c9   : > { %v4549_v15 = vld [vmem:[#allocation40 + $0x388] sm:$0xff]  ;;  %5077 = vmatprep.subr.mxu1 %v4681_v23  ;;  %v4548_v21 = vld [vmem:[#allocation40 + $0x380] sm:$0xff]  ;;  %5007 = vmatpush2.msra.mxu0 %v4552_v47 }
 0x9ca   : > { %v4677_v18 = vld [vmem:[#allocation40 + $0x788] sm:$0xff]  ;;  %v4676_v46 = vld [vmem:[#allocation40 + $0x780] sm:$0xff]  ;;  %5078 = vmatpush2.msra.mxu1 %v4680_v10  ;;  %5008 = vmatprep.subr.mxu0 %v4549_v15 }
 0x9cb   : > { %v4545_v12 = vld [vmem:[#allocation40 + $0x368] sm:$0xff]  ;;  %5079 = vmatprep.subr.mxu1 %v4677_v18  ;;  %v4544_v54 = vld [vmem:[#allocation40 + $0x360] sm:$0xff]  ;;  %5009 = vmatpush2.msra.mxu0 %v4548_v21 }
 0x9cc   : > { %v4673_v59 = vld [vmem:[#allocation40 + $0x768] sm:$0xff]  ;;  %v4672_v19 = vld [vmem:[#allocation40 + $0x760] sm:$0xff]  ;;  %5080 = vmatpush2.msra.mxu1 %v4676_v46  ;;  %5010 = vmatprep.subr.mxu0 %v4545_v12 }
 0x9cd   : > { %v4541_v7 = vld [vmem:[#allocation40 + $0x348] sm:$0xff]  ;;  %5081 = vmatprep.subr.mxu1 %v4673_v59  ;;  %v4540_v53 = vld [vmem:[#allocation40 + $0x340] sm:$0xff]  ;;  %5011 = vmatpush2.msra.mxu0 %v4544_v54 }
 0x9ce   : > { %v4669_v41 = vld [vmem:[#allocation40 + $0x748] sm:$0xff]  ;;  %v4668_v6 = vld [vmem:[#allocation40 + $0x740] sm:$0xff]  ;;  %5082 = vmatpush2.msra.mxu1 %v4672_v19  ;;  %5012 = vmatprep.subr.mxu0 %v4541_v7 }
 0x9cf   : > { %v4537_v51 = vld [vmem:[#allocation40 + $0x328] sm:$0xff]  ;;  %5083 = vmatprep.subr.mxu1 %v4669_v41  ;;  %v4536_v5 = vld [vmem:[#allocation40 + $0x320] sm:$0xff]  ;;  %5013 = vmatpush2.msra.mxu0 %v4540_v53 }
 0x9d0   : > { %v4665_v14 = vld [vmem:[#allocation40 + $0x728] sm:$0xff]  ;;  %v4664_v16 = vld [vmem:[#allocation40 + $0x720] sm:$0xff]  ;;  %5084 = vmatpush2.msra.mxu1 %v4668_v6  ;;  %5014 = vmatprep.subr.mxu0 %v4537_v51 }
 0x9d1   : > { %v4533_v63 = vld [vmem:[#allocation40 + $0x308] sm:$0xff]  ;;  %5085 = vmatprep.subr.mxu1 %v4665_v14  ;;  %v4532_v49 = vld [vmem:[#allocation40 + $0x300] sm:$0xff]  ;;  %5015 = vmatpush2.msra.mxu0 %v4536_v5 }
 0x9d2   : > { %v4661_v61 = vld [vmem:[#allocation40 + $0x708] sm:$0xff]  ;;  %v4660_v58 = vld [vmem:[#allocation40 + $0x700] sm:$0xff]  ;;  %5086 = vmatpush2.msra.mxu1 %v4664_v16  ;;  %5016 = vmatprep.subr.mxu0 %v4533_v63 }
 0x9d3   : > { %v4529_v56 = vld [vmem:[#allocation40 + $0x2e8] sm:$0xff]  ;;  %5087 = vmatprep.subr.mxu1 %v4661_v61  ;;  %v4528_v40 = vld [vmem:[#allocation40 + $0x2e0] sm:$0xff]  ;;  %5017 = vmatpush2.msra.mxu0 %v4532_v49 }
 0x9d4   : > { %v4657_v42 = vld [vmem:[#allocation40 + $0x6e8] sm:$0xff]  ;;  %v4656_v31 = vld [vmem:[#allocation40 + $0x6e0] sm:$0xff]  ;;  %5088 = vmatpush2.msra.mxu1 %v4660_v58  ;;  %5018 = vmatprep.subr.mxu0 %v4529_v56 }
 0x9d5   : > { %v4525_v60 = vld [vmem:[#allocation40 + $0x2c8] sm:$0xff]  ;;  %5089 = vmatprep.subr.mxu1 %v4657_v42  ;;  %v4524_v33 = vld [vmem:[#allocation40 + $0x2c0] sm:$0xff]  ;;  %5019 = vmatpush2.msra.mxu0 %v4528_v40 }
 0x9d6   : > { %v4653_v1 = vld [vmem:[#allocation40 + $0x6c8] sm:$0xff]  ;;  %v4652_v0 = vld [vmem:[#allocation40 + $0x6c0] sm:$0xff]  ;;  %5090 = vmatpush2.msra.mxu1 %v4656_v31  ;;  %5020 = vmatprep.subr.mxu0 %v4525_v60 }
 0x9d7   : > { %v4521_v4 = vld [vmem:[#allocation40 + $0x2a8] sm:$0xff]  ;;  %5091 = vmatprep.subr.mxu1 %v4653_v1  ;;  %v4520_v57 = vld [vmem:[#allocation40 + $0x2a0] sm:$0xff]  ;;  %5021 = vmatpush2.msra.mxu0 %v4524_v33 }
 0x9d8   : > { %v4649_v25 = vld [vmem:[#allocation40 + $0x6a8] sm:$0xff]  ;;  %v4648_v39 = vld [vmem:[#allocation40 + $0x6a0] sm:$0xff]  ;;  %5092 = vmatpush2.msra.mxu1 %v4652_v0  ;;  %5022 = vmatprep.subr.mxu0 %v4521_v4 }
 0x9d9   : > { %v4517_v11 = vld [vmem:[#allocation40 + $0x288] sm:$0xff]  ;;  %5093 = vmatprep.subr.mxu1 %v4649_v25  ;;  %v4516_v52 = vld [vmem:[#allocation40 + $0x280] sm:$0xff]  ;;  %5023 = vmatpush2.msra.mxu0 %v4520_v57 }
 0x9da   : > { %v4645_v36 = vld [vmem:[#allocation40 + $0x688] sm:$0xff]  ;;  %v4644_v30 = vld [vmem:[#allocation40 + $0x680] sm:$0xff]  ;;  %5094 = vmatpush2.msra.mxu1 %v4648_v39  ;;  %5024 = vmatprep.subr.mxu0 %v4517_v11 }
 0x9db   : > { %v4513_v9 = vld [vmem:[#allocation40 + $0x268] sm:$0xff]  ;;  %5095 = vmatprep.subr.mxu1 %v4645_v36  ;;  %v4512_v38 = vld [vmem:[#allocation40 + $0x260] sm:$0xff]  ;;  %5025 = vmatpush2.msra.mxu0 %v4516_v52 }
 0x9dc   : > { %v4641_v2 = vld [vmem:[#allocation40 + $0x668] sm:$0xff]  ;;  %v4640_v26 = vld [vmem:[#allocation40 + $0x660] sm:$0xff]  ;;  %5096 = vmatpush2.msra.mxu1 %v4644_v30  ;;  %5026 = vmatprep.subr.mxu0 %v4513_v9 }
 0x9dd   : > { %v4509_v28 = vld [vmem:[#allocation40 + $0x248] sm:$0xff]  ;;  %5097 = vmatprep.subr.mxu1 %v4641_v2  ;;  %v4508_v34 = vld [vmem:[#allocation40 + $0x240] sm:$0xff]  ;;  %5027 = vmatpush2.msra.mxu0 %v4512_v38 }
 0x9de   : > { %v4637_v55 = vld [vmem:[#allocation40 + $0x648] sm:$0xff]  ;;  %v4636_v24 = vld [vmem:[#allocation40 + $0x640] sm:$0xff]  ;;  %5098 = vmatpush2.msra.mxu1 %v4640_v26  ;;  %5028 = vmatprep.subr.mxu0 %v4509_v28 }
 0x9df   : > { %v4505_v62 = vld [vmem:[#allocation40 + $0x228] sm:$0xff]  ;;  %5099 = vmatprep.subr.mxu1 %v4637_v55  ;;  %v4504_v27 = vld [vmem:[#allocation40 + $0x220] sm:$0xff]  ;;  %5029 = vmatpush2.msra.mxu0 %v4508_v34 }
 0x9e0   : > { %v4633_v43 = vld [vmem:[#allocation40 + $0x628] sm:$0xff]  ;;  %v4632_v20 = vld [vmem:[#allocation40 + $0x620] sm:$0xff]  ;;  %5100 = vmatpush2.msra.mxu1 %v4636_v24  ;;  %5030 = vmatprep.subr.mxu0 %v4505_v62 }
 0x9e1   : > { %v4501_v17 = vld [vmem:[#allocation40 + $0x208] sm:$0xff]  ;;  %5101 = vmatprep.subr.mxu1 %v4633_v43  ;;  %v4500_v47 = vld [vmem:[#allocation40 + $0x200] sm:$0xff]  ;;  %5031 = vmatpush2.msra.mxu0 %v4504_v27 }
 0x9e2   : > { %v4629_v23 = vld [vmem:[#allocation40 + $0x608] sm:$0xff]  ;;  %v4628_v10 = vld [vmem:[#allocation40 + $0x600] sm:$0xff]  ;;  %5102 = vmatpush2.msra.mxu1 %v4632_v20  ;;  %5032 = vmatprep.subr.mxu0 %v4501_v17 }
 0x9e3   : > { %v4753_v15 = vld [vmem:[#allocation40 + $0x9e8] sm:$0xff]  ;;  %5103 = vmatprep.subr.mxu1 %v4629_v23  ;;  %5033 = vmatpush2.msra.mxu0 %v4500_v47  ;;  %v4752_v21 = vld [vmem:[#allocation40 + $0x9e0] sm:$0xff] }
 0x9e4   : > { %v4881_v18 = vld [vmem:[#allocation40 + $0xde8] sm:$0xff]  ;;  %5104 = vmatpush2.msra.mxu1 %v4628_v10  ;;  %v4880_v46 = vld [vmem:[#allocation40 + $0xde0] sm:$0xff]  ;;  %5035 = vmatmul.mubr.f32.vlgmr.msra.gmra.mxu0 %v9582_v13 }
 0x9e5   : > { %5112 = vmatprep.subr.mxu0 %v4753_v15  ;;  %v4749_v12 = vld [vmem:[#allocation40 + $0x9c8] sm:$0xff]  ;;  %5183 = vmatprep.subr.mxu1 %v4881_v18  ;;  %v4748_v54 = vld [vmem:[#allocation40 + $0x9c0] sm:$0xff] }
 0x9e6   : > { %v4877_v59 = vld [vmem:[#allocation40 + $0xdc8] sm:$0xff]  ;;  %5106 = vmatmul.mubr.f32.vlgmr.msra.gmra.mxu1 %v9586_v32  ;;  %v4876_v19 = vld [vmem:[#allocation40 + $0xdc0] sm:$0xff]  ;;  %5113 = vmatpush1.msra.mxu0 %v4752_v21 }
 0x9e7   : > { %5184 = vmatpush1.msra.mxu1 %v4880_v46  ;;  %v4745_v7 = vld [vmem:[#allocation40 + $0x9a8] sm:$0xff]  ;;  %5114 = vmatprep.subr.mxu0 %v4749_v12  ;;  %v4744_v53 = vld [vmem:[#allocation40 + $0x9a0] sm:$0xff] }
 0x9e8   : > { %v4873_v41 = vld [vmem:[#allocation40 + $0xda8] sm:$0xff]  ;;  %5185 = vmatprep.subr.mxu1 %v4877_v59  ;;  %v4872_v6 = vld [vmem:[#allocation40 + $0xda0] sm:$0xff]  ;;  %5115 = vmatpush1.msra.mxu0 %v4748_v54 }
 0x9e9   : > { %5186 = vmatpush1.msra.mxu1 %v4876_v19  ;;  %v4741_v51 = vld [vmem:[#allocation40 + $0x988] sm:$0xff]  ;;  %5116 = vmatprep.subr.mxu0 %v4745_v7  ;;  %v4740_v5 = vld [vmem:[#allocation40 + $0x980] sm:$0xff] }
 0x9ea   : > { %v4869_v14 = vld [vmem:[#allocation40 + $0xd88] sm:$0xff]  ;;  %5187 = vmatprep.subr.mxu1 %v4873_v41  ;;  %v4868_v16 = vld [vmem:[#allocation40 + $0xd80] sm:$0xff]  ;;  %5117 = vmatpush1.msra.mxu0 %v4744_v53 }
 0x9eb   : > { %5188 = vmatpush1.msra.mxu1 %v4872_v6  ;;  %v4737_v63 = vld [vmem:[#allocation40 + $0x968] sm:$0xff]  ;;  %5118 = vmatprep.subr.mxu0 %v4741_v51  ;;  %v4736_v49 = vld [vmem:[#allocation40 + $0x960] sm:$0xff] }
 0x9ec   : > { %v4865_v61 = vld [vmem:[#allocation40 + $0xd68] sm:$0xff]  ;;  %5189 = vmatprep.subr.mxu1 %v4869_v14  ;;  %v4864_v58 = vld [vmem:[#allocation40 + $0xd60] sm:$0xff]  ;;  %5119 = vmatpush1.msra.mxu0 %v4740_v5 }
 0x9ed   : > { %5190 = vmatpush1.msra.mxu1 %v4868_v16  ;;  %v4733_v56 = vld [vmem:[#allocation40 + $0x948] sm:$0xff]  ;;  %5120 = vmatprep.subr.mxu0 %v4737_v63  ;;  %v4732_v40 = vld [vmem:[#allocation40 + $0x940] sm:$0xff] }
 0x9ee   : > { %v4861_v42 = vld [vmem:[#allocation40 + $0xd48] sm:$0xff]  ;;  %5191 = vmatprep.subr.mxu1 %v4865_v61  ;;  %v4860_v31 = vld [vmem:[#allocation40 + $0xd40] sm:$0xff]  ;;  %5121 = vmatpush1.msra.mxu0 %v4736_v49 }
 0x9ef   : > { %5192 = vmatpush1.msra.mxu1 %v4864_v58  ;;  %v4729_v60 = vld [vmem:[#allocation40 + $0x928] sm:$0xff]  ;;  %5122 = vmatprep.subr.mxu0 %v4733_v56  ;;  %v4728_v33 = vld [vmem:[#allocation40 + $0x920] sm:$0xff] }
 0x9f0   : > { %v4857_v1 = vld [vmem:[#allocation40 + $0xd28] sm:$0xff]  ;;  %5193 = vmatprep.subr.mxu1 %v4861_v42  ;;  %v4856_v0 = vld [vmem:[#allocation40 + $0xd20] sm:$0xff]  ;;  %5123 = vmatpush1.msra.mxu0 %v4732_v40 }
 0x9f1   : > { %5194 = vmatpush1.msra.mxu1 %v4860_v31  ;;  %v4725_v4 = vld [vmem:[#allocation40 + $0x908] sm:$0xff]  ;;  %5124 = vmatprep.subr.mxu0 %v4729_v60  ;;  %v4724_v57 = vld [vmem:[#allocation40 + $0x900] sm:$0xff] }
 0x9f2   : > { %v4853_v25 = vld [vmem:[#allocation40 + $0xd08] sm:$0xff]  ;;  %5195 = vmatprep.subr.mxu1 %v4857_v1  ;;  %v4852_v39 = vld [vmem:[#allocation40 + $0xd00] sm:$0xff]  ;;  %5125 = vmatpush1.msra.mxu0 %v4728_v33 }
 0x9f3   : > { %5196 = vmatpush1.msra.mxu1 %v4856_v0  ;;  %v4721_v11 = vld [vmem:[#allocation40 + $0x8e8] sm:$0xff]  ;;  %5126 = vmatprep.subr.mxu0 %v4725_v4  ;;  %v4720_v52 = vld [vmem:[#allocation40 + $0x8e0] sm:$0xff] }
 0x9f4   : > { %v4849_v36 = vld [vmem:[#allocation40 + $0xce8] sm:$0xff]  ;;  %5197 = vmatprep.subr.mxu1 %v4853_v25  ;;  %v4848_v30 = vld [vmem:[#allocation40 + $0xce0] sm:$0xff]  ;;  %5127 = vmatpush1.msra.mxu0 %v4724_v57 }
 0x9f5   : > { %5198 = vmatpush1.msra.mxu1 %v4852_v39  ;;  %v4717_v9 = vld [vmem:[#allocation40 + $0x8c8] sm:$0xff]  ;;  %5128 = vmatprep.subr.mxu0 %v4721_v11  ;;  %v4716_v38 = vld [vmem:[#allocation40 + $0x8c0] sm:$0xff] }
 0x9f6   : > { %v4845_v2 = vld [vmem:[#allocation40 + $0xcc8] sm:$0xff]  ;;  %5199 = vmatprep.subr.mxu1 %v4849_v36  ;;  %v4844_v26 = vld [vmem:[#allocation40 + $0xcc0] sm:$0xff]  ;;  %5129 = vmatpush1.msra.mxu0 %v4720_v52 }
 0x9f7   : > { %5200 = vmatpush1.msra.mxu1 %v4848_v30  ;;  %v4713_v28 = vld [vmem:[#allocation40 + $0x8a8] sm:$0xff]  ;;  %5130 = vmatprep.subr.mxu0 %v4717_v9  ;;  %v4712_v34 = vld [vmem:[#allocation40 + $0x8a0] sm:$0xff] }
 0x9f8   : > { %v4841_v55 = vld [vmem:[#allocation40 + $0xca8] sm:$0xff]  ;;  %5201 = vmatprep.subr.mxu1 %v4845_v2  ;;  %v4840_v24 = vld [vmem:[#allocation40 + $0xca0] sm:$0xff]  ;;  %5131 = vmatpush1.msra.mxu0 %v4716_v38 }
 0x9f9   : > { %5202 = vmatpush1.msra.mxu1 %v4844_v26  ;;  %v4709_v62 = vld [vmem:[#allocation40 + $0x888] sm:$0xff]  ;;  %5132 = vmatprep.subr.mxu0 %v4713_v28  ;;  %v4708_v27 = vld [vmem:[#allocation40 + $0x880] sm:$0xff] }
 0x9fa   : > { %v4837_v43 = vld [vmem:[#allocation40 + $0xc88] sm:$0xff]  ;;  %5203 = vmatprep.subr.mxu1 %v4841_v55  ;;  %v4836_v20 = vld [vmem:[#allocation40 + $0xc80] sm:$0xff]  ;;  %5133 = vmatpush1.msra.mxu0 %v4712_v34 }
 0x9fb   : > { %5204 = vmatpush1.msra.mxu1 %v4840_v24  ;;  %v4705_v17 = vld [vmem:[#allocation40 + $0x868] sm:$0xff]  ;;  %5134 = vmatprep.subr.mxu0 %v4709_v62  ;;  %v4704_v47 = vld [vmem:[#allocation40 + $0x860] sm:$0xff] }
 0x9fc   : > { %v4833_v23 = vld [vmem:[#allocation40 + $0xc68] sm:$0xff]  ;;  %5205 = vmatprep.subr.mxu1 %v4837_v43  ;;  %v4832_v10 = vld [vmem:[#allocation40 + $0xc60] sm:$0xff]  ;;  %5135 = vmatpush1.msra.mxu0 %v4708_v27 }
 0x9fd   : > { %5206 = vmatpush1.msra.mxu1 %v4836_v20  ;;  %v4701_v15 = vld [vmem:[#allocation40 + $0x848] sm:$0xff]  ;;  %5136 = vmatprep.subr.mxu0 %v4705_v17  ;;  %v4700_v21 = vld [vmem:[#allocation40 + $0x840] sm:$0xff] }
 0x9fe   : > { %v4829_v18 = vld [vmem:[#allocation40 + $0xc48] sm:$0xff]  ;;  %5207 = vmatprep.subr.mxu1 %v4833_v23  ;;  %v4828_v46 = vld [vmem:[#allocation40 + $0xc40] sm:$0xff]  ;;  %5137 = vmatpush1.msra.mxu0 %v4704_v47 }
 0x9ff   : > { %5208 = vmatpush1.msra.mxu1 %v4832_v10  ;;  %v4697_v12 = vld [vmem:[#allocation40 + $0x828] sm:$0xff]  ;;  %5138 = vmatprep.subr.mxu0 %v4701_v15  ;;  %v4696_v54 = vld [vmem:[#allocation40 + $0x820] sm:$0xff] }
 0xa00   : > { %v4825_v59 = vld [vmem:[#allocation40 + $0xc28] sm:$0xff]  ;;  %5209 = vmatprep.subr.mxu1 %v4829_v18  ;;  %v4824_v19 = vld [vmem:[#allocation40 + $0xc20] sm:$0xff]  ;;  %5139 = vmatpush1.msra.mxu0 %v4700_v21 }
 0xa01   : > { %5210 = vmatpush1.msra.mxu1 %v4828_v46  ;;  %v4693_v7 = vld [vmem:[#allocation40 + $0x808] sm:$0xff]  ;;  %5140 = vmatprep.subr.mxu0 %v4697_v12  ;;  %v4692_v53 = vld [vmem:[#allocation40 + $0x800] sm:$0xff] }
 0xa02   : > { %v4821_v41 = vld [vmem:[#allocation40 + $0xc08] sm:$0xff]  ;;  %5211 = vmatprep.subr.mxu1 %v4825_v59  ;;  %v4820_v6 = vld [vmem:[#allocation40 + $0xc00] sm:$0xff]  ;;  %5141 = vmatpush1.msra.mxu0 %v4696_v54 }
 0xa03   : > { %5212 = vmatpush1.msra.mxu1 %v4824_v19  ;;  %v4817_v51 = vld [vmem:[#allocation40 + $0xbe8] sm:$0xff]  ;;  %5142 = vmatprep.subr.mxu0 %v4693_v7  ;;  %v4816_v5 = vld [vmem:[#allocation40 + $0xbe0] sm:$0xff] }
 0xa04   : > { %v4945_v14 = vld [vmem:[#allocation40 + $0xfe8] sm:$0xff]  ;;  %5213 = vmatprep.subr.mxu1 %v4821_v41  ;;  %v4944_v16 = vld [vmem:[#allocation40 + $0xfe0] sm:$0xff]  ;;  %5143 = vmatpush1.msra.mxu0 %v4692_v53 }
 0xa05   : > { %5214 = vmatpush1.msra.mxu1 %v4820_v6  ;;  %v4813_v63 = vld [vmem:[#allocation40 + $0xbc8] sm:$0xff]  ;;  %5144 = vmatprep.subr.mxu0 %v4817_v51  ;;  %v4812_v49 = vld [vmem:[#allocation40 + $0xbc0] sm:$0xff] }
 0xa06   : > { %v4941_v61 = vld [vmem:[#allocation40 + $0xfc8] sm:$0xff]  ;;  %5215 = vmatprep.subr.mxu1 %v4945_v14  ;;  %v4940_v58 = vld [vmem:[#allocation40 + $0xfc0] sm:$0xff]  ;;  %5145 = vmatpush2.msra.mxu0 %v4816_v5 }
 0xa07   : > { %5216 = vmatpush2.msra.mxu1 %v4944_v16  ;;  %v4809_v56 = vld [vmem:[#allocation40 + $0xba8] sm:$0xff]  ;;  %5146 = vmatprep.subr.mxu0 %v4813_v63  ;;  %v4808_v40 = vld [vmem:[#allocation40 + $0xba0] sm:$0xff] }
 0xa08   : > { %v4937_v42 = vld [vmem:[#allocation40 + $0xfa8] sm:$0xff]  ;;  %5217 = vmatprep.subr.mxu1 %v4941_v61  ;;  %v4936_v31 = vld [vmem:[#allocation40 + $0xfa0] sm:$0xff]  ;;  %5147 = vmatpush2.msra.mxu0 %v4812_v49 }
 0xa09   : > { %5218 = vmatpush2.msra.mxu1 %v4940_v58  ;;  %v4805_v60 = vld [vmem:[#allocation40 + $0xb88] sm:$0xff]  ;;  %5148 = vmatprep.subr.mxu0 %v4809_v56  ;;  %v4804_v33 = vld [vmem:[#allocation40 + $0xb80] sm:$0xff] }
 0xa0a   : > { %v4933_v1 = vld [vmem:[#allocation40 + $0xf88] sm:$0xff]  ;;  %5219 = vmatprep.subr.mxu1 %v4937_v42  ;;  %v4932_v0 = vld [vmem:[#allocation40 + $0xf80] sm:$0xff]  ;;  %5149 = vmatpush2.msra.mxu0 %v4808_v40 }
 0xa0b   : > { %5220 = vmatpush2.msra.mxu1 %v4936_v31  ;;  %v4801_v4 = vld [vmem:[#allocation40 + $0xb68] sm:$0xff]  ;;  %5150 = vmatprep.subr.mxu0 %v4805_v60  ;;  %v4800_v57 = vld [vmem:[#allocation40 + $0xb60] sm:$0xff]  ;;  %v4499_v60 = vld [vmem:[#allocation40 + $0x1f8] sm:$0xff] }
 0xa0c   : > { %v4929_v25 = vld [vmem:[#allocation40 + $0xf68] sm:$0xff]  ;;  %5221 = vmatprep.subr.mxu1 %v4933_v1  ;;  %v4928_v39 = vld [vmem:[#allocation40 + $0xf60] sm:$0xff]  ;;  %5151 = vmatpush2.msra.mxu0 %v4804_v33  ;;  %v4627_v1 = vld [vmem:[#allocation40 + $0x5f8] sm:$0xff] }
 0xa0d   : > { %5222 = vmatpush2.msra.mxu1 %v4932_v0  ;;  %v4797_v11 = vld [vmem:[#allocation40 + $0xb48] sm:$0xff]  ;;  %5152 = vmatprep.subr.mxu0 %v4801_v4  ;;  %v4796_v52 = vld [vmem:[#allocation40 + $0xb40] sm:$0xff]  ;;  %v4498_v33 = vld [vmem:[#allocation40 + $0x1f0] sm:$0xff] }
 0xa0e   : > { %v4925_v36 = vld [vmem:[#allocation40 + $0xf48] sm:$0xff]  ;;  %5223 = vmatprep.subr.mxu1 %v4929_v25  ;;  %v4924_v30 = vld [vmem:[#allocation40 + $0xf40] sm:$0xff]  ;;  %5153 = vmatpush2.msra.mxu0 %v4800_v57  ;;  %v4626_v0 = vld [vmem:[#allocation40 + $0x5f0] sm:$0xff] }
 0xa0f   : > { %5224 = vmatpush2.msra.mxu1 %v4928_v39  ;;  %v4793_v9 = vld [vmem:[#allocation40 + $0xb28] sm:$0xff]  ;;  %5154 = vmatprep.subr.mxu0 %v4797_v11  ;;  %v4792_v38 = vld [vmem:[#allocation40 + $0xb20] sm:$0xff]  ;;  %v4495_v4 = vld [vmem:[#allocation40 + $0x1d8] sm:$0xff] }
 0xa10   : > { %v4921_v2 = vld [vmem:[#allocation40 + $0xf28] sm:$0xff]  ;;  %5225 = vmatprep.subr.mxu1 %v4925_v36  ;;  %v4920_v26 = vld [vmem:[#allocation40 + $0xf20] sm:$0xff]  ;;  %5155 = vmatpush2.msra.mxu0 %v4796_v52  ;;  %v4623_v25 = vld [vmem:[#allocation40 + $0x5d8] sm:$0xff] }
 0xa11   : > { %5226 = vmatpush2.msra.mxu1 %v4924_v30  ;;  %v4789_v28 = vld [vmem:[#allocation40 + $0xb08] sm:$0xff]  ;;  %5156 = vmatprep.subr.mxu0 %v4793_v9  ;;  %v4788_v34 = vld [vmem:[#allocation40 + $0xb00] sm:$0xff]  ;;  %v4494_v57 = vld [vmem:[#allocation40 + $0x1d0] sm:$0xff] }
 0xa12   : > { %v4917_v55 = vld [vmem:[#allocation40 + $0xf08] sm:$0xff]  ;;  %5227 = vmatprep.subr.mxu1 %v4921_v2  ;;  %v4916_v24 = vld [vmem:[#allocation40 + $0xf00] sm:$0xff]  ;;  %5157 = vmatpush2.msra.mxu0 %v4792_v38  ;;  %v4622_v39 = vld [vmem:[#allocation40 + $0x5d0] sm:$0xff] }
 0xa13   : > { %5228 = vmatpush2.msra.mxu1 %v4920_v26  ;;  %v4785_v62 = vld [vmem:[#allocation40 + $0xae8] sm:$0xff]  ;;  %5158 = vmatprep.subr.mxu0 %v4789_v28  ;;  %v4784_v27 = vld [vmem:[#allocation40 + $0xae0] sm:$0xff]  ;;  %v4491_v11 = vld [vmem:[#allocation40 + $0x1b8] sm:$0xff] }
 0xa14   : > { %v4913_v43 = vld [vmem:[#allocation40 + $0xee8] sm:$0xff]  ;;  %5229 = vmatprep.subr.mxu1 %v4917_v55  ;;  %v4912_v20 = vld [vmem:[#allocation40 + $0xee0] sm:$0xff]  ;;  %5159 = vmatpush2.msra.mxu0 %v4788_v34  ;;  %v4619_v36 = vld [vmem:[#allocation40 + $0x5b8] sm:$0xff] }
 0xa15   : > { %5230 = vmatpush2.msra.mxu1 %v4916_v24  ;;  %v4781_v17 = vld [vmem:[#allocation40 + $0xac8] sm:$0xff]  ;;  %5160 = vmatprep.subr.mxu0 %v4785_v62  ;;  %v4780_v47 = vld [vmem:[#allocation40 + $0xac0] sm:$0xff]  ;;  %v4490_v52 = vld [vmem:[#allocation40 + $0x1b0] sm:$0xff] }
 0xa16   : > { %v4909_v23 = vld [vmem:[#allocation40 + $0xec8] sm:$0xff]  ;;  %5231 = vmatprep.subr.mxu1 %v4913_v43  ;;  %v4908_v10 = vld [vmem:[#allocation40 + $0xec0] sm:$0xff]  ;;  %5161 = vmatpush2.msra.mxu0 %v4784_v27  ;;  %v4618_v30 = vld [vmem:[#allocation40 + $0x5b0] sm:$0xff] }
 0xa17   : > { %5232 = vmatpush2.msra.mxu1 %v4912_v20  ;;  %v4777_v15 = vld [vmem:[#allocation40 + $0xaa8] sm:$0xff]  ;;  %5162 = vmatprep.subr.mxu0 %v4781_v17  ;;  %v4776_v21 = vld [vmem:[#allocation40 + $0xaa0] sm:$0xff]  ;;  %v4487_v9 = vld [vmem:[#allocation40 + $0x198] sm:$0xff] }
 0xa18   : > { %v4905_v18 = vld [vmem:[#allocation40 + $0xea8] sm:$0xff]  ;;  %5233 = vmatprep.subr.mxu1 %v4909_v23  ;;  %v4904_v46 = vld [vmem:[#allocation40 + $0xea0] sm:$0xff]  ;;  %5163 = vmatpush2.msra.mxu0 %v4780_v47  ;;  %v4615_v2 = vld [vmem:[#allocation40 + $0x598] sm:$0xff] }
 0xa19   : > { %5234 = vmatpush2.msra.mxu1 %v4908_v10  ;;  %v4773_v12 = vld [vmem:[#allocation40 + $0xa88] sm:$0xff]  ;;  %5164 = vmatprep.subr.mxu0 %v4777_v15  ;;  %v4772_v54 = vld [vmem:[#allocation40 + $0xa80] sm:$0xff]  ;;  %v4486_v38 = vld [vmem:[#allocation40 + $0x190] sm:$0xff] }
 0xa1a   : > { %v4901_v59 = vld [vmem:[#allocation40 + $0xe88] sm:$0xff]  ;;  %5235 = vmatprep.subr.mxu1 %v4905_v18  ;;  %v4900_v19 = vld [vmem:[#allocation40 + $0xe80] sm:$0xff]  ;;  %5165 = vmatpush2.msra.mxu0 %v4776_v21  ;;  %v4614_v26 = vld [vmem:[#allocation40 + $0x590] sm:$0xff] }
 0xa1b   : > { %5236 = vmatpush2.msra.mxu1 %v4904_v46  ;;  %v4769_v7 = vld [vmem:[#allocation40 + $0xa68] sm:$0xff]  ;;  %5166 = vmatprep.subr.mxu0 %v4773_v12  ;;  %v4768_v53 = vld [vmem:[#allocation40 + $0xa60] sm:$0xff]  ;;  %v4483_v28 = vld [vmem:[#allocation40 + $0x178] sm:$0xff] }
 0xa1c   : > { %v4897_v41 = vld [vmem:[#allocation40 + $0xe68] sm:$0xff]  ;;  %5237 = vmatprep.subr.mxu1 %v4901_v59  ;;  %v4896_v6 = vld [vmem:[#allocation40 + $0xe60] sm:$0xff]  ;;  %5167 = vmatpush2.msra.mxu0 %v4772_v54  ;;  %v4611_v55 = vld [vmem:[#allocation40 + $0x578] sm:$0xff] }
 0xa1d   : > { %5238 = vmatpush2.msra.mxu1 %v4900_v19  ;;  %v4765_v51 = vld [vmem:[#allocation40 + $0xa48] sm:$0xff]  ;;  %5168 = vmatprep.subr.mxu0 %v4769_v7  ;;  %v4764_v5 = vld [vmem:[#allocation40 + $0xa40] sm:$0xff]  ;;  %v4482_v34 = vld [vmem:[#allocation40 + $0x170] sm:$0xff] }
 0xa1e   : > { %v4893_v14 = vld [vmem:[#allocation40 + $0xe48] sm:$0xff]  ;;  %5239 = vmatprep.subr.mxu1 %v4897_v41  ;;  %v4892_v16 = vld [vmem:[#allocation40 + $0xe40] sm:$0xff]  ;;  %5169 = vmatpush2.msra.mxu0 %v4768_v53  ;;  %v4610_v24 = vld [vmem:[#allocation40 + $0x570] sm:$0xff] }
 0xa1f   : > { %5240 = vmatpush2.msra.mxu1 %v4896_v6  ;;  %v4761_v63 = vld [vmem:[#allocation40 + $0xa28] sm:$0xff]  ;;  %5170 = vmatprep.subr.mxu0 %v4765_v51  ;;  %v4760_v49 = vld [vmem:[#allocation40 + $0xa20] sm:$0xff]  ;;  %v4479_v62 = vld [vmem:[#allocation40 + $0x158] sm:$0xff] }
 0xa20   : > { %v4889_v61 = vld [vmem:[#allocation40 + $0xe28] sm:$0xff]  ;;  %5241 = vmatprep.subr.mxu1 %v4893_v14  ;;  %v4888_v58 = vld [vmem:[#allocation40 + $0xe20] sm:$0xff]  ;;  %5171 = vmatpush2.msra.mxu0 %v4764_v5  ;;  %v4607_v43 = vld [vmem:[#allocation40 + $0x558] sm:$0xff] }
 0xa21   : > { %5242 = vmatpush2.msra.mxu1 %v4892_v16  ;;  %v4757_v56 = vld [vmem:[#allocation40 + $0xa08] sm:$0xff]  ;;  %5172 = vmatprep.subr.mxu0 %v4761_v63  ;;  %v4756_v40 = vld [vmem:[#allocation40 + $0xa00] sm:$0xff]  ;;  %v4478_v27 = vld [vmem:[#allocation40 + $0x150] sm:$0xff] }
 0xa22   : > { %v4885_v42 = vld [vmem:[#allocation40 + $0xe08] sm:$0xff]  ;;  %5243 = vmatprep.subr.mxu1 %v4889_v61  ;;  %5173 = vmatpush2.msra.mxu0 %v4760_v49  ;;  %v4884_v31 = vld [vmem:[#allocation40 + $0xe00] sm:$0xff]  ;;  %v4606_v20 = vld [vmem:[#allocation40 + $0x550] sm:$0xff] }
 0xa23   : > { %5244 = vmatpush2.msra.mxu1 %v4888_v58  ;;  %5174 = vmatprep.subr.mxu0 %v4757_v56  ;;  %v4475_v17 = vld [vmem:[#allocation40 + $0x138] sm:$0xff]  ;;  %v4474_v47 = vld [vmem:[#allocation40 + $0x130] sm:$0xff] }
 0xa24   : > { %5245 = vmatprep.subr.mxu1 %v4885_v42  ;;  %5175 = vmatpush2.msra.mxu0 %v4756_v40  ;;  %v4603_v23 = vld [vmem:[#allocation40 + $0x538] sm:$0xff]  ;;  %v4602_v10 = vld [vmem:[#allocation40 + $0x530] sm:$0xff] }
 0xa25   : > { %5176 = vmatprep.mubr.f32.mxu0 %v9592_v35  ;;  %5246 = vmatpush2.msra.mxu1 %v4884_v31  ;;  %v4471_v15 = vld [vmem:[#allocation40 + $0x118] sm:$0xff]  ;;  %v4470_v21 = vld [vmem:[#allocation40 + $0x110] sm:$0xff] }
 0xa26   : > { %5177 = vmatmul.mubr.f32.vlgmr.msra.gmra.mxu0 %v9590_v8  ;;  %5247 = vmatprep.mubr.f32.mxu1 %v9596_v3  ;;  %v4599_v18 = vld [vmem:[#allocation40 + $0x518] sm:$0xff]  ;;  %v4598_v46 = vld [vmem:[#allocation40 + $0x510] sm:$0xff] }
 0xa27   : > { %5254 = vmatprep.subr.mxu0 %v4499_v60  ;;  %5325 = vmatprep.subr.mxu1 %v4627_v1  ;;  %v4467_v12 = vld [vmem:[#allocation40 + $0xf8] sm:$0xff]  ;;  %v4466_v54 = vld [vmem:[#allocation40 + $0xf0] sm:$0xff] }
 0xa28   : > { %5248 = vmatmul.mubr.f32.vlgmr.msra.gmra.mxu1 %v9594_v44  ;;  %5255 = vmatpush1.msra.mxu0 %v4498_v33  ;;  %v4595_v59 = vld [vmem:[#allocation40 + $0x4f8] sm:$0xff]  ;;  %v4594_v19 = vld [vmem:[#allocation40 + $0x4f0] sm:$0xff] }
 0xa29   : > { %5326 = vmatpush1.msra.mxu1 %v4626_v0  ;;  %5256 = vmatprep.subr.mxu0 %v4495_v4  ;;  %v4463_v7 = vld [vmem:[#allocation40 + $0xd8] sm:$0xff]  ;;  %v4462_v53 = vld [vmem:[#allocation40 + $0xd0] sm:$0xff] }
 0xa2a   : > { %5327 = vmatprep.subr.mxu1 %v4623_v25  ;;  %5257 = vmatpush1.msra.mxu0 %v4494_v57  ;;  %v4591_v41 = vld [vmem:[#allocation40 + $0x4d8] sm:$0xff]  ;;  %v4590_v6 = vld [vmem:[#allocation40 + $0x4d0] sm:$0xff] }
 0xa2b   : > { %5328 = vmatpush1.msra.mxu1 %v4622_v39  ;;  %5258 = vmatprep.subr.mxu0 %v4491_v11  ;;  %v4459_v51 = vld [vmem:[#allocation40 + $0xb8] sm:$0xff]  ;;  %v4458_v5 = vld [vmem:[#allocation40 + $0xb0] sm:$0xff] }
 0xa2c   : > { %5329 = vmatprep.subr.mxu1 %v4619_v36  ;;  %5259 = vmatpush1.msra.mxu0 %v4490_v52  ;;  %v4587_v14 = vld [vmem:[#allocation40 + $0x4b8] sm:$0xff]  ;;  %v4586_v16 = vld [vmem:[#allocation40 + $0x4b0] sm:$0xff] }
 0xa2d   : > { %5330 = vmatpush1.msra.mxu1 %v4618_v30  ;;  %5260 = vmatprep.subr.mxu0 %v4487_v9  ;;  %v4455_v63 = vld [vmem:[#allocation40 + $0x98] sm:$0xff]  ;;  %v4454_v49 = vld [vmem:[#allocation40 + $0x90] sm:$0xff] }
 0xa2e   : > { %5331 = vmatprep.subr.mxu1 %v4615_v2  ;;  %5261 = vmatpush1.msra.mxu0 %v4486_v38  ;;  %v4583_v61 = vld [vmem:[#allocation40 + $0x498] sm:$0xff]  ;;  %v4582_v58 = vld [vmem:[#allocation40 + $0x490] sm:$0xff] }
 0xa2f   : > { %5332 = vmatpush1.msra.mxu1 %v4614_v26  ;;  %5262 = vmatprep.subr.mxu0 %v4483_v28  ;;  %v4451_v56 = vld [vmem:[#allocation40 + $0x78] sm:$0xff]  ;;  %v4450_v40 = vld [vmem:[#allocation40 + $0x70] sm:$0xff] }
 0xa30   : > { %5333 = vmatprep.subr.mxu1 %v4611_v55  ;;  %5263 = vmatpush1.msra.mxu0 %v4482_v34  ;;  %v4579_v42 = vld [vmem:[#allocation40 + $0x478] sm:$0xff]  ;;  %v4578_v31 = vld [vmem:[#allocation40 + $0x470] sm:$0xff] }
 0xa31   : > { %5334 = vmatpush1.msra.mxu1 %v4610_v24  ;;  %5264 = vmatprep.subr.mxu0 %v4479_v62  ;;  %v4447_v60 = vld [vmem:[#allocation40 + $0x58] sm:$0xff]  ;;  %v4446_v33 = vld [vmem:[#allocation40 + $0x50] sm:$0xff] }
 0xa32   : > { %5335 = vmatprep.subr.mxu1 %v4607_v43  ;;  %5265 = vmatpush1.msra.mxu0 %v4478_v27  ;;  %v4575_v1 = vld [vmem:[#allocation40 + $0x458] sm:$0xff]  ;;  %v4574_v0 = vld [vmem:[#allocation40 + $0x450] sm:$0xff] }
 0xa33   : > { %5336 = vmatpush1.msra.mxu1 %v4606_v20  ;;  %5266 = vmatprep.subr.mxu0 %v4475_v17  ;;  %v4443_v4 = vld [vmem:[#allocation40 + $0x38] sm:$0xff]  ;;  %v4442_v57 = vld [vmem:[#allocation40 + $0x30] sm:$0xff] }
 0xa34   : > { %5337 = vmatprep.subr.mxu1 %v4603_v23  ;;  %5267 = vmatpush1.msra.mxu0 %v4474_v47  ;;  %v4571_v25 = vld [vmem:[#allocation40 + $0x438] sm:$0xff]  ;;  %v4570_v39 = vld [vmem:[#allocation40 + $0x430] sm:$0xff] }
 0xa35   : > { %5338 = vmatpush1.msra.mxu1 %v4602_v10  ;;  %5268 = vmatprep.subr.mxu0 %v4471_v15  ;;  %v4439_v11 = vld [vmem:[#allocation40 + $0x18] sm:$0xff]  ;;  %v4438_v52 = vld [vmem:[#allocation40 + $0x10] sm:$0xff] }
 0xa36   : > { %5339 = vmatprep.subr.mxu1 %v4599_v18  ;;  %5269 = vmatpush1.msra.mxu0 %v4470_v21  ;;  %v4567_v36 = vld [vmem:[#allocation40 + $0x418] sm:$0xff]  ;;  %v4566_v30 = vld [vmem:[#allocation40 + $0x410] sm:$0xff] }
 0xa37   : > { %5340 = vmatpush1.msra.mxu1 %v4598_v46  ;;  %5270 = vmatprep.subr.mxu0 %v4467_v12  ;;  %v4563_v9 = vld [vmem:[#allocation40 + $0x3f8] sm:$0xff]  ;;  %v4562_v38 = vld [vmem:[#allocation40 + $0x3f0] sm:$0xff] }
 0xa38   : > { %5341 = vmatprep.subr.mxu1 %v4595_v59  ;;  %5271 = vmatpush1.msra.mxu0 %v4466_v54  ;;  %v4691_v2 = vld [vmem:[#allocation40 + $0x7f8] sm:$0xff]  ;;  %v4690_v26 = vld [vmem:[#allocation40 + $0x7f0] sm:$0xff] }
 0xa39   : > { %5342 = vmatpush1.msra.mxu1 %v4594_v19  ;;  %5272 = vmatprep.subr.mxu0 %v4463_v7  ;;  %v4559_v28 = vld [vmem:[#allocation40 + $0x3d8] sm:$0xff]  ;;  %v4558_v34 = vld [vmem:[#allocation40 + $0x3d0] sm:$0xff] }
 0xa3a   : > { %5343 = vmatprep.subr.mxu1 %v4591_v41  ;;  %5273 = vmatpush1.msra.mxu0 %v4462_v53  ;;  %v4687_v55 = vld [vmem:[#allocation40 + $0x7d8] sm:$0xff]  ;;  %v4686_v24 = vld [vmem:[#allocation40 + $0x7d0] sm:$0xff] }
 0xa3b   : > { %5344 = vmatpush1.msra.mxu1 %v4590_v6  ;;  %5274 = vmatprep.subr.mxu0 %v4459_v51  ;;  %v4555_v62 = vld [vmem:[#allocation40 + $0x3b8] sm:$0xff]  ;;  %v4554_v27 = vld [vmem:[#allocation40 + $0x3b0] sm:$0xff] }
 0xa3c   : > { %5345 = vmatprep.subr.mxu1 %v4587_v14  ;;  %5275 = vmatpush1.msra.mxu0 %v4458_v5  ;;  %v4683_v43 = vld [vmem:[#allocation40 + $0x7b8] sm:$0xff]  ;;  %v4682_v20 = vld [vmem:[#allocation40 + $0x7b0] sm:$0xff] }
 0xa3d   : > { %5346 = vmatpush1.msra.mxu1 %v4586_v16  ;;  %5276 = vmatprep.subr.mxu0 %v4455_v63  ;;  %v4551_v17 = vld [vmem:[#allocation40 + $0x398] sm:$0xff]  ;;  %v4550_v47 = vld [vmem:[#allocation40 + $0x390] sm:$0xff] }
 0xa3e   : > { %5347 = vmatprep.subr.mxu1 %v4583_v61  ;;  %5277 = vmatpush1.msra.mxu0 %v4454_v49  ;;  %v4679_v23 = vld [vmem:[#allocation40 + $0x798] sm:$0xff]  ;;  %v4678_v10 = vld [vmem:[#allocation40 + $0x790] sm:$0xff] }
 0xa3f   : > { %5348 = vmatpush1.msra.mxu1 %v4582_v58  ;;  %5278 = vmatprep.subr.mxu0 %v4451_v56  ;;  %v4547_v15 = vld [vmem:[#allocation40 + $0x378] sm:$0xff]  ;;  %v4546_v21 = vld [vmem:[#allocation40 + $0x370] sm:$0xff] }
 0xa40   : > { %5349 = vmatprep.subr.mxu1 %v4579_v42  ;;  %5279 = vmatpush1.msra.mxu0 %v4450_v40  ;;  %v4675_v18 = vld [vmem:[#allocation40 + $0x778] sm:$0xff]  ;;  %v4674_v46 = vld [vmem:[#allocation40 + $0x770] sm:$0xff] }
 0xa41   : > { %5350 = vmatpush1.msra.mxu1 %v4578_v31  ;;  %5280 = vmatprep.subr.mxu0 %v4447_v60  ;;  %v4543_v12 = vld [vmem:[#allocation40 + $0x358] sm:$0xff]  ;;  %v4542_v54 = vld [vmem:[#allocation40 + $0x350] sm:$0xff] }
 0xa42   : > { %5351 = vmatprep.subr.mxu1 %v4575_v1  ;;  %5281 = vmatpush1.msra.mxu0 %v4446_v33  ;;  %v4671_v59 = vld [vmem:[#allocation40 + $0x758] sm:$0xff]  ;;  %v4670_v19 = vld [vmem:[#allocation40 + $0x750] sm:$0xff] }
 0xa43   : > { %5352 = vmatpush1.msra.mxu1 %v4574_v0  ;;  %5282 = vmatprep.subr.mxu0 %v4443_v4  ;;  %v4539_v7 = vld [vmem:[#allocation40 + $0x338] sm:$0xff]  ;;  %v4538_v53 = vld [vmem:[#allocation40 + $0x330] sm:$0xff] }
 0xa44   : > { %5353 = vmatprep.subr.mxu1 %v4571_v25  ;;  %5283 = vmatpush1.msra.mxu0 %v4442_v57  ;;  %v4667_v41 = vld [vmem:[#allocation40 + $0x738] sm:$0xff]  ;;  %v4666_v6 = vld [vmem:[#allocation40 + $0x730] sm:$0xff] }
 0xa45   : > { %5354 = vmatpush1.msra.mxu1 %v4570_v39  ;;  %5284 = vmatprep.subr.mxu0 %v4439_v11  ;;  %v4535_v51 = vld [vmem:[#allocation40 + $0x318] sm:$0xff]  ;;  %v4534_v5 = vld [vmem:[#allocation40 + $0x310] sm:$0xff] }
 0xa46   : > { %5355 = vmatprep.subr.mxu1 %v4567_v36  ;;  %5285 = vmatpush1.msra.mxu0 %v4438_v52  ;;  %v4663_v14 = vld [vmem:[#allocation40 + $0x718] sm:$0xff]  ;;  %v4662_v16 = vld [vmem:[#allocation40 + $0x710] sm:$0xff] }
 0xa47   : > { %5356 = vmatpush1.msra.mxu1 %v4566_v30  ;;  %5286 = vmatprep.subr.mxu0 %v4563_v9  ;;  %v4531_v63 = vld [vmem:[#allocation40 + $0x2f8] sm:$0xff]  ;;  %v4530_v49 = vld [vmem:[#allocation40 + $0x2f0] sm:$0xff] }
 0xa48   : > { %5357 = vmatprep.subr.mxu1 %v4691_v2  ;;  %5287 = vmatpush2.msra.mxu0 %v4562_v38  ;;  %v4659_v61 = vld [vmem:[#allocation40 + $0x6f8] sm:$0xff]  ;;  %v4658_v58 = vld [vmem:[#allocation40 + $0x6f0] sm:$0xff] }
 0xa49   : > { %5358 = vmatpush2.msra.mxu1 %v4690_v26  ;;  %5288 = vmatprep.subr.mxu0 %v4559_v28  ;;  %v4527_v56 = vld [vmem:[#allocation40 + $0x2d8] sm:$0xff]  ;;  %v4526_v40 = vld [vmem:[#allocation40 + $0x2d0] sm:$0xff] }
 0xa4a   : > { %5359 = vmatprep.subr.mxu1 %v4687_v55  ;;  %5289 = vmatpush2.msra.mxu0 %v4558_v34  ;;  %v4655_v42 = vld [vmem:[#allocation40 + $0x6d8] sm:$0xff]  ;;  %v4654_v31 = vld [vmem:[#allocation40 + $0x6d0] sm:$0xff] }
 0xa4b   : > { %5360 = vmatpush2.msra.mxu1 %v4686_v24  ;;  %5290 = vmatprep.subr.mxu0 %v4555_v62  ;;  %v4523_v60 = vld [vmem:[#allocation40 + $0x2b8] sm:$0xff]  ;;  %v4522_v33 = vld [vmem:[#allocation40 + $0x2b0] sm:$0xff] }
 0xa4c   : > { %5361 = vmatprep.subr.mxu1 %v4683_v43  ;;  %5291 = vmatpush2.msra.mxu0 %v4554_v27  ;;  %v4651_v1 = vld [vmem:[#allocation40 + $0x6b8] sm:$0xff]  ;;  %v4650_v0 = vld [vmem:[#allocation40 + $0x6b0] sm:$0xff] }
 0xa4d   : > { %5362 = vmatpush2.msra.mxu1 %v4682_v20  ;;  %5292 = vmatprep.subr.mxu0 %v4551_v17  ;;  %v4519_v4 = vld [vmem:[#allocation40 + $0x298] sm:$0xff]  ;;  %v4518_v57 = vld [vmem:[#allocation40 + $0x290] sm:$0xff] }
 0xa4e   : > { %5363 = vmatprep.subr.mxu1 %v4679_v23  ;;  %5293 = vmatpush2.msra.mxu0 %v4550_v47  ;;  %v4647_v25 = vld [vmem:[#allocation40 + $0x698] sm:$0xff]  ;;  %v4646_v39 = vld [vmem:[#allocation40 + $0x690] sm:$0xff] }
 0xa4f   : > { %5364 = vmatpush2.msra.mxu1 %v4678_v10  ;;  %5294 = vmatprep.subr.mxu0 %v4547_v15  ;;  %v4515_v11 = vld [vmem:[#allocation40 + $0x278] sm:$0xff]  ;;  %v4514_v52 = vld [vmem:[#allocation40 + $0x270] sm:$0xff] }
 0xa50   : > { %5365 = vmatprep.subr.mxu1 %v4675_v18  ;;  %5295 = vmatpush2.msra.mxu0 %v4546_v21  ;;  %v4643_v36 = vld [vmem:[#allocation40 + $0x678] sm:$0xff]  ;;  %v4642_v30 = vld [vmem:[#allocation40 + $0x670] sm:$0xff] }
 0xa51   : > { %5366 = vmatpush2.msra.mxu1 %v4674_v46  ;;  %5296 = vmatprep.subr.mxu0 %v4543_v12  ;;  %v4511_v9 = vld [vmem:[#allocation40 + $0x258] sm:$0xff]  ;;  %v4510_v38 = vld [vmem:[#allocation40 + $0x250] sm:$0xff] }
 0xa52   : > { %5367 = vmatprep.subr.mxu1 %v4671_v59  ;;  %5297 = vmatpush2.msra.mxu0 %v4542_v54  ;;  %v4639_v2 = vld [vmem:[#allocation40 + $0x658] sm:$0xff]  ;;  %v4638_v26 = vld [vmem:[#allocation40 + $0x650] sm:$0xff] }
 0xa53   : > { %5368 = vmatpush2.msra.mxu1 %v4670_v19  ;;  %5298 = vmatprep.subr.mxu0 %v4539_v7  ;;  %v4507_v28 = vld [vmem:[#allocation40 + $0x238] sm:$0xff]  ;;  %v4506_v34 = vld [vmem:[#allocation40 + $0x230] sm:$0xff] }
 0xa54   : > { %5369 = vmatprep.subr.mxu1 %v4667_v41  ;;  %5299 = vmatpush2.msra.mxu0 %v4538_v53  ;;  %v4635_v55 = vld [vmem:[#allocation40 + $0x638] sm:$0xff]  ;;  %v4634_v24 = vld [vmem:[#allocation40 + $0x630] sm:$0xff] }
 0xa55   : > { %5370 = vmatpush2.msra.mxu1 %v4666_v6  ;;  %5300 = vmatprep.subr.mxu0 %v4535_v51  ;;  %v4503_v62 = vld [vmem:[#allocation40 + $0x218] sm:$0xff]  ;;  %v4502_v27 = vld [vmem:[#allocation40 + $0x210] sm:$0xff] }
 0xa56   : > { %5371 = vmatprep.subr.mxu1 %v4663_v14  ;;  %5301 = vmatpush2.msra.mxu0 %v4534_v5  ;;  %v4631_v43 = vld [vmem:[#allocation40 + $0x618] sm:$0xff]  ;;  %v4630_v20 = vld [vmem:[#allocation40 + $0x610] sm:$0xff] }
 0xa57   : > { %5372 = vmatpush2.msra.mxu1 %v4662_v16  ;;  %5302 = vmatprep.subr.mxu0 %v4531_v63  ;;  %v4755_v17 = vld [vmem:[#allocation40 + $0x9f8] sm:$0xff]  ;;  %v4754_v47 = vld [vmem:[#allocation40 + $0x9f0] sm:$0xff] }
 0xa58   : > { %5373 = vmatprep.subr.mxu1 %v4659_v61  ;;  %5303 = vmatpush2.msra.mxu0 %v4530_v49  ;;  %v4883_v23 = vld [vmem:[#allocation40 + $0xdf8] sm:$0xff]  ;;  %v4882_v10 = vld [vmem:[#allocation40 + $0xdf0] sm:$0xff] }
 0xa59   : > { %5374 = vmatpush2.msra.mxu1 %v4658_v58  ;;  %5304 = vmatprep.subr.mxu0 %v4527_v56  ;;  %v4751_v15 = vld [vmem:[#allocation40 + $0x9d8] sm:$0xff]  ;;  %v4750_v21 = vld [vmem:[#allocation40 + $0x9d0] sm:$0xff] }
 0xa5a   : > { %5375 = vmatprep.subr.mxu1 %v4655_v42  ;;  %5305 = vmatpush2.msra.mxu0 %v4526_v40  ;;  %v4879_v18 = vld [vmem:[#allocation40 + $0xdd8] sm:$0xff]  ;;  %v4878_v46 = vld [vmem:[#allocation40 + $0xdd0] sm:$0xff] }
 0xa5b   : > { %5376 = vmatpush2.msra.mxu1 %v4654_v31  ;;  %5306 = vmatprep.subr.mxu0 %v4523_v60  ;;  %v4747_v12 = vld [vmem:[#allocation40 + $0x9b8] sm:$0xff]  ;;  %v4746_v59 = vld [vmem:[#allocation40 + $0x9b0] sm:$0xff] }
 0xa5c   : > { %5377 = vmatprep.subr.mxu1 %v4651_v1  ;;  %5307 = vmatpush2.msra.mxu0 %v4522_v33  ;;  %v4743_v54 = vld [vmem:[#allocation40 + $0x998] sm:$0xff]  ;;  %v4742_v19 = vld [vmem:[#allocation40 + $0x990] sm:$0xff] }
 0xa5d   : > { %5378 = vmatpush2.msra.mxu1 %v4650_v0  ;;  %5308 = vmatprep.subr.mxu0 %v4519_v4  ;;  %v4870_v7 = vld [vmem:[#allocation40 + $0xd90] sm:$0xff]  ;;  %v4867_v41 = vld [vmem:[#allocation40 + $0xd78] sm:$0xff] }
 0xa5e   : > { %5379 = vmatprep.subr.mxu1 %v4647_v25  ;;  %5309 = vmatpush2.msra.mxu0 %v4518_v57  ;;  %v4738_v53 = vld [vmem:[#allocation40 + $0x970] sm:$0xff]  ;;  %v4735_v51 = vld [vmem:[#allocation40 + $0x958] sm:$0xff] }
 0xa5f   : > { %5380 = vmatpush2.msra.mxu1 %v4646_v39  ;;  %5310 = vmatprep.subr.mxu0 %v4515_v11  ;;  %v4866_v6 = vld [vmem:[#allocation40 + $0xd70] sm:$0xff]  ;;  %v4863_v14 = vld [vmem:[#allocation40 + $0xd58] sm:$0xff] }
 0xa60   : > { %5381 = vmatprep.subr.mxu1 %v4643_v36  ;;  %5311 = vmatpush2.msra.mxu0 %v4514_v52  ;;  %v4734_v5 = vld [vmem:[#allocation40 + $0x950] sm:$0xff]  ;;  %v4731_v63 = vld [vmem:[#allocation40 + $0x938] sm:$0xff] }
 0xa61   : > { %5382 = vmatpush2.msra.mxu1 %v4642_v30  ;;  %5312 = vmatprep.subr.mxu0 %v4511_v9  ;;  %v4862_v16 = vld [vmem:[#allocation40 + $0xd50] sm:$0xff]  ;;  %v4859_v61 = vld [vmem:[#allocation40 + $0xd38] sm:$0xff] }
 0xa62   : > { %5383 = vmatprep.subr.mxu1 %v4639_v2  ;;  %5313 = vmatpush2.msra.mxu0 %v4510_v38  ;;  %v4730_v49 = vld [vmem:[#allocation40 + $0x930] sm:$0xff]  ;;  %v4727_v56 = vld [vmem:[#allocation40 + $0x918] sm:$0xff] }
 0xa63   : > { %5384 = vmatpush2.msra.mxu1 %v4638_v26  ;;  %5314 = vmatprep.subr.mxu0 %v4507_v28  ;;  %v4858_v58 = vld [vmem:[#allocation40 + $0xd30] sm:$0xff]  ;;  %v4855_v42 = vld [vmem:[#allocation40 + $0xd18] sm:$0xff] }
 0xa64   : > { %5385 = vmatprep.subr.mxu1 %v4635_v55  ;;  %5315 = vmatpush2.msra.mxu0 %v4506_v34  ;;  %v4726_v40 = vld [vmem:[#allocation40 + $0x910] sm:$0xff]  ;;  %v4723_v60 = vld [vmem:[#allocation40 + $0x8f8] sm:$0xff] }
 0xa65   : > { %5386 = vmatpush2.msra.mxu1 %v4634_v24  ;;  %5316 = vmatprep.subr.mxu0 %v4503_v62  ;;  %v4854_v31 = vld [vmem:[#allocation40 + $0xd10] sm:$0xff]  ;;  %v4851_v1 = vld [vmem:[#allocation40 + $0xcf8] sm:$0xff] }
 0xa66   : > { %5387 = vmatprep.subr.mxu1 %v4631_v43  ;;  %5317 = vmatpush2.msra.mxu0 %v4502_v27  ;;  %v4722_v33 = vld [vmem:[#allocation40 + $0x8f0] sm:$0xff]  ;;  %v4719_v4 = vld [vmem:[#allocation40 + $0x8d8] sm:$0xff] }
 0xa67   : > { %5318 = vmatprep.mubr.f32.mxu0 %v9584_v37  ;;  %5388 = vmatpush2.msra.mxu1 %v4630_v20  ;;  %v4875_v37 = vld [vmem:[#allocation40 + $0xdb8] sm:$0xff]  ;;  %v4850_v0 = vld [vmem:[#allocation40 + $0xcf0] sm:$0xff] }
 0xa68   : > { %5319 = vmatmul.mubr.f32.vlgmr.msra.gmra.mxu0 %v9582_v13  ;;  %5389 = vmatprep.mubr.f32.mxu1 %v9588_v48  ;;  %v4874_v13 = vld [vmem:[#allocation40 + $0xdb0] sm:$0xff]  ;;  %v4871_v48 = vld [vmem:[#allocation40 + $0xd98] sm:$0xff] }
 0xa69   : > { %5396 = vmatprep.subr.mxu0 %v4755_v17  ;;  %5467 = vmatprep.subr.mxu1 %v4883_v23  ;;  %v4847_v25 = vld [vmem:[#allocation40 + $0xcd8] sm:$0xff]  ;;  %v4718_v57 = vld [vmem:[#allocation40 + $0x8d0] sm:$0xff] }
 0xa6a   : > { %5390 = vmatmul.mubr.f32.vlgmr.msra.gmra.mxu1 %v9586_v32  ;;  %5397 = vmatpush1.msra.mxu0 %v4754_v47  ;;  %v4739_v32 = vld [vmem:[#allocation40 + $0x978] sm:$0xff]  ;;  %v4846_v39 = vld [vmem:[#allocation40 + $0xcd0] sm:$0xff] }
 0xa6b   : > { %5468 = vmatpush1.msra.mxu1 %v4882_v10  ;;  %5398 = vmatprep.subr.mxu0 %v4751_v15  ;;  %v4715_v11 = vld [vmem:[#allocation40 + $0x8b8] sm:$0xff]  ;;  %v4714_v52 = vld [vmem:[#allocation40 + $0x8b0] sm:$0xff] }
 0xa6c   : > { %5469 = vmatprep.subr.mxu1 %v4879_v18  ;;  %5399 = vmatpush1.msra.mxu0 %v4750_v21  ;;  %v4843_v36 = vld [vmem:[#allocation40 + $0xcb8] sm:$0xff]  ;;  %v4842_v30 = vld [vmem:[#allocation40 + $0xcb0] sm:$0xff] }
 0xa6d   : > { %5470 = vmatpush1.msra.mxu1 %v4878_v46  ;;  %5400 = vmatprep.subr.mxu0 %v4747_v12  ;;  %v4711_v9 = vld [vmem:[#allocation40 + $0x898] sm:$0xff]  ;;  %v4710_v38 = vld [vmem:[#allocation40 + $0x890] sm:$0xff] }
 0xa6e   : > { %5471 = vmatprep.subr.mxu1 %v4875_v37  ;;  %5401 = vmatpush1.msra.mxu0 %v4746_v59  ;;  %v4839_v2 = vld [vmem:[#allocation40 + $0xc98] sm:$0xff]  ;;  %v4838_v26 = vld [vmem:[#allocation40 + $0xc90] sm:$0xff] }
 0xa6f   : > { %5472 = vmatpush1.msra.mxu1 %v4874_v13  ;;  %5402 = vmatprep.subr.mxu0 %v4743_v54  ;;  %v4707_v28 = vld [vmem:[#allocation40 + $0x878] sm:$0xff]  ;;  %v4706_v34 = vld [vmem:[#allocation40 + $0x870] sm:$0xff] }
 0xa70   : > { %5473 = vmatprep.subr.mxu1 %v4871_v48  ;;  %5403 = vmatpush1.msra.mxu0 %v4742_v19  ;;  %v4835_v55 = vld [vmem:[#allocation40 + $0xc78] sm:$0xff]  ;;  %v4834_v24 = vld [vmem:[#allocation40 + $0xc70] sm:$0xff] }
 0xa71   : > { %5474 = vmatpush1.msra.mxu1 %v4870_v7  ;;  %5404 = vmatprep.subr.mxu0 %v4739_v32  ;;  %v4703_v62 = vld [vmem:[#allocation40 + $0x858] sm:$0xff]  ;;  %v4702_v27 = vld [vmem:[#allocation40 + $0x850] sm:$0xff] }
 0xa72   : > { %5475 = vmatprep.subr.mxu1 %v4867_v41  ;;  %5405 = vmatpush1.msra.mxu0 %v4738_v53  ;;  %v4831_v43 = vld [vmem:[#allocation40 + $0xc58] sm:$0xff]  ;;  %v4830_v20 = vld [vmem:[#allocation40 + $0xc50] sm:$0xff] }
 0xa73   : > { %5476 = vmatpush1.msra.mxu1 %v4866_v6  ;;  %5406 = vmatprep.subr.mxu0 %v4735_v51  ;;  %v4699_v17 = vld [vmem:[#allocation40 + $0x838] sm:$0xff]  ;;  %v4698_v47 = vld [vmem:[#allocation40 + $0x830] sm:$0xff] }
 0xa74   : > { %5477 = vmatprep.subr.mxu1 %v4863_v14  ;;  %5407 = vmatpush1.msra.mxu0 %v4734_v5  ;;  %v4827_v23 = vld [vmem:[#allocation40 + $0xc38] sm:$0xff]  ;;  %v4826_v10 = vld [vmem:[#allocation40 + $0xc30] sm:$0xff] }
 0xa75   : > { %5478 = vmatpush1.msra.mxu1 %v4862_v16  ;;  %5408 = vmatprep.subr.mxu0 %v4731_v63  ;;  %v4695_v15 = vld [vmem:[#allocation40 + $0x818] sm:$0xff]  ;;  %v4694_v21 = vld [vmem:[#allocation40 + $0x810] sm:$0xff] }
 0xa76   : > { %5479 = vmatprep.subr.mxu1 %v4859_v61  ;;  %5409 = vmatpush1.msra.mxu0 %v4730_v49  ;;  %v4823_v18 = vld [vmem:[#allocation40 + $0xc18] sm:$0xff]  ;;  %v4822_v46 = vld [vmem:[#allocation40 + $0xc10] sm:$0xff] }
 0xa77   : > { %5480 = vmatpush1.msra.mxu1 %v4858_v58  ;;  %5410 = vmatprep.subr.mxu0 %v4727_v56  ;;  %v4819_v12 = vld [vmem:[#allocation40 + $0xbf8] sm:$0xff]  ;;  %v4818_v59 = vld [vmem:[#allocation40 + $0xbf0] sm:$0xff] }
 0xa78   : > { %5481 = vmatprep.subr.mxu1 %v4855_v42  ;;  %5411 = vmatpush1.msra.mxu0 %v4726_v40  ;;  %v4947_v37 = vld [vmem:[#allocation40 + $0xff8] sm:$0xff]  ;;  %v4946_v13 = vld [vmem:[#allocation40 + $0xff0] sm:$0xff] }
 0xa79   : > { %5482 = vmatpush1.msra.mxu1 %v4854_v31  ;;  %5412 = vmatprep.subr.mxu0 %v4723_v60  ;;  %v4815_v54 = vld [vmem:[#allocation40 + $0xbd8] sm:$0xff]  ;;  %v4814_v19 = vld [vmem:[#allocation40 + $0xbd0] sm:$0xff] }
 0xa7a   : > { %5483 = vmatprep.subr.mxu1 %v4851_v1  ;;  %5413 = vmatpush1.msra.mxu0 %v4722_v33  ;;  %v4943_v48 = vld [vmem:[#allocation40 + $0xfd8] sm:$0xff]  ;;  %v4942_v7 = vld [vmem:[#allocation40 + $0xfd0] sm:$0xff] }
 0xa7b   : > { %5484 = vmatpush1.msra.mxu1 %v4850_v0  ;;  %5414 = vmatprep.subr.mxu0 %v4719_v4  ;;  %v4811_v32 = vld [vmem:[#allocation40 + $0xbb8] sm:$0xff]  ;;  %v4810_v53 = vld [vmem:[#allocation40 + $0xbb0] sm:$0xff] }
 0xa7c   : > { %5485 = vmatprep.subr.mxu1 %v4847_v25  ;;  %5415 = vmatpush1.msra.mxu0 %v4718_v57  ;;  %v4939_v41 = vld [vmem:[#allocation40 + $0xfb8] sm:$0xff]  ;;  %v4938_v6 = vld [vmem:[#allocation40 + $0xfb0] sm:$0xff] }
 0xa7d   : > { %5486 = vmatpush1.msra.mxu1 %v4846_v39  ;;  %5416 = vmatprep.subr.mxu0 %v4715_v11  ;;  %v4807_v51 = vld [vmem:[#allocation40 + $0xb98] sm:$0xff]  ;;  %v4806_v5 = vld [vmem:[#allocation40 + $0xb90] sm:$0xff] }
 0xa7e   : > { %5487 = vmatprep.subr.mxu1 %v4843_v36  ;;  %5417 = vmatpush1.msra.mxu0 %v4714_v52  ;;  %v4935_v14 = vld [vmem:[#allocation40 + $0xf98] sm:$0xff]  ;;  %v4934_v16 = vld [vmem:[#allocation40 + $0xf90] sm:$0xff] }
 0xa7f   : > { %5488 = vmatpush1.msra.mxu1 %v4842_v30  ;;  %5418 = vmatprep.subr.mxu0 %v4711_v9  ;;  %v4803_v63 = vld [vmem:[#allocation40 + $0xb78] sm:$0xff]  ;;  %v4802_v49 = vld [vmem:[#allocation40 + $0xb70] sm:$0xff] }
 0xa80   : > { %5489 = vmatprep.subr.mxu1 %v4839_v2  ;;  %5419 = vmatpush1.msra.mxu0 %v4710_v38  ;;  %v4931_v61 = vld [vmem:[#allocation40 + $0xf78] sm:$0xff]  ;;  %v4930_v58 = vld [vmem:[#allocation40 + $0xf70] sm:$0xff] }
 0xa81   : > { %5490 = vmatpush1.msra.mxu1 %v4838_v26  ;;  %5420 = vmatprep.subr.mxu0 %v4707_v28  ;;  %v4799_v56 = vld [vmem:[#allocation40 + $0xb58] sm:$0xff]  ;;  %v4798_v40 = vld [vmem:[#allocation40 + $0xb50] sm:$0xff] }
 0xa82   : > { %5491 = vmatprep.subr.mxu1 %v4835_v55  ;;  %5421 = vmatpush1.msra.mxu0 %v4706_v34  ;;  %v4927_v42 = vld [vmem:[#allocation40 + $0xf58] sm:$0xff]  ;;  %v4926_v31 = vld [vmem:[#allocation40 + $0xf50] sm:$0xff] }
 0xa83   : > { %5492 = vmatpush1.msra.mxu1 %v4834_v24  ;;  %5422 = vmatprep.subr.mxu0 %v4703_v62  ;;  %v4795_v60 = vld [vmem:[#allocation40 + $0xb38] sm:$0xff]  ;;  %v4794_v33 = vld [vmem:[#allocation40 + $0xb30] sm:$0xff] }
 0xa84   : > { %5493 = vmatprep.subr.mxu1 %v4831_v43  ;;  %5423 = vmatpush1.msra.mxu0 %v4702_v27  ;;  %v4923_v1 = vld [vmem:[#allocation40 + $0xf38] sm:$0xff]  ;;  %v4922_v0 = vld [vmem:[#allocation40 + $0xf30] sm:$0xff] }
 0xa85   : > { %5494 = vmatpush1.msra.mxu1 %v4830_v20  ;;  %5424 = vmatprep.subr.mxu0 %v4699_v17  ;;  %v4791_v4 = vld [vmem:[#allocation40 + $0xb18] sm:$0xff]  ;;  %v4790_v57 = vld [vmem:[#allocation40 + $0xb10] sm:$0xff] }
 0xa86   : > { %5495 = vmatprep.subr.mxu1 %v4827_v23  ;;  %5425 = vmatpush1.msra.mxu0 %v4698_v47  ;;  %v4919_v25 = vld [vmem:[#allocation40 + $0xf18] sm:$0xff]  ;;  %v4918_v39 = vld [vmem:[#allocation40 + $0xf10] sm:$0xff] }
 0xa87   : > { %5496 = vmatpush1.msra.mxu1 %v4826_v10  ;;  %5426 = vmatprep.subr.mxu0 %v4695_v15  ;;  %v4787_v11 = vld [vmem:[#allocation40 + $0xaf8] sm:$0xff]  ;;  %v4786_v52 = vld [vmem:[#allocation40 + $0xaf0] sm:$0xff] }
 0xa88   : > { %5497 = vmatprep.subr.mxu1 %v4823_v18  ;;  %5427 = vmatpush1.msra.mxu0 %v4694_v21  ;;  %v4915_v36 = vld [vmem:[#allocation40 + $0xef8] sm:$0xff]  ;;  %v4914_v30 = vld [vmem:[#allocation40 + $0xef0] sm:$0xff] }
 0xa89   : > { %5498 = vmatpush1.msra.mxu1 %v4822_v46  ;;  %5428 = vmatprep.subr.mxu0 %v4819_v12  ;;  %v4783_v9 = vld [vmem:[#allocation40 + $0xad8] sm:$0xff]  ;;  %v4782_v38 = vld [vmem:[#allocation40 + $0xad0] sm:$0xff] }
 0xa8a   : > { %5499 = vmatprep.subr.mxu1 %v4947_v37  ;;  %5429 = vmatpush2.msra.mxu0 %v4818_v59  ;;  %v4911_v2 = vld [vmem:[#allocation40 + $0xed8] sm:$0xff]  ;;  %v4910_v26 = vld [vmem:[#allocation40 + $0xed0] sm:$0xff] }
 0xa8b   : > { %5500 = vmatpush2.msra.mxu1 %v4946_v13  ;;  %5430 = vmatprep.subr.mxu0 %v4815_v54  ;;  %v4779_v28 = vld [vmem:[#allocation40 + $0xab8] sm:$0xff]  ;;  %v4778_v34 = vld [vmem:[#allocation40 + $0xab0] sm:$0xff] }
 0xa8c   : > { %5501 = vmatprep.subr.mxu1 %v4943_v48  ;;  %5431 = vmatpush2.msra.mxu0 %v4814_v19  ;;  %v4907_v55 = vld [vmem:[#allocation40 + $0xeb8] sm:$0xff]  ;;  %v4906_v24 = vld [vmem:[#allocation40 + $0xeb0] sm:$0xff] }
 0xa8d   : > { %5502 = vmatpush2.msra.mxu1 %v4942_v7  ;;  %5432 = vmatprep.subr.mxu0 %v4811_v32  ;;  %v4775_v62 = vld [vmem:[#allocation40 + $0xa98] sm:$0xff]  ;;  %v4774_v27 = vld [vmem:[#allocation40 + $0xa90] sm:$0xff] }
 0xa8e   : > { %5503 = vmatprep.subr.mxu1 %v4939_v41  ;;  %5433 = vmatpush2.msra.mxu0 %v4810_v53  ;;  %v4903_v43 = vld [vmem:[#allocation40 + $0xe98] sm:$0xff]  ;;  %v4902_v20 = vld [vmem:[#allocation40 + $0xe90] sm:$0xff]  ;;  %v5712_v53 = vld [vmem:[#allocation41 + $0xe8] sm:$0xff] }
 0xa8f   : > { %5504 = vmatpush2.msra.mxu1 %v4938_v6  ;;  %5434 = vmatprep.subr.mxu0 %v4807_v51  ;;  %v4771_v17 = vld [vmem:[#allocation40 + $0xa78] sm:$0xff]  ;;  %v4770_v47 = vld [vmem:[#allocation40 + $0xa70] sm:$0xff]  ;;  %v5711_v6 = vld [vmem:[#allocation41 + $0xe0] sm:$0xff] }
 0xa90   : > { %5505 = vmatprep.subr.mxu1 %v4935_v14  ;;  %5435 = vmatpush2.msra.mxu0 %v4806_v5  ;;  %v4899_v23 = vld [vmem:[#allocation40 + $0xe78] sm:$0xff]  ;;  %v4898_v10 = vld [vmem:[#allocation40 + $0xe70] sm:$0xff] }
 0xa91   : > { %5506 = vmatpush2.msra.mxu1 %v4934_v16  ;;  %5436 = vmatprep.subr.mxu0 %v4803_v63  ;;  %v4767_v15 = vld [vmem:[#allocation40 + $0xa58] sm:$0xff]  ;;  %v4766_v21 = vld [vmem:[#allocation40 + $0xa50] sm:$0xff]  ;;  %v5776_v16 = vld [vmem:[#allocation41 + $0x2e8] sm:$0xff] }
 0xa92   : > { %5507 = vmatprep.subr.mxu1 %v4931_v61  ;;  %5437 = vmatpush2.msra.mxu0 %v4802_v49  ;;  %v4895_v18 = vld [vmem:[#allocation40 + $0xe58] sm:$0xff]  ;;  %v4894_v46 = vld [vmem:[#allocation40 + $0xe50] sm:$0xff]  ;;  %v5708_v61 = vld [vmem:[#allocation41 + $0xc8] sm:$0xff] }
 0xa93   : > { %5508 = vmatpush2.msra.mxu1 %v4930_v58  ;;  %5438 = vmatprep.subr.mxu0 %v4799_v56  ;;  %v4763_v12 = vld [vmem:[#allocation40 + $0xa38] sm:$0xff]  ;;  %v4762_v59 = vld [vmem:[#allocation40 + $0xa30] sm:$0xff]  ;;  %v5772_v58 = vld [vmem:[#allocation41 + $0x2c8] sm:$0xff] }
 0xa94   : > { %5509 = vmatprep.subr.mxu1 %v4927_v42  ;;  %5439 = vmatpush2.msra.mxu0 %v4798_v40  ;;  %v4891_v37 = vld [vmem:[#allocation40 + $0xe38] sm:$0xff]  ;;  %v4890_v13 = vld [vmem:[#allocation40 + $0xe30] sm:$0xff]  ;;  %v5771_v42 = vld [vmem:[#allocation41 + $0x2c0] sm:$0xff] }
 0xa95   : > { %5510 = vmatpush2.msra.mxu1 %v4926_v31  ;;  %5440 = vmatprep.subr.mxu0 %v4795_v60  ;;  %v4759_v54 = vld [vmem:[#allocation40 + $0xa18] sm:$0xff]  ;;  %v4758_v19 = vld [vmem:[#allocation40 + $0xa10] sm:$0xff]  ;;  %v5704_v40 = vld [vmem:[#allocation41 + $0xa8] sm:$0xff] }
 0xa96   : > { %5511 = vmatprep.subr.mxu1 %v4923_v1  ;;  %5441 = vmatpush2.msra.mxu0 %v4794_v33  ;;  %v4887_v48 = vld [vmem:[#allocation40 + $0xe18] sm:$0xff]  ;;  %v4886_v7 = vld [vmem:[#allocation40 + $0xe10] sm:$0xff]  ;;  %v5703_v60 = vld [vmem:[#allocation41 + $0xa0] sm:$0xff] }
 0xa97   : > { %5512 = vmatpush2.msra.mxu1 %v4922_v0  ;;  %5442 = vmatprep.subr.mxu0 %v4791_v4  ;;  %v5714_v32 = vld [vmem:[#allocation41 + $0xf8] sm:$0xff]  ;;  %v5713_v41 = vld [vmem:[#allocation41 + $0xf0] sm:$0xff]  ;;  %v5768_v0 = vld [vmem:[#allocation41 + $0x2a8] sm:$0xff] }
 0xa98   : > { %5513 = vmatprep.subr.mxu1 %v4919_v25  ;;  %5443 = vmatpush2.msra.mxu0 %v4790_v57  ;;  %v5710_v51 = vld [vmem:[#allocation41 + $0xd8] sm:$0xff]  ;;  %v5777_v5 = vld [vmem:[#allocation41 + $0x2f0] sm:$0xff]  ;;  %v5767_v25 = vld [vmem:[#allocation41 + $0x2a0] sm:$0xff] }
 0xa99   : > { %5514 = vmatpush2.msra.mxu1 %v4918_v39  ;;  %5444 = vmatprep.subr.mxu0 %v4787_v11  ;;  %v5778_v14 = vld [vmem:[#allocation41 + $0x2f8] sm:$0xff]  ;;  %v5709_v63 = vld [vmem:[#allocation41 + $0xd0] sm:$0xff]  ;;  %v5700_v57 = vld [vmem:[#allocation41 + $0x88] sm:$0xff] }
 0xa9a   : > { %5515 = vmatprep.subr.mxu1 %v4915_v36  ;;  %5445 = vmatpush2.msra.mxu0 %v4786_v52  ;;  %v5706_v49 = vld [vmem:[#allocation41 + $0xb8] sm:$0xff]  ;;  %v5705_v56 = vld [vmem:[#allocation41 + $0xb0] sm:$0xff]  ;;  %v5699_v39 = vld [vmem:[#allocation41 + $0x80] sm:$0xff] }
 0xa9b   : > { %5516 = vmatpush2.msra.mxu1 %v4914_v30  ;;  %5446 = vmatprep.subr.mxu0 %v4783_v9  ;;  %v5770_v31 = vld [vmem:[#allocation41 + $0x2b8] sm:$0xff]  ;;  %v5769_v1 = vld [vmem:[#allocation41 + $0x2b0] sm:$0xff]  ;;  %v5696_v52 = vld [vmem:[#allocation41 + $0x68] sm:$0xff] }
 0xa9c   : > { %5517 = vmatprep.subr.mxu1 %v4911_v2  ;;  %5447 = vmatpush2.msra.mxu0 %v4782_v38  ;;  %v5702_v33 = vld [vmem:[#allocation41 + $0x98] sm:$0xff]  ;;  %v5701_v4 = vld [vmem:[#allocation41 + $0x90] sm:$0xff]  ;;  %v5695_v30 = vld [vmem:[#allocation41 + $0x60] sm:$0xff] }
 0xa9d   : > { %5518 = vmatpush2.msra.mxu1 %v4910_v26  ;;  %5448 = vmatprep.subr.mxu0 %v4779_v28  ;;  %v5698_v11 = vld [vmem:[#allocation41 + $0x78] sm:$0xff]  ;;  %v5697_v36 = vld [vmem:[#allocation41 + $0x70] sm:$0xff]  ;;  %v5692_v38 = vld [vmem:[#allocation41 + $0x48] sm:$0xff] }
 0xa9e   : > { %5519 = vmatprep.subr.mxu1 %v4907_v55  ;;  %5449 = vmatpush2.msra.mxu0 %v4778_v34  ;;  %v5694_v9 = vld [vmem:[#allocation41 + $0x58] sm:$0xff]  ;;  %v5693_v2 = vld [vmem:[#allocation41 + $0x50] sm:$0xff]  ;;  %v5691_v26 = vld [vmem:[#allocation41 + $0x40] sm:$0xff] }
 0xa9f   : > { %5520 = vmatpush2.msra.mxu1 %v4906_v24  ;;  %5450 = vmatprep.subr.mxu0 %v4775_v62  ;;  %v5690_v28 = vld [vmem:[#allocation41 + $0x38] sm:$0xff]  ;;  %v5689_v55 = vld [vmem:[#allocation41 + $0x30] sm:$0xff]  ;;  %v5688_v34 = vld [vmem:[#allocation41 + $0x28] sm:$0xff] }
 0xaa0   : > { %5521 = vmatprep.subr.mxu1 %v4903_v43  ;;  %5451 = vmatpush2.msra.mxu0 %v4774_v27  ;;  %v5687_v24 = vld [vmem:[#allocation41 + $0x20] sm:$0xff]  ;;  %v5686_v62 = vld [vmem:[#allocation41 + $0x18] sm:$0xff]  ;;  %v5685_v43 = vld [vmem:[#allocation41 + $0x10] sm:$0xff] }
 0xaa1   : > { %5522 = vmatpush2.msra.mxu1 %v4902_v20  ;;  %5452 = vmatprep.subr.mxu0 %v4771_v17  ;;  %v5684_v27 = vld [vmem:[#allocation41 + $0x8] sm:$0xff]  ;;  %v5683_v20 = vld [vmem:[#allocation41] sm:$0xff]  ;;  %v5746_v17 = vld [vmem:[#allocation41 + $0x1f8] sm:$0xff] }
 0xaa2   : > { %5523 = vmatprep.subr.mxu1 %v4899_v23  ;;  %5453 = vmatpush2.msra.mxu0 %v4770_v47  ;;  %v5745_v23 = vld [vmem:[#allocation41 + $0x1f0] sm:$0xff]  ;;  %v5744_v47 = vld [vmem:[#allocation41 + $0x1e8] sm:$0xff] }
 0xaa3   : > { %5524 = vmatpush2.msra.mxu1 %v4898_v10  ;;  %5454 = vmatprep.subr.mxu0 %v4767_v15  ;;  %v5743_v10 = vld [vmem:[#allocation41 + $0x1e0] sm:$0xff]  ;;  %v5742_v15 = vld [vmem:[#allocation41 + $0x1d8] sm:$0xff] }
 0xaa4   : > { %5525 = vmatprep.subr.mxu1 %v4895_v18  ;;  %5455 = vmatpush2.msra.mxu0 %v4766_v21  ;;  %v5741_v18 = vld [vmem:[#allocation41 + $0x1d0] sm:$0xff]  ;;  %v5740_v21 = vld [vmem:[#allocation41 + $0x1c8] sm:$0xff] }
 0xaa5   : > { %5526 = vmatpush2.msra.mxu1 %v4894_v46  ;;  %5456 = vmatprep.subr.mxu0 %v4763_v12  ;;  %v5739_v46 = vld [vmem:[#allocation41 + $0x1c0] sm:$0xff]  ;;  %v5738_v12 = vld [vmem:[#allocation41 + $0x1b8] sm:$0xff] }
 0xaa6   : > { %5527 = vmatprep.subr.mxu1 %v4891_v37  ;;  %5457 = vmatpush2.msra.mxu0 %v4762_v59  ;;  %v5737_v37 = vld [vmem:[#allocation41 + $0x1b0] sm:$0xff]  ;;  %v5736_v59 = vld [vmem:[#allocation41 + $0x1a8] sm:$0xff] }
 0xaa7   : > { %5528 = vmatpush2.msra.mxu1 %v4890_v13  ;;  %5458 = vmatprep.subr.mxu0 %v4759_v54  ;;  %v5735_v13 = vld [vmem:[#allocation41 + $0x1a0] sm:$0xff]  ;;  %v5734_v54 = vld [vmem:[#allocation41 + $0x198] sm:$0xff] }
 0xaa8   : > { %5529 = vmatprep.subr.mxu1 %v4887_v48  ;;  %5459 = vmatpush2.msra.mxu0 %v4758_v19  ;;  %v5733_v48 = vld [vmem:[#allocation41 + $0x190] sm:$0xff]  ;;  %v5732_v19 = vld [vmem:[#allocation41 + $0x188] sm:$0xff] }
 0xaa9   : > { %5460 = vmatprep.mubr.f32.mxu0 %v9592_v35  ;;  %5530 = vmatpush2.msra.mxu1 %v4886_v7  ;;  %v5775_v35 = vld [vmem:[#allocation41 + $0x2e0] sm:$0xff] }
 0xaaa   : > { %5531 = vmatprep.mubr.f32.mxu1 %v9596_v3  ;;  %5461 = vmatmul.mubr.f32.vlgmr.msra.gmra.mxu0 %v9590_v8  ;;  %v5774_v3 = vld [vmem:[#allocation41 + $0x2d8] sm:$0xff]  ;;  %v5707_v8 = vld [vmem:[#allocation41 + $0xc0] sm:$0xff] }
 0xaab   : > { %5532 = vmatmul.mubr.f32.vlgmr.msra.gmra.mxu1 %v9594_v44  ;;  %5823 = vmatprep.subr.mxu0 %v5714_v32  ;;  %v5773_v44 = vld [vmem:[#allocation41 + $0x2d0] sm:$0xff]  ;;  %v5731_v7 = vld [vmem:[#allocation41 + $0x180] sm:$0xff]  ;;  %v5730_v32 = vld [vmem:[#allocation41 + $0x178] sm:$0xff] }
 0xaac   : > { %5824 = vmatpush1.msra.mxu0 %v5713_v41  ;;  %5894 = vmatprep.subr.mxu1 %v5778_v14  ;;  %v9620_v41 = vld [vmem:[#allocation29] sm:$0xf]  ;;  %v5727_v14 = vld [vmem:[#allocation41 + $0x160] sm:$0xff] }
 0xaad   : > { %5825 = vmatprep.subr.mxu0 %v5712_v53  ;;  %5895 = vmatpush1.msra.mxu1 %v5777_v5  ;;  %v5729_v53 = vld [vmem:[#allocation41 + $0x170] sm:$0xff]  ;;  %v4953_v5 = vrot.slane %v9620_v41, %v10052_v50 }
 0xaae   : > { %5826 = vmatpush1.msra.mxu0 %v5711_v6  ;;  %5896 = vmatprep.subr.mxu1 %v5776_v16  ;;  %v5728_v6 = vld [vmem:[#allocation41 + $0x168] sm:$0xff]  ;;  %v5726_v16 = vld [vmem:[#allocation41 + $0x158] sm:$0xff] }
 0xaaf   : > { %5827 = vmatprep.subr.mxu0 %v5710_v51  ;;  %5897 = vmatpush1.msra.mxu1 %v5775_v35  ;;  %v5036_v51 = vpop.f32.mrf.mxu0  ;;  %v4957_v35 = vrot.slane %v9620_v41, %v10053_v29 }
 0xab0   : > { %5828 = vmatpush1.msra.mxu0 %v5709_v63  ;;  %5898 = vmatprep.subr.mxu1 %v5774_v3  ;;  %v5725_v63 = vld [vmem:[#allocation41 + $0x150] sm:$0xff]  ;;  %v5107_v3 = vpop.f32.mrf.mxu1 }
 0xab1   : > { %5829 = vmatprep.subr.mxu0 %v5708_v61  ;;  %5899 = vmatpush1.msra.mxu1 %v5773_v44  ;;  %v5724_v61 = vld [vmem:[#allocation41 + $0x148] sm:$0xff]  ;;  %v5723_v44 = vld [vmem:[#allocation41 + $0x140] sm:$0xff] }
 0xab2   : > { %5830 = vmatpush1.msra.mxu0 %v5707_v8  ;;  %5900 = vmatprep.subr.mxu1 %v5772_v58  ;;  %v5038_v8 = vpop.f32.mrf.mxu0  ;;  %v5722_v58 = vld [vmem:[#allocation41 + $0x138] sm:$0xff] }
 0xab3   : > { %5831 = vmatprep.subr.mxu0 %v5706_v49  ;;  %5901 = vmatpush1.msra.mxu1 %v5771_v42  ;;  %v5037_v49 = vadd.f32 %v5036_v51, %v4953_v5  ;;  %v5039_v42 = vadd.f32 %v5038_v8, %v4957_v35  ;;  %v5756_v5 = vld [vmem:[#allocation41 + $0x248] sm:$0xff]  ;;  %v5754_v8 = vld [vmem:[#allocation41 + $0x238] sm:$0xff] }
 0xab4   : > { %5832 = vmatpush1.msra.mxu0 %v5705_v56  ;;  %5902 = vmatprep.subr.mxu1 %v5770_v31  ;;  %v5721_v56 = vld [vmem:[#allocation41 + $0x130] sm:$0xff]  ;;  %v5109_v31 = vpop.f32.mrf.mxu1 }
 0xab5   : > { %5833 = vmatprep.subr.mxu0 %v5704_v40  ;;  %5903 = vmatpush1.msra.mxu1 %v5769_v1  ;;  %v5720_v40 = vld [vmem:[#allocation41 + $0x128] sm:$0xff]  ;;  %v5108_v1 = vadd.f32 %v5107_v3, %v5037_v49 }
 0xab6   : > { %5834 = vmatpush1.msra.mxu0 %v5703_v60  ;;  %5904 = vmatprep.subr.mxu1 %v5768_v0  ;;  %v5719_v60 = vld [vmem:[#allocation41 + $0x120] sm:$0xff] }
 0xab7   : > { %5835 = vmatprep.subr.mxu0 %v5702_v33  ;;  %5905 = vmatpush1.msra.mxu1 %v5767_v25  ;;  %v5718_v33 = vld [vmem:[#allocation41 + $0x118] sm:$0xff]  ;;  %v5110_v25 = vadd.f32 %v5109_v31, %v5039_v42  ;;  %v5751_v31 = vld [vmem:[#allocation41 + $0x220] sm:$0xff] }
 0xab8   : > { %5836 = vmatpush1.msra.mxu0 %v5701_v4  ;;  %v5717_v4 = vld [vmem:[#allocation41 + $0x110] sm:$0xff] }
 0xab9   : > { %5837 = vmatprep.subr.mxu0 %v5700_v57 }
 0xaba   : > { %5838 = vmatpush1.msra.mxu0 %v5699_v39  ;;  %v5716_v39 = vld [vmem:[#allocation41 + $0x108] sm:$0xff] }
 0xabb   : > { %5839 = vmatprep.subr.mxu0 %v5698_v11 }
 0xabc   : > { %5840 = vmatpush1.msra.mxu0 %v5697_v36 }
 0xabd   : > { %5841 = vmatprep.subr.mxu0 %v5696_v52  ;;  %v5715_v52 = vld [vmem:[#allocation41 + $0x100] sm:$0xff] }
 0xabe   : > { %5842 = vmatpush1.msra.mxu0 %v5695_v30 }
 0xabf   : > { %5843 = vmatprep.subr.mxu0 %v5694_v9 }
 0xac0   : > { %5844 = vmatpush1.msra.mxu0 %v5693_v2 }
 0xac1   : > { %5845 = vmatprep.subr.mxu0 %v5692_v38  ;;  %v5766_v38 = vld [vmem:[#allocation41 + $0x298] sm:$0xff] }
 0xac2   : > { %5846 = vmatpush1.msra.mxu0 %v5691_v26  ;;  %5906 = vmatprep.subr.mxu1 %v5766_v38  ;;  %v5809_v38 = vld [vmem:[#allocation41 + $0x3f0] sm:$0xff] }
 0xac3   : > { %5847 = vmatprep.subr.mxu0 %v5690_v28 }
 0xac4   : > { %5848 = vmatpush1.msra.mxu0 %v5689_v55  ;;  %v5765_v55 = vld [vmem:[#allocation41 + $0x290] sm:$0xff] }
 0xac5   : > { %5849 = vmatprep.subr.mxu0 %v5688_v34  ;;  %5907 = vmatpush1.msra.mxu1 %v5765_v55  ;;  %v5808_v55 = vld [vmem:[#allocation41 + $0x3e8] sm:$0xff] }
 0xac6   : > { %5850 = vmatpush1.msra.mxu0 %v5687_v24 }
 0xac7   : > { %5851 = vmatprep.subr.mxu0 %v5686_v62 }
 0xac8   : > { %5852 = vmatpush1.msra.mxu0 %v5685_v43  ;;  %v5764_v43 = vld [vmem:[#allocation41 + $0x288] sm:$0xff] }
 0xac9   : > { %5853 = vmatprep.subr.mxu0 %v5684_v27  ;;  %5908 = vmatprep.subr.mxu1 %v5764_v43  ;;  %v5763_v27 = vld [vmem:[#allocation41 + $0x280] sm:$0xff]  ;;  %v5806_v43 = vld [vmem:[#allocation41 + $0x3d8] sm:$0xff] }
 0xaca   : > { %5854 = vmatpush1.msra.mxu0 %v5683_v20  ;;  %5909 = vmatpush1.msra.mxu1 %v5763_v27 }
 0xacb   : > { %5855 = vmatprep.subr.mxu0 %v5746_v17 }
 0xacc   : > { %5856 = vmatpush2.msra.mxu0 %v5745_v23 }
 0xacd   : > { %5857 = vmatprep.subr.mxu0 %v5744_v47 }
 0xace   : > { %5858 = vmatpush2.msra.mxu0 %v5743_v10  ;;  %v5762_v10 = vld [vmem:[#allocation41 + $0x278] sm:$0xff] }
 0xacf   : > { %5859 = vmatprep.subr.mxu0 %v5742_v15  ;;  %5910 = vmatprep.subr.mxu1 %v5762_v10  ;;  %v5761_v15 = vld [vmem:[#allocation41 + $0x270] sm:$0xff] }
 0xad0   : > { %5860 = vmatpush2.msra.mxu0 %v5741_v18  ;;  %5911 = vmatpush1.msra.mxu1 %v5761_v15  ;;  %v5801_v10 = vld [vmem:[#allocation41 + $0x3b0] sm:$0xff]  ;;  %v5800_v15 = vld [vmem:[#allocation41 + $0x3a8] sm:$0xff] }
 0xad1   : > { %5861 = vmatprep.subr.mxu0 %v5740_v21 }
 0xad2   : > { %5862 = vmatpush2.msra.mxu0 %v5739_v46 }
 0xad3   : > { %5863 = vmatprep.subr.mxu0 %v5738_v12 }
 0xad4   : > { %5864 = vmatpush2.msra.mxu0 %v5737_v37  ;;  %v5760_v37 = vld [vmem:[#allocation41 + $0x268] sm:$0xff] }
 0xad5   : > { %5865 = vmatprep.subr.mxu0 %v5736_v59  ;;  %5912 = vmatprep.subr.mxu1 %v5760_v37  ;;  %v5759_v59 = vld [vmem:[#allocation41 + $0x260] sm:$0xff]  ;;  %v9646_v37 = vld [vmem:[#allocation30] sm:$0xf] }
 0xad6   : > { %5866 = vmatpush2.msra.mxu0 %v5735_v13  ;;  %5913 = vmatpush1.msra.mxu1 %v5759_v59  ;;  %v5795_v59 = vld [vmem:[#allocation41 + $0x380] sm:$0xff] }
 0xad7   : > { %5867 = vmatprep.subr.mxu0 %v5734_v54 }
 0xad8   : > { %5868 = vmatpush2.msra.mxu0 %v5733_v48 }
 0xad9   : > { %5869 = vmatprep.subr.mxu0 %v5732_v19 }
 0xada   : > { %5870 = vmatpush2.msra.mxu0 %v5731_v7  ;;  %v5758_v7 = vld [vmem:[#allocation41 + $0x258] sm:$0xff] }
 0xadb   : > { %5871 = vmatprep.subr.mxu0 %v5730_v32  ;;  %5914 = vmatprep.subr.mxu1 %v5758_v7  ;;  %v5757_v32 = vld [vmem:[#allocation41 + $0x250] sm:$0xff] }
 0xadc   : > { %5872 = vmatpush2.msra.mxu0 %v5729_v53  ;;  %5915 = vmatpush1.msra.mxu1 %v5757_v32  ;;  %v5636_v32 = vrot.slane %v9646_v37, %v10052_v50 }
 0xadd   : > { %5873 = vmatprep.subr.mxu0 %v5728_v6  ;;  %5916 = vmatprep.subr.mxu1 %v5756_v5 }
 0xade   : > { %5874 = vmatpush2.msra.mxu0 %v5727_v14 }
 0xadf   : > { %5875 = vmatprep.subr.mxu0 %v5726_v16  ;;  %v5755_v16 = vld [vmem:[#allocation41 + $0x240] sm:$0xff] }
 0xae0   : > { %5876 = vmatpush2.msra.mxu0 %v5725_v63  ;;  %5917 = vmatpush1.msra.mxu1 %v5755_v16  ;;  %v5790_v16 = vld [vmem:[#allocation41 + $0x358] sm:$0xff] }
 0xae1   : > { %5877 = vmatprep.subr.mxu0 %v5724_v61  ;;  %5918 = vmatprep.subr.mxu1 %v5754_v8  ;;  %v5788_v8 = vld [vmem:[#allocation41 + $0x348] sm:$0xff] }
 0xae2   : > { %5878 = vmatpush2.msra.mxu0 %v5723_v44  ;;  %v5753_v44 = vld [vmem:[#allocation41 + $0x230] sm:$0xff] }
 0xae3   : > { %5879 = vmatprep.subr.mxu0 %v5722_v58  ;;  %5919 = vmatpush1.msra.mxu1 %v5753_v44 }
 0xae4   : > { %5880 = vmatpush2.msra.mxu0 %v5721_v56 }
 0xae5   : > { %5881 = vmatprep.subr.mxu0 %v5720_v40  ;;  %v5752_v40 = vld [vmem:[#allocation41 + $0x228] sm:$0xff] }
 0xae6   : > { %v5178_v0 = vpop.f32.mrf.mxu0  ;;  %5882 = vmatpush2.msra.mxu0 %v5719_v60  ;;  %5920 = vmatprep.subr.mxu1 %v5752_v40 }
 0xae7   : > { %v5179_v57 = vadd.f32 %v5178_v0, %v5108_v1  ;;  %5883 = vmatprep.subr.mxu0 %v5718_v33  ;;  %5921 = vmatpush1.msra.mxu1 %v5751_v31  ;;  %v5750_v0 = vld [vmem:[#allocation41 + $0x218] sm:$0xff]  ;;  %v5783_v31 = vld [vmem:[#allocation41 + $0x320] sm:$0xff] }
 0xae8   : > { %v5249_v11 = vpop.f32.mrf.mxu1  ;;  %v5180_v36 = vpop.f32.mrf.mxu0  ;;  %5884 = vmatpush2.msra.mxu0 %v5717_v4  ;;  %5922 = vmatprep.subr.mxu1 %v5750_v0  ;;  %v5780_v0 = vld [vmem:[#allocation41 + $0x308] sm:$0xff] }
 0xae9   : > { %v5250_v30 = vadd.f32 %v5249_v11, %v5179_v57  ;;  %v5181_v9 = vadd.f32 %v5180_v36, %v5110_v25  ;;  %5885 = vmatprep.subr.mxu0 %v5716_v39  ;;  %v5749_v25 = vld [vmem:[#allocation41 + $0x210] sm:$0xff]  ;;  %v5748_v11 = vld [vmem:[#allocation41 + $0x208] sm:$0xff] }
 0xaea   : > { %v5251_v2 = vpop.f32.mrf.mxu1  ;;  %5886 = vmatpush2.msra.mxu0 %v5715_v52  ;;  %5923 = vmatpush1.msra.mxu1 %v5749_v25  ;;  %v5747_v52 = vld [vmem:[#allocation41 + $0x200] sm:$0xff] }
 0xaeb   : > { %v9626_v26 = vmax.f32 %v5250_v30, 0.0  ;;  %v5252_v28 = vadd.f32 %v5251_v2, %v5181_v9  ;;  %5924 = vmatprep.subr.mxu1 %v5748_v11  ;;  %v5810_v9 = vld [vmem:[#allocation41 + $0x3f8] sm:$0xff] }
 0xaec   : > { %5925 = vmatpush1.msra.mxu1 %v5747_v52 }
 0xaed   : > { %v5542_v34 = vrot.slane %v9626_v26, 4  ;;  %v5571_v24 = vmul.f32 %v9626_v26, %v9626_v26  ;;  %v9631_v62 = vmax.f32 %v5252_v28, 0.0  ;;  %5926 = vmatprep.subr.mxu1 %v5810_v9 }
 0xaee   : > { %5927 = vmatpush2.msra.mxu1 %v5809_v38 }
 0xaef   : > { %v5543_v20 = vadd.f32 %v5542_v34, %v9626_v26  ;;  %v5575_v17 = vrot.slane %v5571_v24, 4  ;;  %v5548_v23 = vrot.slane %v9631_v62, 4  ;;  %v5572_v47 = vmul.f32 %v9631_v62, %v9631_v62  ;;  %5928 = vmatprep.subr.mxu1 %v5808_v55 }
 0xaf1   : > { %v5544_v18 = vrot.slane %v5543_v20, 2  ;;  %v5576_v21 = vadd.f32 %v5575_v17, %v5571_v24  ;;  %v5549_v46 = vadd.f32 %v5548_v23, %v9631_v62  ;;  %v5581_v12 = vrot.slane %v5572_v47, 4  ;;  %v5807_v24 = vld [vmem:[#allocation41 + $0x3e0] sm:$0xff]  ;;  %v5804_v17 = vld [vmem:[#allocation41 + $0x3c8] sm:$0xff] }
 0xaf2   : > { %5929 = vmatpush2.msra.mxu1 %v5807_v24  ;;  %v5803_v23 = vld [vmem:[#allocation41 + $0x3c0] sm:$0xff] }
 0xaf3   : > { %v5545_v13 = vadd.f32 %v5544_v18, %v5543_v20  ;;  %v5577_v54 = vrot.slane %v5576_v21, 2  ;;  %v5550_v48 = vrot.slane %v5549_v46, 2  ;;  %v5582_v19 = vadd.f32 %v5581_v12, %v5572_v47  ;;  %5930 = vmatprep.subr.mxu1 %v5806_v43  ;;  %v5805_v20 = vld [vmem:[#allocation41 + $0x3d0] sm:$0xff]  ;;  %v5802_v47 = vld [vmem:[#allocation41 + $0x3b8] sm:$0xff]  ;;  %v5799_v18 = vld [vmem:[#allocation41 + $0x3a0] sm:$0xff] }
 0xaf4   : > { %5931 = vmatpush2.msra.mxu1 %v5805_v20  ;;  %v5796_v12 = vld [vmem:[#allocation41 + $0x388] sm:$0xff] }
 0xaf5   : > { %v5546_v53 = vrot.slane %v5545_v13, 1  ;;  %v5578_v6 = vadd.f32 %v5577_v54, %v5576_v21  ;;  %v5551_v51 = vadd.f32 %v5550_v48, %v5549_v46  ;;  %v5583_v14 = vrot.slane %v5582_v19, 2  ;;  %5932 = vmatprep.subr.mxu1 %v5804_v17  ;;  %v5798_v21 = vld [vmem:[#allocation41 + $0x398] sm:$0xff]  ;;  %v5797_v46 = vld [vmem:[#allocation41 + $0x390] sm:$0xff] }
 0xaf6   : > { %5933 = vmatpush2.msra.mxu1 %v5803_v23  ;;  %v5794_v54 = vld [vmem:[#allocation41 + $0x378] sm:$0xff] }
 0xaf7   : > { %v5547_v63 = vadd.f32 %v5546_v53, %v5545_v13  ;;  %v5579_v35 = vrot.slane %v5578_v6, 1  ;;  %v5552_v61 = vrot.slane %v5551_v51, 1  ;;  %v5584_v3 = vadd.f32 %v5583_v14, %v5582_v19  ;;  %5934 = vmatprep.subr.mxu1 %v5802_v47  ;;  %v5793_v19 = vld [vmem:[#allocation41 + $0x370] sm:$0xff]  ;;  %v5792_v53 = vld [vmem:[#allocation41 + $0x368] sm:$0xff] }
 0xaf8   : > { %5935 = vmatpush2.msra.mxu1 %v5801_v10  ;;  %v9656_v14 = vld [vmem:[#allocation32] sm:$0xf] }
 0xaf9   : > { %v9638_v49 = vmul.f32 0.125, %v5547_v63  ;;  %v5580_v58 = vadd.f32 %v5579_v35, %v5578_v6  ;;  %v5553_v56 = vadd.f32 %v5552_v61, %v5551_v51  ;;  %v5585_v42 = vrot.slane %v5584_v3, 1  ;;  %5936 = vmatprep.subr.mxu1 %v5800_v15  ;;  %v5789_v61 = vld [vmem:[#allocation41 + $0x350] sm:$0xff] }
 0xafa   : > { %5937 = vmatpush2.msra.mxu1 %v5799_v18  ;;  %v5640_v51 = vrot.slane %v9646_v37, %v10053_v29  ;;  %v5666_v35 = vrot.slane %v9656_v14, %v10053_v29 }
 0xafb   : > { %v5599_v60 = vmul.f32 0.125, %v5580_v58  ;;  %v5603_v1 = vmul.f32 %v9638_v49, %v9638_v49  ;;  %v9642_v33 = vmul.f32 0.125, %v5553_v56  ;;  %v5586_v4 = vadd.f32 %v5585_v42, %v5584_v3  ;;  %5938 = vmatprep.subr.mxu1 %v5798_v21  ;;  %v5786_v58 = vld [vmem:[#allocation41 + $0x338] sm:$0xff]  ;;  %v5785_v56 = vld [vmem:[#allocation41 + $0x330] sm:$0xff]  ;;  %v5784_v42 = vld [vmem:[#allocation41 + $0x328] sm:$0xff] }
 0xafc   : > { %5939 = vmatpush2.msra.mxu1 %v5797_v46  ;;  %v5615_v13 = vsub.f32 %v9626_v26, %v9638_v49  ;;  %v5791_v26 = vld [vmem:[#allocation41 + $0x360] sm:$0xff] }
 0xafd   : > { %v5607_v57 = vsub.f32 %v5599_v60, %v5603_v1  ;;  %v5604_v39 = vmul.f32 %v9642_v33, %v9642_v33  ;;  %v5600_v36 = vmul.f32 0.125, %v5586_v4  ;;  %5940 = vmatprep.subr.mxu1 %v5796_v12  ;;  %v5616_v6 = vsub.f32 %v9631_v62, %v9642_v33  ;;  %v5787_v49 = vld [vmem:[#allocation41 + $0x340] sm:$0xff]  ;;  %v5782_v1 = vld [vmem:[#allocation41 + $0x318] sm:$0xff]  ;;  %v5781_v33 = vld [vmem:[#allocation41 + $0x310] sm:$0xff] }
 0xafe   : > { %5941 = vmatpush2.msra.mxu1 %v5795_v59  ;;  %v5662_v62 = vrot.slane %v9656_v14, %v10052_v50  ;;  %v5779_v4 = vld [vmem:[#allocation41 + $0x300] sm:$0xff] }
 0xaff   : > { %v5611_v30 = vmax.f32 %v5607_v57, 0.0  ;;  %v5608_v2 = vsub.f32 %v5600_v36, %v5604_v39  ;;  %5942 = vmatprep.subr.mxu1 %v5794_v54  ;;  %v4961_v57 = vrot.slane %v9620_v41, %v10054_v45  ;;  %v4965_v39 = vrot.slane %v9620_v41, %v10055_v22 }
 0xb00   : > { %5943 = vmatpush2.msra.mxu1 %v5793_v19 }
 0xb01   : > { %v5619_v28 = vadd.f32 1e-05, %v5611_v30  ;;  %v5612_v34 = vmax.f32 %v5608_v2, 0.0  ;;  %5944 = vmatprep.subr.mxu1 %v5792_v53 }
 0xb02   : > { %5945 = vmatpush2.msra.mxu1 %v5791_v26 }
 0xb03   : > { %7133 = vrsqrt.f32 %v5619_v28  ;;  %v5620_v27 = vadd.f32 1e-05, %v5612_v34  ;;  %5946 = vmatprep.subr.mxu1 %v5790_v16 }
 0xb04   : > { %5947 = vmatpush2.msra.mxu1 %v5789_v61 }
 0xb05   : > { %7135 = vrsqrt.f32 %v5620_v27  ;;  %5948 = vmatprep.subr.mxu1 %v5788_v8 }
 0xb06   : > { %5949 = vmatpush2.msra.mxu1 %v5787_v49 }
 0xb07   : > { %5950 = vmatprep.subr.mxu1 %v5786_v58 }
 0xb08   : > { %5951 = vmatpush2.msra.mxu1 %v5785_v56 }
 0xb09   : > { %5952 = vmatprep.subr.mxu1 %v5784_v42 }
 0xb0a   : > { %5953 = vmatpush2.msra.mxu1 %v5783_v31 }
 0xb0b   : > { %5954 = vmatprep.subr.mxu1 %v5782_v1 }
 0xb0c   : > { %5955 = vmatpush2.msra.mxu1 %v5781_v33 }
 0xb0d   : > { %5956 = vmatprep.subr.mxu1 %v5780_v0 }
 0xb0e   : > { %5957 = vmatpush2.msra.mxu1 %v5779_v4 }
 0xb10   : > { %v7134_v48 = vpop.eup %7133 }
 0xb11   : > { %v5627_v7 = vmul.f32 %v7134_v48, %v5615_v13 }
 0xb12   : > { %v7136_v5 = vpop.eup %7135 }
 0xb13   : > { %v5628_v63 = vmul.f32 %v7136_v5, %v5616_v6  ;;  %v5653_v3 = vmul.f32 %v5636_v32, %v5627_v7 }
 0xb15   : > { %v5654_v44 = vmul.f32 %v5640_v51, %v5628_v63  ;;  %v5679_v60 = vadd.f32 %v5662_v62, %v5653_v3 }
 0xb17   : > { %v5680_v40 = vadd.f32 %v5666_v35, %v5654_v44 }
 0xb19   : > { %5887 = vmatprep.mubr.f32.mxu0 %v5680_v40 }
 0xb1a   : > { %5888 = vmatmul.mubr.f32.vlgmr.msra.gmra.mxu0 %v5679_v60 }
 0xb28   : > { %v5320_v25 = vpop.f32.mrf.mxu0 }
 0xb29   : > { %v5321_v52 = vadd.f32 %v5320_v25, %v4961_v57 }
 0xb2a   : > { %v5391_v11 = vpop.f32.mrf.mxu1  ;;  %v5322_v36 = vpop.f32.mrf.mxu0 }
 0xb2b   : > { %v5323_v30 = vadd.f32 %v5322_v36, %v4965_v39  ;;  %v5392_v2 = vadd.f32 %v5391_v11, %v5321_v52  ;;  %v5644_v11 = vrot.slane %v9646_v37, %v10054_v45  ;;  %v5648_v52 = vrot.slane %v9646_v37, %v10055_v22  ;;  %v6054_v37 = vld [vmem:[%s10082_s0 + $0x78] sm:$0xff] }
 0xb2c   : > { %v5393_v9 = vpop.f32.mrf.mxu1 }
 0xb2d   : > { %v5394_v55 = vadd.f32 %v5393_v9, %v5323_v30 }
 0xb6a   : > { %v5462_v38 = vpop.f32.mrf.mxu0 }
 0xb6b   : > { %v5533_v28 = vpop.f32.mrf.mxu1  ;;  %v5463_v34 = vadd.f32 %v5462_v38, %v5392_v2  ;;  %v5674_v2 = vrot.slane %v9656_v14, %v10055_v22  ;;  %v6069_v22 = vld [vmem:[%s10082_s0 + $0xf0] sm:$0xff] }
 0xb6c   : > { %v5464_v24 = vpop.f32.mrf.mxu0 }
 0xb6d   : > { %v5534_v43 = vadd.f32 %v5533_v28, %v5463_v34  ;;  %v5465_v27 = vadd.f32 %v5464_v24, %v5394_v55  ;;  %v5535_v20 = vpop.f32.mrf.mxu1  ;;  %v5670_v28 = vrot.slane %v9656_v14, %v10054_v45  ;;  %v6053_v45 = vld [vmem:[%s10082_s0 + $0x70] sm:$0xff]  ;;  %v6068_v14 = vld [vmem:[%s10082_s0 + $0xe8] sm:$0xff] }
 0xb6f   : > { %v5540_v17 = vmax.f32 %v5534_v43, 0.0  ;;  %v5536_v23 = vadd.f32 %v5535_v20, %v5465_v27  ;;  %v6070_v43 = vld [vmem:[%s10082_s0 + $0xf8] sm:$0xff]  ;;  %v6052_v27 = vld [vmem:[%s10082_s0 + $0x68] sm:$0xff]  ;;  %v6067_v20 = vld [vmem:[%s10082_s0 + $0xe0] sm:$0xff] }
 0xb70   : > { %6661 = vmatprep.subr.mxu0 %v6070_v43 }
 0xb71   : > { %v5554_v47 = vrot.slane %v5540_v17, 4  ;;  %v5573_v10 = vmul.f32 %v5540_v17, %v5540_v17  ;;  %v5541_v15 = vmax.f32 %v5536_v23, 0.0  ;;  %6662 = vmatpush3.msra.mxu0 %v6054_v37  ;;  %v6066_v23 = vld [vmem:[%s10082_s0 + $0xd8] sm:$0xff] }
 0xb72   : > { %6663 = vmatprep.subr.mxu0 %v6069_v22 }
 0xb73   : > { %v5555_v41 = vadd.f32 %v5554_v47, %v5540_v17  ;;  %v5587_v18 = vrot.slane %v5573_v10, 4  ;;  %v5560_v21 = vrot.slane %v5541_v15, 4  ;;  %v5574_v46 = vmul.f32 %v5541_v15, %v5541_v15  ;;  %6664 = vmatpush3.msra.mxu0 %v6053_v45  ;;  %v6050_v47 = vld [vmem:[%s10082_s0 + $0x58] sm:$0xff] }
 0xb74   : > { %6665 = vmatprep.subr.mxu0 %v6068_v14 }
 0xb75   : > { %v5556_v12 = vrot.slane %v5555_v41, 2  ;;  %v5588_v59 = vadd.f32 %v5587_v18, %v5573_v10  ;;  %v5561_v13 = vadd.f32 %v5560_v21, %v5541_v15  ;;  %v5593_v54 = vrot.slane %v5574_v46, 4  ;;  %6666 = vmatpush3.msra.mxu0 %v6052_v27  ;;  %v6065_v10 = vld [vmem:[%s10082_s0 + $0xd0] sm:$0xff]  ;;  %v6048_v18 = vld [vmem:[%s10082_s0 + $0x48] sm:$0xff]  ;;  %v6063_v21 = vld [vmem:[%s10082_s0 + $0xc0] sm:$0xff] }
 0xb76   : > { %6667 = vmatprep.subr.mxu0 %v6067_v20 }
 0xb77   : > { %v5557_v48 = vadd.f32 %v5556_v12, %v5555_v41  ;;  %v5589_v19 = vrot.slane %v5588_v59, 2  ;;  %v5562_v7 = vrot.slane %v5561_v13, 2  ;;  %v5594_v32 = vadd.f32 %v5593_v54, %v5574_v46  ;;  %v6064_v41 = vld [vmem:[%s10082_s0 + $0xc8] sm:$0xff]  ;;  %v6047_v46 = vld [vmem:[%s10082_s0 + $0x40] sm:$0xff]  ;;  %v6062_v12 = vld [vmem:[%s10082_s0 + $0xb8] sm:$0xff] }
 0xb78   : > { %v6045_v54 = vld [vmem:[%s10082_s0 + $0x30] sm:$0xff] }
 0xb79   : > { %v5558_v53 = vrot.slane %v5557_v48, 1  ;;  %v5590_v6 = vadd.f32 %v5589_v19, %v5588_v59  ;;  %v5563_v51 = vadd.f32 %v5562_v7, %v5561_v13  ;;  %v5595_v26 = vrot.slane %v5594_v32, 2  ;;  %v6046_v59 = vld [vmem:[%s10082_s0 + $0x38] sm:$0xff]  ;;  %v6061_v13 = vld [vmem:[%s10082_s0 + $0xb0] sm:$0xff]  ;;  %v6044_v19 = vld [vmem:[%s10082_s0 + $0x28] sm:$0xff] }
 0xb7a   : > { %v6059_v7 = vld [vmem:[%s10082_s0 + $0xa0] sm:$0xff] }
 0xb7b   : > { %v5559_v5 = vadd.f32 %v5558_v53, %v5557_v48  ;;  %v5591_v16 = vrot.slane %v5590_v6, 1  ;;  %v5564_v63 = vrot.slane %v5563_v51, 1  ;;  %v5596_v35 = vadd.f32 %v5595_v26, %v5594_v32  ;;  %v6060_v48 = vld [vmem:[%s10082_s0 + $0xa8] sm:$0xff]  ;;  %v6043_v32 = vld [vmem:[%s10082_s0 + $0x20] sm:$0xff]  ;;  %v6058_v53 = vld [vmem:[%s10082_s0 + $0x98] sm:$0xff] }
 0xb7c   : > { %v6041_v26 = vld [vmem:[%s10082_s0 + $0x10] sm:$0xff] }
 0xb7d   : > { %v5569_v61 = vmul.f32 0.125, %v5559_v5  ;;  %v5592_v3 = vadd.f32 %v5591_v16, %v5590_v6  ;;  %v5565_v62 = vadd.f32 %v5564_v63, %v5563_v51  ;;  %v5597_v8 = vrot.slane %v5596_v35, 1  ;;  %v6042_v6 = vld [vmem:[%s10082_s0 + $0x18] sm:$0xff]  ;;  %v6057_v51 = vld [vmem:[%s10082_s0 + $0x90] sm:$0xff]  ;;  %v6056_v5 = vld [vmem:[%s10082_s0 + $0x88] sm:$0xff] }
 0xb7e   : > { %v6040_v16 = vld [vmem:[%s10082_s0 + $0x8] sm:$0xff]  ;;  %v6055_v63 = vld [vmem:[%s10082_s0 + $0x80] sm:$0xff] }
 0xb7f   : > { %v5601_v44 = vmul.f32 0.125, %v5592_v3  ;;  %v5605_v49 = vmul.f32 %v5569_v61, %v5569_v61  ;;  %v5570_v58 = vmul.f32 0.125, %v5565_v62  ;;  %v5598_v56 = vadd.f32 %v5597_v8, %v5596_v35  ;;  %v6039_v35 = vld [vmem:[%s10082_s0] sm:$0xff] }
 0xb80   : > { %v5617_v25 = vsub.f32 %v5540_v17, %v5569_v61  ;;  %v6051_v17 = vld [vmem:[%s10082_s0 + $0x60] sm:$0xff] }
 0xb81   : > { %v5609_v42 = vsub.f32 %v5601_v44, %v5605_v49  ;;  %v5606_v40 = vmul.f32 %v5570_v58, %v5570_v58  ;;  %v5602_v31 = vmul.f32 0.125, %v5598_v56  ;;  %v5618_v36 = vsub.f32 %v5541_v15, %v5570_v58  ;;  %6668 = vmatpush3.msra.mxu0 %v6051_v17  ;;  %v6049_v15 = vld [vmem:[%s10082_s0 + $0x50] sm:$0xff]  ;;  %v5811_v61 = vld [vmem:[#allocation33] sm:$0x3] }
 0xb82   : > { %6669 = vmatprep.subr.mxu0 %v6066_v23  ;;  %v5816_v62 = vrot.slane %v5811_v61, %v10052_v50  ;;  %v5820_v8 = vrot.slane %v5811_v61, %v10053_v29 }
 0xb83   : > { %v5613_v60 = vmax.f32 %v5609_v42, 0.0  ;;  %v5610_v1 = vsub.f32 %v5602_v31, %v5606_v40  ;;  %6670 = vmatpush3.msra.mxu0 %v6050_v47 }
 0xb84   : > { %6671 = vmatprep.subr.mxu0 %v6065_v10 }
 0xb85   : > { %v5621_v33 = vadd.f32 1e-05, %v5613_v60  ;;  %v5614_v0 = vmax.f32 %v5610_v1, 0.0  ;;  %6672 = vmatpush3.msra.mxu0 %v6049_v15 }
 0xb86   : > { %6673 = vmatprep.subr.mxu0 %v6064_v41 }
 0xb87   : > { %7137 = vrsqrt.f32 %v5621_v33  ;;  %v5622_v4 = vadd.f32 1e-05, %v5614_v0  ;;  %6674 = vmatpush3.msra.mxu0 %v6048_v18 }
 0xb88   : > { %6675 = vmatprep.subr.mxu0 %v6063_v21 }
 0xb89   : > { %7139 = vrsqrt.f32 %v5622_v4  ;;  %6676 = vmatpush3.msra.mxu0 %v6047_v46 }
 0xb8a   : > { %6677 = vmatprep.subr.mxu0 %v6062_v12 }
 0xb8b   : > { %6678 = vmatpush3.msra.mxu0 %v6046_v59 }
 0xb8c   : > { %6679 = vmatprep.subr.mxu0 %v6061_v13 }
 0xb8d   : > { %6680 = vmatpush3.msra.mxu0 %v6045_v54 }
 0xb8e   : > { %6681 = vmatprep.subr.mxu0 %v6060_v48 }
 0xb8f   : > { %6682 = vmatpush3.msra.mxu0 %v6044_v19  ;;  %v6011_v19 = vld [vmem:[#allocation35] sm:$0x3] }
 0xb90   : > { %6683 = vmatprep.subr.mxu0 %v6059_v7 }
 0xb91   : > { %6684 = vmatpush3.msra.mxu0 %v6043_v32 }
 0xb92   : > { %6685 = vmatprep.subr.mxu0 %v6058_v53 }
 0xb93   : > { %6686 = vmatpush3.msra.mxu0 %v6042_v6  ;;  %v6016_v6 = vrot.slane %v6011_v19, %v10052_v50 }
 0xb94   : > { %v7138_v57 = vpop.eup %7137  ;;  %6687 = vmatprep.subr.mxu0 %v6057_v51 }
 0xb95   : > { %v5629_v39 = vmul.f32 %v7138_v57, %v5617_v25  ;;  %6688 = vmatpush3.msra.mxu0 %v6041_v26  ;;  %v6020_v26 = vrot.slane %v6011_v19, %v10053_v29 }
 0xb96   : > { %v7140_v30 = vpop.eup %7139  ;;  %6689 = vmatprep.subr.mxu0 %v6056_v5  ;;  %v6025_v5 = vld [vmem:[#allocation36] sm:$0x3] }
 0xb97   : > { %v5630_v9 = vmul.f32 %v7140_v30, %v5618_v36  ;;  %v5655_v38 = vmul.f32 %v5644_v11, %v5629_v39  ;;  %6690 = vmatpush3.msra.mxu0 %v6040_v16  ;;  %v6030_v61 = vrot.slane %v6025_v5, %v10052_v50 }
 0xb98   : > { %6691 = vmatprep.subr.mxu0 %v6055_v63 }
 0xb99   : > { %v5656_v55 = vmul.f32 %v5648_v52, %v5630_v9  ;;  %v5681_v24 = vadd.f32 %v5670_v28, %v5655_v38  ;;  %6692 = vmatpush3.msra.mxu0 %v6039_v35  ;;  %v6034_v35 = vrot.slane %v6025_v5, %v10053_v29 }
 0xb9b   : > { %v5682_v34 = vadd.f32 %v5674_v2, %v5656_v55 }
 0xb9d   : > { %5958 = vmatprep.mubr.f32.mxu1 %v5682_v34 }
 0xb9e   : > { %5959 = vmatmul.mubr.f32.vlgmr.msra.gmra.mxu1 %v5681_v24 }
 0xbda   : > { %v5889_v3 = vpop.f32.mrf.mxu0 }
 0xbdb   : > { %v5890_v49 = vadd.f32 %v5889_v3, %v5816_v62 }
 0xbdc   : > { %v5891_v44 = vpop.f32.mrf.mxu0 }
 0xbdd   : > { %v5892_v56 = vadd.f32 %v5891_v44, %v5820_v8 }
 0xc5e   : > { %v5960_v58 = vpop.f32.mrf.mxu1 }
 0xc5f   : > { %v5961_v42 = vadd.f32 %v5960_v58, %v5890_v49  ;;  %v6589_v58 = vld [vmem:[#allocation38] ss:$0 sm:$0xff] }
 0xc60   : > { %v5962_v40 = vpop.f32.mrf.mxu1 }
 0xc61   : > { %v5965_v31 = vmax.f32 %v5961_v42, 0.0  ;;  %v5963_v60 = vadd.f32 %v5962_v40, %v5892_v56 }
 0xc63   : > { %v5967_v1 = vrot.slane %v5965_v31, 4  ;;  %v5981_v33 = vmul.f32 %v5965_v31, %v5965_v31  ;;  %v5966_v0 = vmax.f32 %v5963_v60, 0.0 }
 0xc65   : > { %v5968_v4 = vadd.f32 %v5967_v1, %v5965_v31  ;;  %v5983_v25 = vrot.slane %v5981_v33, 4  ;;  %v5973_v57 = vrot.slane %v5966_v0, 4  ;;  %v5982_v39 = vmul.f32 %v5966_v0, %v5966_v0 }
 0xc67   : > { %v5969_v11 = vrot.slane %v5968_v4, 2  ;;  %v5984_v36 = vadd.f32 %v5983_v25, %v5981_v33  ;;  %v5974_v52 = vadd.f32 %v5973_v57, %v5966_v0  ;;  %v5989_v30 = vrot.slane %v5982_v39, 4 }
 0xc69   : > { %v5970_v9 = vadd.f32 %v5969_v11, %v5968_v4  ;;  %v5985_v2 = vrot.slane %v5984_v36, 2  ;;  %v5975_v38 = vrot.slane %v5974_v52, 2  ;;  %v5990_v28 = vadd.f32 %v5989_v30, %v5982_v39 }
 0xc6b   : > { %v5971_v55 = vrot.slane %v5970_v9, 1  ;;  %v5986_v34 = vadd.f32 %v5985_v2, %v5984_v36  ;;  %v5976_v24 = vadd.f32 %v5975_v38, %v5974_v52  ;;  %v5991_v43 = vrot.slane %v5990_v28, 2 }
 0xc6d   : > { %v5972_v37 = vadd.f32 %v5971_v55, %v5970_v9  ;;  %v5987_v22 = vrot.slane %v5986_v34, 1  ;;  %v5977_v45 = vrot.slane %v5976_v24, 1  ;;  %v5992_v14 = vadd.f32 %v5991_v43, %v5990_v28 }
 0xc6f   : > { %v5979_v27 = vmul.f32 0.125, %v5972_v37  ;;  %v5988_v20 = vadd.f32 %v5987_v22, %v5986_v34  ;;  %v5978_v17 = vadd.f32 %v5977_v45, %v5976_v24  ;;  %v5993_v23 = vrot.slane %v5992_v14, 1 }
 0xc71   : > { %v5995_v47 = vmul.f32 0.125, %v5988_v20  ;;  %v5997_v10 = vmul.f32 %v5979_v27, %v5979_v27  ;;  %v5980_v15 = vmul.f32 0.125, %v5978_v17  ;;  %v5994_v41 = vadd.f32 %v5993_v23, %v5992_v14 }
 0xc72   : > { %v6003_v7 = vsub.f32 %v5965_v31, %v5979_v27 }
 0xc73   : > { %v5999_v18 = vsub.f32 %v5995_v47, %v5997_v10  ;;  %v5998_v21 = vmul.f32 %v5980_v15, %v5980_v15  ;;  %v5996_v46 = vmul.f32 0.125, %v5994_v41  ;;  %v6004_v51 = vsub.f32 %v5966_v0, %v5980_v15 }
 0xc75   : > { %v6001_v12 = vmax.f32 %v5999_v18, 0.0  ;;  %v6000_v59 = vsub.f32 %v5996_v46, %v5998_v21 }
 0xc77   : > { %v6005_v13 = vadd.f32 1e-05, %v6001_v12  ;;  %v6002_v54 = vmax.f32 %v6000_v59, 0.0 }
 0xc79   : > { %7141 = vrsqrt.f32 %v6005_v13  ;;  %v6006_v48 = vadd.f32 1e-05, %v6002_v54 }
 0xc7b   : > { %7143 = vrsqrt.f32 %v6006_v48 }
 0xc86   : > { %v7142_v32 = vpop.eup %7141 }
 0xc87   : > { %v6009_v53 = vmul.f32 %v7142_v32, %v6003_v7 }
 0xc88   : > { %v7144_v16 = vpop.eup %7143 }
 0xc89   : > { %v6010_v63 = vmul.f32 %v7144_v16, %v6004_v51  ;;  %v6023_v3 = vmul.f32 %v6016_v6, %v6009_v53 }
 0xc8b   : > { %v6024_v62 = vmul.f32 %v6020_v26, %v6010_v63  ;;  %v6037_v44 = vadd.f32 %v6030_v61, %v6023_v3 }
 0xc8d   : > { %v6038_v8 = vadd.f32 %v6034_v35, %v6024_v62 }
 0xc8f   : > { %6142 = vmatprep.mubr.f32.mxu0 %v6038_v8 }
 0xc90   : > { %6143 = vmatmul.mubr.f32.vlgmr.msra.gmra.mxu0 %v6037_v44 }
 0xd50   : > { %v6693_v49 = vpop.f32.mrf.mxu0 }
 0xd52   : > { %v6694_v56 = vpop.f32.mrf.mxu0 }
 0xd53   : > { %v6695_v42 = vadd.f32 %v6694_v56, %v6693_v49 }
 0xd55   : > { %v6145_v40 = vadd.f32 %v6695_v42, %v6589_v58 }
 0xd57   : > { %6149 = vst.msk [vmem:[#allocation39] sm:$0xff] %vm6148_vm0, %v6145_v40 }
 0xd58 PF: > { %s10083_s15 = sld [smem:[#allocation64_spill]]  ;;  %s7843_s3 = smov [#allocation39]  }
 0xd59   : > { %s6157_s8 = sshll.u32 %s7843_s3, 4  ;;  %s6158_s8 = int_to_ptr.vmem [resolvable:$true] %s6157_s8 }
 0xd5a   : > { %s7679_s13 = scalar_lea.vmem %s6158_s8, 128  ;;  %p7686_p5 = scmp.lt.s32.totalorder %s6158_s8, %s6158_s8 }
 0xd5b   : > { %p7680_p11 = scmp.ne.s32.totalorder %s6158_s8, %s7679_s13  ;;  %p7687_p6 = scmp.lt.s32.totalorder %s7679_s13, %s7679_s13 }
 0xd5d   : > { %p7688_p8 = por %p7687_p6, %p7686_p5 }
 0xd5e   : > { %s10084_s18 = sadd.s32 4294967295, %s10083_s15  }
 0xd5f   : > { %p9778_p0 = scmp.eq.s32.totalorder %s10084_s18, 47 }
 0xd61   : > { %p7681_p4 = pnand %p7680_p11, %p9778_p0 }
 0xd63   : > { %p7682_p7 = pneg %p7681_p4 }
 0xd65   : > { %p7689_p9 = pnand %p7688_p8, %p7682_p7 }
 0xd67   : > { %7692 = shalt.err (!%p7689_p9)
}
 0xd68   : > { %s10086_s29 = sld [smem:[#allocation128_spill]] }
 0xd6e   : > { %6911 = dma.vmem_to_hbm [thread:$0]  (%p9778_p0), %s6158_s8, 128, %s10086_s29, [#allocation11]  }
 0xd6f   : > { %7776 = dma.done.wait (%p9778_p0), [#allocation11], 128  }
 0xd70   : > { %7778 = vsyncadd (%p9778_p0), [#allocation11], 4294967168 }
 0xd71 PF: > { %s10087_s4 = sld [smem:[#allocation64_spill]]  ;;  %s10089_s30 = smov %s7797_s5 }
 0xd72   : > { %s10090_s24 = smov %s7801_s1  ;;  %s10092_s5 = smov %s10100_s26 }
 0xd73   : > { %s10093_s1 = smov %s10104_s21 }
 0xd77   : > { %s44_s2 = sadd.s32 1, %s10087_s4   ;;  %s10088_s4 = smov %s7793_s25 }
 0xd78   : > { %p41_p1 = scmp.ge.s32.totalorder %s44_s2, 50   ;;  %s10091_s25 = smov %s10096_s17 }
 0xd79   : > { %s10094_s26 = smov %s44_s2 }
 0xd7a   :  { %43 = sbr.rel (!%p41_p1) target bundleno = 32 (0x20), region = 247 }
 0xd7f   :  { %6170 = vsyncpa [#allocation10], 1 }
 0xd80   :  { %6172 = vsyncpa [#allocation10 + $0x1], 1 }
 0xd81   :  { %6173 = vsyncpa [#allocation13], 1 }
 0xd82   :  { %6174 = vsyncpa [#allocation16], 1 }
 0xd83   :  { %6175 = vsyncpa [#allocation19], 1 }
 0xd84   :  { %6176 = vsyncpa [#allocation22], 1 }
 0xd85   :  { %6177 = vsyncpa [#allocation25], 1 }
 0xd86   :  { %6178 = vsyncpa [#allocation28], 1 }
 0xd87   :  { %6179 = vsyncpa [#allocation31], 1 }
 0xd88   :  { %6180 = vsyncpa [#allocation34], 1 }
 0xd89   :  { %6181 = vsyncpa [#allocation37], 1 }
 0xd8a   :  { %6182 = vsyncpa [#allocation11], 1 }
 0xd8b   :  { %6184 = vsyncpa [#allocation11 + $0x1], 1 }

</bundles_post_ra>
